<compile_context>
chip_gen: v6e
topology: v6e:2x2x1
jax: 0.10.0
libtpu: 0.0.40
codegen_flags: <defaults>
</compile_context>

<pallas_src>
import functools

import jax
import jax.numpy as jnp
from jax.experimental import pallas as pl
from jax.experimental.pallas import tpu as pltpu


# ---------------------------------------------------------------------------
# Fused Conv2d(k=8, stride=1) + bias + ReLU + MaxPool2d(8, 8) kernel
# ---------------------------------------------------------------------------
def _conv_relu_pool_kernel(x_ref, w_ref, b_ref, o_ref, *, wo, po, qo):
    # x_ref: (Cin, Hp, Wp) f32   (one image, VMEM resident)
    # w_ref: (Cout, Cin*64) bf16 (rows ordered (kw, ci, kh))
    # b_ref: (Cout, 1) f32
    # o_ref: (Po, Qo, Cout) f32  (pooled output, NHWC-like)
    cin = x_ref.shape[0]
    cout = w_ref.shape[0]
    w = w_ref[...]                                           # (Cout, Cin*64) bf16
    b = b_ref[...]                                           # (Cout, 1) f32

    def row_body(p, carry):
        r0 = pl.multiple_of(p * 8, 8)
        # 16 input rows cover the 8 conv rows of this pool window (+7 for kh).
        xs = x_ref[:, pl.ds(r0, 16), :].astype(jnp.bfloat16)  # (Cin, 16, Wp)

        # kw lane-shifts hoisted out of the conv-row loop: built once, reused
        # by all 8 conv rows of the pool window.
        shifted = [xs[:, :, kw:kw + wo] for kw in range(8)]   # 8 x (Cin,16,Wo)

        acc = None
        for oh in range(8):                                   # 8 conv rows / pool row
            # in-VMEM im2col, patch rows ordered (kw, ci, kh) = weight order
            patch = jnp.concatenate(
                [s[:, oh:oh + 8, :].reshape(cin * 8, wo) for s in shifted],
                axis=0)                                       # (Cin*64, Wo) bf16
            y = jnp.dot(w, patch, preferred_element_type=jnp.float32)  # (Cout, Wo)
            acc = y if acc is None else jnp.maximum(acc, y)

        # bias + ReLU commute with the max over the pool window
        acc = jnp.maximum(acc + b, 0.0)                       # (Cout, Wo) f32
        accT = acc[:, : qo * 8].T                             # (Qo*8, Cout)
        pooled = jnp.max(accT.reshape(qo, 8, cout), axis=1)   # (Qo, Cout)
        o_ref[p] = pooled.astype(o_ref.dtype)
        return carry

    jax.lax.fori_loop(0, po, row_body, 0)


def conv_relu_pool(x, w_mat, b):
    """x: (N, Cin, H, W) f32, w_mat: (Cout, Cin*64) bf16 (rows (kw, ci, kh)),
    b: (Cout, 1) f32  ->  (N, Po, Qo, Cout) f32 pooled+relu'd conv output."""
    n, cin, h, w = x.shape
    cout, k = w_mat.shape
    assert k == cin * 64, (k, cin)
    wo = w - 7                       # conv output width
    po = (h - 7) // 8                # pooled output height (floor mode)
    qo = (w - 7) // 8                # pooled output width  (floor mode)
    # pad H (tiny, zero rows) so every pool row can load a full 16-row slab
    need_h = 8 * (po - 1) + 16
    if h < need_h:
        x = jnp.pad(x, ((0, 0), (0, 0), (0, need_h - h), (0, 0)))
    hp, wp = x.shape[2], x.shape[3]

    kernel = functools.partial(_conv_relu_pool_kernel, wo=wo, po=po, qo=qo)
    return pl.pallas_call(
        kernel,
        out_shape=jax.ShapeDtypeStruct((n, po, qo, cout), jnp.float32),
        grid=(n,),
        in_specs=[
            pl.BlockSpec((None, cin, hp, wp), lambda i: (i, 0, 0, 0)),
            pl.BlockSpec((cout, k), lambda i: (0, 0)),
            pl.BlockSpec((cout, 1), lambda i: (0, 0)),
        ],
        out_specs=pl.BlockSpec((None, po, qo, cout), lambda i: (i, 0, 0, 0)),
        compiler_params=pltpu.CompilerParams(dimension_semantics=("parallel",)),
    )(x, w_mat, b)


# ---------------------------------------------------------------------------
# Fused fc1 -> relu -> fc2 -> relu -> fc3 -> sigmoid kernel
# ---------------------------------------------------------------------------
def _fc_kernel(a_ref, w1_ref, b1_ref, w2_ref, b2_ref, w3_ref, b3_ref, o_ref):
    h = jnp.dot(a_ref[...], w1_ref[...],
                preferred_element_type=jnp.float32) + b1_ref[...]
    h = jnp.maximum(h, 0.0).astype(w2_ref.dtype)
    h = jnp.dot(h, w2_ref[...],
                preferred_element_type=jnp.float32) + b2_ref[...]
    h = jnp.maximum(h, 0.0).astype(w3_ref.dtype)
    h = jnp.dot(h, w3_ref[...],
                preferred_element_type=jnp.float32) + b3_ref[...]
    o_ref[...] = 1.0 / (1.0 + jnp.exp(-h))


def fc_head(feat, kp):
    """feat: (N, 784) f32 -> (N, 90) f32 (sigmoid output)."""
    m = feat.shape[0]
    m8 = ((m + 7) // 8) * 8
    a = feat
    if m8 != m:
        a = jnp.pad(a, ((0, m8 - m), (0, 0)))
    a = a.astype(jnp.bfloat16)
    w1, b1 = kp["fc1_w"], kp["fc1_b"]
    w2, b2 = kp["fc2_w"], kp["fc2_b"]
    w3, b3 = kp["fc3_w"], kp["fc3_b"]
    out = pl.pallas_call(
        _fc_kernel,
        out_shape=jax.ShapeDtypeStruct((m8, w3.shape[1]), jnp.float32),
        grid=(m8 // 8,),
        in_specs=[
            pl.BlockSpec((8, a.shape[1]), lambda i: (i, 0)),
            pl.BlockSpec(w1.shape, lambda i: (0, 0)),
            pl.BlockSpec(b1.shape, lambda i: (0, 0)),
            pl.BlockSpec(w2.shape, lambda i: (0, 0)),
            pl.BlockSpec(b2.shape, lambda i: (0, 0)),
            pl.BlockSpec(w3.shape, lambda i: (0, 0)),
            pl.BlockSpec(b3.shape, lambda i: (0, 0)),
        ],
        out_specs=pl.BlockSpec((8, w3.shape[1]), lambda i: (i, 0)),
        compiler_params=pltpu.CompilerParams(dimension_semantics=("parallel",)),
    )(a, w1, b1, w2, b2, w3, b3)
    return out[:m]


# ---------------------------------------------------------------------------
# Parameters (PyTorch layout) + one-time kernel-layout preparation
# ---------------------------------------------------------------------------
def init_params(key):
    ks = jax.random.split(key, 12)
    f32 = jnp.float32
    return {
        "conv1_w": 0.05 * jax.random.normal(ks[0], (6, 3, 8, 8), f32),
        "conv1_b": 0.05 * jax.random.normal(ks[1], (6,), f32),
        "conv2_w": 0.05 * jax.random.normal(ks[2], (16, 6, 8, 8), f32),
        "conv2_b": 0.05 * jax.random.normal(ks[3], (16,), f32),
        "fc1_w": 0.05 * jax.random.normal(ks[4], (520, 16 * 7 * 7), f32),
        "fc1_b": 0.05 * jax.random.normal(ks[5], (520,), f32),
        "fc2_w": 0.05 * jax.random.normal(ks[6], (190, 520), f32),
        "fc2_b": 0.05 * jax.random.normal(ks[7], (190,), f32),
        "fc3_w": 0.05 * jax.random.normal(ks[8], (90, 190), f32),
        "fc3_b": 0.05 * jax.random.normal(ks[9], (90,), f32),
    }


def prepare_params(p):
    """One-time conversion from PyTorch layout to kernel layout."""
    def conv_mat(w):
        cout, cin, kh, kw = w.shape
        # patch rows inside the kernel are ordered (kw, ci, kh)
        return jnp.transpose(w, (0, 3, 1, 2)).reshape(cout, cin * kh * kw)

    return {
        "c1_w": conv_mat(p["conv1_w"]).astype(jnp.bfloat16),
        "c1_b": p["conv1_b"].reshape(-1, 1).astype(jnp.float32),
        "c2_w": conv_mat(p["conv2_w"]).astype(jnp.bfloat16),
        "c2_b": p["conv2_b"].reshape(-1, 1).astype(jnp.float32),
        "fc1_w": p["fc1_w"].T.astype(jnp.bfloat16),    # (784, 520)
        "fc1_b": p["fc1_b"].reshape(1, -1).astype(jnp.float32),
        "fc2_w": p["fc2_w"].T.astype(jnp.bfloat16),    # (520, 190)
        "fc2_b": p["fc2_b"].reshape(1, -1).astype(jnp.float32),
        "fc3_w": p["fc3_w"].T.astype(jnp.bfloat16),    # (190, 90)
        "fc3_b": p["fc3_b"].reshape(1, -1).astype(jnp.float32),
    }


# ---------------------------------------------------------------------------
# The Net forward pass (Pallas)
# ---------------------------------------------------------------------------
@jax.jit
def net_forward(x, kp):
    # x: (N, 3, H, W) NCHW f32
    # NOTE: the PyTorch module's print(x.size()) debug statements are not
    # reproduced (no side-effect prints inside the jitted forward).
    n = x.shape[0]
    y1 = conv_relu_pool(x.astype(jnp.float32), kp["c1_w"], kp["c1_b"])
    #                                                    # (N, 63, 63, 6)
    x2 = jnp.transpose(y1, (0, 3, 1, 2))                 # (N, 6, 63, 63)  tiny
    y2 = conv_relu_pool(x2, kp["c2_w"], kp["c2_b"])      # (N, 7, 7, 16)
    # PyTorch view(-1, 16*7*7) flattens NCHW -> transpose back (tiny)
    feat = jnp.transpose(y2, (0, 3, 1, 2)).reshape(n, 16 * 7 * 7)
    return fc_head(feat, kp)                             # (N, 90)


# ---------------------------------------------------------------------------
# Pure-JAX reference of the PyTorch module (for correctness validation)
# ---------------------------------------------------------------------------
@jax.jit
def reference_forward(x, p):
    def conv(x, w, b):
        y = jax.lax.conv_general_dilated(
            x, w, (1, 1), "VALID",
            dimension_numbers=("NCHW", "OIHW", "NCHW"))
        return y + b.reshape(1, -1, 1, 1)

    def pool(x):
        return jax.lax.reduce_window(
            x, -jnp.inf, jax.lax.max, (1, 1, 8, 8), (1, 1, 8, 8), "VALID")

    y = pool(jax.nn.relu(conv(x, p["conv1_w"], p["conv1_b"])))
    y = pool(jax.nn.relu(conv(y, p["conv2_w"], p["conv2_b"])))
    y = y.reshape(y.shape[0], -1)                        # NCHW flatten, (N, 784)
    y = jax.nn.relu(y @ p["fc1_w"].T + p["fc1_b"])
    y = jax.nn.relu(y @ p["fc2_w"].T + p["fc2_b"])
    return jax.nn.sigmoid(y @ p["fc3_w"].T + p["fc3_b"])


if __name__ == "__main__":
    key = jax.random.PRNGKey(0)
    pkey, xkey = jax.random.split(key)
    params = init_params(pkey)
    kparams = prepare_params(params)
    # Architecture constrains the spatial size: fc1 expects 16*7*7 features,
    # which pins the input to (N, 3, 512, 512).  Batch kept small (2).
    x = jax.random.normal(xkey, (2, 3, 512, 512), jnp.float32)

    out = jax.block_until_ready(net_forward(x, kparams))
    assert out.shape == (2, 90), out.shape
    assert bool(jnp.all(jnp.isfinite(out)))
    assert bool(jnp.all((out >= 0.0) & (out <= 1.0)))    # sigmoid output range

    ref = jax.block_until_ready(reference_forward(x, params))
    max_err = float(jnp.max(jnp.abs(out - ref)))
    assert max_err < 8e-2, f"max |pallas - reference| = {max_err}"

    print("KERNEL_OK")
</pallas_src>

<mosaic_0001>
module attributes {stable_mosaic.version = 11 : i64} {
  func.func @_conv_relu_pool_kernel(%arg0: i32, %arg1: memref<1x3x512x512xf32, #tpu.memory_space<vmem>>, %arg2: memref<6x192xbf16, #tpu.memory_space<vmem>>, %arg3: memref<6x1xf32, #tpu.memory_space<vmem>>, %arg4: memref<1x63x63x6xf32, #tpu.memory_space<vmem>>) attributes {dimension_semantics = [#tpu.dimension_semantics<parallel>], iteration_bounds = array<i64: 2>, scalar_prefetch = 0 : i64, scratch_operands = 0 : i64, tpu.core_type = #tpu.core_type<tc>, window_params = [{transform_indices = @transform_0, window_bounds = array<i64: 1, 3, 512, 512>}, {pipeline_mode = #tpu.pipeline_mode<synchronous>, transform_indices = @transform_1, window_bounds = array<i64: 6, 192>}, {pipeline_mode = #tpu.pipeline_mode<synchronous>, transform_indices = @transform_2, window_bounds = array<i64: 6, 1>}, {transform_indices = @transform_3, window_bounds = array<i64: 1, 63, 63, 6>}]} {
    %c0 = arith.constant 0 : index
    %c0_0 = arith.constant 0 : index
    %0 = vector.load %arg2[%c0, %c0_0] : memref<6x192xbf16, #tpu.memory_space<vmem>>, vector<6x192xbf16>
    %c0_1 = arith.constant 0 : index
    %c0_2 = arith.constant 0 : index
    %1 = vector.load %arg3[%c0_1, %c0_2] : memref<6x1xf32, #tpu.memory_space<vmem>>, vector<6x1xf32>
    %c0_i32 = arith.constant 0 : i32
    %c63_i32 = arith.constant 63 : i32
    %2 = arith.addi %c0_i32, %c63_i32 : i32
    %c1_i32 = arith.constant 1 : i32
    scf.for %arg5 = %c0_i32 to %2 step %c1_i32  : i32 {
      %c8_i32 = arith.constant 8 : i32
      %3 = arith.muli %arg5, %c8_i32 : i32
      %4 = tpu.assume_multiple %3, 8 : i32
      %c0_4 = arith.constant 0 : index
      %c0_5 = arith.constant 0 : index
      %5 = arith.index_cast %4 : i32 to index
      %c0_6 = arith.constant 0 : index
      %6 = vector.load %arg1[%c0_4, %c0_5, %5, %c0_6] : memref<1x3x512x512xf32, #tpu.memory_space<vmem>>, vector<1x3x16x512xf32>
      %7 = vector.shape_cast %6 : vector<1x3x16x512xf32> to vector<3x16x512xf32>
      %8 = arith.truncf %7 : vector<3x16x512xf32> to vector<3x16x512xbf16>
      %9 = vector.extract_strided_slice %8 {offsets = [0, 0, 0], sizes = [3, 16, 505], strides = [1, 1, 1]} : vector<3x16x512xbf16> to vector<3x16x505xbf16>
      %10 = vector.extract_strided_slice %8 {offsets = [0, 0, 1], sizes = [3, 16, 505], strides = [1, 1, 1]} : vector<3x16x512xbf16> to vector<3x16x505xbf16>
      %11 = vector.extract_strided_slice %8 {offsets = [0, 0, 2], sizes = [3, 16, 505], strides = [1, 1, 1]} : vector<3x16x512xbf16> to vector<3x16x505xbf16>
      %12 = vector.extract_strided_slice %8 {offsets = [0, 0, 3], sizes = [3, 16, 505], strides = [1, 1, 1]} : vector<3x16x512xbf16> to vector<3x16x505xbf16>
      %13 = vector.extract_strided_slice %8 {offsets = [0, 0, 4], sizes = [3, 16, 505], strides = [1, 1, 1]} : vector<3x16x512xbf16> to vector<3x16x505xbf16>
      %14 = vector.extract_strided_slice %8 {offsets = [0, 0, 5], sizes = [3, 16, 505], strides = [1, 1, 1]} : vector<3x16x512xbf16> to vector<3x16x505xbf16>
      %15 = vector.extract_strided_slice %8 {offsets = [0, 0, 6], sizes = [3, 16, 505], strides = [1, 1, 1]} : vector<3x16x512xbf16> to vector<3x16x505xbf16>
      %16 = vector.extract_strided_slice %8 {offsets = [0, 0, 7], sizes = [3, 16, 505], strides = [1, 1, 1]} : vector<3x16x512xbf16> to vector<3x16x505xbf16>
      %17 = vector.extract_strided_slice %9 {offsets = [0, 0, 0], sizes = [3, 8, 505], strides = [1, 1, 1]} : vector<3x16x505xbf16> to vector<3x8x505xbf16>
      %18 = vector.shape_cast %17 : vector<3x8x505xbf16> to vector<24x505xbf16>
      %19 = vector.extract_strided_slice %10 {offsets = [0, 0, 0], sizes = [3, 8, 505], strides = [1, 1, 1]} : vector<3x16x505xbf16> to vector<3x8x505xbf16>
      %20 = vector.shape_cast %19 : vector<3x8x505xbf16> to vector<24x505xbf16>
      %21 = vector.extract_strided_slice %11 {offsets = [0, 0, 0], sizes = [3, 8, 505], strides = [1, 1, 1]} : vector<3x16x505xbf16> to vector<3x8x505xbf16>
      %22 = vector.shape_cast %21 : vector<3x8x505xbf16> to vector<24x505xbf16>
      %23 = vector.extract_strided_slice %12 {offsets = [0, 0, 0], sizes = [3, 8, 505], strides = [1, 1, 1]} : vector<3x16x505xbf16> to vector<3x8x505xbf16>
      %24 = vector.shape_cast %23 : vector<3x8x505xbf16> to vector<24x505xbf16>
      %25 = vector.extract_strided_slice %13 {offsets = [0, 0, 0], sizes = [3, 8, 505], strides = [1, 1, 1]} : vector<3x16x505xbf16> to vector<3x8x505xbf16>
      %26 = vector.shape_cast %25 : vector<3x8x505xbf16> to vector<24x505xbf16>
      %27 = vector.extract_strided_slice %14 {offsets = [0, 0, 0], sizes = [3, 8, 505], strides = [1, 1, 1]} : vector<3x16x505xbf16> to vector<3x8x505xbf16>
      %28 = vector.shape_cast %27 : vector<3x8x505xbf16> to vector<24x505xbf16>
      %29 = vector.extract_strided_slice %15 {offsets = [0, 0, 0], sizes = [3, 8, 505], strides = [1, 1, 1]} : vector<3x16x505xbf16> to vector<3x8x505xbf16>
      %30 = vector.shape_cast %29 : vector<3x8x505xbf16> to vector<24x505xbf16>
      %31 = vector.extract_strided_slice %16 {offsets = [0, 0, 0], sizes = [3, 8, 505], strides = [1, 1, 1]} : vector<3x16x505xbf16> to vector<3x8x505xbf16>
      %32 = vector.shape_cast %31 : vector<3x8x505xbf16> to vector<24x505xbf16>
      %33 = tpu.concatenate %18, %20, %22, %24, %26, %28, %30, %32 in 0 : vector<24x505xbf16>, vector<24x505xbf16>, vector<24x505xbf16>, vector<24x505xbf16>, vector<24x505xbf16>, vector<24x505xbf16>, vector<24x505xbf16>, vector<24x505xbf16> -> vector<192x505xbf16>
      %cst = arith.constant dense<0.000000e+00> : vector<6x505xf32>
      %34 = tpu.matmul %0, %33, %cst {dimension_numbers = #tpu.dot_dimension_numbers<[1], [0], [0], [1], [0, 0, 1, 1], [], []>} : vector<6x192xbf16>, vector<192x505xbf16>, vector<6x505xf32> -> vector<6x505xf32>
      %35 = vector.extract_strided_slice %9 {offsets = [0, 1, 0], sizes = [3, 8, 505], strides = [1, 1, 1]} : vector<3x16x505xbf16> to vector<3x8x505xbf16>
      %36 = vector.shape_cast %35 : vector<3x8x505xbf16> to vector<24x505xbf16>
      %37 = vector.extract_strided_slice %10 {offsets = [0, 1, 0], sizes = [3, 8, 505], strides = [1, 1, 1]} : vector<3x16x505xbf16> to vector<3x8x505xbf16>
      %38 = vector.shape_cast %37 : vector<3x8x505xbf16> to vector<24x505xbf16>
      %39 = vector.extract_strided_slice %11 {offsets = [0, 1, 0], sizes = [3, 8, 505], strides = [1, 1, 1]} : vector<3x16x505xbf16> to vector<3x8x505xbf16>
      %40 = vector.shape_cast %39 : vector<3x8x505xbf16> to vector<24x505xbf16>
      %41 = vector.extract_strided_slice %12 {offsets = [0, 1, 0], sizes = [3, 8, 505], strides = [1, 1, 1]} : vector<3x16x505xbf16> to vector<3x8x505xbf16>
      %42 = vector.shape_cast %41 : vector<3x8x505xbf16> to vector<24x505xbf16>
      %43 = vector.extract_strided_slice %13 {offsets = [0, 1, 0], sizes = [3, 8, 505], strides = [1, 1, 1]} : vector<3x16x505xbf16> to vector<3x8x505xbf16>
      %44 = vector.shape_cast %43 : vector<3x8x505xbf16> to vector<24x505xbf16>
      %45 = vector.extract_strided_slice %14 {offsets = [0, 1, 0], sizes = [3, 8, 505], strides = [1, 1, 1]} : vector<3x16x505xbf16> to vector<3x8x505xbf16>
      %46 = vector.shape_cast %45 : vector<3x8x505xbf16> to vector<24x505xbf16>
      %47 = vector.extract_strided_slice %15 {offsets = [0, 1, 0], sizes = [3, 8, 505], strides = [1, 1, 1]} : vector<3x16x505xbf16> to vector<3x8x505xbf16>
      %48 = vector.shape_cast %47 : vector<3x8x505xbf16> to vector<24x505xbf16>
      %49 = vector.extract_strided_slice %16 {offsets = [0, 1, 0], sizes = [3, 8, 505], strides = [1, 1, 1]} : vector<3x16x505xbf16> to vector<3x8x505xbf16>
      %50 = vector.shape_cast %49 : vector<3x8x505xbf16> to vector<24x505xbf16>
      %51 = tpu.concatenate %36, %38, %40, %42, %44, %46, %48, %50 in 0 : vector<24x505xbf16>, vector<24x505xbf16>, vector<24x505xbf16>, vector<24x505xbf16>, vector<24x505xbf16>, vector<24x505xbf16>, vector<24x505xbf16>, vector<24x505xbf16> -> vector<192x505xbf16>
      %cst_7 = arith.constant dense<0.000000e+00> : vector<6x505xf32>
      %52 = tpu.matmul %0, %51, %cst_7 {dimension_numbers = #tpu.dot_dimension_numbers<[1], [0], [0], [1], [0, 0, 1, 1], [], []>} : vector<6x192xbf16>, vector<192x505xbf16>, vector<6x505xf32> -> vector<6x505xf32>
      %53 = arith.maximumf %34, %52 : vector<6x505xf32>
      %54 = vector.extract_strided_slice %9 {offsets = [0, 2, 0], sizes = [3, 8, 505], strides = [1, 1, 1]} : vector<3x16x505xbf16> to vector<3x8x505xbf16>
      %55 = vector.shape_cast %54 : vector<3x8x505xbf16> to vector<24x505xbf16>
      %56 = vector.extract_strided_slice %10 {offsets = [0, 2, 0], sizes = [3, 8, 505], strides = [1, 1, 1]} : vector<3x16x505xbf16> to vector<3x8x505xbf16>
      %57 = vector.shape_cast %56 : vector<3x8x505xbf16> to vector<24x505xbf16>
      %58 = vector.extract_strided_slice %11 {offsets = [0, 2, 0], sizes = [3, 8, 505], strides = [1, 1, 1]} : vector<3x16x505xbf16> to vector<3x8x505xbf16>
      %59 = vector.shape_cast %58 : vector<3x8x505xbf16> to vector<24x505xbf16>
      %60 = vector.extract_strided_slice %12 {offsets = [0, 2, 0], sizes = [3, 8, 505], strides = [1, 1, 1]} : vector<3x16x505xbf16> to vector<3x8x505xbf16>
      %61 = vector.shape_cast %60 : vector<3x8x505xbf16> to vector<24x505xbf16>
      %62 = vector.extract_strided_slice %13 {offsets = [0, 2, 0], sizes = [3, 8, 505], strides = [1, 1, 1]} : vector<3x16x505xbf16> to vector<3x8x505xbf16>
      %63 = vector.shape_cast %62 : vector<3x8x505xbf16> to vector<24x505xbf16>
      %64 = vector.extract_strided_slice %14 {offsets = [0, 2, 0], sizes = [3, 8, 505], strides = [1, 1, 1]} : vector<3x16x505xbf16> to vector<3x8x505xbf16>
      %65 = vector.shape_cast %64 : vector<3x8x505xbf16> to vector<24x505xbf16>
      %66 = vector.extract_strided_slice %15 {offsets = [0, 2, 0], sizes = [3, 8, 505], strides = [1, 1, 1]} : vector<3x16x505xbf16> to vector<3x8x505xbf16>
      %67 = vector.shape_cast %66 : vector<3x8x505xbf16> to vector<24x505xbf16>
      %68 = vector.extract_strided_slice %16 {offsets = [0, 2, 0], sizes = [3, 8, 505], strides = [1, 1, 1]} : vector<3x16x505xbf16> to vector<3x8x505xbf16>
      %69 = vector.shape_cast %68 : vector<3x8x505xbf16> to vector<24x505xbf16>
      %70 = tpu.concatenate %55, %57, %59, %61, %63, %65, %67, %69 in 0 : vector<24x505xbf16>, vector<24x505xbf16>, vector<24x505xbf16>, vector<24x505xbf16>, vector<24x505xbf16>, vector<24x505xbf16>, vector<24x505xbf16>, vector<24x505xbf16> -> vector<192x505xbf16>
      %cst_8 = arith.constant dense<0.000000e+00> : vector<6x505xf32>
      %71 = tpu.matmul %0, %70, %cst_8 {dimension_numbers = #tpu.dot_dimension_numbers<[1], [0], [0], [1], [0, 0, 1, 1], [], []>} : vector<6x192xbf16>, vector<192x505xbf16>, vector<6x505xf32> -> vector<6x505xf32>
      %72 = arith.maximumf %53, %71 : vector<6x505xf32>
      %73 = vector.extract_strided_slice %9 {offsets = [0, 3, 0], sizes = [3, 8, 505], strides = [1, 1, 1]} : vector<3x16x505xbf16> to vector<3x8x505xbf16>
      %74 = vector.shape_cast %73 : vector<3x8x505xbf16> to vector<24x505xbf16>
      %75 = vector.extract_strided_slice %10 {offsets = [0, 3, 0], sizes = [3, 8, 505], strides = [1, 1, 1]} : vector<3x16x505xbf16> to vector<3x8x505xbf16>
      %76 = vector.shape_cast %75 : vector<3x8x505xbf16> to vector<24x505xbf16>
      %77 = vector.extract_strided_slice %11 {offsets = [0, 3, 0], sizes = [3, 8, 505], strides = [1, 1, 1]} : vector<3x16x505xbf16> to vector<3x8x505xbf16>
      %78 = vector.shape_cast %77 : vector<3x8x505xbf16> to vector<24x505xbf16>
      %79 = vector.extract_strided_slice %12 {offsets = [0, 3, 0], sizes = [3, 8, 505], strides = [1, 1, 1]} : vector<3x16x505xbf16> to vector<3x8x505xbf16>
      %80 = vector.shape_cast %79 : vector<3x8x505xbf16> to vector<24x505xbf16>
      %81 = vector.extract_strided_slice %13 {offsets = [0, 3, 0], sizes = [3, 8, 505], strides = [1, 1, 1]} : vector<3x16x505xbf16> to vector<3x8x505xbf16>
      %82 = vector.shape_cast %81 : vector<3x8x505xbf16> to vector<24x505xbf16>
      %83 = vector.extract_strided_slice %14 {offsets = [0, 3, 0], sizes = [3, 8, 505], strides = [1, 1, 1]} : vector<3x16x505xbf16> to vector<3x8x505xbf16>
      %84 = vector.shape_cast %83 : vector<3x8x505xbf16> to vector<24x505xbf16>
      %85 = vector.extract_strided_slice %15 {offsets = [0, 3, 0], sizes = [3, 8, 505], strides = [1, 1, 1]} : vector<3x16x505xbf16> to vector<3x8x505xbf16>
      %86 = vector.shape_cast %85 : vector<3x8x505xbf16> to vector<24x505xbf16>
      %87 = vector.extract_strided_slice %16 {offsets = [0, 3, 0], sizes = [3, 8, 505], strides = [1, 1, 1]} : vector<3x16x505xbf16> to vector<3x8x505xbf16>
      %88 = vector.shape_cast %87 : vector<3x8x505xbf16> to vector<24x505xbf16>
      %89 = tpu.concatenate %74, %76, %78, %80, %82, %84, %86, %88 in 0 : vector<24x505xbf16>, vector<24x505xbf16>, vector<24x505xbf16>, vector<24x505xbf16>, vector<24x505xbf16>, vector<24x505xbf16>, vector<24x505xbf16>, vector<24x505xbf16> -> vector<192x505xbf16>
      %cst_9 = arith.constant dense<0.000000e+00> : vector<6x505xf32>
      %90 = tpu.matmul %0, %89, %cst_9 {dimension_numbers = #tpu.dot_dimension_numbers<[1], [0], [0], [1], [0, 0, 1, 1], [], []>} : vector<6x192xbf16>, vector<192x505xbf16>, vector<6x505xf32> -> vector<6x505xf32>
      %91 = arith.maximumf %72, %90 : vector<6x505xf32>
      %92 = vector.extract_strided_slice %9 {offsets = [0, 4, 0], sizes = [3, 8, 505], strides = [1, 1, 1]} : vector<3x16x505xbf16> to vector<3x8x505xbf16>
      %93 = vector.shape_cast %92 : vector<3x8x505xbf16> to vector<24x505xbf16>
      %94 = vector.extract_strided_slice %10 {offsets = [0, 4, 0], sizes = [3, 8, 505], strides = [1, 1, 1]} : vector<3x16x505xbf16> to vector<3x8x505xbf16>
      %95 = vector.shape_cast %94 : vector<3x8x505xbf16> to vector<24x505xbf16>
      %96 = vector.extract_strided_slice %11 {offsets = [0, 4, 0], sizes = [3, 8, 505], strides = [1, 1, 1]} : vector<3x16x505xbf16> to vector<3x8x505xbf16>
      %97 = vector.shape_cast %96 : vector<3x8x505xbf16> to vector<24x505xbf16>
      %98 = vector.extract_strided_slice %12 {offsets = [0, 4, 0], sizes = [3, 8, 505], strides = [1, 1, 1]} : vector<3x16x505xbf16> to vector<3x8x505xbf16>
      %99 = vector.shape_cast %98 : vector<3x8x505xbf16> to vector<24x505xbf16>
      %100 = vector.extract_strided_slice %13 {offsets = [0, 4, 0], sizes = [3, 8, 505], strides = [1, 1, 1]} : vector<3x16x505xbf16> to vector<3x8x505xbf16>
      %101 = vector.shape_cast %100 : vector<3x8x505xbf16> to vector<24x505xbf16>
      %102 = vector.extract_strided_slice %14 {offsets = [0, 4, 0], sizes = [3, 8, 505], strides = [1, 1, 1]} : vector<3x16x505xbf16> to vector<3x8x505xbf16>
      %103 = vector.shape_cast %102 : vector<3x8x505xbf16> to vector<24x505xbf16>
      %104 = vector.extract_strided_slice %15 {offsets = [0, 4, 0], sizes = [3, 8, 505], strides = [1, 1, 1]} : vector<3x16x505xbf16> to vector<3x8x505xbf16>
      %105 = vector.shape_cast %104 : vector<3x8x505xbf16> to vector<24x505xbf16>
      %106 = vector.extract_strided_slice %16 {offsets = [0, 4, 0], sizes = [3, 8, 505], strides = [1, 1, 1]} : vector<3x16x505xbf16> to vector<3x8x505xbf16>
      %107 = vector.shape_cast %106 : vector<3x8x505xbf16> to vector<24x505xbf16>
      %108 = tpu.concatenate %93, %95, %97, %99, %101, %103, %105, %107 in 0 : vector<24x505xbf16>, vector<24x505xbf16>, vector<24x505xbf16>, vector<24x505xbf16>, vector<24x505xbf16>, vector<24x505xbf16>, vector<24x505xbf16>, vector<24x505xbf16> -> vector<192x505xbf16>
      %cst_10 = arith.constant dense<0.000000e+00> : vector<6x505xf32>
      %109 = tpu.matmul %0, %108, %cst_10 {dimension_numbers = #tpu.dot_dimension_numbers<[1], [0], [0], [1], [0, 0, 1, 1], [], []>} : vector<6x192xbf16>, vector<192x505xbf16>, vector<6x505xf32> -> vector<6x505xf32>
      %110 = arith.maximumf %91, %109 : vector<6x505xf32>
      %111 = vector.extract_strided_slice %9 {offsets = [0, 5, 0], sizes = [3, 8, 505], strides = [1, 1, 1]} : vector<3x16x505xbf16> to vector<3x8x505xbf16>
      %112 = vector.shape_cast %111 : vector<3x8x505xbf16> to vector<24x505xbf16>
      %113 = vector.extract_strided_slice %10 {offsets = [0, 5, 0], sizes = [3, 8, 505], strides = [1, 1, 1]} : vector<3x16x505xbf16> to vector<3x8x505xbf16>
      %114 = vector.shape_cast %113 : vector<3x8x505xbf16> to vector<24x505xbf16>
      %115 = vector.extract_strided_slice %11 {offsets = [0, 5, 0], sizes = [3, 8, 505], strides = [1, 1, 1]} : vector<3x16x505xbf16> to vector<3x8x505xbf16>
      %116 = vector.shape_cast %115 : vector<3x8x505xbf16> to vector<24x505xbf16>
      %117 = vector.extract_strided_slice %12 {offsets = [0, 5, 0], sizes = [3, 8, 505], strides = [1, 1, 1]} : vector<3x16x505xbf16> to vector<3x8x505xbf16>
      %118 = vector.shape_cast %117 : vector<3x8x505xbf16> to vector<24x505xbf16>
      %119 = vector.extract_strided_slice %13 {offsets = [0, 5, 0], sizes = [3, 8, 505], strides = [1, 1, 1]} : vector<3x16x505xbf16> to vector<3x8x505xbf16>
      %120 = vector.shape_cast %119 : vector<3x8x505xbf16> to vector<24x505xbf16>
      %121 = vector.extract_strided_slice %14 {offsets = [0, 5, 0], sizes = [3, 8, 505], strides = [1, 1, 1]} : vector<3x16x505xbf16> to vector<3x8x505xbf16>
      %122 = vector.shape_cast %121 : vector<3x8x505xbf16> to vector<24x505xbf16>
      %123 = vector.extract_strided_slice %15 {offsets = [0, 5, 0], sizes = [3, 8, 505], strides = [1, 1, 1]} : vector<3x16x505xbf16> to vector<3x8x505xbf16>
      %124 = vector.shape_cast %123 : vector<3x8x505xbf16> to vector<24x505xbf16>
      %125 = vector.extract_strided_slice %16 {offsets = [0, 5, 0], sizes = [3, 8, 505], strides = [1, 1, 1]} : vector<3x16x505xbf16> to vector<3x8x505xbf16>
      %126 = vector.shape_cast %125 : vector<3x8x505xbf16> to vector<24x505xbf16>
      %127 = tpu.concatenate %112, %114, %116, %118, %120, %122, %124, %126 in 0 : vector<24x505xbf16>, vector<24x505xbf16>, vector<24x505xbf16>, vector<24x505xbf16>, vector<24x505xbf16>, vector<24x505xbf16>, vector<24x505xbf16>, vector<24x505xbf16> -> vector<192x505xbf16>
      %cst_11 = arith.constant dense<0.000000e+00> : vector<6x505xf32>
      %128 = tpu.matmul %0, %127, %cst_11 {dimension_numbers = #tpu.dot_dimension_numbers<[1], [0], [0], [1], [0, 0, 1, 1], [], []>} : vector<6x192xbf16>, vector<192x505xbf16>, vector<6x505xf32> -> vector<6x505xf32>
      %129 = arith.maximumf %110, %128 : vector<6x505xf32>
      %130 = vector.extract_strided_slice %9 {offsets = [0, 6, 0], sizes = [3, 8, 505], strides = [1, 1, 1]} : vector<3x16x505xbf16> to vector<3x8x505xbf16>
      %131 = vector.shape_cast %130 : vector<3x8x505xbf16> to vector<24x505xbf16>
      %132 = vector.extract_strided_slice %10 {offsets = [0, 6, 0], sizes = [3, 8, 505], strides = [1, 1, 1]} : vector<3x16x505xbf16> to vector<3x8x505xbf16>
      %133 = vector.shape_cast %132 : vector<3x8x505xbf16> to vector<24x505xbf16>
      %134 = vector.extract_strided_slice %11 {offsets = [0, 6, 0], sizes = [3, 8, 505], strides = [1, 1, 1]} : vector<3x16x505xbf16> to vector<3x8x505xbf16>
      %135 = vector.shape_cast %134 : vector<3x8x505xbf16> to vector<24x505xbf16>
      %136 = vector.extract_strided_slice %12 {offsets = [0, 6, 0], sizes = [3, 8, 505], strides = [1, 1, 1]} : vector<3x16x505xbf16> to vector<3x8x505xbf16>
      %137 = vector.shape_cast %136 : vector<3x8x505xbf16> to vector<24x505xbf16>
      %138 = vector.extract_strided_slice %13 {offsets = [0, 6, 0], sizes = [3, 8, 505], strides = [1, 1, 1]} : vector<3x16x505xbf16> to vector<3x8x505xbf16>
      %139 = vector.shape_cast %138 : vector<3x8x505xbf16> to vector<24x505xbf16>
      %140 = vector.extract_strided_slice %14 {offsets = [0, 6, 0], sizes = [3, 8, 505], strides = [1, 1, 1]} : vector<3x16x505xbf16> to vector<3x8x505xbf16>
      %141 = vector.shape_cast %140 : vector<3x8x505xbf16> to vector<24x505xbf16>
      %142 = vector.extract_strided_slice %15 {offsets = [0, 6, 0], sizes = [3, 8, 505], strides = [1, 1, 1]} : vector<3x16x505xbf16> to vector<3x8x505xbf16>
      %143 = vector.shape_cast %142 : vector<3x8x505xbf16> to vector<24x505xbf16>
      %144 = vector.extract_strided_slice %16 {offsets = [0, 6, 0], sizes = [3, 8, 505], strides = [1, 1, 1]} : vector<3x16x505xbf16> to vector<3x8x505xbf16>
      %145 = vector.shape_cast %144 : vector<3x8x505xbf16> to vector<24x505xbf16>
      %146 = tpu.concatenate %131, %133, %135, %137, %139, %141, %143, %145 in 0 : vector<24x505xbf16>, vector<24x505xbf16>, vector<24x505xbf16>, vector<24x505xbf16>, vector<24x505xbf16>, vector<24x505xbf16>, vector<24x505xbf16>, vector<24x505xbf16> -> vector<192x505xbf16>
      %cst_12 = arith.constant dense<0.000000e+00> : vector<6x505xf32>
      %147 = tpu.matmul %0, %146, %cst_12 {dimension_numbers = #tpu.dot_dimension_numbers<[1], [0], [0], [1], [0, 0, 1, 1], [], []>} : vector<6x192xbf16>, vector<192x505xbf16>, vector<6x505xf32> -> vector<6x505xf32>
      %148 = arith.maximumf %129, %147 : vector<6x505xf32>
      %149 = vector.extract_strided_slice %9 {offsets = [0, 7, 0], sizes = [3, 8, 505], strides = [1, 1, 1]} : vector<3x16x505xbf16> to vector<3x8x505xbf16>
      %150 = vector.shape_cast %149 : vector<3x8x505xbf16> to vector<24x505xbf16>
      %151 = vector.extract_strided_slice %10 {offsets = [0, 7, 0], sizes = [3, 8, 505], strides = [1, 1, 1]} : vector<3x16x505xbf16> to vector<3x8x505xbf16>
      %152 = vector.shape_cast %151 : vector<3x8x505xbf16> to vector<24x505xbf16>
      %153 = vector.extract_strided_slice %11 {offsets = [0, 7, 0], sizes = [3, 8, 505], strides = [1, 1, 1]} : vector<3x16x505xbf16> to vector<3x8x505xbf16>
      %154 = vector.shape_cast %153 : vector<3x8x505xbf16> to vector<24x505xbf16>
      %155 = vector.extract_strided_slice %12 {offsets = [0, 7, 0], sizes = [3, 8, 505], strides = [1, 1, 1]} : vector<3x16x505xbf16> to vector<3x8x505xbf16>
      %156 = vector.shape_cast %155 : vector<3x8x505xbf16> to vector<24x505xbf16>
      %157 = vector.extract_strided_slice %13 {offsets = [0, 7, 0], sizes = [3, 8, 505], strides = [1, 1, 1]} : vector<3x16x505xbf16> to vector<3x8x505xbf16>
      %158 = vector.shape_cast %157 : vector<3x8x505xbf16> to vector<24x505xbf16>
      %159 = vector.extract_strided_slice %14 {offsets = [0, 7, 0], sizes = [3, 8, 505], strides = [1, 1, 1]} : vector<3x16x505xbf16> to vector<3x8x505xbf16>
      %160 = vector.shape_cast %159 : vector<3x8x505xbf16> to vector<24x505xbf16>
      %161 = vector.extract_strided_slice %15 {offsets = [0, 7, 0], sizes = [3, 8, 505], strides = [1, 1, 1]} : vector<3x16x505xbf16> to vector<3x8x505xbf16>
      %162 = vector.shape_cast %161 : vector<3x8x505xbf16> to vector<24x505xbf16>
      %163 = vector.extract_strided_slice %16 {offsets = [0, 7, 0], sizes = [3, 8, 505], strides = [1, 1, 1]} : vector<3x16x505xbf16> to vector<3x8x505xbf16>
      %164 = vector.shape_cast %163 : vector<3x8x505xbf16> to vector<24x505xbf16>
      %165 = tpu.concatenate %150, %152, %154, %156, %158, %160, %162, %164 in 0 : vector<24x505xbf16>, vector<24x505xbf16>, vector<24x505xbf16>, vector<24x505xbf16>, vector<24x505xbf16>, vector<24x505xbf16>, vector<24x505xbf16>, vector<24x505xbf16> -> vector<192x505xbf16>
      %cst_13 = arith.constant dense<0.000000e+00> : vector<6x505xf32>
      %166 = tpu.matmul %0, %165, %cst_13 {dimension_numbers = #tpu.dot_dimension_numbers<[1], [0], [0], [1], [0, 0, 1, 1], [], []>} : vector<6x192xbf16>, vector<192x505xbf16>, vector<6x505xf32> -> vector<6x505xf32>
      %167 = arith.maximumf %148, %166 : vector<6x505xf32>
      %168 = vector.broadcast %1 : vector<6x1xf32> to vector<6x505xf32>
      %169 = arith.addf %167, %168 : vector<6x505xf32>
      %cst_14 = arith.constant 0.000000e+00 : f32
      %170 = vector.broadcast %cst_14 : f32 to vector<6x505xf32>
      %171 = arith.maximumf %169, %170 : vector<6x505xf32>
      %172 = vector.extract_strided_slice %171 {offsets = [0, 0], sizes = [6, 504], strides = [1, 1]} : vector<6x505xf32> to vector<6x504xf32>
      %173 = tpu.transpose %172, [1, 0] : vector<6x504xf32> -> vector<504x6xf32>
      %174 = vector.shape_cast %173 : vector<504x6xf32> to vector<63x8x6xf32>
      %cst_15 = arith.constant dense<0xFF800000> : vector<63x6xf32>
      %175 = vector.multi_reduction <maximumf>, %174, %cst_15 [1] : vector<63x8x6xf32> to vector<63x6xf32>
      %c0_16 = arith.constant 0 : index
      %176 = arith.index_cast %arg5 : i32 to index
      %c0_17 = arith.constant 0 : index
      %c0_18 = arith.constant 0 : index
      %177 = vector.load %arg4[%c0_16, %176, %c0_17, %c0_18] : memref<1x63x63x6xf32, #tpu.memory_space<vmem>>, vector<1x1x63x6xf32>
      %178 = vector.shape_cast %177 : vector<1x1x63x6xf32> to vector<63x6xf32>
      %179 = vector.shape_cast %175 : vector<63x6xf32> to vector<1x1x63x6xf32>
      tpu.vector_store %arg4[%c0_16, %176, %c0_17, %c0_18], %179 {strides = array<i32>} : memref<1x63x63x6xf32, #tpu.memory_space<vmem>>, vector<1x1x63x6xf32>,
    }
    %c63_i32_3 = arith.constant 63 : i32
    return
  }
  func.func @transform_0(%arg0: i32) -> (i32, i32, i32, i32) {
    %c0_i32 = arith.constant 0 : i32
    %c0_i32_0 = arith.constant 0 : i32
    %c0_i32_1 = arith.constant 0 : i32
    %c0_i32_2 = arith.constant 0 : i32
    return %arg0, %c0_i32, %c0_i32_0, %c0_i32_1 : i32, i32, i32, i32
  }
  func.func @transform_1(%arg0: i32) -> (i32, i32) {
    %c0_i32 = arith.constant 0 : i32
    %c0_i32_0 = arith.constant 0 : i32
    %c0_i32_1 = arith.constant 0 : i32
    return %c0_i32, %c0_i32_0 : i32, i32
  }
  func.func @transform_2(%arg0: i32) -> (i32, i32) {
    %c0_i32 = arith.constant 0 : i32
    %c0_i32_0 = arith.constant 0 : i32
    %c0_i32_1 = arith.constant 0 : i32
    return %c0_i32, %c0_i32_0 : i32, i32
  }
  func.func @transform_3(%arg0: i32) -> (i32, i32, i32, i32) {
    %c0_i32 = arith.constant 0 : i32
    %c0_i32_0 = arith.constant 0 : i32
    %c0_i32_1 = arith.constant 0 : i32
    %c0_i32_2 = arith.constant 0 : i32
    return %arg0, %c0_i32, %c0_i32_0, %c0_i32_1 : i32, i32, i32, i32
  }
}

module attributes {stable_mosaic.version = 11 : i64} {
  func.func @_conv_relu_pool_kernel(%arg0: i32, %arg1: memref<1x6x64x63xf32, #tpu.memory_space<vmem>>, %arg2: memref<16x384xbf16, #tpu.memory_space<vmem>>, %arg3: memref<16x1xf32, #tpu.memory_space<vmem>>, %arg4: memref<1x7x7x16xf32, #tpu.memory_space<vmem>>) attributes {dimension_semantics = [#tpu.dimension_semantics<parallel>], iteration_bounds = array<i64: 2>, scalar_prefetch = 0 : i64, scratch_operands = 0 : i64, tpu.core_type = #tpu.core_type<tc>, window_params = [{transform_indices = @transform_0, window_bounds = array<i64: 1, 6, 64, 63>}, {pipeline_mode = #tpu.pipeline_mode<synchronous>, transform_indices = @transform_1, window_bounds = array<i64: 16, 384>}, {pipeline_mode = #tpu.pipeline_mode<synchronous>, transform_indices = @transform_2, window_bounds = array<i64: 16, 1>}, {transform_indices = @transform_3, window_bounds = array<i64: 1, 7, 7, 16>}]} {
    %c0 = arith.constant 0 : index
    %c0_0 = arith.constant 0 : index
    %0 = vector.load %arg2[%c0, %c0_0] : memref<16x384xbf16, #tpu.memory_space<vmem>>, vector<16x384xbf16>
    %c0_1 = arith.constant 0 : index
    %c0_2 = arith.constant 0 : index
    %1 = vector.load %arg3[%c0_1, %c0_2] : memref<16x1xf32, #tpu.memory_space<vmem>>, vector<16x1xf32>
    %c0_i32 = arith.constant 0 : i32
    %c7_i32 = arith.constant 7 : i32
    %2 = arith.addi %c0_i32, %c7_i32 : i32
    %c1_i32 = arith.constant 1 : i32
    scf.for %arg5 = %c0_i32 to %2 step %c1_i32  : i32 {
      %c8_i32 = arith.constant 8 : i32
      %3 = arith.muli %arg5, %c8_i32 : i32
      %4 = tpu.assume_multiple %3, 8 : i32
      %c0_4 = arith.constant 0 : index
      %c0_5 = arith.constant 0 : index
      %5 = arith.index_cast %4 : i32 to index
      %c0_6 = arith.constant 0 : index
      %6 = vector.load %arg1[%c0_4, %c0_5, %5, %c0_6] : memref<1x6x64x63xf32, #tpu.memory_space<vmem>>, vector<1x6x16x63xf32>
      %7 = vector.shape_cast %6 : vector<1x6x16x63xf32> to vector<6x16x63xf32>
      %8 = arith.truncf %7 : vector<6x16x63xf32> to vector<6x16x63xbf16>
      %9 = vector.extract_strided_slice %8 {offsets = [0, 0, 0], sizes = [6, 16, 56], strides = [1, 1, 1]} : vector<6x16x63xbf16> to vector<6x16x56xbf16>
      %10 = vector.extract_strided_slice %8 {offsets = [0, 0, 1], sizes = [6, 16, 56], strides = [1, 1, 1]} : vector<6x16x63xbf16> to vector<6x16x56xbf16>
      %11 = vector.extract_strided_slice %8 {offsets = [0, 0, 2], sizes = [6, 16, 56], strides = [1, 1, 1]} : vector<6x16x63xbf16> to vector<6x16x56xbf16>
      %12 = vector.extract_strided_slice %8 {offsets = [0, 0, 3], sizes = [6, 16, 56], strides = [1, 1, 1]} : vector<6x16x63xbf16> to vector<6x16x56xbf16>
      %13 = vector.extract_strided_slice %8 {offsets = [0, 0, 4], sizes = [6, 16, 56], strides = [1, 1, 1]} : vector<6x16x63xbf16> to vector<6x16x56xbf16>
      %14 = vector.extract_strided_slice %8 {offsets = [0, 0, 5], sizes = [6, 16, 56], strides = [1, 1, 1]} : vector<6x16x63xbf16> to vector<6x16x56xbf16>
      %15 = vector.extract_strided_slice %8 {offsets = [0, 0, 6], sizes = [6, 16, 56], strides = [1, 1, 1]} : vector<6x16x63xbf16> to vector<6x16x56xbf16>
      %16 = vector.extract_strided_slice %8 {offsets = [0, 0, 7], sizes = [6, 16, 56], strides = [1, 1, 1]} : vector<6x16x63xbf16> to vector<6x16x56xbf16>
      %17 = vector.extract_strided_slice %9 {offsets = [0, 0, 0], sizes = [6, 8, 56], strides = [1, 1, 1]} : vector<6x16x56xbf16> to vector<6x8x56xbf16>
      %18 = vector.shape_cast %17 : vector<6x8x56xbf16> to vector<48x56xbf16>
      %19 = vector.extract_strided_slice %10 {offsets = [0, 0, 0], sizes = [6, 8, 56], strides = [1, 1, 1]} : vector<6x16x56xbf16> to vector<6x8x56xbf16>
      %20 = vector.shape_cast %19 : vector<6x8x56xbf16> to vector<48x56xbf16>
      %21 = vector.extract_strided_slice %11 {offsets = [0, 0, 0], sizes = [6, 8, 56], strides = [1, 1, 1]} : vector<6x16x56xbf16> to vector<6x8x56xbf16>
      %22 = vector.shape_cast %21 : vector<6x8x56xbf16> to vector<48x56xbf16>
      %23 = vector.extract_strided_slice %12 {offsets = [0, 0, 0], sizes = [6, 8, 56], strides = [1, 1, 1]} : vector<6x16x56xbf16> to vector<6x8x56xbf16>
      %24 = vector.shape_cast %23 : vector<6x8x56xbf16> to vector<48x56xbf16>
      %25 = vector.extract_strided_slice %13 {offsets = [0, 0, 0], sizes = [6, 8, 56], strides = [1, 1, 1]} : vector<6x16x56xbf16> to vector<6x8x56xbf16>
      %26 = vector.shape_cast %25 : vector<6x8x56xbf16> to vector<48x56xbf16>
      %27 = vector.extract_strided_slice %14 {offsets = [0, 0, 0], sizes = [6, 8, 56], strides = [1, 1, 1]} : vector<6x16x56xbf16> to vector<6x8x56xbf16>
      %28 = vector.shape_cast %27 : vector<6x8x56xbf16> to vector<48x56xbf16>
      %29 = vector.extract_strided_slice %15 {offsets = [0, 0, 0], sizes = [6, 8, 56], strides = [1, 1, 1]} : vector<6x16x56xbf16> to vector<6x8x56xbf16>
      %30 = vector.shape_cast %29 : vector<6x8x56xbf16> to vector<48x56xbf16>
      %31 = vector.extract_strided_slice %16 {offsets = [0, 0, 0], sizes = [6, 8, 56], strides = [1, 1, 1]} : vector<6x16x56xbf16> to vector<6x8x56xbf16>
      %32 = vector.shape_cast %31 : vector<6x8x56xbf16> to vector<48x56xbf16>
      %33 = tpu.concatenate %18, %20, %22, %24, %26, %28, %30, %32 in 0 : vector<48x56xbf16>, vector<48x56xbf16>, vector<48x56xbf16>, vector<48x56xbf16>, vector<48x56xbf16>, vector<48x56xbf16>, vector<48x56xbf16>, vector<48x56xbf16> -> vector<384x56xbf16>
      %cst = arith.constant dense<0.000000e+00> : vector<16x56xf32>
      %34 = tpu.matmul %0, %33, %cst {dimension_numbers = #tpu.dot_dimension_numbers<[1], [0], [0], [1], [0, 0, 1, 1], [], []>} : vector<16x384xbf16>, vector<384x56xbf16>, vector<16x56xf32> -> vector<16x56xf32>
      %35 = vector.extract_strided_slice %9 {offsets = [0, 1, 0], sizes = [6, 8, 56], strides = [1, 1, 1]} : vector<6x16x56xbf16> to vector<6x8x56xbf16>
      %36 = vector.shape_cast %35 : vector<6x8x56xbf16> to vector<48x56xbf16>
      %37 = vector.extract_strided_slice %10 {offsets = [0, 1, 0], sizes = [6, 8, 56], strides = [1, 1, 1]} : vector<6x16x56xbf16> to vector<6x8x56xbf16>
      %38 = vector.shape_cast %37 : vector<6x8x56xbf16> to vector<48x56xbf16>
      %39 = vector.extract_strided_slice %11 {offsets = [0, 1, 0], sizes = [6, 8, 56], strides = [1, 1, 1]} : vector<6x16x56xbf16> to vector<6x8x56xbf16>
      %40 = vector.shape_cast %39 : vector<6x8x56xbf16> to vector<48x56xbf16>
      %41 = vector.extract_strided_slice %12 {offsets = [0, 1, 0], sizes = [6, 8, 56], strides = [1, 1, 1]} : vector<6x16x56xbf16> to vector<6x8x56xbf16>
      %42 = vector.shape_cast %41 : vector<6x8x56xbf16> to vector<48x56xbf16>
      %43 = vector.extract_strided_slice %13 {offsets = [0, 1, 0], sizes = [6, 8, 56], strides = [1, 1, 1]} : vector<6x16x56xbf16> to vector<6x8x56xbf16>
      %44 = vector.shape_cast %43 : vector<6x8x56xbf16> to vector<48x56xbf16>
      %45 = vector.extract_strided_slice %14 {offsets = [0, 1, 0], sizes = [6, 8, 56], strides = [1, 1, 1]} : vector<6x16x56xbf16> to vector<6x8x56xbf16>
      %46 = vector.shape_cast %45 : vector<6x8x56xbf16> to vector<48x56xbf16>
      %47 = vector.extract_strided_slice %15 {offsets = [0, 1, 0], sizes = [6, 8, 56], strides = [1, 1, 1]} : vector<6x16x56xbf16> to vector<6x8x56xbf16>
      %48 = vector.shape_cast %47 : vector<6x8x56xbf16> to vector<48x56xbf16>
      %49 = vector.extract_strided_slice %16 {offsets = [0, 1, 0], sizes = [6, 8, 56], strides = [1, 1, 1]} : vector<6x16x56xbf16> to vector<6x8x56xbf16>
      %50 = vector.shape_cast %49 : vector<6x8x56xbf16> to vector<48x56xbf16>
      %51 = tpu.concatenate %36, %38, %40, %42, %44, %46, %48, %50 in 0 : vector<48x56xbf16>, vector<48x56xbf16>, vector<48x56xbf16>, vector<48x56xbf16>, vector<48x56xbf16>, vector<48x56xbf16>, vector<48x56xbf16>, vector<48x56xbf16> -> vector<384x56xbf16>
      %cst_7 = arith.constant dense<0.000000e+00> : vector<16x56xf32>
      %52 = tpu.matmul %0, %51, %cst_7 {dimension_numbers = #tpu.dot_dimension_numbers<[1], [0], [0], [1], [0, 0, 1, 1], [], []>} : vector<16x384xbf16>, vector<384x56xbf16>, vector<16x56xf32> -> vector<16x56xf32>
      %53 = arith.maximumf %34, %52 : vector<16x56xf32>
      %54 = vector.extract_strided_slice %9 {offsets = [0, 2, 0], sizes = [6, 8, 56], strides = [1, 1, 1]} : vector<6x16x56xbf16> to vector<6x8x56xbf16>
      %55 = vector.shape_cast %54 : vector<6x8x56xbf16> to vector<48x56xbf16>
      %56 = vector.extract_strided_slice %10 {offsets = [0, 2, 0], sizes = [6, 8, 56], strides = [1, 1, 1]} : vector<6x16x56xbf16> to vector<6x8x56xbf16>
      %57 = vector.shape_cast %56 : vector<6x8x56xbf16> to vector<48x56xbf16>
      %58 = vector.extract_strided_slice %11 {offsets = [0, 2, 0], sizes = [6, 8, 56], strides = [1, 1, 1]} : vector<6x16x56xbf16> to vector<6x8x56xbf16>
      %59 = vector.shape_cast %58 : vector<6x8x56xbf16> to vector<48x56xbf16>
      %60 = vector.extract_strided_slice %12 {offsets = [0, 2, 0], sizes = [6, 8, 56], strides = [1, 1, 1]} : vector<6x16x56xbf16> to vector<6x8x56xbf16>
      %61 = vector.shape_cast %60 : vector<6x8x56xbf16> to vector<48x56xbf16>
      %62 = vector.extract_strided_slice %13 {offsets = [0, 2, 0], sizes = [6, 8, 56], strides = [1, 1, 1]} : vector<6x16x56xbf16> to vector<6x8x56xbf16>
      %63 = vector.shape_cast %62 : vector<6x8x56xbf16> to vector<48x56xbf16>
      %64 = vector.extract_strided_slice %14 {offsets = [0, 2, 0], sizes = [6, 8, 56], strides = [1, 1, 1]} : vector<6x16x56xbf16> to vector<6x8x56xbf16>
      %65 = vector.shape_cast %64 : vector<6x8x56xbf16> to vector<48x56xbf16>
      %66 = vector.extract_strided_slice %15 {offsets = [0, 2, 0], sizes = [6, 8, 56], strides = [1, 1, 1]} : vector<6x16x56xbf16> to vector<6x8x56xbf16>
      %67 = vector.shape_cast %66 : vector<6x8x56xbf16> to vector<48x56xbf16>
      %68 = vector.extract_strided_slice %16 {offsets = [0, 2, 0], sizes = [6, 8, 56], strides = [1, 1, 1]} : vector<6x16x56xbf16> to vector<6x8x56xbf16>
      %69 = vector.shape_cast %68 : vector<6x8x56xbf16> to vector<48x56xbf16>
      %70 = tpu.concatenate %55, %57, %59, %61, %63, %65, %67, %69 in 0 : vector<48x56xbf16>, vector<48x56xbf16>, vector<48x56xbf16>, vector<48x56xbf16>, vector<48x56xbf16>, vector<48x56xbf16>, vector<48x56xbf16>, vector<48x56xbf16> -> vector<384x56xbf16>
      %cst_8 = arith.constant dense<0.000000e+00> : vector<16x56xf32>
      %71 = tpu.matmul %0, %70, %cst_8 {dimension_numbers = #tpu.dot_dimension_numbers<[1], [0], [0], [1], [0, 0, 1, 1], [], []>} : vector<16x384xbf16>, vector<384x56xbf16>, vector<16x56xf32> -> vector<16x56xf32>
      %72 = arith.maximumf %53, %71 : vector<16x56xf32>
      %73 = vector.extract_strided_slice %9 {offsets = [0, 3, 0], sizes = [6, 8, 56], strides = [1, 1, 1]} : vector<6x16x56xbf16> to vector<6x8x56xbf16>
      %74 = vector.shape_cast %73 : vector<6x8x56xbf16> to vector<48x56xbf16>
      %75 = vector.extract_strided_slice %10 {offsets = [0, 3, 0], sizes = [6, 8, 56], strides = [1, 1, 1]} : vector<6x16x56xbf16> to vector<6x8x56xbf16>
      %76 = vector.shape_cast %75 : vector<6x8x56xbf16> to vector<48x56xbf16>
      %77 = vector.extract_strided_slice %11 {offsets = [0, 3, 0], sizes = [6, 8, 56], strides = [1, 1, 1]} : vector<6x16x56xbf16> to vector<6x8x56xbf16>
      %78 = vector.shape_cast %77 : vector<6x8x56xbf16> to vector<48x56xbf16>
      %79 = vector.extract_strided_slice %12 {offsets = [0, 3, 0], sizes = [6, 8, 56], strides = [1, 1, 1]} : vector<6x16x56xbf16> to vector<6x8x56xbf16>
      %80 = vector.shape_cast %79 : vector<6x8x56xbf16> to vector<48x56xbf16>
      %81 = vector.extract_strided_slice %13 {offsets = [0, 3, 0], sizes = [6, 8, 56], strides = [1, 1, 1]} : vector<6x16x56xbf16> to vector<6x8x56xbf16>
      %82 = vector.shape_cast %81 : vector<6x8x56xbf16> to vector<48x56xbf16>
      %83 = vector.extract_strided_slice %14 {offsets = [0, 3, 0], sizes = [6, 8, 56], strides = [1, 1, 1]} : vector<6x16x56xbf16> to vector<6x8x56xbf16>
      %84 = vector.shape_cast %83 : vector<6x8x56xbf16> to vector<48x56xbf16>
      %85 = vector.extract_strided_slice %15 {offsets = [0, 3, 0], sizes = [6, 8, 56], strides = [1, 1, 1]} : vector<6x16x56xbf16> to vector<6x8x56xbf16>
      %86 = vector.shape_cast %85 : vector<6x8x56xbf16> to vector<48x56xbf16>
      %87 = vector.extract_strided_slice %16 {offsets = [0, 3, 0], sizes = [6, 8, 56], strides = [1, 1, 1]} : vector<6x16x56xbf16> to vector<6x8x56xbf16>
      %88 = vector.shape_cast %87 : vector<6x8x56xbf16> to vector<48x56xbf16>
      %89 = tpu.concatenate %74, %76, %78, %80, %82, %84, %86, %88 in 0 : vector<48x56xbf16>, vector<48x56xbf16>, vector<48x56xbf16>, vector<48x56xbf16>, vector<48x56xbf16>, vector<48x56xbf16>, vector<48x56xbf16>, vector<48x56xbf16> -> vector<384x56xbf16>
      %cst_9 = arith.constant dense<0.000000e+00> : vector<16x56xf32>
      %90 = tpu.matmul %0, %89, %cst_9 {dimension_numbers = #tpu.dot_dimension_numbers<[1], [0], [0], [1], [0, 0, 1, 1], [], []>} : vector<16x384xbf16>, vector<384x56xbf16>, vector<16x56xf32> -> vector<16x56xf32>
      %91 = arith.maximumf %72, %90 : vector<16x56xf32>
      %92 = vector.extract_strided_slice %9 {offsets = [0, 4, 0], sizes = [6, 8, 56], strides = [1, 1, 1]} : vector<6x16x56xbf16> to vector<6x8x56xbf16>
      %93 = vector.shape_cast %92 : vector<6x8x56xbf16> to vector<48x56xbf16>
      %94 = vector.extract_strided_slice %10 {offsets = [0, 4, 0], sizes = [6, 8, 56], strides = [1, 1, 1]} : vector<6x16x56xbf16> to vector<6x8x56xbf16>
      %95 = vector.shape_cast %94 : vector<6x8x56xbf16> to vector<48x56xbf16>
      %96 = vector.extract_strided_slice %11 {offsets = [0, 4, 0], sizes = [6, 8, 56], strides = [1, 1, 1]} : vector<6x16x56xbf16> to vector<6x8x56xbf16>
      %97 = vector.shape_cast %96 : vector<6x8x56xbf16> to vector<48x56xbf16>
      %98 = vector.extract_strided_slice %12 {offsets = [0, 4, 0], sizes = [6, 8, 56], strides = [1, 1, 1]} : vector<6x16x56xbf16> to vector<6x8x56xbf16>
      %99 = vector.shape_cast %98 : vector<6x8x56xbf16> to vector<48x56xbf16>
      %100 = vector.extract_strided_slice %13 {offsets = [0, 4, 0], sizes = [6, 8, 56], strides = [1, 1, 1]} : vector<6x16x56xbf16> to vector<6x8x56xbf16>
      %101 = vector.shape_cast %100 : vector<6x8x56xbf16> to vector<48x56xbf16>
      %102 = vector.extract_strided_slice %14 {offsets = [0, 4, 0], sizes = [6, 8, 56], strides = [1, 1, 1]} : vector<6x16x56xbf16> to vector<6x8x56xbf16>
      %103 = vector.shape_cast %102 : vector<6x8x56xbf16> to vector<48x56xbf16>
      %104 = vector.extract_strided_slice %15 {offsets = [0, 4, 0], sizes = [6, 8, 56], strides = [1, 1, 1]} : vector<6x16x56xbf16> to vector<6x8x56xbf16>
      %105 = vector.shape_cast %104 : vector<6x8x56xbf16> to vector<48x56xbf16>
      %106 = vector.extract_strided_slice %16 {offsets = [0, 4, 0], sizes = [6, 8, 56], strides = [1, 1, 1]} : vector<6x16x56xbf16> to vector<6x8x56xbf16>
      %107 = vector.shape_cast %106 : vector<6x8x56xbf16> to vector<48x56xbf16>
      %108 = tpu.concatenate %93, %95, %97, %99, %101, %103, %105, %107 in 0 : vector<48x56xbf16>, vector<48x56xbf16>, vector<48x56xbf16>, vector<48x56xbf16>, vector<48x56xbf16>, vector<48x56xbf16>, vector<48x56xbf16>, vector<48x56xbf16> -> vector<384x56xbf16>
      %cst_10 = arith.constant dense<0.000000e+00> : vector<16x56xf32>
      %109 = tpu.matmul %0, %108, %cst_10 {dimension_numbers = #tpu.dot_dimension_numbers<[1], [0], [0], [1], [0, 0, 1, 1], [], []>} : vector<16x384xbf16>, vector<384x56xbf16>, vector<16x56xf32> -> vector<16x56xf32>
      %110 = arith.maximumf %91, %109 : vector<16x56xf32>
      %111 = vector.extract_strided_slice %9 {offsets = [0, 5, 0], sizes = [6, 8, 56], strides = [1, 1, 1]} : vector<6x16x56xbf16> to vector<6x8x56xbf16>
      %112 = vector.shape_cast %111 : vector<6x8x56xbf16> to vector<48x56xbf16>
      %113 = vector.extract_strided_slice %10 {offsets = [0, 5, 0], sizes = [6, 8, 56], strides = [1, 1, 1]} : vector<6x16x56xbf16> to vector<6x8x56xbf16>
      %114 = vector.shape_cast %113 : vector<6x8x56xbf16> to vector<48x56xbf16>
      %115 = vector.extract_strided_slice %11 {offsets = [0, 5, 0], sizes = [6, 8, 56], strides = [1, 1, 1]} : vector<6x16x56xbf16> to vector<6x8x56xbf16>
      %116 = vector.shape_cast %115 : vector<6x8x56xbf16> to vector<48x56xbf16>
      %117 = vector.extract_strided_slice %12 {offsets = [0, 5, 0], sizes = [6, 8, 56], strides = [1, 1, 1]} : vector<6x16x56xbf16> to vector<6x8x56xbf16>
      %118 = vector.shape_cast %117 : vector<6x8x56xbf16> to vector<48x56xbf16>
      %119 = vector.extract_strided_slice %13 {offsets = [0, 5, 0], sizes = [6, 8, 56], strides = [1, 1, 1]} : vector<6x16x56xbf16> to vector<6x8x56xbf16>
      %120 = vector.shape_cast %119 : vector<6x8x56xbf16> to vector<48x56xbf16>
      %121 = vector.extract_strided_slice %14 {offsets = [0, 5, 0], sizes = [6, 8, 56], strides = [1, 1, 1]} : vector<6x16x56xbf16> to vector<6x8x56xbf16>
      %122 = vector.shape_cast %121 : vector<6x8x56xbf16> to vector<48x56xbf16>
      %123 = vector.extract_strided_slice %15 {offsets = [0, 5, 0], sizes = [6, 8, 56], strides = [1, 1, 1]} : vector<6x16x56xbf16> to vector<6x8x56xbf16>
      %124 = vector.shape_cast %123 : vector<6x8x56xbf16> to vector<48x56xbf16>
      %125 = vector.extract_strided_slice %16 {offsets = [0, 5, 0], sizes = [6, 8, 56], strides = [1, 1, 1]} : vector<6x16x56xbf16> to vector<6x8x56xbf16>
      %126 = vector.shape_cast %125 : vector<6x8x56xbf16> to vector<48x56xbf16>
      %127 = tpu.concatenate %112, %114, %116, %118, %120, %122, %124, %126 in 0 : vector<48x56xbf16>, vector<48x56xbf16>, vector<48x56xbf16>, vector<48x56xbf16>, vector<48x56xbf16>, vector<48x56xbf16>, vector<48x56xbf16>, vector<48x56xbf16> -> vector<384x56xbf16>
      %cst_11 = arith.constant dense<0.000000e+00> : vector<16x56xf32>
      %128 = tpu.matmul %0, %127, %cst_11 {dimension_numbers = #tpu.dot_dimension_numbers<[1], [0], [0], [1], [0, 0, 1, 1], [], []>} : vector<16x384xbf16>, vector<384x56xbf16>, vector<16x56xf32> -> vector<16x56xf32>
      %129 = arith.maximumf %110, %128 : vector<16x56xf32>
      %130 = vector.extract_strided_slice %9 {offsets = [0, 6, 0], sizes = [6, 8, 56], strides = [1, 1, 1]} : vector<6x16x56xbf16> to vector<6x8x56xbf16>
      %131 = vector.shape_cast %130 : vector<6x8x56xbf16> to vector<48x56xbf16>
      %132 = vector.extract_strided_slice %10 {offsets = [0, 6, 0], sizes = [6, 8, 56], strides = [1, 1, 1]} : vector<6x16x56xbf16> to vector<6x8x56xbf16>
      %133 = vector.shape_cast %132 : vector<6x8x56xbf16> to vector<48x56xbf16>
      %134 = vector.extract_strided_slice %11 {offsets = [0, 6, 0], sizes = [6, 8, 56], strides = [1, 1, 1]} : vector<6x16x56xbf16> to vector<6x8x56xbf16>
      %135 = vector.shape_cast %134 : vector<6x8x56xbf16> to vector<48x56xbf16>
      %136 = vector.extract_strided_slice %12 {offsets = [0, 6, 0], sizes = [6, 8, 56], strides = [1, 1, 1]} : vector<6x16x56xbf16> to vector<6x8x56xbf16>
      %137 = vector.shape_cast %136 : vector<6x8x56xbf16> to vector<48x56xbf16>
      %138 = vector.extract_strided_slice %13 {offsets = [0, 6, 0], sizes = [6, 8, 56], strides = [1, 1, 1]} : vector<6x16x56xbf16> to vector<6x8x56xbf16>
      %139 = vector.shape_cast %138 : vector<6x8x56xbf16> to vector<48x56xbf16>
      %140 = vector.extract_strided_slice %14 {offsets = [0, 6, 0], sizes = [6, 8, 56], strides = [1, 1, 1]} : vector<6x16x56xbf16> to vector<6x8x56xbf16>
      %141 = vector.shape_cast %140 : vector<6x8x56xbf16> to vector<48x56xbf16>
      %142 = vector.extract_strided_slice %15 {offsets = [0, 6, 0], sizes = [6, 8, 56], strides = [1, 1, 1]} : vector<6x16x56xbf16> to vector<6x8x56xbf16>
      %143 = vector.shape_cast %142 : vector<6x8x56xbf16> to vector<48x56xbf16>
      %144 = vector.extract_strided_slice %16 {offsets = [0, 6, 0], sizes = [6, 8, 56], strides = [1, 1, 1]} : vector<6x16x56xbf16> to vector<6x8x56xbf16>
      %145 = vector.shape_cast %144 : vector<6x8x56xbf16> to vector<48x56xbf16>
      %146 = tpu.concatenate %131, %133, %135, %137, %139, %141, %143, %145 in 0 : vector<48x56xbf16>, vector<48x56xbf16>, vector<48x56xbf16>, vector<48x56xbf16>, vector<48x56xbf16>, vector<48x56xbf16>, vector<48x56xbf16>, vector<48x56xbf16> -> vector<384x56xbf16>
      %cst_12 = arith.constant dense<0.000000e+00> : vector<16x56xf32>
      %147 = tpu.matmul %0, %146, %cst_12 {dimension_numbers = #tpu.dot_dimension_numbers<[1], [0], [0], [1], [0, 0, 1, 1], [], []>} : vector<16x384xbf16>, vector<384x56xbf16>, vector<16x56xf32> -> vector<16x56xf32>
      %148 = arith.maximumf %129, %147 : vector<16x56xf32>
      %149 = vector.extract_strided_slice %9 {offsets = [0, 7, 0], sizes = [6, 8, 56], strides = [1, 1, 1]} : vector<6x16x56xbf16> to vector<6x8x56xbf16>
      %150 = vector.shape_cast %149 : vector<6x8x56xbf16> to vector<48x56xbf16>
      %151 = vector.extract_strided_slice %10 {offsets = [0, 7, 0], sizes = [6, 8, 56], strides = [1, 1, 1]} : vector<6x16x56xbf16> to vector<6x8x56xbf16>
      %152 = vector.shape_cast %151 : vector<6x8x56xbf16> to vector<48x56xbf16>
      %153 = vector.extract_strided_slice %11 {offsets = [0, 7, 0], sizes = [6, 8, 56], strides = [1, 1, 1]} : vector<6x16x56xbf16> to vector<6x8x56xbf16>
      %154 = vector.shape_cast %153 : vector<6x8x56xbf16> to vector<48x56xbf16>
      %155 = vector.extract_strided_slice %12 {offsets = [0, 7, 0], sizes = [6, 8, 56], strides = [1, 1, 1]} : vector<6x16x56xbf16> to vector<6x8x56xbf16>
      %156 = vector.shape_cast %155 : vector<6x8x56xbf16> to vector<48x56xbf16>
      %157 = vector.extract_strided_slice %13 {offsets = [0, 7, 0], sizes = [6, 8, 56], strides = [1, 1, 1]} : vector<6x16x56xbf16> to vector<6x8x56xbf16>
      %158 = vector.shape_cast %157 : vector<6x8x56xbf16> to vector<48x56xbf16>
      %159 = vector.extract_strided_slice %14 {offsets = [0, 7, 0], sizes = [6, 8, 56], strides = [1, 1, 1]} : vector<6x16x56xbf16> to vector<6x8x56xbf16>
      %160 = vector.shape_cast %159 : vector<6x8x56xbf16> to vector<48x56xbf16>
      %161 = vector.extract_strided_slice %15 {offsets = [0, 7, 0], sizes = [6, 8, 56], strides = [1, 1, 1]} : vector<6x16x56xbf16> to vector<6x8x56xbf16>
      %162 = vector.shape_cast %161 : vector<6x8x56xbf16> to vector<48x56xbf16>
      %163 = vector.extract_strided_slice %16 {offsets = [0, 7, 0], sizes = [6, 8, 56], strides = [1, 1, 1]} : vector<6x16x56xbf16> to vector<6x8x56xbf16>
      %164 = vector.shape_cast %163 : vector<6x8x56xbf16> to vector<48x56xbf16>
      %165 = tpu.concatenate %150, %152, %154, %156, %158, %160, %162, %164 in 0 : vector<48x56xbf16>, vector<48x56xbf16>, vector<48x56xbf16>, vector<48x56xbf16>, vector<48x56xbf16>, vector<48x56xbf16>, vector<48x56xbf16>, vector<48x56xbf16> -> vector<384x56xbf16>
      %cst_13 = arith.constant dense<0.000000e+00> : vector<16x56xf32>
      %166 = tpu.matmul %0, %165, %cst_13 {dimension_numbers = #tpu.dot_dimension_numbers<[1], [0], [0], [1], [0, 0, 1, 1], [], []>} : vector<16x384xbf16>, vector<384x56xbf16>, vector<16x56xf32> -> vector<16x56xf32>
      %167 = arith.maximumf %148, %166 : vector<16x56xf32>
      %168 = vector.broadcast %1 : vector<16x1xf32> to vector<16x56xf32>
      %169 = arith.addf %167, %168 : vector<16x56xf32>
      %cst_14 = arith.constant 0.000000e+00 : f32
      %170 = vector.broadcast %cst_14 : f32 to vector<16x56xf32>
      %171 = arith.maximumf %169, %170 : vector<16x56xf32>
      %172 = tpu.transpose %171, [1, 0] : vector<16x56xf32> -> vector<56x16xf32>
      %173 = vector.shape_cast %172 : vector<56x16xf32> to vector<7x8x16xf32>
      %cst_15 = arith.constant dense<0xFF800000> : vector<7x16xf32>
      %174 = vector.multi_reduction <maximumf>, %173, %cst_15 [1] : vector<7x8x16xf32> to vector<7x16xf32>
      %c0_16 = arith.constant 0 : index
      %175 = arith.index_cast %arg5 : i32 to index
      %c0_17 = arith.constant 0 : index
      %c0_18 = arith.constant 0 : index
      %176 = vector.load %arg4[%c0_16, %175, %c0_17, %c0_18] : memref<1x7x7x16xf32, #tpu.memory_space<vmem>>, vector<1x1x7x16xf32>
      %177 = vector.shape_cast %176 : vector<1x1x7x16xf32> to vector<7x16xf32>
      %178 = vector.shape_cast %174 : vector<7x16xf32> to vector<1x1x7x16xf32>
      tpu.vector_store %arg4[%c0_16, %175, %c0_17, %c0_18], %178 {strides = array<i32>} : memref<1x7x7x16xf32, #tpu.memory_space<vmem>>, vector<1x1x7x16xf32>,
    }
    %c7_i32_3 = arith.constant 7 : i32
    return
  }
  func.func @transform_0(%arg0: i32) -> (i32, i32, i32, i32) {
    %c0_i32 = arith.constant 0 : i32
    %c0_i32_0 = arith.constant 0 : i32
    %c0_i32_1 = arith.constant 0 : i32
    %c0_i32_2 = arith.constant 0 : i32
    return %arg0, %c0_i32, %c0_i32_0, %c0_i32_1 : i32, i32, i32, i32
  }
  func.func @transform_1(%arg0: i32) -> (i32, i32) {
    %c0_i32 = arith.constant 0 : i32
    %c0_i32_0 = arith.constant 0 : i32
    %c0_i32_1 = arith.constant 0 : i32
    return %c0_i32, %c0_i32_0 : i32, i32
  }
  func.func @transform_2(%arg0: i32) -> (i32, i32) {
    %c0_i32 = arith.constant 0 : i32
    %c0_i32_0 = arith.constant 0 : i32
    %c0_i32_1 = arith.constant 0 : i32
    return %c0_i32, %c0_i32_0 : i32, i32
  }
  func.func @transform_3(%arg0: i32) -> (i32, i32, i32, i32) {
    %c0_i32 = arith.constant 0 : i32
    %c0_i32_0 = arith.constant 0 : i32
    %c0_i32_1 = arith.constant 0 : i32
    %c0_i32_2 = arith.constant 0 : i32
    return %arg0, %c0_i32, %c0_i32_0, %c0_i32_1 : i32, i32, i32, i32
  }
}

module attributes {stable_mosaic.version = 11 : i64} {
  func.func @_fc_kernel(%arg0: i32, %arg1: memref<8x784xbf16, #tpu.memory_space<vmem>>, %arg2: memref<784x520xbf16, #tpu.memory_space<vmem>>, %arg3: memref<1x520xf32, #tpu.memory_space<vmem>>, %arg4: memref<520x190xbf16, #tpu.memory_space<vmem>>, %arg5: memref<1x190xf32, #tpu.memory_space<vmem>>, %arg6: memref<190x90xbf16, #tpu.memory_space<vmem>>, %arg7: memref<1x90xf32, #tpu.memory_space<vmem>>, %arg8: memref<8x90xf32, #tpu.memory_space<vmem>>) attributes {dimension_semantics = [#tpu.dimension_semantics<parallel>], iteration_bounds = array<i64: 1>, scalar_prefetch = 0 : i64, scratch_operands = 0 : i64, tpu.core_type = #tpu.core_type<tc>, window_params = [{transform_indices = @transform_0, window_bounds = array<i64: 8, 784>}, {pipeline_mode = #tpu.pipeline_mode<synchronous>, transform_indices = @transform_1, window_bounds = array<i64: 784, 520>}, {pipeline_mode = #tpu.pipeline_mode<synchronous>, transform_indices = @transform_2, window_bounds = array<i64: 1, 520>}, {pipeline_mode = #tpu.pipeline_mode<synchronous>, transform_indices = @transform_3, window_bounds = array<i64: 520, 190>}, {pipeline_mode = #tpu.pipeline_mode<synchronous>, transform_indices = @transform_4, window_bounds = array<i64: 1, 190>}, {pipeline_mode = #tpu.pipeline_mode<synchronous>, transform_indices = @transform_5, window_bounds = array<i64: 190, 90>}, {pipeline_mode = #tpu.pipeline_mode<synchronous>, transform_indices = @transform_6, window_bounds = array<i64: 1, 90>}, {transform_indices = @transform_7, window_bounds = array<i64: 8, 90>}]} {
    %c0 = arith.constant 0 : index
    %c0_0 = arith.constant 0 : index
    %0 = vector.load %arg1[%c0, %c0_0] : memref<8x784xbf16, #tpu.memory_space<vmem>>, vector<8x784xbf16>
    %c0_1 = arith.constant 0 : index
    %c0_2 = arith.constant 0 : index
    %1 = vector.load %arg2[%c0_1, %c0_2] : memref<784x520xbf16, #tpu.memory_space<vmem>>, vector<784x520xbf16>
    %cst = arith.constant dense<0.000000e+00> : vector<8x520xf32>
    %2 = tpu.matmul %0, %1, %cst {dimension_numbers = #tpu.dot_dimension_numbers<[1], [0], [0], [1], [0, 0, 1, 1], [], []>} : vector<8x784xbf16>, vector<784x520xbf16>, vector<8x520xf32> -> vector<8x520xf32>
    %c0_3 = arith.constant 0 : index
    %c0_4 = arith.constant 0 : index
    %3 = vector.load %arg3[%c0_3, %c0_4] : memref<1x520xf32, #tpu.memory_space<vmem>>, vector<1x520xf32>
    %4 = vector.broadcast %3 : vector<1x520xf32> to vector<8x520xf32>
    %5 = arith.addf %2, %4 : vector<8x520xf32>
    %cst_5 = arith.constant 0.000000e+00 : f32
    %6 = vector.broadcast %cst_5 : f32 to vector<8x520xf32>
    %7 = arith.maximumf %5, %6 : vector<8x520xf32>
    %8 = arith.truncf %7 : vector<8x520xf32> to vector<8x520xbf16>
    %c0_6 = arith.constant 0 : index
    %c0_7 = arith.constant 0 : index
    %9 = vector.load %arg4[%c0_6, %c0_7] : memref<520x190xbf16, #tpu.memory_space<vmem>>, vector<520x190xbf16>
    %cst_8 = arith.constant dense<0.000000e+00> : vector<8x190xf32>
    %10 = tpu.matmul %8, %9, %cst_8 {dimension_numbers = #tpu.dot_dimension_numbers<[1], [0], [0], [1], [0, 0, 1, 1], [], []>} : vector<8x520xbf16>, vector<520x190xbf16>, vector<8x190xf32> -> vector<8x190xf32>
    %c0_9 = arith.constant 0 : index
    %c0_10 = arith.constant 0 : index
    %11 = vector.load %arg5[%c0_9, %c0_10] : memref<1x190xf32, #tpu.memory_space<vmem>>, vector<1x190xf32>
    %12 = vector.broadcast %11 : vector<1x190xf32> to vector<8x190xf32>
    %13 = arith.addf %10, %12 : vector<8x190xf32>
    %cst_11 = arith.constant 0.000000e+00 : f32
    %14 = vector.broadcast %cst_11 : f32 to vector<8x190xf32>
    %15 = arith.maximumf %13, %14 : vector<8x190xf32>
    %16 = arith.truncf %15 : vector<8x190xf32> to vector<8x190xbf16>
    %c0_12 = arith.constant 0 : index
    %c0_13 = arith.constant 0 : index
    %17 = vector.load %arg6[%c0_12, %c0_13] : memref<190x90xbf16, #tpu.memory_space<vmem>>, vector<190x90xbf16>
    %cst_14 = arith.constant dense<0.000000e+00> : vector<8x90xf32>
    %18 = tpu.matmul %16, %17, %cst_14 {dimension_numbers = #tpu.dot_dimension_numbers<[1], [0], [0], [1], [0, 0, 1, 1], [], []>} : vector<8x190xbf16>, vector<190x90xbf16>, vector<8x90xf32> -> vector<8x90xf32>
    %c0_15 = arith.constant 0 : index
    %c0_16 = arith.constant 0 : index
    %19 = vector.load %arg7[%c0_15, %c0_16] : memref<1x90xf32, #tpu.memory_space<vmem>>, vector<1x90xf32>
    %20 = vector.broadcast %19 : vector<1x90xf32> to vector<8x90xf32>
    %21 = arith.addf %18, %20 : vector<8x90xf32>
    %cst_17 = arith.constant 0.000000e+00 : f32
    %22 = vector.broadcast %cst_17 : f32 to vector<8x90xf32>
    %23 = arith.subf %22, %21 : vector<8x90xf32>
    %24 = math.exp %23 : vector<8x90xf32>
    %cst_18 = arith.constant 1.000000e+00 : f32
    %25 = vector.broadcast %cst_18 : f32 to vector<8x90xf32>
    %26 = arith.addf %25, %24 : vector<8x90xf32>
    %cst_19 = arith.constant 1.000000e+00 : f32
    %27 = vector.broadcast %cst_19 : f32 to vector<8x90xf32>
    %28 = arith.divf %27, %26 : vector<8x90xf32>
    %c0_20 = arith.constant 0 : index
    %c0_21 = arith.constant 0 : index
    %29 = vector.load %arg8[%c0_20, %c0_21] : memref<8x90xf32, #tpu.memory_space<vmem>>, vector<8x90xf32>
    tpu.vector_store %arg8[%c0_20, %c0_21], %28 {strides = array<i32>} : memref<8x90xf32, #tpu.memory_space<vmem>>, vector<8x90xf32>,
    return
  }
  func.func @transform_0(%arg0: i32) -> (i32, i32) {
    %c0_i32 = arith.constant 0 : i32
    %c0_i32_0 = arith.constant 0 : i32
    return %arg0, %c0_i32 : i32, i32
  }
  func.func @transform_1(%arg0: i32) -> (i32, i32) {
    %c0_i32 = arith.constant 0 : i32
    %c0_i32_0 = arith.constant 0 : i32
    %c0_i32_1 = arith.constant 0 : i32
    return %c0_i32, %c0_i32_0 : i32, i32
  }
  func.func @transform_2(%arg0: i32) -> (i32, i32) {
    %c0_i32 = arith.constant 0 : i32
    %c0_i32_0 = arith.constant 0 : i32
    %c0_i32_1 = arith.constant 0 : i32
    return %c0_i32, %c0_i32_0 : i32, i32
  }
  func.func @transform_3(%arg0: i32) -> (i32, i32) {
    %c0_i32 = arith.constant 0 : i32
    %c0_i32_0 = arith.constant 0 : i32
    %c0_i32_1 = arith.constant 0 : i32
    return %c0_i32, %c0_i32_0 : i32, i32
  }
  func.func @transform_4(%arg0: i32) -> (i32, i32) {
    %c0_i32 = arith.constant 0 : i32
    %c0_i32_0 = arith.constant 0 : i32
    %c0_i32_1 = arith.constant 0 : i32
    return %c0_i32, %c0_i32_0 : i32, i32
  }
  func.func @transform_5(%arg0: i32) -> (i32, i32) {
    %c0_i32 = arith.constant 0 : i32
    %c0_i32_0 = arith.constant 0 : i32
    %c0_i32_1 = arith.constant 0 : i32
    return %c0_i32, %c0_i32_0 : i32, i32
  }
  func.func @transform_6(%arg0: i32) -> (i32, i32) {
    %c0_i32 = arith.constant 0 : i32
    %c0_i32_0 = arith.constant 0 : i32
    %c0_i32_1 = arith.constant 0 : i32
    return %c0_i32, %c0_i32_0 : i32, i32
  }
  func.func @transform_7(%arg0: i32) -> (i32, i32) {
    %c0_i32 = arith.constant 0 : i32
    %c0_i32_0 = arith.constant 0 : i32
    return %arg0, %c0_i32 : i32, i32
  }
}

</mosaic_0001>

<bundles_post_ra>
// kernel: net_forward.4
= control target key start
LH: loop header
LB: loop body
LE: loop exit
PB: predicated region body
PF: predicated region fallthrough
CT: control target
= control target key end

     0   :  { %s2584_s12 = smov 0   ;;  %s3555_s0 = inlined_call_operand.vmem [shape: f32[2,6,64,63], index: 0, kind: input, shape index: {}]   ;;  %s3556_s1 = inlined_call_operand.vmem [shape: bf16[16,384], index: 1, kind: input, shape index: {}]   ;;  %s3557_s2 = inlined_call_operand.vmem [shape: f32[16,1], index: 2, kind: input, shape index: {}]   ;;  %s3558_s3 = inlined_call_operand.vmem [shape: f32[2,7,7,16], index: 3, kind: output, shape index: {}]  }
   0x1 LB: > { %s2012_s13 = sadd.s32 4294967295, %s2548_s12   ;;  %p2016_p0 = scmp.ge.s32.totalorder %s2548_s12, 1  ;;  %s2548_s12 = sphi %s2584_s12, %s13_s12  }
   0x2   : > { %p137_p1 = scmp.lt.s32.totalorder %s2548_s12, 3 }
   0x4   : > { %p138_p2 = pnand %p2016_p0, %p137_p1 }
   0x5   : > { %p161_p3 = scmp.lt.s32.totalorder (!%p138_p2), %s2012_s13, 1  ;;  %s2632_s7 = smov (!%p138_p2), 0  }
   0x6   : > { %141 = sbr.rel (%p138_p2) target bundleno = 845 (0x34d), region = 32 }
   0xb   : > { %v2595_v0 = vld [vmem:[%s3556_s1] sm:$0xff]  ;;  %v2600_v1 = vld [vmem:[%s3556_s1 + $0x8] sm:$0xf]  ;;  %v2605_v2 = vld [vmem:[%s3556_s1 + $0xc] sm:$0xff]  ;;  %s3659_s13 = smov (!%p161_p3, %s2012_s13), 1 }
   0xc   : > { %3592 = vst [vmem:[#allocation2_spill] sm:$0xff] %v2595_v0  ;;  %3593 = vst [vmem:[#allocation3_spill] sm:$0xff] %v2600_v1  ;;  %v2610_v3 = vld [vmem:[%s3556_s1 + $0x14] sm:$0xf]  ;;  %v2615_v4 = vld [vmem:[%s3557_s2] sm:$0xff]  ;;  %s2508_s26 = smul.u32 384, %s3659_s13 }
   0xd   : > { %3594 = vst [vmem:[#allocation4_spill] sm:$0xff] %v2605_v2  ;;  %3595 = vst [vmem:[#allocation5_spill] sm:$0xff] %v2610_v3  ;;  %v2620_v5 = vld [vmem:[%s3557_s2 + $0x8] sm:$0xff]  ;;  %s2509_s27 = smul.u32 56, %s3659_s13 }
   0xe   : > { %3596 = vst [vmem:[#allocation6_spill] sm:$0xff] %v2615_v4  ;;  %3597 = vst [vmem:[#allocation7_spill] sm:$0xff] %v2620_v5  ;;  %s2625_s30 = scalar_lea.vmem %s3555_s0, %s2508_s26 }
   0xf   : > { %s2630_s6 = scalar_lea.vmem %s3558_s3, %s2509_s27 }
  0x10 LB: >> { %s2019_s8 = sshll.u32 %s2552_s7, 3  ;;  %v3559_v6 = vmov 0.0   ;;  %s2555_s10 = smov 124   ;;  %vm401_vm0 = vsmask.f32 3328  ;;  %vm2562_vm3 = vmmov 0   ;;  %s2552_s7 = sphi %s2632_s7, %s183_s7  }
  0x11   : >> { %2348 = vmatprep.subr.bf16.mxu1 %v3559_v6  ;;  %s2642_s9 = scalar_lea.vmem %s2625_s30, %s2019_s8  ;;  %s2556_s11 = smov 123   ;;  %vm402_vm1 = vsmask.f32 7440  ;;  %2364 = vmatprep.mubr.msk.bf16.mxu1 %vm2562_vm3, %v3559_v6  ;;  %vm647_vm4 = vcmask 1042432   ;;  %vm648_vm5 = vcmask 1046532   ;;  %vm1055_vm10 = vcmask 1041408  }
  0x12   : >> { %v194_v7 = vld [vmem:[%s2642_s9 + $0x100] sm:$0xff]  ;;  %s2557_s13 = smov 126   ;;  %s2558_s14 = smov 121   ;;  %v187_v22 = vld [vmem:[%s2642_s9 + $0x8] sm:$0xff]  ;;  %vm2780_vm2 = vmor %vm401_vm0, %vm402_vm1  ;;  %vm833_vm7 = vsmask.f32 2304 }
  0x13   : >> { %v3599_v0 = vld [vmem:[#allocation2_spill] sm:$0xff]  ;;  %s2559_s15 = smov 127   ;;  %v2676_v18 = vpack.c.bf16 %v194_v7, %v194_v7  ;;  %v189_v23 = vld [vmem:[%s2642_s9 + $0x48] sm:$0xff]  ;;  %v2708_v30 = vpack.c.bf16 %v187_v22, %v187_v22  ;;  %s2560_s16 = smov 125   ;;  %vm2861_vm6 = vmor %vm647_vm4, %vm648_vm5  ;;  %vm834_vm8 = vsmask.f32 6416 }
  0x14   : >> { %v3598_v2 = vld [vmem:[#allocation4_spill] sm:$0xff]  ;;  %v196_v8 = vld [vmem:[%s2642_s9 + $0x140] sm:$0xff]  ;;  %v2710_v31 = vpack.c.bf16 %v189_v23, %v189_v23  ;;  %v195_v36 = vld [vmem:[%s2642_s9 + $0x108] sm:$0xff]  ;;  %s2561_s17 = smov 122   ;;  %vm1056_vm11 = vcmask 1045508   ;;  %vm1451_vm0 = vcmask 1040384   ;;  %s1945_s18 = scalar_lea.vmem %s2630_s6, %s2019_s8 }
  0x15   : >> { %v186_v9 = vld [vmem:[%s2642_s9] sm:$0xff]  ;;  %v2647_v10 = vpack.c.bf16 %v196_v8, %v194_v7  ;;  %v2678_v19 = vpack.c.bf16 %v196_v8, %v196_v8  ;;  %v2703_v28 = vshrl.u32 %v2676_v18, 16  ;;  %v197_v37 = vld [vmem:[%s2642_s9 + $0x148] sm:$0xff]  ;;  %v2723_v38 = vshll.u32 %v2676_v18, 16  ;;  %vm2976_vm9 = vmor %vm833_vm7, %vm834_vm8  ;;  %s183_s7 = sadd.s32 1, %s2552_s7  }
  0x16   : >> { %v188_v11 = vld [vmem:[%s2642_s9 + $0x40] sm:$0xff]  ;;  %v2668_v16 = vpack.c.bf16 %v186_v9, %v186_v9  ;;  %v191_v42 = vld [vmem:[%s2642_s9 + $0x88] sm:$0xff]  ;;  %v2743_v46 = vshll.u32 %v2708_v30, 16  ;;  %v2746_v47 = vshll.u32 %v2710_v31, 16  ;;  %v2748_v48 = vpack.c.bf16 %v195_v36, %v195_v36  ;;  %vm3061_vm12 = vmor %vm1055_vm10, %vm1056_vm11  ;;  %p180_p4 = scmp.ge.s32.totalorder %s183_s7, 7  }
  0x17   : >> { %v190_v12 = vld [vmem:[%s2642_s9 + $0x80] sm:$0xff]  ;;  %v2652_v14 = vpack.c.bf16 %v188_v11, %v186_v9  ;;  %253 = vrot.lane.b32.xlu1 %v2647_v10, %s2555_s10  ;;  %v2670_v17 = vpack.c.bf16 %v188_v11, %v188_v11  ;;  %3600 = vst [vmem:[#allocation8_spill] sm:$0xff] %v2703_v28  ;;  %v2706_v29 = vshrl.u32 %v2678_v19, 16  ;;  %3602 = vst [vmem:[#allocation10_spill] sm:$0xff] %v2723_v38  ;;  %v2726_v39 = vshll.u32 %v2678_v19, 16  ;;  %v193_v43 = vld [vmem:[%s2642_s9 + $0xc8] sm:$0xff] }
  0x18   : >> { %v192_v13 = vld [vmem:[%s2642_s9 + $0xc0] sm:$0xff]  ;;  %v2681_v20 = vshrl.u32 %v2668_v16, 16  ;;  %v2691_v24 = vshll.u32 %v2668_v16, 16  ;;  %v2698_v26 = vpack.c.bf16 %v190_v12, %v190_v12  ;;  %3607 = vst [vmem:[#allocation15_spill] sm:$0xff] %v2746_v47  ;;  %v2750_v49 = vpack.c.bf16 %v197_v37, %v197_v37  ;;  %v3626_v3 = vld [vmem:[#allocation5_spill] sm:$0xff]  ;;  %v3627_v1 = vld [vmem:[#allocation3_spill] sm:$0xff] }
  0x19   : >> { %258 = vrot.lane.b32.xlu0 %v2652_v14, %s2556_s11  ;;  %v2658_v15 = vpack.c.bf16 %v192_v13, %v190_v12  ;;  %v2684_v21 = vshrl.u32 %v2670_v17, 16  ;;  %v2694_v25 = vshll.u32 %v2670_v17, 16  ;;  %v2700_v27 = vpack.c.bf16 %v192_v13, %v192_v13  ;;  %3601 = vst [vmem:[#allocation9_spill] sm:$0xff] %v2706_v29  ;;  %3603 = vst [vmem:[#allocation11_spill] sm:$0xff] %v2726_v39 }
  0x1a   : >> { %v407_v32 = vrot.slane %v2681_v20, 4  ;;  %v410_v33 = vrot.slane %v2691_v24, 5  ;;  %v2729_v40 = vshrl.u32 %v2698_v26, 16  ;;  %v2737_v44 = vshll.u32 %v2698_v26, 16 }
  0x1b   : >> { %231 = vrot.lane.b32.xlu1 %v2652_v14, %s2557_s13  ;;  %v421_v34 = vrot.slane %v2684_v21, 4  ;;  %v424_v35 = vrot.slane %v2694_v25, 5  ;;  %v2732_v41 = vshrl.u32 %v2700_v27, 16  ;;  %v2740_v45 = vshll.u32 %v2700_v27, 16 }
  0x1c   : >> { %3604 = vst [vmem:[#allocation12_spill] sm:$0xff] %v2729_v40  ;;  %3606 = vst [vmem:[#allocation14_spill] sm:$0xff] %v2737_v44  ;;  %v411_v50 = vor.u32 %v410_v33, %v407_v32  ;;  %v463_v52 = vrot.slane %v2703_v28, 4  ;;  %v477_v53 = vrot.slane %v2706_v29, 4  ;;  %v466_v54 = vrot.slane %v2723_v38, 5 }
  0x1d   : >> { %233 = vrot.lane.b32.xlu0 %v2658_v15, %s2557_s13  ;;  %3605 = vst [vmem:[#allocation13_spill] sm:$0xff] %v2732_v41  ;;  %v425_v51 = vor.u32 %v424_v35, %v421_v34  ;;  %v480_v55 = vrot.slane %v2726_v39, 5  ;;  %v2760_v56 = vpack.c.bf16 %v191_v42, %v191_v42  ;;  %v2762_v57 = vpack.c.bf16 %v193_v43, %v193_v43 }
  0x1e   : >> { %v435_v58 = vrot.slane %v2729_v40, 4  ;;  %v438_v59 = vrot.slane %v2737_v44, 5  ;;  %v449_v60 = vrot.slane %v2732_v41, 4  ;;  %v452_v61 = vrot.slane %v2740_v45, 5 }
  0x1f   : >> { %251 = vrot.lane.b32.xlu1 %v2658_v15, %s2555_s10  ;;  %v416_v62 = vrot.slane %v2743_v46, 5  ;;  %v430_v63 = vrot.slane %v2746_v47, 5  ;;  %v2773_v7 = vshll.u32 %v2748_v48, 16  ;;  %v2776_v8 = vshll.u32 %v2750_v49, 16 }
  0x20   : >> { %v412_v9 = vrot.slane %v411_v50, 4  ;;  %v426_v11 = vrot.slane %v425_v51, 4  ;;  %v467_v12 = vor.u32 %v466_v54, %v463_v52  ;;  %v481_v13 = vor.u32 %v480_v55, %v477_v53 }
  0x21   : >> { %280 = vrot.lane.b32.xlu0 %v2647_v10, %s2558_s14  ;;  %3608 = vst [vmem:[#allocation16_spill] sm:$0xff] %v2773_v7  ;;  %3609 = vst [vmem:[#allocation17_spill] sm:$0xff] %v2776_v8  ;;  %v439_v23 = vor.u32 %v438_v59, %v435_v58  ;;  %v2785_v32 = vshll.u32 %v2760_v56, 16  ;;  %v453_v33 = vor.u32 %v452_v61, %v449_v60  ;;  %v2788_v34 = vshll.u32 %v2762_v57, 16 }
  0x22   : >> { %v472_v35 = vrot.slane %v2773_v7, 5  ;;  %v486_v36 = vrot.slane %v2776_v8, 5  ;;  %v2796_v37 = vcombine.high %v3599_v0, %v3598_v2  ;;  %v417_v42 = vsel %vm2780_vm2, %v412_v9, %v416_v62 }
  0x23   : >> { %278 = vrot.lane.b32.xlu1 %v2658_v15, %s2558_s14  ;;  %3612 = vst [vmem:[#allocation18_spill] sm:$0xff] %v2785_v32  ;;  %3613 = vst [vmem:[#allocation19_spill] sm:$0xff] %v2788_v34  ;;  %v431_v43 = vsel %vm2780_vm2, %v426_v11, %v430_v63  ;;  %v468_v50 = vrot.slane %v467_v12, 4  ;;  %v482_v51 = vrot.slane %v481_v13, 4  ;;  %v440_v52 = vrot.slane %v439_v23, 4 }
  0x24   : >> { %v444_v53 = vrot.slane %v2785_v32, 5  ;;  %v454_v54 = vrot.slane %v453_v33, 4  ;;  %v458_v55 = vrot.slane %v2788_v34, 5  ;;  %333 = vmatprep.mubr.bf16.mxu0 %v2796_v37  ;;  %v2811_v58 = vcombine.low %v417_v42, %v431_v43 }
  0x25   : >> { %226 = vrot.lane.b32.xlu0 %v2647_v10, %s2559_s15  ;;  %v473_v59 = vsel %vm2780_vm2, %v468_v50, %v472_v35  ;;  %v487_v60 = vsel %vm2780_vm2, %v482_v51, %v486_v36  ;;  %v2041_v11 = vrot.slane %v2668_v16, 9  ;;  %v652_v12 = vrot.slane %v2708_v30, 5 }
  0x26   : >> { %3614 = vst [vmem:[#allocation20_spill] sm:$0xff] %v2811_v58  ;;  %v445_v61 = vsel %vm2780_vm2, %v440_v52, %v444_v53  ;;  %v459_v62 = vsel %vm2780_vm2, %v454_v54, %v458_v55  ;;  %v2825_v63 = vcombine.low %v473_v59, %v487_v60  ;;  %v2042_v22 = vrot.slane %v2670_v17, 9 }
  0x27   : >> { %224 = vrot.lane.b32.xlu1 %v2658_v15, %s2559_s15  ;;  %v2829_v9 = vcombine.low %v445_v61, %v459_v62  ;;  %v656_v23 = vrot.slane %v2710_v31, 5  ;;  %v653_v33 = vsel %vm2861_vm6, %v2041_v11, %v652_v12  ;;  %v2043_v35 = vrot.slane %v2698_v26, 9 }
  0x28   : >> { %v660_v42 = vrot.slane %v2760_v56, 5  ;;  %v2044_v43 = vrot.slane %v2700_v27, 9  ;;  %v664_v50 = vrot.slane %v2762_v57, 5  ;;  %v2045_v54 = vrot.slane %v2676_v18, 9 }
  0x29   : >> { %249 = vrot.lane.b32.xlu0 %v2652_v14, %s2555_s10  ;;  %v657_v36 = vsel %vm2861_vm6, %v2042_v22, %v656_v23  ;;  %v668_v55 = vrot.slane %v2748_v48, 5  ;;  %v2046_v59 = vrot.slane %v2678_v19, 9  ;;  %v672_v60 = vrot.slane %v2750_v49, 5 }
  0x2a   : >> { %v2881_v51 = vcombine.low %v653_v33, %v657_v36  ;;  %v661_v52 = vsel %vm2861_vm6, %v2043_v35, %v660_v42  ;;  %v665_v53 = vsel %vm2861_vm6, %v2044_v43, %v664_v50  ;;  %v836_v13 = vrot.slane %v2681_v20, 5 }
  0x2b   : >> { %244 = vrot.lane.b32.xlu1 %v2647_v10, %s2560_s16  ;;  %v2895_v61 = vcombine.low %v661_v52, %v665_v53  ;;  %v669_v62 = vsel %vm2861_vm6, %v2045_v54, %v668_v55  ;;  %v673_v11 = vsel %vm2861_vm6, %v2046_v59, %v672_v60  ;;  %v837_v22 = vrot.slane %v2691_v24, 6 }
  0x2c   : >> { %v2907_v12 = vcombine.low %v669_v62, %v673_v11  ;;  %v2928_v23 = vshrl.u32 %v2708_v30, 16  ;;  %v846_v33 = vrot.slane %v2684_v21, 5  ;;  %v847_v35 = vrot.slane %v2694_v25, 6 }
  0x2d   : >> { %276 = vrot.lane.b32.xlu0 %v2652_v14, %s2558_s14  ;;  %v2935_v36 = vshrl.u32 %v2710_v31, 16  ;;  %v838_v42 = vor.u32 %v837_v22, %v836_v13  ;;  %v843_v43 = vrot.slane %v2743_v46, 6  ;;  %v853_v53 = vrot.slane %v2746_v47, 6 }
  0x2e   : >> { %v842_v50 = vrot.slane %v2928_v23, 5  ;;  %v848_v52 = vor.u32 %v847_v35, %v846_v33  ;;  %v876_v54 = vrot.slane %v2703_v28, 5  ;;  %v877_v59 = vrot.slane %v2723_v38, 6 }
  0x2f   : >> { %271 = vrot.lane.b32.xlu1 %v2647_v10, %s2561_s17  ;;  %v852_v55 = vrot.slane %v2935_v36, 5  ;;  %v2948_v60 = vshrl.u32 %v2748_v48, 16  ;;  %v886_v62 = vrot.slane %v2706_v29, 5  ;;  %v887_v11 = vrot.slane %v2726_v39, 6 }
  0x30   : >> { %v2955_v13 = vshrl.u32 %v2750_v49, 16  ;;  %v856_v22 = vrot.slane %v2729_v40, 5  ;;  %v857_v33 = vrot.slane %v2737_v44, 6  ;;  %v2960_v35 = vshrl.u32 %v2760_v56, 16 }
  0x31   : >> { %222 = vrot.lane.b32.xlu0 %v2652_v14, %s2559_s15  ;;  %3617 = vst [vmem:[#allocation21_spill] sm:$0xff] %v2948_v60  ;;  %v866_v6 = vrot.slane %v2732_v41, 5  ;;  %v867_v5 = vrot.slane %v2740_v45, 6  ;;  %v2965_v4 = vshrl.u32 %v2762_v57, 16  ;;  %v844_v29 = vor.u32 %v843_v43, %v842_v50 }
  0x32   : >> { %3618 = vst [vmem:[#allocation22_spill] sm:$0xff] %v2955_v13  ;;  %3619 = vst [vmem:[#allocation23_spill] sm:$0xff] %v2960_v35  ;;  %v849_v39 = vrot.slane %v848_v52, 4  ;;  %v883_v38 = vrot.slane %v2773_v7, 6  ;;  %v854_v40 = vor.u32 %v853_v53, %v852_v55  ;;  %v878_v44 = vor.u32 %v877_v59, %v876_v54 }
  0x33   : >> { %269 = vrot.lane.b32.xlu1 %v2658_v15, %s2561_s17  ;;  %3620 = vst [vmem:[#allocation24_spill] sm:$0xff] %v2965_v4  ;;  %v882_v28 = vrot.slane %v2948_v60, 5  ;;  %v893_v47 = vrot.slane %v2776_v8, 6  ;;  %v888_v43 = vor.u32 %v887_v11, %v886_v62  ;;  %v892_v50 = vrot.slane %v2955_v13, 5 }
  0x34   : >> { %v858_v52 = vor.u32 %v857_v33, %v856_v22  ;;  %v863_v53 = vrot.slane %v2785_v32, 6  ;;  %v862_v55 = vrot.slane %v2960_v35, 5  ;;  %v868_v59 = vor.u32 %v867_v5, %v866_v6 }
  0x35   : >> { %242 = vrot.lane.b32.xlu0 %v2658_v15, %s2560_s16  ;;  %v872_v8 = vrot.slane %v2965_v4, 5  ;;  %v873_v7 = vrot.slane %v2788_v34, 6  ;;  %v879_v11 = vrot.slane %v878_v44, 4  ;;  %v855_v22 = vsel %vm2976_vm9, %v849_v39, %v854_v40 }
  0x36   : >> { %v884_v5 = vor.u32 %v883_v38, %v882_v28  ;;  %v889_v6 = vrot.slane %v888_v43, 4  ;;  %v894_v33 = vor.u32 %v893_v47, %v892_v50  ;;  %v859_v34 = vrot.slane %v858_v52, 4 }
  0x37   : >> { %267 = vrot.lane.b32.xlu1 %v2652_v14, %s2561_s17  ;;  %v864_v32 = vor.u32 %v863_v53, %v862_v55  ;;  %v874_v35 = vor.u32 %v873_v7, %v872_v8  ;;  %vm1241_vm13 = vsmask.f32 1280  ;;  %vm1242_vm14 = vsmask.f32 5392 }
  0x38   : >> { %v885_v28 = vsel %vm2976_vm9, %v879_v11, %v884_v5  ;;  %v895_v38 = vsel %vm2976_vm9, %v889_v6, %v894_v33  ;;  %v2054_v5 = vrot.slane %v2670_v17, 10  ;;  %v1064_v6 = vrot.slane %v2710_v31, 6  ;;  %vm3175_vm15 = vmor %vm1241_vm13, %vm1242_vm14 }
  0x39   : >> { %240 = vrot.lane.b32.xlu0 %v2652_v14, %s2560_s16  ;;  %v865_v40 = vsel %vm2976_vm9, %v859_v34, %v864_v32  ;;  %v3011_v7 = vcombine.low %v885_v28, %v895_v38  ;;  %v1068_v28 = vrot.slane %v2760_v56, 6  ;;  %vm1452_vm1 = vcmask 1044484  }
  0x3a   : >> { %vm3264_vm2 = vmor %vm1451_vm0, %vm1452_vm1  ;;  %vm1637_vm4 = vsmask.f32 256  ;;  %vm1638_vm5 = vsmask.f32 4368  ;;  %vm1932_vm7 = vcmask 1041409   ;;  %vm1934_vm8 = vcmask 1042434  }
  0x3b   : >> { %262 = vrot.lane.b32.xlu1 %v2647_v10, %s2556_s11  ;;  %vm3361_vm6 = vmor %vm1637_vm4, %vm1638_vm5  ;;  %vm1940_vm10 = vcmask 1045509   ;;  %vm1942_vm11 = vcmask 1046534  }
  0x3d   : >> { %235 = vrot.lane.b32.xlu0 %v2647_v10, %s2557_s13 }
  0x3f   : >> { %260 = vrot.lane.b32.xlu1 %v2658_v15, %s2556_s11 }
  0x41   : >> { %536 = vrot.lane.b32.xlu0 %v2811_v58, %s2556_s11 }
  0x43   : >> { %531 = vrot.lane.b32.xlu1 %v2825_v63, %s2555_s10 }
  0x45   : >> { %511 = vrot.lane.b32.xlu0 %v2829_v9, %s2557_s13 }
  0x47   : >> { %558 = vrot.lane.b32.xlu1 %v2825_v63, %s2558_s14 }
  0x49   : >> { %509 = vrot.lane.b32.xlu0 %v2811_v58, %s2557_s13 }
  0x4b   : >> { %504 = vrot.lane.b32.xlu1 %v2825_v63, %s2559_s15 }
  0x4d   : >> { %529 = vrot.lane.b32.xlu0 %v2829_v9, %s2555_s10 }
  0x4f   : >> { %527 = vrot.lane.b32.xlu1 %v2811_v58, %s2555_s10 }
  0x51   : >> { %556 = vrot.lane.b32.xlu0 %v2829_v9, %s2558_s14 }
  0x53   : >> { %554 = vrot.lane.b32.xlu1 %v2811_v58, %s2558_s14 }
  0x55   : >> { %502 = vrot.lane.b32.xlu0 %v2829_v9, %s2559_s15 }
  0x57   : >> { %500 = vrot.lane.b32.xlu1 %v2811_v58, %s2559_s15 }
  0x59   : >> { %522 = vrot.lane.b32.xlu0 %v2825_v63, %s2560_s16 }
  0x5b   : >> { %520 = vrot.lane.b32.xlu1 %v2829_v9, %s2560_s16 }
  0x5d   : >> { %549 = vrot.lane.b32.xlu0 %v2825_v63, %s2561_s17 }
  0x5f   : >> { %518 = vrot.lane.b32.xlu1 %v2811_v58, %s2560_s16 }
  0x61   : >> { %547 = vrot.lane.b32.xlu0 %v2829_v9, %s2561_s17 }
  0x63   : >> { %513 = vrot.lane.b32.xlu1 %v2825_v63, %s2557_s13 }
  0x65   : >> { %545 = vrot.lane.b32.xlu0 %v2811_v58, %s2561_s17  ;;  %v839_v58 = vrot.slane %v838_v42, 4 }
  0x67   : >> { %722 = vrot.lane.b32.xlu1 %v2881_v51, %s2556_s11  ;;  %v845_v62 = vsel %vm2976_vm9, %v839_v58, %v844_v29 }
  0x68   : >> { %v2997_v29 = vcombine.low %v845_v62, %v855_v22  ;;  %v1060_v22 = vrot.slane %v2708_v30, 6 }
  0x69   : >> { %540 = vrot.lane.b32.xlu0 %v2825_v63, %s2556_s11 }
  0x6b   : >> { %697 = vrot.lane.b32.xlu1 %v2895_v61, %s2557_s13 }
  0x6d   : >> { %538 = vrot.lane.b32.xlu0 %v2829_v9, %s2556_s11 }
  0x6f   : >> { %695 = vrot.lane.b32.xlu1 %v2881_v51, %s2557_s13 }
  0x71   : >> { %717 = vrot.lane.b32.xlu0 %v2907_v12, %s2555_s10 }
  0x73   : >> { %715 = vrot.lane.b32.xlu1 %v2895_v61, %s2555_s10 }
  0x75   : >> { %744 = vrot.lane.b32.xlu0 %v2907_v12, %s2558_s14 }
  0x77   : >> { %742 = vrot.lane.b32.xlu1 %v2895_v61, %s2558_s14 }
  0x79   : >> { %690 = vrot.lane.b32.xlu0 %v2907_v12, %s2559_s15 }
  0x7b   : >> { %688 = vrot.lane.b32.xlu1 %v2895_v61, %s2559_s15 }
  0x7d   : >> { %713 = vrot.lane.b32.xlu0 %v2881_v51, %s2555_s10 }
  0x7f   : >> { %708 = vrot.lane.b32.xlu1 %v2907_v12, %s2560_s16 }
  0x81   : >> { %740 = vrot.lane.b32.xlu0 %v2881_v51, %s2558_s14 }
  0x83   : >> { %735 = vrot.lane.b32.xlu1 %v2907_v12, %s2561_s17 }
  0x85   : >> { %686 = vrot.lane.b32.xlu0 %v2881_v51, %s2559_s15 }
  0x87   : >> { %733 = vrot.lane.b32.xlu1 %v2895_v61, %s2561_s17 }
  0x89   : >> { %706 = vrot.lane.b32.xlu0 %v2895_v61, %s2560_s16  ;;  %v254_v54 = vpop.permute.xlu1 %253 }
  0x8b   : >> { %v259_v60 = vpop.permute.xlu0 %258  ;;  %731 = vrot.lane.b32.xlu1 %v2881_v51, %s2561_s17 }
  0x8c   : >> { %2100 = vmatprep.subr.bf16.mxu0 %v259_v60  ;;  %v869_v60 = vrot.slane %v868_v59, 4 }
  0x8d   : >> { %704 = vrot.lane.b32.xlu0 %v2881_v51, %s2560_s16  ;;  %v232_v4 = vpop.permute.xlu1 %231 }
  0x8e   : >> { %v875_v44 = vsel %vm2976_vm9, %v869_v60, %v874_v35  ;;  %vm1936_vm9 = vcmask 1043459  }
  0x8f   : >> { %v234_v13 = vpop.permute.xlu0 %233  ;;  %726 = vrot.lane.b32.xlu1 %v2907_v12, %s2556_s11  ;;  %v3013_v8 = vcombine.low %v865_v40, %v875_v44  ;;  %v1065_v44 = vsel %vm3061_vm12, %v2054_v5, %v1064_v6 }
  0x90   : >> { %2101 = vmatpush3.bf16.msra.mxu0 %v234_v13  ;;  %v3623_v13 = vmov 0.0  }
  0x91   : >> { %699 = vrot.lane.b32.xlu0 %v2907_v12, %s2557_s13  ;;  %2102 = vmatprep.subr.bf16.mxu0 %v254_v54  ;;  %v252_v39 = vpop.permute.xlu1 %251 }
  0x93   : >> { %v281_v47 = vpop.permute.xlu0 %280  ;;  %724 = vrot.lane.b32.xlu1 %v2895_v61, %s2556_s11 }
  0x94   : >> { %2103 = vmatpush3.bf16.msra.mxu0 %v232_v4  ;;  %2349 = vmatpush3.bf16.msra.mxu1 %v281_v47  ;;  %v2056_v47 = vrot.slane %v2700_v27, 10 }
  0x95   : >> { %944 = vrot.lane.b32.xlu0 %v2997_v29, %s2556_s11  ;;  %v279_v58 = vpop.permute.xlu1 %278  ;;  %2104 = vmatprep.subr.bf16.mxu0 %v252_v39  ;;  %v3067_v39 = vcombine.low %v3627_v1, %v3626_v3  ;;  %v3637_v1 = vld [vmem:[#allocation16_spill] sm:$0xff] }
  0x96   : >> { %2350 = vmatprep.subr.bf16.mxu1 %v3623_v13 }
  0x97   : >> { %v227_v32 = vpop.permute.xlu0 %226  ;;  %939 = vrot.lane.b32.xlu1 %v3011_v7, %s2555_s10 }
  0x98   : >> { %2105 = vmatpush3.bf16.msra.mxu0 %v227_v32  ;;  %2351 = vmatpush3.bf16.msra.mxu1 %v279_v58  ;;  %v1072_v58 = vrot.slane %v2762_v57, 6 }
  0x99   : >> { %919 = vrot.lane.b32.xlu0 %v3013_v8, %s2557_s13  ;;  %v225_v4 = vpop.permute.xlu1 %224  ;;  %2352 = vmatprep.subr.bf16.mxu1 %v3623_v13 }
  0x9b   : >> { %v250_v34 = vpop.permute.xlu0 %249  ;;  %966 = vrot.lane.b32.xlu1 %v3011_v7, %s2558_s14 }
  0x9c   : >> { %2106 = vmatprep.subr.bf16.mxu0 %v250_v34 }
  0x9d   : >> { %917 = vrot.lane.b32.xlu0 %v2997_v29, %s2557_s13  ;;  %v245_v35 = vpop.permute.xlu1 %244  ;;  %2107 = vmatpush3.bf16.msra.mxu0 %v225_v4 }
  0x9e   : >> { %2108 = vmatprep.subr.bf16.mxu0 %v245_v35  ;;  %v2057_v35 = vrot.slane %v2676_v18, 10 }
  0x9f   : >> { %v277_v42 = vpop.permute.xlu0 %276  ;;  %912 = vrot.lane.b32.xlu1 %v3011_v7, %s2559_s15 }
  0xa0   : >> { %2353 = vmatpush3.bf16.msra.mxu1 %v277_v42 }
  0xa1   : >> { %937 = vrot.lane.b32.xlu0 %v3013_v8, %s2555_s10  ;;  %v272_v43 = vpop.permute.xlu1 %271  ;;  %2354 = vmatprep.subr.bf16.mxu1 %v3623_v13 }
  0xa3   : >> { %v223_v50 = vpop.permute.xlu0 %222  ;;  %935 = vrot.lane.b32.xlu1 %v2997_v29, %s2555_s10 }
  0xa4   : >> { %2109 = vmatpush3.bf16.msra.mxu0 %v223_v50  ;;  %2355 = vmatpush3.bf16.msra.mxu1 %v272_v43  ;;  %v1073_v43 = vsel %vm3061_vm12, %v2056_v47, %v1072_v58  ;;  %v1076_v50 = vrot.slane %v2748_v48, 6  ;;  %v1244_v47 = vrot.slane %v2681_v20, 6  ;;  %v1245_v58 = vrot.slane %v2691_v24, 7 }
  0xa5   : >> { %964 = vrot.lane.b32.xlu0 %v3013_v8, %s2558_s14  ;;  %v270_v52 = vpop.permute.xlu1 %269  ;;  %2356 = vmatprep.subr.bf16.mxu1 %v3623_v13  ;;  %v1248_v24 = vrot.slane %v2928_v23, 6 }
  0xa7   : >> { %v243_v53 = vpop.permute.xlu0 %242  ;;  %962 = vrot.lane.b32.xlu1 %v2997_v29, %s2558_s14 }
  0xa8   : >> { %2110 = vmatprep.subr.bf16.mxu0 %v243_v53  ;;  %2357 = vmatpush3.bf16.msra.mxu1 %v270_v52  ;;  %v2058_v52 = vrot.slane %v2678_v19, 10  ;;  %v1080_v53 = vrot.slane %v2750_v49, 6 }
  0xa9   : >> { %910 = vrot.lane.b32.xlu0 %v3013_v8, %s2559_s15  ;;  %v268_v54 = vpop.permute.xlu1 %267  ;;  %2111 = vmatpush3.bf16.msra.mxu0 %v2647_v10  ;;  %v3053_v10 = vcombine.low %v3599_v0, %v3598_v2  ;;  %v3638_v2 = vld [vmem:[#allocation22_spill] sm:$0xff] }
  0xaa   : >> { %2358 = vmatprep.subr.bf16.mxu1 %v3623_v13  ;;  %v1288_v3 = vrot.slane %v3638_v2, 6 }
  0xab   : >> { %v241_v55 = vpop.permute.xlu0 %240  ;;  %908 = vrot.lane.b32.xlu1 %v2997_v29, %s2559_s15 }
  0xac   : >> { %2112 = vmatprep.subr.bf16.mxu0 %v241_v55  ;;  %2359 = vmatpush3.bf16.msra.mxu1 %v268_v54 }
  0xad   : >> { %930 = vrot.lane.b32.xlu0 %v3011_v7, %s2560_s16  ;;  %v263_v59 = vpop.permute.xlu1 %262  ;;  %2113 = vmatpush3.bf16.msra.mxu0 %v2658_v15  ;;  %v2053_v15 = vrot.slane %v2668_v16, 10 }
  0xae   : >> { %2360 = vmatprep.subr.bf16.mxu1 %v3623_v13 }
  0xaf   : >> { %v236_v62 = vpop.permute.xlu0 %235  ;;  %928 = vrot.lane.b32.xlu1 %v3013_v8, %s2560_s16  ;;  %v1061_v40 = vsel %vm3061_vm12, %v2053_v15, %v1060_v22 }
  0xb0   : >> { %2114 = vmatprep.subr.bf16.mxu0 %v236_v62  ;;  %2361 = vmatpush3.bf16.msra.mxu1 %v263_v59  ;;  %v3091_v4 = vcombine.low %v1061_v40, %v1065_v44  ;;  %v1077_v62 = vsel %vm3061_vm12, %v2057_v35, %v1076_v50  ;;  %v1253_v35 = vrot.slane %v2694_v25, 7  ;;  %v1249_v50 = vrot.slane %v2743_v46, 7 }
  0xb1   : >> { %957 = vrot.lane.b32.xlu0 %v3011_v7, %s2561_s17  ;;  %v261_v11 = vpop.permute.xlu1 %260  ;;  %2115 = vmatpush3.bf16.msra.mxu0 %v2652_v14  ;;  %v2055_v14 = vrot.slane %v2698_v26, 10 }
  0xb2   : >> { %2362 = vmatprep.subr.bf16.mxu1 %v3623_v13 }
  0xb3   : >> { %v537_v33 = vpop.permute.xlu0 %536  ;;  %926 = vrot.lane.b32.xlu1 %v2997_v29, %s2560_s16  ;;  %v1069_v34 = vsel %vm3061_vm12, %v2055_v14, %v1068_v28 }
  0xb4   : >> { %2131 = vmatprep.subr.bf16.mxu0 %v537_v33  ;;  %2363 = vmatpush3.bf16.msra.mxu1 %v261_v11  ;;  %v3106_v55 = vcombine.low %v1069_v34, %v1073_v43  ;;  %v1081_v11 = vsel %vm3061_vm12, %v2058_v52, %v1080_v53  ;;  %v1252_v34 = vrot.slane %v2684_v21, 6  ;;  %v1256_v52 = vrot.slane %v2935_v36, 6  ;;  %v3628_v53 = vld [vmem:[#allocation15_spill] sm:$0xff] }
  0xb5   : >> { %955 = vrot.lane.b32.xlu0 %v3013_v8, %s2561_s17  ;;  %v532_v38 = vpop.permute.xlu1 %531  ;;  %334 = vmatmul.mubr.bf16.vlgmr.msra.gmra.mxu0 %v3053_v10  ;;  %v3116_v22 = vcombine.low %v1077_v62, %v1081_v11  ;;  %v3630_v11 = vld [vmem:[#allocation10_spill] sm:$0xff]  ;;  %vm1946_vm12 = vcmask 129024  }
  0xb6   : >> { %2368 = vmatprep.subr.bf16.mxu1 %v3623_v13  ;;  %595 = vmatprep.mubr.bf16.mxu0 %v2796_v37  ;;  %v1254_v25 = vor.u32 %v1253_v35, %v1252_v34  ;;  %v1250_v35 = vor.u32 %v1249_v50, %v1248_v24  ;;  %v3641_v24 = vld [vmem:[#allocation17_spill] sm:$0xff] }
  0xb7   : >> { %v512_v32 = vpop.permute.xlu0 %511  ;;  %2365 = vmatmul.mubr.bf16.vlgmr.msra.gmra.mxu1 %v3067_v39  ;;  %921 = vrot.lane.b32.xlu1 %v3011_v7, %s2557_s13  ;;  %v1289_v50 = vrot.slane %v3641_v24, 7 }
  0xb8   : >> { %2132 = vmatpush3.bf16.msra.mxu0 %v512_v32  ;;  %2384 = vmatprep.mubr.msk.bf16.mxu1 %vm2562_vm3, %v3623_v13 }
  0xb9   : >> { %953 = vrot.lane.b32.xlu0 %v2997_v29, %s2561_s17  ;;  %v559_v42 = vpop.permute.xlu1 %558  ;;  %2133 = vmatprep.subr.bf16.mxu0 %v532_v38 }
  0xba   : >> { %2369 = vmatpush3.bf16.msra.mxu1 %v559_v42 }
  0xbb   : >> { %v510_v54 = vpop.permute.xlu0 %509  ;;  %2370 = vmatprep.subr.bf16.mxu1 %v3623_v13  ;;  %1130 = vrot.lane.b32.xlu1 %v3091_v4, %s2556_s11 }
  0xbc   : >> { %2134 = vmatpush3.bf16.msra.mxu0 %v510_v54  ;;  %v1257_v54 = vrot.slane %v3628_v53, 7 }
  0xbd   : >> { %948 = vrot.lane.b32.xlu0 %v3011_v7, %s2556_s11  ;;  %v505_v59 = vpop.permute.xlu1 %504 }
  0xbf   : >> { %v530_v15 = vpop.permute.xlu0 %529  ;;  %1105 = vrot.lane.b32.xlu1 %v3106_v55, %s2557_s13 }
  0xc0   : >> { %2135 = vmatprep.subr.bf16.mxu0 %v530_v15  ;;  %v1277_v15 = vrot.slane %v3630_v11, 7 }
  0xc1   : >> { %946 = vrot.lane.b32.xlu0 %v3013_v8, %s2556_s11  ;;  %v528_v5 = vpop.permute.xlu1 %527  ;;  %2136 = vmatpush3.bf16.msra.mxu0 %v505_v59  ;;  %v3629_v59 = vld [vmem:[#allocation8_spill] sm:$0xff] }
  0xc2   : >> { %2137 = vmatprep.subr.bf16.mxu0 %v528_v5  ;;  %v1276_v62 = vrot.slane %v3629_v59, 6 }
  0xc3   : >> { %v557_v6 = vpop.permute.xlu0 %556  ;;  %1103 = vrot.lane.b32.xlu1 %v3091_v4, %s2557_s13 }
  0xc4   : >> { %2371 = vmatpush3.bf16.msra.mxu1 %v557_v6  ;;  %v3632_v6 = vld [vmem:[#allocation11_spill] sm:$0xff]  ;;  %v1278_v11 = vor.u32 %v1277_v15, %v1276_v62 }
  0xc5   : >> { %1125 = vrot.lane.b32.xlu0 %v3116_v22, %s2555_s10  ;;  %v555_v33 = vpop.permute.xlu1 %554  ;;  %2372 = vmatprep.subr.bf16.mxu1 %v3623_v13 }
  0xc7   : >> { %v503_v60 = vpop.permute.xlu0 %502  ;;  %1123 = vrot.lane.b32.xlu1 %v3106_v55, %s2555_s10 }
  0xc8   : >> { %2138 = vmatpush3.bf16.msra.mxu0 %v503_v60  ;;  %2373 = vmatpush3.bf16.msra.mxu1 %v555_v33  ;;  %v1285_v33 = vrot.slane %v3632_v6, 7  ;;  %v3636_v6 = vld [vmem:[#allocation21_spill] sm:$0xff] }
  0xc9   : >> { %1152 = vrot.lane.b32.xlu0 %v3116_v22, %s2558_s14  ;;  %v501_v14 = vpop.permute.xlu1 %500  ;;  %2374 = vmatprep.subr.bf16.mxu1 %v3623_v13  ;;  %v1280_v0 = vrot.slane %v3636_v6, 6 }
  0xcb   : >> { %v523_v28 = vpop.permute.xlu0 %522  ;;  %1150 = vrot.lane.b32.xlu1 %v3106_v55, %s2558_s14 }
  0xcc   : >> { %2139 = vmatprep.subr.bf16.mxu0 %v523_v28  ;;  %v3634_v28 = vld [vmem:[#allocation12_spill] sm:$0xff] }
  0xcd   : >> { %1098 = vrot.lane.b32.xlu0 %v3116_v22, %s2559_s15  ;;  %v521_v38 = vpop.permute.xlu1 %520  ;;  %2140 = vmatpush3.bf16.msra.mxu0 %v501_v14  ;;  %v3633_v14 = vld [vmem:[#allocation20_spill] sm:$0xff] }
  0xce   : >> { %2141 = vmatprep.subr.bf16.mxu0 %v521_v38  ;;  %v1260_v38 = vrot.slane %v3634_v28, 6  ;;  %v3645_v28 = vld [vmem:[#allocation19_spill] sm:$0xff] }
  0xcf   : >> { %v550_v40 = vpop.permute.xlu0 %549  ;;  %1096 = vrot.lane.b32.xlu1 %v3106_v55, %s2559_s15 }
  0xd0   : >> { %2375 = vmatpush3.bf16.msra.mxu1 %v550_v40  ;;  %v3635_v40 = vld [vmem:[#allocation14_spill] sm:$0xff] }
  0xd1   : >> { %1121 = vrot.lane.b32.xlu0 %v3091_v4, %s2555_s10  ;;  %v519_v44 = vpop.permute.xlu1 %518  ;;  %2376 = vmatprep.subr.bf16.mxu1 %v3623_v13 }
  0xd2   : >> { %2142 = vmatpush3.bf16.msra.mxu0 %v2825_v63  ;;  %v1246_v63 = vor.u32 %v1245_v58, %v1244_v47  ;;  %v1268_v47 = vrot.slane %v2732_v41, 6  ;;  %v1269_v58 = vrot.slane %v2740_v45, 7 }
  0xd3   : >> { %v548_v32 = vpop.permute.xlu0 %547  ;;  %2143 = vmatprep.subr.bf16.mxu0 %v519_v44  ;;  %1116 = vrot.lane.b32.xlu1 %v3116_v22, %s2560_s16  ;;  %v1261_v44 = vrot.slane %v3635_v40, 7 }
  0xd4   : >> { %2377 = vmatpush3.bf16.msra.mxu1 %v548_v32  ;;  %v1247_v34 = vrot.slane %v1246_v63, 4  ;;  %v1270_v40 = vor.u32 %v1269_v58, %v1268_v47  ;;  %v1290_v58 = vor.u32 %v1289_v50, %v1288_v3 }
  0xd5   : >> { %1148 = vrot.lane.b32.xlu0 %v3091_v4, %s2558_s14  ;;  %v514_v42 = vpop.permute.xlu1 %513  ;;  %2378 = vmatprep.subr.bf16.mxu1 %v3623_v13 }
  0xd6   : >> { %2144 = vmatpush3.bf16.msra.mxu0 %v2829_v9  ;;  %v3631_v9 = vld [vmem:[#allocation9_spill] sm:$0xff] }
  0xd7   : >> { %v546_v43 = vpop.permute.xlu0 %545  ;;  %2145 = vmatprep.subr.bf16.mxu0 %v514_v42  ;;  %1143 = vrot.lane.b32.xlu1 %v3116_v22, %s2561_s17  ;;  %v1284_v5 = vrot.slane %v3631_v9, 6  ;;  %v1255_v42 = vrot.slane %v1254_v25, 4  ;;  %v3642_v25 = vld [vmem:[#allocation23_spill] sm:$0xff]  ;;  %v1273_v9 = vrot.slane %v3645_v28, 7 }
  0xd8   : >> { %2379 = vmatpush3.bf16.msra.mxu1 %v546_v43  ;;  %v1258_v43 = vor.u32 %v1257_v54, %v1256_v52  ;;  %v1264_v52 = vrot.slane %v3642_v25, 6  ;;  %v3643_v54 = vld [vmem:[#allocation18_spill] sm:$0xff] }
  0xd9   : >> { %1094 = vrot.lane.b32.xlu0 %v3091_v4, %s2559_s15  ;;  %v723_v60 = vpop.permute.xlu1 %722  ;;  %2380 = vmatprep.subr.bf16.mxu1 %v3623_v13  ;;  %v1286_v63 = vor.u32 %v1285_v33, %v1284_v5  ;;  %v1265_v62 = vrot.slane %v3643_v54, 7  ;;  %v1251_v5 = vsel %vm3175_vm15, %v1247_v34, %v1250_v35  ;;  %v1271_v54 = vrot.slane %v1270_v40, 4 }
  0xda   : >> { %2146 = vmatpush3.bf16.msra.mxu0 %v3633_v14  ;;  %v1281_v14 = vrot.slane %v3637_v1, 7  ;;  %v1259_v33 = vsel %vm3175_vm15, %v1255_v42, %v1258_v43 }
  0xdb   : >> { %v541_v32 = vpop.permute.xlu0 %540  ;;  %2162 = vmatprep.subr.bf16.mxu0 %v723_v60  ;;  %1141 = vrot.lane.b32.xlu1 %v3106_v55, %s2561_s17  ;;  %v1262_v60 = vor.u32 %v1261_v44, %v1260_v38  ;;  %v1279_v38 = vrot.slane %v1278_v11, 4  ;;  %v1287_v47 = vrot.slane %v1286_v63, 4  ;;  %v1266_v28 = vor.u32 %v1265_v62, %v1264_v52 }
  0xdc   : >> { %2381 = vmatpush3.bf16.msra.mxu1 %v541_v32  ;;  %v3644_v32 = vld [vmem:[#allocation24_spill] sm:$0xff]  ;;  %v1282_v44 = vor.u32 %v1281_v14, %v1280_v0  ;;  %v3203_v0 = vcombine.low %v1251_v5, %v1259_v33 }
  0xdd   : >> { %1114 = vrot.lane.b32.xlu0 %v3106_v55, %s2560_s16  ;;  %v698_v15 = vpop.permute.xlu1 %697  ;;  %2382 = vmatprep.subr.bf16.mxu1 %v3623_v13  ;;  %v1272_v41 = vrot.slane %v3644_v32, 6 }
  0xde   : >> { %596 = vmatmul.mubr.bf16.vlgmr.msra.gmra.mxu0 %v3053_v10 }
  0xdf   : >> { %v539_v1 = vpop.permute.xlu0 %538  ;;  %2163 = vmatpush3.bf16.msra.mxu0 %v698_v15  ;;  %781 = vmatprep.mubr.bf16.mxu0 %v2796_v37  ;;  %v1274_v34 = vor.u32 %v1273_v9, %v1272_v41  ;;  %v1283_v41 = vsel %vm3175_vm15, %v1279_v38, %v1282_v44  ;;  %v1291_v9 = vsel %vm3175_vm15, %v1287_v47, %v1290_v58 }
  0xe0   : >> { %2383 = vmatpush3.bf16.msra.mxu1 %v539_v1  ;;  %1139 = vrot.lane.b32.xlu1 %v3091_v4, %s2561_s17  ;;  %v1263_v1 = vrot.slane %v1262_v60, 4  ;;  %v3217_v14 = vcombine.low %v1283_v41, %v1291_v9  ;;  %v1468_v41 = vrot.slane %v2762_v57, 7 }
  0xe1   : >> { %1112 = vrot.lane.b32.xlu0 %v3091_v4, %s2560_s16  ;;  %v696_v15 = vpop.permute.xlu1 %695  ;;  %2388 = vmatprep.subr.bf16.mxu1 %v3623_v13  ;;  %v1275_v43 = vsel %vm3175_vm15, %v1271_v54, %v1274_v34 }
  0xe2   : >> { %v1267_v42 = vsel %vm3175_vm15, %v1263_v1, %v1266_v28  ;;  %v1460_v1 = vrot.slane %v2710_v31, 7  ;;  %v1464_v31 = vrot.slane %v2760_v56, 7 }
  0xe3   : >> { %v718_v35 = vpop.permute.xlu0 %717  ;;  %2385 = vmatmul.mubr.bf16.vlgmr.msra.gmra.mxu1 %v3067_v39  ;;  %v3219_v63 = vcombine.low %v1267_v42, %v1275_v43 }
  0xe4   : >> { %2164 = vmatprep.subr.bf16.mxu0 %v718_v35  ;;  %2404 = vmatprep.mubr.msk.bf16.mxu1 %vm2562_vm3, %v3623_v13 }
  0xe5   : >> { %1134 = vrot.lane.b32.xlu1 %v3116_v22, %s2556_s11  ;;  %1107 = vrot.lane.b32.xlu0 %v3116_v22, %s2557_s13  ;;  %v716_v3 = vpop.permute.xlu1 %715 }
  0xe6   : >> { %2165 = vmatpush3.bf16.msra.mxu0 %v696_v15  ;;  %v1456_v15 = vrot.slane %v2708_v30, 7  ;;  %v2067_v30 = vrot.slane %v2698_v26, 11 }
  0xe7   : >> { %v745_v11 = vpop.permute.xlu0 %744  ;;  %2166 = vmatprep.subr.bf16.mxu0 %v716_v3 }
  0xe8   : >> { %2389 = vmatpush3.bf16.msra.mxu1 %v745_v11  ;;  %v2069_v11 = vrot.slane %v2676_v18, 11 }
  0xe9   : >> { %1132 = vrot.lane.b32.xlu1 %v3106_v55, %s2556_s11  ;;  %1340 = vrot.lane.b32.xlu0 %v3203_v0, %s2556_s11  ;;  %v743_v50 = vpop.permute.xlu1 %742 }
  0xea   : >> { %2390 = vmatprep.subr.bf16.mxu1 %v3623_v13 }
  0xeb   : >> { %v691_v28 = vpop.permute.xlu0 %690 }
  0xec   : >> { %2167 = vmatpush3.bf16.msra.mxu0 %v691_v28  ;;  %2391 = vmatpush3.bf16.msra.mxu1 %v743_v50  ;;  %v1472_v50 = vrot.slane %v2748_v48, 7  ;;  %v2070_v28 = vrot.slane %v2678_v19, 11 }
  0xed   : >> { %1335 = vrot.lane.b32.xlu1 %v3217_v14, %s2555_s10  ;;  %1315 = vrot.lane.b32.xlu0 %v3219_v63, %s2557_s13  ;;  %v689_v45 = vpop.permute.xlu1 %688 }
  0xee   : >> { %2392 = vmatprep.subr.bf16.mxu1 %v3623_v13  ;;  %v1473_v48 = vsel %vm3264_vm2, %v2069_v11, %v1472_v50  ;;  %v3654_v11 = vld [vmem:[#allocation13_spill] sm:$0xff] }
  0xef   : >> { %v714_v52 = vpop.permute.xlu0 %713  ;;  %v2077_v50 = vrot.slane %v3654_v11, 11 }
  0xf0   : >> { %2168 = vmatprep.subr.bf16.mxu0 %v714_v52 }
  0xf1   : >> { %1362 = vrot.lane.b32.xlu1 %v3217_v14, %s2558_s14  ;;  %1313 = vrot.lane.b32.xlu0 %v3203_v0, %s2557_s13  ;;  %v709_v54 = vpop.permute.xlu1 %708 }
  0xf2   : >> { %2169 = vmatpush3.bf16.msra.mxu0 %v689_v45  ;;  %v1476_v45 = vrot.slane %v2750_v49, 7 }
  0xf3   : >> { %v741_v62 = vpop.permute.xlu0 %740  ;;  %2170 = vmatprep.subr.bf16.mxu0 %v709_v54 }
  0xf4   : >> { %2393 = vmatpush3.bf16.msra.mxu1 %v741_v62  ;;  %v1477_v19 = vsel %vm3264_vm2, %v2070_v28, %v1476_v45  ;;  %v3655_v28 = vld [vmem:[#allocation19_spill] sm:$0xff] }
  0xf5   : >> { %1308 = vrot.lane.b32.xlu1 %v3217_v14, %s2559_s15  ;;  %1333 = vrot.lane.b32.xlu0 %v3219_v63, %s2555_s10  ;;  %v736_v60 = vpop.permute.xlu1 %735  ;;  %v3315_v49 = vcombine.low %v1473_v48, %v1477_v19 }
  0xf6   : >> { %2394 = vmatprep.subr.bf16.mxu1 %v3623_v13 }
  0xf7   : >> { %v687_v40 = vpop.permute.xlu0 %686 }
  0xf8   : >> { %2171 = vmatpush3.bf16.msra.mxu0 %v687_v40  ;;  %2395 = vmatpush3.bf16.msra.mxu1 %v736_v60 }
  0xf9   : >> { %1331 = vrot.lane.b32.xlu1 %v3203_v0, %s2555_s10  ;;  %1360 = vrot.lane.b32.xlu0 %v3219_v63, %s2558_s14  ;;  %v734_v5 = vpop.permute.xlu1 %733 }
  0xfa   : >> { %2396 = vmatprep.subr.bf16.mxu1 %v3623_v13 }
  0xfb   : >> { %v707_v33 = vpop.permute.xlu0 %706 }
  0xfc   : >> { %2172 = vmatprep.subr.bf16.mxu0 %v707_v33  ;;  %2397 = vmatpush3.bf16.msra.mxu1 %v734_v5 }
  0xfd   : >> { %1358 = vrot.lane.b32.xlu1 %v3203_v0, %s2558_s14  ;;  %1306 = vrot.lane.b32.xlu0 %v3219_v63, %s2559_s15  ;;  %v732_v38 = vpop.permute.xlu1 %731 }
  0xfe   : >> { %2173 = vmatpush3.bf16.msra.mxu0 %v2907_v12  ;;  %2398 = vmatprep.subr.bf16.mxu1 %v3623_v13  ;;  %v2065_v12 = vrot.slane %v2668_v16, 11 }
  0xff   : >> { %v705_v44 = vpop.permute.xlu0 %704 }
 0x100   : >> { %2174 = vmatprep.subr.bf16.mxu0 %v705_v44  ;;  %2399 = vmatpush3.bf16.msra.mxu1 %v732_v38  ;;  %v1457_v16 = vsel %vm3264_vm2, %v2065_v12, %v1456_v15 }
 0x101   : >> { %1304 = vrot.lane.b32.xlu1 %v3203_v0, %s2559_s15  ;;  %1326 = vrot.lane.b32.xlu0 %v3217_v14, %s2560_s16  ;;  %v727_v47 = vpop.permute.xlu1 %726 }
 0x102   : >> { %2175 = vmatpush3.bf16.msra.mxu0 %v2895_v61  ;;  %2400 = vmatprep.subr.bf16.mxu1 %v3623_v13  ;;  %v2066_v61 = vrot.slane %v2670_v17, 11 }
 0x103   : >> { %v700_v58 = vpop.permute.xlu0 %699 }
 0x104   : >> { %2176 = vmatprep.subr.bf16.mxu0 %v700_v58  ;;  %2401 = vmatpush3.bf16.msra.mxu1 %v727_v47  ;;  %v1461_v17 = vsel %vm3264_vm2, %v2066_v61, %v1460_v1  ;;  %v1647_v1 = vrot.slane %v2935_v36, 7 }
 0x105   : >> { %1324 = vrot.lane.b32.xlu1 %v3219_v63, %s2560_s16  ;;  %1353 = vrot.lane.b32.xlu0 %v3217_v14, %s2561_s17  ;;  %v725_v35 = vpop.permute.xlu1 %724  ;;  %v3288_v26 = vcombine.low %v1457_v16, %v1461_v17  ;;  %v1662_v16 = vrot.slane %v3636_v6, 7  ;;  %v1667_v17 = vrot.slane %v3638_v2, 7  ;;  %v2078_v6 = vrot.slane %v3629_v59, 11 }
 0x106   : >> { %2177 = vmatpush3.bf16.msra.mxu0 %v2881_v51  ;;  %2402 = vmatprep.subr.bf16.mxu1 %v3623_v13  ;;  %v2068_v51 = vrot.slane %v2700_v27, 11  ;;  %v1465_v27 = vsel %vm3264_vm2, %v2067_v30, %v1464_v31  ;;  %v3651_v31 = vld [vmem:[#allocation9_spill] sm:$0xff] }
 0x107   : >> { %v945_v3 = vpop.permute.xlu0 %944 }
 0x108   : >> { %2193 = vmatprep.subr.bf16.mxu0 %v945_v3  ;;  %2403 = vmatpush3.bf16.msra.mxu1 %v725_v35  ;;  %v1469_v56 = vsel %vm3264_vm2, %v2068_v51, %v1468_v41  ;;  %v2075_v35 = vrot.slane %v2684_v21, 11  ;;  %v1648_v3 = vor.u32 %v1647_v1, %v3628_v53  ;;  %v1657_v21 = vrot.slane %v3644_v32, 7 }
 0x109   : >> { %782 = vmatmul.mubr.bf16.vlgmr.msra.gmra.mxu0 %v3053_v10  ;;  %1322 = vrot.lane.b32.xlu1 %v3203_v0, %s2560_s16  ;;  %v940_v9 = vpop.permute.xlu1 %939  ;;  %v3302_v52 = vcombine.low %v1465_v27, %v1469_v56  ;;  %v2079_v51 = vrot.slane %v3651_v31, 11  ;;  %v1668_v41 = vor.u32 %v1667_v17, %v3641_v24  ;;  %v3652_v27 = vld [vmem:[#allocation12_spill] sm:$0xff] }
 0x10a   : >> { %1351 = vrot.lane.b32.xlu0 %v3219_v63, %s2561_s17  ;;  %2408 = vmatprep.subr.bf16.mxu1 %v3623_v13  ;;  %v1649_v2 = vsel %vm3361_vm6, %v2075_v35, %v1648_v3  ;;  %v2076_v56 = vrot.slane %v3652_v27, 11  ;;  %v1658_v45 = vor.u32 %v1657_v21, %v3655_v28 }
 0x10b   : >> { %v920_v42 = vpop.permute.xlu0 %919  ;;  %2405 = vmatmul.mubr.bf16.vlgmr.msra.gmra.mxu1 %v3067_v39  ;;  %1003 = vmatprep.mubr.bf16.mxu0 %v2796_v37 }
 0x10c   : >> { %2194 = vmatpush3.bf16.msra.mxu0 %v920_v42  ;;  %2424 = vmatprep.mubr.msk.bf16.mxu1 %vm2562_vm3, %v3623_v13 }
 0x10d   : >> { %1317 = vrot.lane.b32.xlu1 %v3217_v14, %s2557_s13  ;;  %2195 = vmatprep.subr.bf16.mxu0 %v940_v9  ;;  %v967_v57 = vpop.permute.xlu1 %966 }
 0x10e   : >> { %1349 = vrot.lane.b32.xlu0 %v3203_v0, %s2561_s17  ;;  %2409 = vmatpush3.bf16.msra.mxu1 %v967_v57  ;;  %v3653_v57 = vld [vmem:[#allocation18_spill] sm:$0xff] }
 0x10f   : >> { %v918_v43 = vpop.permute.xlu0 %917  ;;  %2410 = vmatprep.subr.bf16.mxu1 %v3623_v13 }
 0x110   : >> { %2196 = vmatpush3.bf16.msra.mxu0 %v918_v43 }
 0x111   : >> { %1526 = vrot.lane.b32.xlu1 %v3288_v26, %s2556_s11  ;;  %v913_v54 = vpop.permute.xlu1 %912 }
 0x112   : >> { %1344 = vrot.lane.b32.xlu0 %v3217_v14, %s2556_s11 }
 0x113   : >> { %v938_v18 = vpop.permute.xlu0 %937 }
 0x114   : >> { %2197 = vmatprep.subr.bf16.mxu0 %v938_v18 }
 0x115   : >> { %1501 = vrot.lane.b32.xlu1 %v3302_v52, %s2557_s13  ;;  %2198 = vmatpush3.bf16.msra.mxu0 %v913_v54  ;;  %v936_v62 = vpop.permute.xlu1 %935  ;;  %v1669_v54 = vsel %vm3361_vm6, %v2079_v51, %v1668_v41 }
 0x116   : >> { %1342 = vrot.lane.b32.xlu0 %v3219_v63, %s2556_s11  ;;  %2199 = vmatprep.subr.bf16.mxu0 %v936_v62  ;;  %v1659_v62 = vsel %vm3361_vm6, %v2077_v50, %v1658_v45 }
 0x117   : >> { %v965_v60 = vpop.permute.xlu0 %964 }
 0x118   : >> { %2411 = vmatpush3.bf16.msra.mxu1 %v965_v60 }
 0x119   : >> { %1499 = vrot.lane.b32.xlu1 %v3288_v26, %s2557_s13  ;;  %2412 = vmatprep.subr.bf16.mxu1 %v3623_v13  ;;  %v963_v40 = vpop.permute.xlu1 %962 }
 0x11a   : >> { %1521 = vrot.lane.b32.xlu0 %v3315_v49, %s2555_s10 }
 0x11b   : >> { %v911_v5 = vpop.permute.xlu0 %910 }
 0x11c   : >> { %2200 = vmatpush3.bf16.msra.mxu0 %v911_v5  ;;  %2413 = vmatpush3.bf16.msra.mxu1 %v963_v40 }
 0x11d   : >> { %1519 = vrot.lane.b32.xlu1 %v3302_v52, %s2555_s10  ;;  %2414 = vmatprep.subr.bf16.mxu1 %v3623_v13  ;;  %v909_v33 = vpop.permute.xlu1 %908 }
 0x11e   : >> { %1548 = vrot.lane.b32.xlu0 %v3315_v49, %s2558_s14 }
 0x11f   : >> { %v931_v38 = vpop.permute.xlu0 %930 }
 0x120   : >> { %2201 = vmatprep.subr.bf16.mxu0 %v931_v38 }
 0x121   : >> { %1546 = vrot.lane.b32.xlu1 %v3302_v52, %s2558_s14  ;;  %2202 = vmatpush3.bf16.msra.mxu0 %v909_v33  ;;  %v929_v44 = vpop.permute.xlu1 %928 }
 0x122   : >> { %1494 = vrot.lane.b32.xlu0 %v3315_v49, %s2559_s15  ;;  %2203 = vmatprep.subr.bf16.mxu0 %v929_v44 }
 0x123   : >> { %v958_v47 = vpop.permute.xlu0 %957 }
 0x124   : >> { %2415 = vmatpush3.bf16.msra.mxu1 %v958_v47 }
 0x125   : >> { %1492 = vrot.lane.b32.xlu1 %v3302_v52, %s2559_s15  ;;  %2416 = vmatprep.subr.bf16.mxu1 %v3623_v13  ;;  %v927_v58 = vpop.permute.xlu1 %926 }
 0x126   : >> { %1517 = vrot.lane.b32.xlu0 %v3288_v26, %s2555_s10  ;;  %2204 = vmatpush3.bf16.msra.mxu0 %v3011_v7  ;;  %v1642_v7 = vrot.slane %v2928_v23, 7  ;;  %v2074_v23 = vrot.slane %v2681_v20, 11 }
 0x127   : >> { %v956_v12 = vpop.permute.xlu0 %955  ;;  %2205 = vmatprep.subr.bf16.mxu0 %v927_v58 }
 0x128   : >> { %2417 = vmatpush3.bf16.msra.mxu1 %v956_v12  ;;  %v1643_v36 = vor.u32 %v1642_v7, %v2743_v46  ;;  %v1652_v46 = vrot.slane %v3642_v25, 7  ;;  %v3650_v25 = vld [vmem:[#allocation16_spill] sm:$0xff] }
 0x129   : >> { %1512 = vrot.lane.b32.xlu1 %v3315_v49, %s2560_s16  ;;  %2418 = vmatprep.subr.bf16.mxu1 %v3623_v13  ;;  %v922_v15 = vpop.permute.xlu1 %921  ;;  %v1663_v32 = vor.u32 %v1662_v16, %v3650_v25 }
 0x12a   : >> { %1544 = vrot.lane.b32.xlu0 %v3288_v26, %s2558_s14  ;;  %2206 = vmatpush3.bf16.msra.mxu0 %v3013_v8  ;;  %v1644_v53 = vsel %vm3361_vm6, %v2074_v23, %v1643_v36  ;;  %v1653_v43 = vor.u32 %v1652_v46, %v3653_v57 }
 0x12b   : >> { %v954_v61 = vpop.permute.xlu0 %953  ;;  %2207 = vmatprep.subr.bf16.mxu0 %v922_v15  ;;  %v3394_v59 = vcombine.low %v1644_v53, %v1649_v2  ;;  %v1664_v24 = vsel %vm3361_vm6, %v2078_v6, %v1663_v32 }
 0x12c   : >> { %2419 = vmatpush3.bf16.msra.mxu1 %v954_v61  ;;  %v1654_v19 = vsel %vm3361_vm6, %v2076_v56, %v1653_v43  ;;  %v3406_v60 = vcombine.low %v1664_v24, %v1669_v54 }
 0x12d   : >> { %1539 = vrot.lane.b32.xlu1 %v3315_v49, %s2561_s17  ;;  %2420 = vmatprep.subr.bf16.mxu1 %v3623_v13  ;;  %v1131_v34 = vpop.permute.xlu1 %1130  ;;  %v3411_v40 = vcombine.low %v1654_v19, %v1659_v62 }
 0x12e   : >> { %1490 = vrot.lane.b32.xlu0 %v3288_v26, %s2559_s15  ;;  %2208 = vmatpush3.bf16.msra.mxu0 %v2997_v29 }
 0x12f   : >> { %v949_v8 = vpop.permute.xlu0 %948  ;;  %2224 = vmatprep.subr.bf16.mxu0 %v1131_v34 }
 0x130   : >> { %2421 = vmatpush3.bf16.msra.mxu1 %v949_v8 }
 0x131   : >> { %1537 = vrot.lane.b32.xlu1 %v3302_v52, %s2561_s17  ;;  %1004 = vmatmul.mubr.bf16.vlgmr.msra.gmra.mxu0 %v3053_v10  ;;  %v1106_v20 = vpop.permute.xlu1 %1105 }
 0x132   : >> { %1510 = vrot.lane.b32.xlu0 %v3302_v52, %s2560_s16  ;;  %2422 = vmatprep.subr.bf16.mxu1 %v3623_v13 }
 0x133   : >> { %v947_v30 = vpop.permute.xlu0 %946  ;;  %1189 = vmatprep.mubr.bf16.mxu0 %v2796_v37  ;;  %2225 = vmatpush3.bf16.msra.mxu0 %v1106_v20 }
 0x134   : >> { %2423 = vmatpush3.bf16.msra.mxu1 %v947_v30 }
 0x135   : >> { %1535 = vrot.lane.b32.xlu1 %v3288_v26, %s2561_s17  ;;  %2428 = vmatprep.subr.bf16.mxu1 %v3623_v13  ;;  %v1104_v9 = vpop.permute.xlu1 %1103 }
 0x136   : >> { %1508 = vrot.lane.b32.xlu0 %v3288_v26, %s2560_s16 }
 0x137   : >> { %2425 = vmatmul.mubr.bf16.vlgmr.msra.gmra.mxu1 %v3067_v39  ;;  %v1126_v42 = vpop.permute.xlu0 %1125 }
 0x138   : >> { %2226 = vmatprep.subr.bf16.mxu0 %v1126_v42  ;;  %2444 = vmatprep.mubr.msk.bf16.mxu1 %vm2562_vm3, %v3623_v13 }
 0x139   : >> { %1530 = vrot.lane.b32.xlu1 %v3315_v49, %s2556_s11  ;;  %2227 = vmatpush3.bf16.msra.mxu0 %v1104_v9  ;;  %v1124_v18 = vpop.permute.xlu1 %1123 }
 0x13a   : >> { %1503 = vrot.lane.b32.xlu0 %v3315_v49, %s2557_s13  ;;  %2228 = vmatprep.subr.bf16.mxu0 %v1124_v18 }
 0x13b   : >> { %v1153_v48 = vpop.permute.xlu0 %1152 }
 0x13c   : >> { %2429 = vmatpush3.bf16.msra.mxu1 %v1153_v48 }
 0x13d   : >> { %1528 = vrot.lane.b32.xlu1 %v3302_v52, %s2556_s11  ;;  %2430 = vmatprep.subr.bf16.mxu1 %v3623_v13  ;;  %v1151_v5 = vpop.permute.xlu1 %1150 }
 0x13e   : >> { %1718 = vrot.lane.b32.xlu0 %v3394_v59, %s2556_s11 }
 0x13f   : >> { %v1099_v33 = vpop.permute.xlu0 %1098 }
 0x140   : >> { %2229 = vmatpush3.bf16.msra.mxu0 %v1099_v33  ;;  %2431 = vmatpush3.bf16.msra.mxu1 %v1151_v5 }
 0x141   : >> { %1713 = vrot.lane.b32.xlu1 %v3406_v60, %s2555_s10  ;;  %2432 = vmatprep.subr.bf16.mxu1 %v3623_v13  ;;  %v1097_v38 = vpop.permute.xlu1 %1096 }
 0x142   : >> { %1693 = vrot.lane.b32.xlu0 %v3411_v40, %s2557_s13 }
 0x143   : >> { %v1122_v44 = vpop.permute.xlu0 %1121 }
 0x144   : >> { %2230 = vmatprep.subr.bf16.mxu0 %v1122_v44 }
 0x145   : >> { %1740 = vrot.lane.b32.xlu1 %v3406_v60, %s2558_s14  ;;  %2231 = vmatpush3.bf16.msra.mxu0 %v1097_v38  ;;  %v1117_v47 = vpop.permute.xlu1 %1116 }
 0x146   : >> { %1691 = vrot.lane.b32.xlu0 %v3394_v59, %s2557_s13  ;;  %2232 = vmatprep.subr.bf16.mxu0 %v1117_v47 }
 0x147   : >> { %v1149_v58 = vpop.permute.xlu0 %1148 }
 0x148   : >> { %2433 = vmatpush3.bf16.msra.mxu1 %v1149_v58 }
 0x149   : >> { %1686 = vrot.lane.b32.xlu1 %v3406_v60, %s2559_s15  ;;  %2434 = vmatprep.subr.bf16.mxu1 %v3623_v13  ;;  %v1144_v12 = vpop.permute.xlu1 %1143 }
 0x14a   : >> { %1711 = vrot.lane.b32.xlu0 %v3411_v40, %s2555_s10 }
 0x14b   : >> { %v1095_v15 = vpop.permute.xlu0 %1094 }
 0x14c   : >> { %2233 = vmatpush3.bf16.msra.mxu0 %v1095_v15  ;;  %2435 = vmatpush3.bf16.msra.mxu1 %v1144_v12 }
 0x14d   : >> { %1709 = vrot.lane.b32.xlu1 %v3394_v59, %s2555_s10  ;;  %2436 = vmatprep.subr.bf16.mxu1 %v3623_v13  ;;  %v1142_v61 = vpop.permute.xlu1 %1141 }
 0x14e   : >> { %1738 = vrot.lane.b32.xlu0 %v3411_v40, %s2558_s14 }
 0x14f   : >> { %v1115_v7 = vpop.permute.xlu0 %1114 }
 0x150   : >> { %2234 = vmatprep.subr.bf16.mxu0 %v1115_v7  ;;  %2437 = vmatpush3.bf16.msra.mxu1 %v1142_v61 }
 0x151   : >> { %1736 = vrot.lane.b32.xlu1 %v3394_v59, %s2558_s14  ;;  %2235 = vmatpush3.bf16.msra.mxu0 %v3116_v22 }
 0x152   : >> { %1684 = vrot.lane.b32.xlu0 %v3411_v40, %s2559_s15  ;;  %2438 = vmatprep.subr.bf16.mxu1 %v3623_v13  ;;  %v1140_v1 = vpop.permute.xlu1 %1139 }
 0x153   : >> { %v1113_v34 = vpop.permute.xlu0 %1112 }
 0x154   : >> { %2236 = vmatprep.subr.bf16.mxu0 %v1113_v34  ;;  %2439 = vmatpush3.bf16.msra.mxu1 %v1140_v1 }
 0x155   : >> { %1682 = vrot.lane.b32.xlu1 %v3394_v59, %s2559_s15  ;;  %2237 = vmatpush3.bf16.msra.mxu0 %v3106_v55 }
 0x156   : >> { %1704 = vrot.lane.b32.xlu0 %v3406_v60, %s2560_s16  ;;  %2440 = vmatprep.subr.bf16.mxu1 %v3623_v13 }
 0x157   : >> { %v1135_v22 = vpop.permute.xlu1 %1134  ;;  %v1108_v8 = vpop.permute.xlu0 %1107 }
 0x158   : >> { %2238 = vmatprep.subr.bf16.mxu0 %v1108_v8  ;;  %2441 = vmatpush3.bf16.msra.mxu1 %v1135_v22 }
 0x159   : >> { %1702 = vrot.lane.b32.xlu1 %v3411_v40, %s2560_s16  ;;  %2239 = vmatpush3.bf16.msra.mxu0 %v3091_v4 }
 0x15a   : >> { %1731 = vrot.lane.b32.xlu0 %v3406_v60, %s2561_s17  ;;  %2442 = vmatprep.subr.bf16.mxu1 %v3623_v13 }
 0x15b   : >> { %v1133_v55 = vpop.permute.xlu1 %1132  ;;  %v1341_v23 = vpop.permute.xlu0 %1340 }
 0x15c   : >> { %1190 = vmatmul.mubr.bf16.vlgmr.msra.gmra.mxu0 %v3053_v10  ;;  %2255 = vmatprep.subr.bf16.mxu0 %v1341_v23 }
 0x15d   : >> { %1700 = vrot.lane.b32.xlu1 %v3394_v59, %s2560_s16  ;;  %2443 = vmatpush3.bf16.msra.mxu1 %v1133_v55 }
 0x15e   : >> { %1729 = vrot.lane.b32.xlu0 %v3411_v40, %s2561_s17  ;;  %2448 = vmatprep.subr.bf16.mxu1 %v3623_v13 }
 0x15f   : >> { %v1336_v4 = vpop.permute.xlu1 %1335  ;;  %v1316_v36 = vpop.permute.xlu0 %1315  ;;  %1399 = vmatprep.mubr.bf16.mxu0 %v2796_v37 }
 0x160   : >> { %2445 = vmatmul.mubr.bf16.vlgmr.msra.gmra.mxu1 %v3067_v39  ;;  %2256 = vmatpush3.bf16.msra.mxu0 %v1316_v36 }
 0x161   : >> { %1695 = vrot.lane.b32.xlu1 %v3406_v60, %s2557_s13  ;;  %2257 = vmatprep.subr.bf16.mxu0 %v1336_v4 }
 0x162   : >> { %1727 = vrot.lane.b32.xlu0 %v3394_v59, %s2561_s17  ;;  %2464 = vmatprep.mubr.msk.bf16.mxu1 %vm2562_vm3, %v3623_v13 }
 0x163   : >> { %v1363_v35 = vpop.permute.xlu1 %1362  ;;  %v1314_v3 = vpop.permute.xlu0 %1313 }
 0x164   : >> { %2258 = vmatpush3.bf16.msra.mxu0 %v1314_v3  ;;  %2449 = vmatpush3.bf16.msra.mxu1 %v1363_v35 }
 0x165   : >> { %1720 = vrot.lane.b32.xlu1 %v3411_v40, %s2556_s11  ;;  %2450 = vmatprep.subr.bf16.mxu1 %v3623_v13 }
 0x166   : >> { %1722 = vrot.lane.b32.xlu0 %v3406_v60, %s2556_s11 }
 0x167   : >> { %v1309_v29 = vpop.permute.xlu1 %1308  ;;  %v1334_v16 = vpop.permute.xlu0 %1333 }
 0x168   : >> { %2259 = vmatprep.subr.bf16.mxu0 %v1334_v16 }
 0x169   : >> { %2260 = vmatpush3.bf16.msra.mxu0 %v1309_v29 }
 0x16b   : >> { %v1332_v17 = vpop.permute.xlu1 %1331  ;;  %v1361_v20 = vpop.permute.xlu0 %1360 }
 0x16c   : >> { %2451 = vmatpush3.bf16.msra.mxu1 %v1361_v20  ;;  %2261 = vmatprep.subr.bf16.mxu0 %v1332_v17 }
 0x16d   : >> { %2452 = vmatprep.subr.bf16.mxu1 %v3623_v13 }
 0x16f   : >> { %v1359_v30 = vpop.permute.xlu1 %1358  ;;  %v1307_v46 = vpop.permute.xlu0 %1306 }
 0x170   : >> { %2262 = vmatpush3.bf16.msra.mxu0 %v1307_v46  ;;  %2453 = vmatpush3.bf16.msra.mxu1 %v1359_v30  ;;  %v2563_v30 = vmov 0  }
 0x171   : >> { %2454 = vmatprep.subr.bf16.mxu1 %v3623_v13  ;;  %2536 = vset.pattern.permute.xlu0 %v2563_v30 }
 0x172   : >> { %2537 = vset.pattern.permute.xlu1 %v2563_v30 }
 0x173   : >> { %v1305_v21 = vpop.permute.xlu1 %1304  ;;  %v1327_v53 = vpop.permute.xlu0 %1326 }
 0x174   : >> { %2263 = vmatprep.subr.bf16.mxu0 %v1327_v53  ;;  %v3656_v53 = vld [vmem:[#allocation6_spill] sm:$0xff] }
 0x175   : >> { %2264 = vmatpush3.bf16.msra.mxu0 %v1305_v21  ;;  %v2116_v11 = vpop.f32.mrf.mxu0  ;;  %1831 = vperm.xlu0 %2536, %v3656_v53  }
 0x177   : >> { %v1325_v2 = vpop.permute.xlu1 %1324  ;;  %v1354_v6 = vpop.permute.xlu0 %1353 }
 0x178   : >> { %2455 = vmatpush3.bf16.msra.mxu1 %v1354_v6  ;;  %2265 = vmatprep.subr.bf16.mxu0 %v1325_v2  ;;  %v3471_v25 = vpop.f32.mrf.mxu1  ;;  %v2117_v45 = vpop.f32.mrf.mxu0  ;;  %v3657_v2 = vld [vmem:[#allocation7_spill] sm:$0xff] }
 0x179   : >> { %2456 = vmatprep.subr.bf16.mxu1 %v3623_v13  ;;  %2266 = vmatpush3.bf16.msra.mxu0 %v3217_v14  ;;  %v2118_v38 = vadd.f32 %v2117_v45, %v2116_v11 }
 0x17a   : >> { %v2366_v32 = vpop.f32.mrf.mxu1  ;;  %v2119_v18 = vpop.f32.mrf.mxu0  ;;  %1836 = vperm.xlu1 %2537, %v3657_v2  }
 0x17b   : >> { %v1323_v31 = vpop.permute.xlu1 %1322  ;;  %v3493_v61 = vadd.f32 %v2118_v38, %v3471_v25 }
 0x17c   : >> { %v1352_v51 = vpop.permute.xlu0 %1351  ;;  %2267 = vmatprep.subr.bf16.mxu0 %v1323_v31  ;;  %v3476_v41 = vpop.f32.mrf.mxu1 }
 0x17d   : >> { %2457 = vmatpush3.bf16.msra.mxu1 %v1352_v51  ;;  %2268 = vmatpush3.bf16.msra.mxu0 %v3219_v63  ;;  %v2120_v62 = vpop.f32.mrf.mxu0 }
 0x17e   : >> { %2458 = vmatprep.subr.bf16.mxu1 %v3623_v13  ;;  %v2367_v42 = vpop.f32.mrf.mxu1  ;;  %v2121_v7 = vadd.f32 %v2120_v62, %v2119_v18 }
 0x17f   : >> { %v1318_v9 = vpop.permute.xlu1 %1317 }
 0x180   : >> { %v1350_v27 = vpop.permute.xlu0 %1349  ;;  %2269 = vmatprep.subr.bf16.mxu0 %v1318_v9  ;;  %v3500_v35 = vadd.f32 %v2121_v7, %v3476_v41 }
 0x181   : >> { %2459 = vmatpush3.bf16.msra.mxu1 %v1350_v27  ;;  %2270 = vmatpush3.bf16.msra.mxu0 %v3203_v0 }
 0x182   : >> { %2460 = vmatprep.subr.bf16.mxu1 %v3623_v13 }
 0x183   : >> { %v1527_v14 = vpop.permute.xlu1 %1526 }
 0x184   : >> { %v1345_v56 = vpop.permute.xlu0 %1344  ;;  %1400 = vmatmul.mubr.bf16.vlgmr.msra.gmra.mxu0 %v3053_v10  ;;  %2286 = vmatprep.subr.bf16.mxu0 %v1527_v14 }
 0x185   : >> { %2461 = vmatpush3.bf16.msra.mxu1 %v1345_v56  ;;  %1585 = vmatprep.mubr.bf16.mxu0 %v2796_v37 }
 0x186   : >> { %2462 = vmatprep.subr.bf16.mxu1 %v3623_v13 }
 0x187   : >> { %v1502_v63 = vpop.permute.xlu1 %1501 }
 0x188   : >> { %v1343_v57 = vpop.permute.xlu0 %1342  ;;  %2287 = vmatpush3.bf16.msra.mxu0 %v1502_v63 }
 0x189   : >> { %2463 = vmatpush3.bf16.msra.mxu1 %v1343_v57 }
 0x18a   : >> { %2468 = vmatprep.subr.bf16.mxu1 %v3623_v13 }
 0x18b   : >> { %v1500_v43 = vpop.permute.xlu1 %1499 }
 0x18c   : >> { %2465 = vmatmul.mubr.bf16.vlgmr.msra.gmra.mxu1 %v3067_v39  ;;  %v1522_v0 = vpop.permute.xlu0 %1521 }
 0x18d   : >> { %2288 = vmatprep.subr.bf16.mxu0 %v1522_v0  ;;  %2484 = vmatprep.mubr.msk.bf16.mxu1 %vm2562_vm3, %v3623_v13 }
 0x18e   : >> { %2289 = vmatpush3.bf16.msra.mxu0 %v1500_v43 }
 0x18f   : >> { %v1520_v50 = vpop.permute.xlu1 %1519 }
 0x190   : >> { %v1549_v28 = vpop.permute.xlu0 %1548  ;;  %2290 = vmatprep.subr.bf16.mxu0 %v1520_v50 }
 0x191   : >> { %2469 = vmatpush3.bf16.msra.mxu1 %v1549_v28 }
 0x192   : >> { %2470 = vmatprep.subr.bf16.mxu1 %v3623_v13 }
 0x193   : >> { %v1547_v24 = vpop.permute.xlu1 %1546 }
 0x194   : >> { %v1495_v54 = vpop.permute.xlu0 %1494 }
 0x195   : >> { %2291 = vmatpush3.bf16.msra.mxu0 %v1495_v54  ;;  %2471 = vmatpush3.bf16.msra.mxu1 %v1547_v24 }
 0x196   : >> { %2472 = vmatprep.subr.bf16.mxu1 %v3623_v13 }
 0x197   : >> { %v1493_v48 = vpop.permute.xlu1 %1492 }
 0x198   : >> { %v1518_v19 = vpop.permute.xlu0 %1517 }
 0x199   : >> { %2292 = vmatprep.subr.bf16.mxu0 %v1518_v19 }
 0x19a   : >> { %2293 = vmatpush3.bf16.msra.mxu0 %v1493_v48 }
 0x19b   : >> { %v1513_v5 = vpop.permute.xlu1 %1512 }
 0x19c   : >> { %v1545_v33 = vpop.permute.xlu0 %1544  ;;  %2294 = vmatprep.subr.bf16.mxu0 %v1513_v5 }
 0x19d   : >> { %2473 = vmatpush3.bf16.msra.mxu1 %v1545_v33 }
 0x19e   : >> { %2474 = vmatprep.subr.bf16.mxu1 %v3623_v13  ;;  %v2147_v44 = vpop.f32.mrf.mxu0 }
 0x19f   : >> { %v1540_v47 = vpop.permute.xlu1 %1539 }
 0x1a0   : >> { %v1491_v58 = vpop.permute.xlu0 %1490  ;;  %v2148_v12 = vpop.f32.mrf.mxu0 }
 0x1a1   : >> { %2295 = vmatpush3.bf16.msra.mxu0 %v1491_v58  ;;  %2475 = vmatpush3.bf16.msra.mxu1 %v1540_v47  ;;  %v2149_v15 = vadd.f32 %v2148_v12, %v2147_v44 }
 0x1a2   : >> { %2476 = vmatprep.subr.bf16.mxu1 %v3623_v13  ;;  %v2150_v1 = vpop.f32.mrf.mxu0 }
 0x1a3   : >> { %v1538_v34 = vpop.permute.xlu1 %1537  ;;  %v638_v22 = vpop.f32.mrf.mxu1 }
 0x1a4   : >> { %v1511_v8 = vpop.permute.xlu0 %1510  ;;  %v3495_v55 = vadd.f32 %v2149_v15, %v638_v22  ;;  %v2151_v23 = vpop.f32.mrf.mxu0 }
 0x1a5   : >> { %2296 = vmatprep.subr.bf16.mxu0 %v1511_v8  ;;  %2477 = vmatpush3.bf16.msra.mxu1 %v1538_v34  ;;  %v2152_v4 = vadd.f32 %v2151_v23, %v2150_v1  ;;  %v2386_v36 = vpop.f32.mrf.mxu1 }
 0x1a6   : >> { %2297 = vmatpush3.bf16.msra.mxu0 %v3315_v49  ;;  %2478 = vmatprep.subr.bf16.mxu1 %v3623_v13  ;;  %v645_v3 = vmax.f32 %v3493_v61, %v3495_v55 }
 0x1a7   : >> { %v1536_v29 = vpop.permute.xlu1 %1535  ;;  %v641_v16 = vpop.f32.mrf.mxu1 }
 0x1a8   : >> { %v1509_v17 = vpop.permute.xlu0 %1508  ;;  %v3504_v20 = vadd.f32 %v2152_v4, %v641_v16 }
 0x1a9   : >> { %2298 = vmatprep.subr.bf16.mxu0 %v1509_v17  ;;  %2479 = vmatpush3.bf16.msra.mxu1 %v1536_v29  ;;  %v2387_v46 = vpop.f32.mrf.mxu1 }
 0x1aa   : >> { %2299 = vmatpush3.bf16.msra.mxu0 %v3302_v52  ;;  %2480 = vmatprep.subr.bf16.mxu1 %v3623_v13  ;;  %v646_v49 = vmax.f32 %v3500_v35, %v3504_v20 }
 0x1ab   : >> { %v1531_v21 = vpop.permute.xlu1 %1530 }
 0x1ac   : >> { %v1504_v6 = vpop.permute.xlu0 %1503 }
 0x1ad   : >> { %2300 = vmatprep.subr.bf16.mxu0 %v1504_v6  ;;  %2481 = vmatpush3.bf16.msra.mxu1 %v1531_v21 }
 0x1ae   : >> { %2301 = vmatpush3.bf16.msra.mxu0 %v3288_v26  ;;  %2482 = vmatprep.subr.bf16.mxu1 %v3623_v13 }
 0x1af   : >> { %v1529_v25 = vpop.permute.xlu1 %1528 }
 0x1b0   : >> { %v1719_v32 = vpop.permute.xlu0 %1718 }
 0x1b1   : >> { %1586 = vmatmul.mubr.bf16.vlgmr.msra.gmra.mxu0 %v3053_v10  ;;  %2317 = vmatprep.subr.bf16.mxu0 %v1719_v32 }
 0x1b2   : >> { %2483 = vmatpush3.bf16.msra.mxu1 %v1529_v25  ;;  %1777 = vmatprep.mubr.bf16.mxu0 %v2796_v37 }
 0x1b3   : >> { %v1714_v52 = vpop.permute.xlu1 %1713  ;;  %2488 = vmatprep.subr.bf16.mxu1 %v3623_v13 }
 0x1b4   : >> { %v1694_v31 = vpop.permute.xlu0 %1693 }
 0x1b5   : >> { %2485 = vmatmul.mubr.bf16.vlgmr.msra.gmra.mxu1 %v3067_v39  ;;  %2318 = vmatpush3.bf16.msra.mxu0 %v1694_v31 }
 0x1b6   : >> { %2319 = vmatprep.subr.bf16.mxu0 %v1714_v52  ;;  %2504 = vmatprep.mubr.msk.bf16.mxu1 %vm2562_vm3, %v3623_v13  ;;  %vm1875_vm3 = vcmask 130048  }
 0x1b7   : >> { %v1741_v26 = vpop.permute.xlu1 %1740 }
 0x1b8   : >> { %v1692_v51 = vpop.permute.xlu0 %1691  ;;  %2489 = vmatpush3.bf16.msra.mxu1 %v1741_v26 }
 0x1b9   : >> { %2320 = vmatpush3.bf16.msra.mxu0 %v1692_v51  ;;  %2490 = vmatprep.subr.bf16.mxu1 %v3623_v13 }
 0x1bb   : >> { %v1687_v41 = vpop.permute.xlu1 %1686 }
 0x1bc   : >> { %v1712_v9 = vpop.permute.xlu0 %1711 }
 0x1bd   : >> { %2321 = vmatprep.subr.bf16.mxu0 %v1712_v9 }
 0x1be   : >> { %2322 = vmatpush3.bf16.msra.mxu0 %v1687_v41 }
 0x1bf   : >> { %v1710_v37 = vpop.permute.xlu1 %1709 }
 0x1c0   : >> { %v1739_v42 = vpop.permute.xlu0 %1738  ;;  %2323 = vmatprep.subr.bf16.mxu0 %v1710_v37 }
 0x1c1   : >> { %2491 = vmatpush3.bf16.msra.mxu1 %v1739_v42 }
 0x1c2   : >> { %2492 = vmatprep.subr.bf16.mxu1 %v3623_v13 }
 0x1c3   : >> { %v1737_v27 = vpop.permute.xlu1 %1736 }
 0x1c4   : >> { %v1685_v14 = vpop.permute.xlu0 %1684 }
 0x1c5   : >> { %2324 = vmatpush3.bf16.msra.mxu0 %v1685_v14  ;;  %2493 = vmatpush3.bf16.msra.mxu1 %v1737_v27 }
 0x1c6   : >> { %2494 = vmatprep.subr.bf16.mxu1 %v3623_v13 }
 0x1c7   : >> { %v1683_v56 = vpop.permute.xlu1 %1682 }
 0x1c8   : >> { %v1705_v63 = vpop.permute.xlu0 %1704 }
 0x1c9   : >> { %v2178_v57 = vpop.f32.mrf.mxu0  ;;  %2325 = vmatprep.subr.bf16.mxu0 %v1705_v63 }
 0x1ca   : >> { %2326 = vmatpush3.bf16.msra.mxu0 %v1683_v56 }
 0x1cb   : >> { %v2179_v43 = vpop.f32.mrf.mxu0  ;;  %v1703_v0 = vpop.permute.xlu1 %1702 }
 0x1cc   : >> { %v2180_v11 = vadd.f32 %v2179_v43, %v2178_v57  ;;  %v1732_v50 = vpop.permute.xlu0 %1731  ;;  %v824_v28 = vpop.f32.mrf.mxu1  ;;  %2327 = vmatprep.subr.bf16.mxu0 %v1703_v0 }
 0x1cd   : >> { %v2181_v45 = vpop.f32.mrf.mxu0  ;;  %2495 = vmatpush3.bf16.msra.mxu1 %v1732_v50 }
 0x1ce   : >> { %v825_v24 = vadd.f32 %v2180_v11, %v824_v28  ;;  %2328 = vmatpush3.bf16.msra.mxu0 %v3406_v60  ;;  %v2406_v54 = vpop.f32.mrf.mxu1  ;;  %2496 = vmatprep.subr.bf16.mxu1 %v3623_v13 }
 0x1cf   : >> { %v2182_v18 = vpop.f32.mrf.mxu0  ;;  %v1701_v48 = vpop.permute.xlu1 %1700 }
 0x1d0   : >> { %v831_v19 = vmax.f32 %v645_v3, %v825_v24  ;;  %v2183_v62 = vadd.f32 %v2182_v18, %v2181_v45  ;;  %v1730_v5 = vpop.permute.xlu0 %1729  ;;  %v827_v33 = vpop.f32.mrf.mxu1  ;;  %2329 = vmatprep.subr.bf16.mxu0 %v1701_v48 }
 0x1d1   : >> { %2497 = vmatpush3.bf16.msra.mxu1 %v1730_v5 }
 0x1d2   : >> { %v828_v38 = vadd.f32 %v2183_v62, %v827_v33  ;;  %2330 = vmatpush3.bf16.msra.mxu0 %v3411_v40  ;;  %2498 = vmatprep.subr.bf16.mxu1 %v3623_v13  ;;  %v2407_v60 = vpop.f32.mrf.mxu1 }
 0x1d3   : >> { %v1696_v44 = vpop.permute.xlu1 %1695 }
 0x1d4   : >> { %v832_v47 = vmax.f32 %v646_v49, %v828_v38  ;;  %v1728_v58 = vpop.permute.xlu0 %1727  ;;  %2331 = vmatprep.subr.bf16.mxu0 %v1696_v44 }
 0x1d5   : >> { %2499 = vmatpush3.bf16.msra.mxu1 %v1728_v58 }
 0x1d6   : >> { %2332 = vmatpush3.bf16.msra.mxu0 %v3394_v59  ;;  %2500 = vmatprep.subr.bf16.mxu1 %v3623_v13 }
 0x1d7   : >> { %v1721_v40 = vpop.permute.xlu1 %1720 }
 0x1d8   : >> { %v1723_v12 = vpop.permute.xlu0 %1722 }
 0x1d9   : >> { %1778 = vmatmul.mubr.bf16.vlgmr.msra.gmra.mxu0 %v3053_v10  ;;  %2501 = vmatpush3.bf16.msra.mxu1 %v1723_v12 }
 0x1da   : >> { %2502 = vmatprep.subr.bf16.mxu1 %v3623_v13 }
 0x1dd   : >> { %2503 = vmatpush3.bf16.msra.mxu1 %v1721_v40 }
 0x1e0   : >> { %2505 = vmatmul.mubr.bf16.vlgmr.msra.gmra.mxu1 %v3067_v39 }
 0x1f0   : >> { %v1832_v40 = vpop.permute.xlu0 %1831 }
 0x1f1   : >> { %v2209_v15 = vpop.f32.mrf.mxu0 }
 0x1f3   : >> { %v2210_v61 = vpop.f32.mrf.mxu0 }
 0x1f4   : >> { %v2211_v7 = vadd.f32 %v2210_v61, %v2209_v15 }
 0x1f5   : >> { %v2212_v1 = vpop.f32.mrf.mxu0 }
 0x1f7   : >> { %v1046_v34 = vpop.f32.mrf.mxu1  ;;  %v2213_v22 = vpop.f32.mrf.mxu0 }
 0x1f8   : >> { %v1047_v8 = vadd.f32 %v2211_v7, %v1046_v34  ;;  %v2214_v59 = vadd.f32 %v2213_v22, %v2212_v1 }
 0x1f9   : >> { %v2426_v55 = vpop.f32.mrf.mxu1 }
 0x1fa   : >> { %v1053_v23 = vmax.f32 %v831_v19, %v1047_v8 }
 0x1fb   : >> { %v1049_v4 = vpop.f32.mrf.mxu1 }
 0x1fc   : >> { %v1050_v36 = vadd.f32 %v2214_v59, %v1049_v4  ;;  %v1837_v59 = vpop.permute.xlu1 %1836 }
 0x1fd   : >> { %v2427_v10 = vpop.f32.mrf.mxu1 }
 0x1fe   : >> { %v1054_v35 = vmax.f32 %v832_v47, %v1050_v36 }
 0x21c   : >> { %v2240_v3 = vpop.f32.mrf.mxu0 }
 0x21e   : >> { %v2241_v29 = vpop.f32.mrf.mxu0 }
 0x21f   : >> { %v2242_v13 = vadd.f32 %v2241_v29, %v2240_v3 }
 0x220   : >> { %v2243_v16 = vpop.f32.mrf.mxu0  ;;  %v1232_v17 = vpop.f32.mrf.mxu1 }
 0x221   : >> { %v1233_v39 = vadd.f32 %v2242_v13, %v1232_v17 }
 0x222   : >> { %v2244_v20 = vpop.f32.mrf.mxu0  ;;  %v2446_v30 = vpop.f32.mrf.mxu1 }
 0x223   : >> { %v1239_v46 = vmax.f32 %v1053_v23, %v1233_v39  ;;  %v2245_v49 = vadd.f32 %v2244_v20, %v2243_v16 }
 0x224   : >> { %v1235_v21 = vpop.f32.mrf.mxu1 }
 0x225   : >> { %v1236_v53 = vadd.f32 %v2245_v49, %v1235_v21 }
 0x226   : >> { %v2447_v2 = vpop.f32.mrf.mxu1 }
 0x227   : >> { %v1240_v6 = vmax.f32 %v1054_v35, %v1236_v53 }
 0x244   : >> { %v2271_v25 = vpop.f32.mrf.mxu0 }
 0x246   : >> { %v2272_v32 = vpop.f32.mrf.mxu0 }
 0x247   : >> { %v2273_v31 = vadd.f32 %v2272_v32, %v2271_v25 }
 0x248   : >> { %v2274_v52 = vpop.f32.mrf.mxu0 }
 0x24a   : >> { %v2275_v26 = vpop.f32.mrf.mxu0 }
 0x24b   : >> { %v2276_v9 = vadd.f32 %v2275_v26, %v2274_v52 }
 0x24c   : >> { %v1442_v51 = vpop.f32.mrf.mxu1 }
 0x24d   : >> { %v1443_v41 = vadd.f32 %v2273_v31, %v1442_v51 }
 0x24e   : >> { %v2466_v37 = vpop.f32.mrf.mxu1 }
 0x24f   : >> { %v1449_v42 = vmax.f32 %v1239_v46, %v1443_v41 }
 0x250   : >> { %v1445_v27 = vpop.f32.mrf.mxu1 }
 0x251   : >> { %v1446_v14 = vadd.f32 %v2276_v9, %v1445_v27 }
 0x252   : >> { %v2467_v56 = vpop.f32.mrf.mxu1 }
 0x253   : >> { %v1450_v63 = vmax.f32 %v1240_v6, %v1446_v14 }
 0x271   : >> { %v2302_v50 = vpop.f32.mrf.mxu0 }
 0x273   : >> { %v2303_v28 = vpop.f32.mrf.mxu0 }
 0x274   : >> { %v2304_v54 = vadd.f32 %v2303_v28, %v2302_v50 }
 0x275   : >> { %v1628_v57 = vpop.f32.mrf.mxu1  ;;  %v2305_v45 = vpop.f32.mrf.mxu0 }
 0x276   : >> { %v1629_v19 = vadd.f32 %v2304_v54, %v1628_v57 }
 0x277   : >> { %v2486_v43 = vpop.f32.mrf.mxu1  ;;  %v2306_v24 = vpop.f32.mrf.mxu0 }
 0x278   : >> { %v2307_v62 = vadd.f32 %v2306_v24, %v2305_v45  ;;  %v1635_v44 = vmax.f32 %v1449_v42, %v1629_v19 }
 0x279   : >> { %v1631_v0 = vpop.f32.mrf.mxu1 }
 0x27a   : >> { %v1632_v47 = vadd.f32 %v2307_v62, %v1631_v0 }
 0x27b   : >> { %v2487_v11 = vpop.f32.mrf.mxu1 }
 0x27c   : >> { %v1636_v1 = vmax.f32 %v1450_v63, %v1632_v47 }
 0x299   : >> { %v2333_v18 = vpop.f32.mrf.mxu0 }
 0x29b   : >> { %v2334_v48 = vpop.f32.mrf.mxu0 }
 0x29c   : >> { %v2335_v33 = vadd.f32 %v2334_v48, %v2333_v18 }
 0x29d   : >> { %v2336_v5 = vpop.f32.mrf.mxu0 }
 0x29f   : >> { %v2337_v38 = vpop.f32.mrf.mxu0 }
 0x2a0   : >> { %v1820_v60 = vpop.f32.mrf.mxu1  ;;  %v2338_v15 = vadd.f32 %v2337_v38, %v2336_v5 }
 0x2a1   : >> { %v1821_v58 = vadd.f32 %v2335_v33, %v1820_v60 }
 0x2a2   : >> { %v2506_v12 = vpop.f32.mrf.mxu1 }
 0x2a3   : >> { %v1827_v61 = vmax.f32 %v1635_v44, %v1821_v58 }
 0x2a4   : >> { %v1823_v7 = vpop.f32.mrf.mxu1 }
 0x2a5   : >> { %v1824_v34 = vadd.f32 %v2338_v15, %v1823_v7  ;;  %v1839_v22 = vadd.f32 %v1832_v40, %v1827_v61 }
 0x2a6   : >> { %v2507_v8 = vpop.f32.mrf.mxu1 }
 0x2a7   : >> { %v1841_v55 = vmax.f32 %v1839_v22, 0.0  ;;  %v1828_v23 = vmax.f32 %v1636_v1, %v1824_v34 }
 0x2a9   : >> { %v1840_v4 = vadd.f32 %v1837_v59, %v1828_v23  ;;  %1843 = vxpose.xlu1.b32.start [1/2] (short) (narrow) %v1841_v55, 56 }
 0x2ab   : >> { %v1842_v36 = vmax.f32 %v1840_v4, 0.0 }
 0x2ad   : >> { %1844 = vxpose.xlu1.b32.end [2/2] (short) (narrow) %v1842_v36, 56 }
 0x325   : >> { %v1859_v10 = vpop.trf.xlu1 }
 0x326   : >> { %v1876_v29 = vsel %vm1875_vm3, %v1859_v10, -inf }
 0x327   : >> { %v1877_v20 = vrot.slane %v1876_v29, 4 }
 0x329   : >> { %v1860_v35 = vpop.trf.xlu1  ;;  %v1878_v2 = vmax.f32 %v1876_v29, %v1877_v20 }
 0x32a   : >> { %v1883_v3 = vsel %vm1875_vm3, %v1860_v35, -inf }
 0x32b   : >> { %v1884_v16 = vrot.slane %v1883_v3, 4  ;;  %v1879_v51 = vrot.slane %v1878_v2, 2 }
 0x32d   : >> { %v1861_v13 = vpop.trf.xlu1  ;;  %v1885_v46 = vmax.f32 %v1883_v3, %v1884_v16  ;;  %v1880_v57 = vmax.f32 %v1878_v2, %v1879_v51 }
 0x32e   : >> { %v1890_v17 = vsel %vm1875_vm3, %v1861_v13, -inf }
 0x32f   : >> { %v1891_v39 = vrot.slane %v1890_v17, 4  ;;  %v1886_v32 = vrot.slane %v1885_v46, 2  ;;  %v1881_v48 = vrot.slane %v1880_v57, 1 }
 0x331   : >> { %v1862_v30 = vpop.trf.xlu1  ;;  %v1892_v21 = vmax.f32 %v1890_v17, %v1891_v39  ;;  %v1887_v42 = vmax.f32 %v1885_v46, %v1886_v32  ;;  %v1882_v58 = vmax.f32 %v1880_v57, %v1881_v48 }
 0x332   : >> { %v1897_v49 = vsel %vm1875_vm3, %v1862_v30, -inf }
 0x333   : >> { %v1898_v53 = vrot.slane %v1897_v49, 4  ;;  %v1893_v31 = vrot.slane %v1892_v21, 2  ;;  %v1888_v28 = vrot.slane %v1887_v42, 1 }
 0x335   : >> { %v1899_v6 = vmax.f32 %v1897_v49, %v1898_v53  ;;  %v1863_v25 = vpop.trf.xlu1  ;;  %v1894_v14 = vmax.f32 %v1892_v21, %v1893_v31  ;;  %v1889_v38 = vmax.f32 %v1887_v42, %v1888_v28 }
 0x336   : >> { %v1904_v52 = vsel %vm1875_vm3, %v1863_v25, -inf }
 0x337   : >> { %v1905_v26 = vrot.slane %v1904_v52, 4  ;;  %v1900_v41 = vrot.slane %v1899_v6, 2  ;;  %v1895_v24 = vrot.slane %v1894_v14, 1  ;;  %v1933_v61 = vsel %vm1932_vm7, %v1889_v38, %v1882_v58 }
 0x339   : >> { %v1906_v9 = vmax.f32 %v1904_v52, %v1905_v26  ;;  %v1864_v37 = vpop.trf.xlu1  ;;  %v1901_v43 = vmax.f32 %v1899_v6, %v1900_v41  ;;  %v1896_v60 = vmax.f32 %v1894_v14, %v1895_v24 }
 0x33a   : >> { %v1911_v27 = vsel %vm1875_vm3, %v1864_v37, -inf }
 0x33b   : >> { %v1907_v56 = vrot.slane %v1906_v9, 2  ;;  %v1912_v63 = vrot.slane %v1911_v27, 4  ;;  %v1902_v19 = vrot.slane %v1901_v43, 1  ;;  %v1935_v1 = vsel %vm1934_vm8, %v1896_v60, %v1933_v61 }
 0x33d   : >> { %v1908_v0 = vmax.f32 %v1906_v9, %v1907_v56  ;;  %v1913_v11 = vmax.f32 %v1911_v27, %v1912_v63  ;;  %v1865_v50 = vpop.trf.xlu1  ;;  %v1903_v12 = vmax.f32 %v1901_v43, %v1902_v19 }
 0x33e   : >> { %v1918_v45 = vsel %vm1875_vm3, %v1865_v50, -inf }
 0x33f   : >> { %v1914_v54 = vrot.slane %v1913_v11, 2  ;;  %v1919_v18 = vrot.slane %v1918_v45, 4  ;;  %v1909_v62 = vrot.slane %v1908_v0, 1  ;;  %v1937_v22 = vsel %vm1936_vm9, %v1903_v12, %v1935_v1 }
 0x341   : >> { %v1915_v5 = vmax.f32 %v1913_v11, %v1914_v54  ;;  %v1920_v33 = vmax.f32 %v1918_v45, %v1919_v18  ;;  %v1910_v40 = vmax.f32 %v1908_v0, %v1909_v62 }
 0x343   : >> { %v1916_v44 = vrot.slane %v1915_v5, 1  ;;  %v1921_v47 = vrot.slane %v1920_v33, 2  ;;  %v1939_v8 = vsel %vm1452_vm1, %v1910_v40, %v1937_v22 }
 0x345   : >> { %v1922_v15 = vmax.f32 %v1920_v33, %v1921_v47  ;;  %v1917_v7 = vmax.f32 %v1915_v5, %v1916_v44 }
 0x347   : >> { %v1923_v34 = vrot.slane %v1922_v15, 1  ;;  %v1941_v55 = vsel %vm1940_vm10, %v1917_v7, %v1939_v8 }
 0x348   : > { %182 = sbr.rel (!%p180_p4) target bundleno = 16 (0x10), region = 71 }
 0x349   : >> { %v1924_v59 = vmax.f32 %v1922_v15, %v1923_v34 }
 0x34b   : >> { %v1943_v23 = vsel %vm1942_vm11, %v1924_v59, %v1941_v55 }
 0x34c   : >> { %1947 = vst.msk [vmem:[%s1945_s18] sm:$0x7f] %vm1946_vm12, %v1943_v23 }
 0x34d PF: > { %s13_s12 = sadd.s32 1, %s2548_s12  }
 0x34e   : > { %p10_p5 = scmp.ge.s32.totalorder %s13_s12, 4  }
 0x350   :  { %12 = sbr.rel (!%p10_p5) target bundleno = 1 (0x1), region = 82 }

// kernel: net_forward.3
= control target key start
LH: loop header
LB: loop body
LE: loop exit
PB: predicated region body
PF: predicated region fallthrough
CT: control target
= control target key end

     0   :  { %8 = vsyncpa [#allocation3], 0  ;;  %s7972_s0 = inlined_call_operand.hbm [shape: f32[2,3,512,512], index: 0, kind: input, shape index: {}]   ;;  %s7973_s1 = inlined_call_operand.hbm [shape: bf16[6,192], index: 1, kind: input, shape index: {}]   ;;  %s7974_s2 = inlined_call_operand.vmem [shape: f32[6,1], index: 2, kind: input, shape index: {}]   ;;  %s7975_s3 = inlined_call_operand.vmem [shape: f32[2,63,63,6], index: 3, kind: output, shape index: {}]  }
   0x1   :  { %10 = vsyncpa [#allocation3 + $0x1], 0 }
   0x2   :  { %11 = vsyncpa [#allocation5], 0  ;;  %s4778_s12 = smov 0   ;;  %s4780_s13 = smov 0  }
   0x3   :  { %s4782_s14 = smov 0   ;;  %s4784_s15 = smov 0  }
   0x4 LB: > { %s4797_s16 = sadd.s32 4294967295, %s4740_s15   ;;  %s4800_s17 = sadd.s32 1, %s4740_s15   ;;  %s4740_s15 = sphi %s4784_s15, %s8285_s15   ;;  %s4736_s14 = sphi %s4782_s14, %s8284_s14   ;;  %s4732_s13 = sphi %s4780_s13, %s8283_s13   ;;  %s4728_s12 = sphi %s4778_s12, %s8282_s12  }
   0x5   : > { %s21_s18 = ssub.s32 %s4740_s15, %s4800_s17  ;;  %s24_s19 = sadd.s32 1, %s4736_s14 }
   0x6   : > { %p22_p0 = scmp.eq.s32.totalorder %s21_s18, 0  ;;  %p31_p1 = scmp.ne.s32.totalorder %s4736_s14, %s4732_s13 }
   0x7   : > { %p32_p2 = scmp.eq.s32.totalorder %s4740_s15, 0  ;;  %p37_p3 = scmp.ne.s32.totalorder %s4732_s13, %s4728_s12 }
   0x8   : > { %s4810_s20 = scalar_select %p22_p0, %s4736_s14, %s24_s19  }
   0x9   : > { %p4812_p4 = por %p32_p2, %p31_p1  ;;  %p7976_p5 = scmp.eq.s32.totalorder %s4797_s16, 0 }
   0xa   : > { %p4346_p6 = scmp.ge.s32.totalorder %s4740_s15, 1  ;;  %p116_p7 = scmp.lt.s32.totalorder %s4740_s15, 3 }
   0xb   : > { %p4821_p8 = por %p7976_p5, %p37_p3  ;;  %s4746_s24 = smov [#allocation4]  }
   0xc   : > { %p4825_p9 = pnand %p4346_p6, %p116_p7  ;;  %s129_s25 = sshll.u32 %s4746_s24, 4  ;;  %s130_s25 = int_to_ptr.vmem [resolvable:$true] %s129_s25 }
   0xd   : > { %s8082_s22 = scalar_select %p4821_p8, 1, 0 }
   0xe   : > { %s8083_s23 = scalar_select %p4825_p9, 1, 0 }
   0xf   : > { %p4580_p10 = pneg %p4825_p9  ;;  %p4589_p11 = scmp.lt.s32.totalorder %s4740_s15, 2 }
  0x10   : > { %s143_s26 = sand.u32 1, %s4736_s14   ;;  %s4571_s30 = smul.u32 98304, %s4740_s15 }
  0x11   : > { %p4835_p12 = pnand %p4580_p10, %p7976_p5  ;;  %p4841_p13 = pnand %p4589_p11, %p4812_p4 }
  0x12   : > { %s4570_s29 = smul.u32 6144, %s143_s26  ;;  %s4655_s4 = scalar_lea.vmem %s130_s25, 128 }
  0x13   : > { %p4646_p0 = pneg %p4835_p12  ;;  %p4656_p1 = scmp.ne.s32.totalorder %s130_s25, %s4655_s4 }
  0x14   : > { %p4663_p6 = scmp.lt.s32.totalorder %s130_s25, %s130_s25  ;;  %p4664_p7 = scmp.lt.s32.totalorder %s4655_s4, %s4655_s4 }
  0x15   : > { %p4658_p2 = pnand %p4656_p1, %p4646_p0 }
  0x16   : > { %p4665_p10 = por %p4664_p7, %p4663_p6 }
  0x17   : > { %p4659_p3 = pneg %p4658_p2 }
  0x19   : > { %p4666_p5 = pnand %p4665_p10, %p4659_p3 }
  0x1b   : > { %4669 = shalt.err (!%p4666_p5)
}
  0x1c   : > { %4583 = dma.hbm_to_vmem [thread:$0]  (!%p4835_p12), %s7973_s1, 128, %s130_s25, [#allocation5]  }
  0x1d   : > { %s4856_s9 = scalar_lea.hbm %s7972_s0, %s4571_s30  ;;  %s147_s10 = scalar_lea.vmem [#allocation2], %s4570_s29 }
  0x1e   : > { %s154_s11 = sshll.u32 %s147_s10, 4  ;;  %s4860_s12 = scalar_lea.sflag [#allocation3], %s143_s26  ;;  %s4858_s11 = int_to_ptr.vmem [resolvable:$true] %s154_s11 }
  0x1f   : > { %s4670_s15 = scalar_lea.hbm %s4856_s9, 98304  ;;  %p4672_p5 = pneg %p4841_p13 }
  0x20   : > { %p4671_p4 = scmp.ne.s32.totalorder %s4856_s9, %s4670_s15  ;;  %s4675_s21 = scalar_lea.hbm %s7972_s0, 196608 }
  0x21   : > { %p4676_p0 = scmp.lt.s32.totalorder %s4856_s9, %s7972_s0  ;;  %p4677_p1 = scmp.lt.s32.totalorder %s4675_s21, %s4670_s15 }
  0x22   : > { %p4673_p11 = pnand %p4672_p5, %p4671_p4 }
  0x23   : > { %p4678_p2 = por %p4677_p1, %p4676_p0 }
  0x24   : > { %p4674_p12 = pneg %p4673_p11 }
  0x26   : > { %p4679_p3 = pnand %p4678_p2, %p4674_p12 }
  0x28   : > { %4682 = shalt.err (!%p4679_p3)
}
  0x29   : > { %s4683_s26 = scalar_lea.vmem %s4858_s11, 98304  ;;  %s4747_s27 = smov [#allocation2]  }
  0x2a   : > { %p4684_p6 = scmp.ne.s32.totalorder %s4858_s11, %s4683_s26  ;;  %s4688_s29 = sshll.u32 %s4747_s27, 4  ;;  %s4689_s29 = int_to_ptr.vmem [resolvable:$false] %s4688_s29 }
  0x2b   : > { %s4690_s30 = scalar_lea.vmem %s4689_s29, 196608  ;;  %p4691_p4 = scmp.lt.s32.totalorder %s4858_s11, %s4689_s29 }
  0x2c   : > { %p4686_p7 = pnand %p4684_p6, %p4672_p5  ;;  %p4692_p11 = scmp.lt.s32.totalorder %s4690_s30, %s4683_s26 }
  0x2e   : > { %p4687_p10 = pneg %p4686_p7  ;;  %p4693_p8 = por %p4692_p11, %p4691_p4 }
  0x30   : > { %p4694_p9 = pnand %p4693_p8, %p4687_p10 }
  0x32   : > { %4697 = shalt.err (!%p4694_p9)
}
  0x33   : > { %s4748_s4 = smov 512   ;;  %s4749_s5 = smov 32  }
  0x34   : > { %4587 = dma.hbm_to_vmem [thread:$0]  (!%p4841_p13), %s4856_s9, 98304, %s4858_s11, %s4860_s12, %s4748_s4, %s4748_s4, %s4749_s5  }
  0x35   : > { %p8086_p5 = scmp.ne.s32.totalorder %s8083_s23, 0 }
  0x36   : > { %s168_s6 = sand.u32 (!%p8086_p5), 1, %s4732_s13   ;;  %p8087_p8 = scmp.ne.s32.totalorder (!%p8086_p5), %s8082_s22, 0 }
  0x37   : > { %166 = sbr.rel (%p8086_p5) target bundleno = 1554 (0x612), region = 32  ;;  %s169_s8 = scalar_lea.sflag (!%p8086_p5), [#allocation3], %s168_s6 }
  0x38   : > { %s4884_s7 = smul.u32 (!%p8086_p5), 6144, %s168_s6 }
  0x3a   : > { %s172_s10 = scalar_lea.vmem (!%p8086_p5), [#allocation2], %s4884_s7 }
  0x3c   : > { %4719 = dma.done.wait (%p8087_p8), %s169_s8, 98304  }
  0x3d   : > { %4721 = vsyncadd (%p8087_p8), %s169_s8, 4294868992  ;;  %p8088_p9 = scmp.eq.s32.totalorder %s4797_s16, 0 }
  0x3f   : > { %4723 = dma.done.wait (%p8088_p9), [#allocation5], 128   ;;  %p8089_p13 = pmov %p8088_p9 }
  0x40   : > { %p199_p12 = scmp.lt.s32.totalorder %s4797_s16, 1  ;;  %v4902_v0 = vld [vmem:[#allocation4] sm:$0x77]  ;;  %s4909_s15 = smov 0  }
  0x41   : > { %4725 = vsyncadd (%p8089_p13), [#allocation5], 4294967168  ;;  %8090 = vst [vmem:[#allocation8_spill] sm:$0xff] %v4902_v0  ;;  %v4907_v1 = vld [vmem:[%s7974_s2] sm:$0x3f] }
  0x42   : > { %s8287_s16 = smov (!%p199_p12, %s4797_s16), 1  ;;  %8091 = vst [vmem:[#allocation9_spill] sm:$0xff] %v4907_v1 }
  0x43   : > { %s4573_s23 = smul.u32 4032, %s8287_s16 }
  0x45   : > { %s4900_s11 = scalar_lea.vmem %s7975_s3, %s4573_s23 }
  0x46 LB: >> { %s4353_s16 = sshll.u32 %s4744_s15, 3  ;;  %s4750_s24 = smov 127   ;;  %vm669_vm0 = vsmask.f32 3328  ;;  %vm670_vm1 = vsmask.f32 7440  ;;  %s4744_s15 = sphi %s4909_s15, %s212_s15  }
  0x47   : >> { %s214_s18 = sshra.s32 %s4353_s16, 3  ;;  %s4751_s25 = smov 126   ;;  %vm5144_vm2 = vmor %vm669_vm0, %vm670_vm1  ;;  %vm559_vm3 = vcmask 523264   ;;  %vm423_vm4 = vcmask 1006592   ;;  %vm396_vm5 = vcmask 1014784   ;;  %vm488_vm6 = vcmask 1043456  }
  0x48   : >> { %s4541_s19 = sshll.u32 %s214_s18, 5  ;;  %s4752_s26 = smov 125   ;;  %v8133_v0 = vld [vmem:[#allocation8_spill] sm:$0xff]  ;;  %vm369_vm7 = vcmask 1022976   ;;  %vm342_vm8 = vcmask 1031168   ;;  %vm315_vm9 = vcmask 1039360  }
  0x49   : >> { %s4917_s21 = scalar_lea.vmem %s172_s10, %s4541_s19 [#allocation2]  ;;  %s4753_s27 = smov 124   ;;  %vm1120_vm10 = vcmask 1042432   ;;  %vm1121_vm11 = vcmask 1046532   ;;  %vm450_vm13 = vcmask 998400   ;;  %vm477_vm14 = vcmask 990208  }
  0x4a   : >> { %v221_v2 = vld [vmem:[%s4917_s21 + $0x10] sm:$0xff]  ;;  %v219_v3 = vld [vmem:[%s4917_s21] sm:$0xff]  ;;  %v222_v4 = vld [vmem:[%s4917_s21 + $0x18] sm:$0xff]  ;;  %s4754_s29 = smov 123   ;;  %s4755_s30 = smov 122  }
  0x4b   : >> { %v4922_v5 = vpack.c.bf16 %v221_v2, %v221_v2  ;;  %v4924_v6 = vpack.c.bf16 %v219_v3, %v219_v3  ;;  %v4926_v7 = vpack.c.bf16 %v222_v4, %v221_v2  ;;  %v220_v8 = vld [vmem:[%s4917_s21 + $0x8] sm:$0xff]  ;;  %v4930_v10 = vpack.c.bf16 %v222_v4, %v222_v4  ;;  %v227_v13 = vld [vmem:[%s4917_s21 + $0x800] sm:$0xff]  ;;  %v230_v18 = vld [vmem:[%s4917_s21 + $0x818] sm:$0xff]  ;;  %s4756_s4 = smov 121   ;;  %s4538_s5 = sshll.u32 %s4744_s15, 6 }
  0x4c   : >> { %v228_v9 = vld [vmem:[%s4917_s21 + $0x808] sm:$0xff]  ;;  %v4932_v11 = vpack.c.bf16 %v220_v8, %v219_v3  ;;  %v235_v14 = vld [vmem:[%s4917_s21 + $0x1000] sm:$0xff]  ;;  %v4941_v15 = vpack.c.bf16 %v220_v8, %v220_v8  ;;  %v229_v19 = vld [vmem:[%s4917_s21 + $0x810] sm:$0xff]  ;;  %v4977_v29 = vpack.c.bf16 %v227_v13, %v219_v3  ;;  %v4983_v30 = vpack.c.bf16 %v230_v18, %v222_v4  ;;  %s7847_s6 = scalar_lea.vmem %s4900_s11, %s4538_s5  ;;  %s212_s15 = sadd.s32 1, %s4744_s15  }
  0x4d   : >> { %8092 = vst [vmem:[#allocation10_spill] sm:$0xff] %v4926_v7  ;;  %v236_v12 = vld [vmem:[%s4917_s21 + $0x1008] sm:$0xff]  ;;  %303 = vrot.lane.b32.xlu1 %v4922_v5, %s4750_s24  ;;  %299 = vrot.lane.b32.xlu0 %v4924_v6, %s4750_s24  ;;  %v4943_v16 = vpack.c.bf16 %v228_v9, %v227_v13  ;;  %v238_v20 = vld [vmem:[%s4917_s21 + $0x1018] sm:$0xff]  ;;  %v4951_v22 = vpack.c.bf16 %v230_v18, %v229_v19  ;;  %v5076_v40 = vshrl.u32 %v4926_v7, 16  ;;  %v5089_v46 = vshll.u32 %v4926_v7, 16  ;;  %vm5508_vm12 = vmor %vm1120_vm10, %vm1121_vm11  ;;  %p209_p0 = scmp.ge.s32.totalorder %s212_s15, 63  }
  0x4e   : >> { %8093 = vst [vmem:[#allocation11_spill] sm:$0xff] %v4932_v11  ;;  %v4945_v17 = vpack.c.bf16 %v236_v12, %v235_v14  ;;  %v237_v21 = vld [vmem:[%s4917_s21 + $0x1010] sm:$0xff]  ;;  %v4959_v24 = vpack.c.bf16 %v236_v12, %v228_v9  ;;  %v4961_v25 = vpack.c.bf16 %v235_v14, %v227_v13  ;;  %v4967_v26 = vpack.c.bf16 %v238_v20, %v230_v18  ;;  %v223_v38 = vld [vmem:[%s4917_s21 + $0x20] sm:$0xff]  ;;  %v224_v39 = vld [vmem:[%s4917_s21 + $0x28] sm:$0xff] }
  0x4f   : >> { %8094 = vst [vmem:[#allocation12_spill] sm:$0xff] %v4943_v16  ;;  %8096 = vst [vmem:[#allocation14_spill] sm:$0xff] %v4951_v22  ;;  %v4953_v23 = vpack.c.bf16 %v238_v20, %v237_v21  ;;  %v4969_v27 = vpack.c.bf16 %v237_v21, %v229_v19  ;;  %v4975_v28 = vpack.c.bf16 %v228_v9, %v220_v8  ;;  %v5064_v36 = vshrl.u32 %v4932_v11, 16  ;;  %v225_v44 = vld [vmem:[%s4917_s21 + $0x30] sm:$0xff]  ;;  %v226_v45 = vld [vmem:[%s4917_s21 + $0x38] sm:$0xff] }
  0x50   : >> { %8095 = vst [vmem:[#allocation13_spill] sm:$0xff] %v4945_v17  ;;  %8098 = vst [vmem:[#allocation16_spill] sm:$0xff] %v4977_v29  ;;  %v4985_v31 = vpack.c.bf16 %v229_v19, %v221_v2  ;;  %v4991_v32 = vpack.c.bf16 %v236_v12, %v236_v12  ;;  %v4993_v33 = vpack.c.bf16 %v235_v14, %v235_v14  ;;  %v5071_v37 = vshll.u32 %v4932_v11, 16  ;;  %v231_v50 = vld [vmem:[%s4917_s21 + $0x820] sm:$0xff]  ;;  %v232_v51 = vld [vmem:[%s4917_s21 + $0x828] sm:$0xff] }
  0x51   : >> { %8097 = vst [vmem:[#allocation15_spill] sm:$0xff] %v4953_v23  ;;  %305 = vrot.lane.b32.xlu1 %v4930_v10, %s4750_s24  ;;  %301 = vrot.lane.b32.xlu0 %v4941_v15, %s4750_s24  ;;  %v4999_v34 = vpack.c.bf16 %v238_v20, %v238_v20  ;;  %v5001_v35 = vpack.c.bf16 %v237_v21, %v237_v21  ;;  %8100 = vst [vmem:[#allocation18_spill] sm:$0xff] %v5064_v36  ;;  %v675_v42 = vrot.slane %v5064_v36, 4  ;;  %v239_v55 = vld [vmem:[%s4917_s21 + $0x1020] sm:$0xff]  ;;  %v240_v56 = vld [vmem:[%s4917_s21 + $0x1028] sm:$0xff]  ;;  %vm1939_vm10 = vcmask 1045508  }
  0x52   : >> { %8099 = vst [vmem:[#allocation17_spill] sm:$0xff] %v4985_v31  ;;  %8101 = vst [vmem:[#allocation19_spill] sm:$0xff] %v5071_v37  ;;  %v5082_v41 = vpack.c.bf16 %v224_v39, %v223_v38  ;;  %v678_v43 = vrot.slane %v5071_v37, 5  ;;  %v5092_v47 = vshrl.u32 %v4943_v16, 16  ;;  %v5094_v48 = vpack.c.bf16 %v226_v45, %v225_v44  ;;  %v233_v4 = vld [vmem:[%s4917_s21 + $0x830] sm:$0xff] }
  0x53   : >> { %8102 = vst [vmem:[#allocation20_spill] sm:$0xff] %v5076_v40  ;;  %8104 = vst [vmem:[#allocation22_spill] sm:$0xff] %v5089_v46  ;;  %v689_v49 = vrot.slane %v5076_v40, 4  ;;  %v692_v54 = vrot.slane %v5089_v46, 5  ;;  %v5110_v57 = vshll.u32 %v4943_v16, 16  ;;  %v5113_v58 = vshrl.u32 %v4945_v17, 16 }
  0x54   : >> { %8103 = vst [vmem:[#allocation21_spill] sm:$0xff] %v5082_v41  ;;  %8105 = vst [vmem:[#allocation23_spill] sm:$0xff] %v5092_v47  ;;  %v679_v52 = vor.u32 %v678_v43, %v675_v42  ;;  %v5104_v53 = vshll.u32 %v5082_v41, 16  ;;  %v5116_v59 = vshll.u32 %v4945_v17, 16  ;;  %v5119_v60 = vshrl.u32 %v4951_v22, 16  ;;  %v241_v14 = vld [vmem:[%s4917_s21 + $0x1030] sm:$0xff] }
  0x55   : >> { %309 = vrot.lane.b32.xlu1 %v4959_v24, %s4750_s24  ;;  %307 = vrot.lane.b32.xlu0 %v4961_v25, %s4750_s24  ;;  %8106 = vst [vmem:[#allocation24_spill] sm:$0xff] %v5094_v48  ;;  %8108 = vst [vmem:[#allocation26_spill] sm:$0xff] %v5110_v57  ;;  %v5121_v61 = vpack.c.bf16 %v232_v51, %v231_v50  ;;  %v5124_v62 = vshrl.u32 %v4953_v23, 16  ;;  %v5127_v63 = vshll.u32 %v5094_v48, 16  ;;  %v703_v3 = vrot.slane %v5092_v47, 4 }
  0x56   : >> { %8107 = vst [vmem:[#allocation25_spill] sm:$0xff] %v5104_v53  ;;  %8109 = vst [vmem:[#allocation27_spill] sm:$0xff] %v5113_v58  ;;  %v5129_v2 = vpack.c.bf16 %v240_v56, %v239_v55  ;;  %v680_v8 = vrot.slane %v679_v52, 4  ;;  %v684_v9 = vrot.slane %v5104_v53, 5  ;;  %v693_v12 = vor.u32 %v692_v54, %v689_v49 }
  0x57   : >> { %8110 = vst [vmem:[#allocation28_spill] sm:$0xff] %v5116_v59  ;;  %8111 = vst [vmem:[#allocation29_spill] sm:$0xff] %v5119_v60  ;;  %v706_v13 = vrot.slane %v5110_v57, 5  ;;  %v731_v19 = vrot.slane %v5113_v58, 4  ;;  %v5154_v20 = vshll.u32 %v4953_v23, 16  ;;  %v5157_v21 = vshll.u32 %v5121_v61, 16 }
  0x58   : >> { %8112 = vst [vmem:[#allocation30_spill] sm:$0xff] %v5121_v61  ;;  %8113 = vst [vmem:[#allocation31_spill] sm:$0xff] %v5124_v62  ;;  %v698_v38 = vrot.slane %v5127_v63, 5  ;;  %v5161_v39 = vshll.u32 %v5129_v2, 16  ;;  %v685_v44 = vsel %vm5144_vm2, %v680_v8, %v684_v9  ;;  %v694_v45 = vrot.slane %v693_v12, 4 }
  0x59   : >> { %313 = vrot.lane.b32.xlu1 %v4967_v26, %s4750_s24  ;;  %311 = vrot.lane.b32.xlu0 %v4969_v27, %s4750_s24  ;;  %8114 = vst [vmem:[#allocation32_spill] sm:$0xff] %v5127_v63  ;;  %8115 = vst [vmem:[#allocation33_spill] sm:$0xff] %v5129_v2  ;;  %v707_v49 = vor.u32 %v706_v13, %v703_v3  ;;  %v717_v50 = vrot.slane %v5119_v60, 4  ;;  %v745_v54 = vrot.slane %v5124_v62, 4  ;;  %v748_v55 = vrot.slane %v5154_v20, 5 }
  0x5a   : >> { %8119 = vst [vmem:[#allocation35_spill] sm:$0xff] %v5154_v20  ;;  %8120 = vst [vmem:[#allocation36_spill] sm:$0xff] %v5157_v21  ;;  %v712_v56 = vrot.slane %v5157_v21, 5  ;;  %v5186_v3 = vcombine.high %v685_v44, %v685_v44  ;;  %v5339_v23 = vcombine.high %v8133_v0, %v8133_v0  ;;  %vm1511_vm15 = vsmask.f32 2304 }
  0x5b   : >> { %8121 = vst [vmem:[#allocation37_spill] sm:$0xff] %v5161_v39  ;;  %v708_v8 = vrot.slane %v707_v49, 4  ;;  %v749_v13 = vor.u32 %v748_v55, %v745_v54  ;;  %vm1512_vm0 = vsmask.f32 6416 }
  0x5c   : >> { %8134 = vst [vmem:[#allocation49_spill] sm:$0xff] %v5339_v23  ;;  %4375 = vmatprep.mubr.msk.bf16.mxu1 %vm559_vm3, %v5339_v23  ;;  %4374 = vmatprep.mubr.msk.bf16.mxu0 %vm559_vm3, %v5339_v23  ;;  %vm5929_vm1 = vmor %vm1511_vm15, %vm1512_vm0  ;;  %vm2330_vm15 = vsmask.f32 5392 }
  0x5d   : >> { %328 = vrot.lane.b32.xlu1 %v4975_v28, %s4751_s25  ;;  %326 = vrot.lane.b32.xlu0 %v4977_v29, %s4751_s25 }
  0x61   : >> { %332 = vrot.lane.b32.xlu1 %v4983_v30, %s4751_s25  ;;  %330 = vrot.lane.b32.xlu0 %v4985_v31, %s4751_s25 }
  0x65   : >> { %336 = vrot.lane.b32.xlu1 %v4991_v32, %s4751_s25  ;;  %334 = vrot.lane.b32.xlu0 %v4993_v33, %s4751_s25 }
  0x69   : >> { %340 = vrot.lane.b32.xlu1 %v4999_v34, %s4751_s25  ;;  %338 = vrot.lane.b32.xlu0 %v5001_v35, %s4751_s25 }
  0x6d   : >> { %355 = vrot.lane.b32.xlu1 %v4941_v15, %s4752_s26  ;;  %353 = vrot.lane.b32.xlu0 %v4924_v6, %s4752_s26 }
  0x71   : >> { %359 = vrot.lane.b32.xlu1 %v4930_v10, %s4752_s26  ;;  %357 = vrot.lane.b32.xlu0 %v4922_v5, %s4752_s26 }
  0x75   : >> { %363 = vrot.lane.b32.xlu1 %v4959_v24, %s4752_s26  ;;  %361 = vrot.lane.b32.xlu0 %v4961_v25, %s4752_s26 }
  0x79   : >> { %367 = vrot.lane.b32.xlu1 %v4967_v26, %s4752_s26  ;;  %365 = vrot.lane.b32.xlu0 %v4969_v27, %s4752_s26 }
  0x7d   : >> { %382 = vrot.lane.b32.xlu1 %v4975_v28, %s4753_s27  ;;  %380 = vrot.lane.b32.xlu0 %v4977_v29, %s4753_s27 }
  0x81   : >> { %386 = vrot.lane.b32.xlu1 %v4983_v30, %s4753_s27  ;;  %384 = vrot.lane.b32.xlu0 %v4985_v31, %s4753_s27 }
  0x85   : >> { %390 = vrot.lane.b32.xlu1 %v4991_v32, %s4753_s27  ;;  %388 = vrot.lane.b32.xlu0 %v4993_v33, %s4753_s27 }
  0x89   : >> { %394 = vrot.lane.b32.xlu1 %v4999_v34, %s4753_s27  ;;  %392 = vrot.lane.b32.xlu0 %v5001_v35, %s4753_s27 }
  0x8d   : >> { %409 = vrot.lane.b32.xlu1 %v4941_v15, %s4754_s29  ;;  %407 = vrot.lane.b32.xlu0 %v4924_v6, %s4754_s29 }
  0x91   : >> { %413 = vrot.lane.b32.xlu1 %v4930_v10, %s4754_s29  ;;  %411 = vrot.lane.b32.xlu0 %v4922_v5, %s4754_s29 }
  0x95   : >> { %417 = vrot.lane.b32.xlu1 %v4959_v24, %s4754_s29  ;;  %415 = vrot.lane.b32.xlu0 %v4961_v25, %s4754_s29 }
  0x99   : >> { %421 = vrot.lane.b32.xlu1 %v4967_v26, %s4754_s29  ;;  %419 = vrot.lane.b32.xlu0 %v4969_v27, %s4754_s29 }
  0x9d   : >> { %436 = vrot.lane.b32.xlu1 %v4975_v28, %s4755_s30  ;;  %434 = vrot.lane.b32.xlu0 %v4977_v29, %s4755_s30 }
  0xa1   : >> { %440 = vrot.lane.b32.xlu1 %v4983_v30, %s4755_s30  ;;  %438 = vrot.lane.b32.xlu0 %v4985_v31, %s4755_s30 }
  0xa5   : >> { %444 = vrot.lane.b32.xlu1 %v4991_v32, %s4755_s30  ;;  %442 = vrot.lane.b32.xlu0 %v4993_v33, %s4755_s30 }
  0xa9   : >> { %448 = vrot.lane.b32.xlu1 %v4999_v34, %s4755_s30  ;;  %446 = vrot.lane.b32.xlu0 %v5001_v35, %s4755_s30 }
  0xad   : >> { %463 = vrot.lane.b32.xlu1 %v4941_v15, %s4756_s4  ;;  %461 = vrot.lane.b32.xlu0 %v4924_v6, %s4756_s4  ;;  %v234_v6 = vld [vmem:[%s4917_s21 + $0x838] sm:$0xff] }
  0xae   : >> { %v242_v15 = vld [vmem:[%s4917_s21 + $0x1038] sm:$0xff]  ;;  %v5163_v42 = vpack.c.bf16 %v234_v6, %v233_v4  ;;  %v5188_v4 = vcombine.low %v685_v44, %v685_v44  ;;  %v699_v6 = vsel %vm5144_vm2, %v694_v45, %v698_v38  ;;  %v750_v45 = vrot.slane %v749_v13, 4 }
  0xaf   : >> { %v5165_v43 = vpack.c.bf16 %v242_v15, %v241_v14  ;;  %v713_v15 = vsel %vm5144_vm2, %v708_v8, %v712_v56 }
  0xb0   : >> { %8122 = vst [vmem:[#allocation38_spill] sm:$0xff] %v5163_v42  ;;  %v5245_v18 = vcombine.high %v685_v44, %v713_v15 }
  0xb1   : >> { %467 = vrot.lane.b32.xlu1 %v4930_v10, %s4756_s4  ;;  %465 = vrot.lane.b32.xlu0 %v4922_v5, %s4756_s4  ;;  %v734_v10 = vrot.slane %v5116_v59, 5  ;;  %v5151_v5 = vshll.u32 %v4951_v22, 16  ;;  %8123 = vst [vmem:[#allocation39_spill] sm:$0xff] %v5165_v43  ;;  %v5193_v14 = vshll.u32 %v5165_v43, 16 }
  0xb2   : >> { %8128 = vst [vmem:[#allocation44_spill] sm:$0xff] %v5245_v18 }
  0xb3   : >> { %8118 = vst [vmem:[#allocation34_spill] sm:$0xff] %v5151_v5  ;;  %v735_v51 = vor.u32 %v734_v10, %v731_v19  ;;  %v720_v52 = vrot.slane %v5151_v5, 5  ;;  %8125 = vst [vmem:[#allocation41_spill] sm:$0xff] %v5193_v14  ;;  %v754_v49 = vrot.slane %v5193_v14, 5 }
  0xb5   : >> { %471 = vrot.lane.b32.xlu1 %v4959_v24, %s4756_s4  ;;  %469 = vrot.lane.b32.xlu0 %v4961_v25, %s4756_s4  ;;  %v740_v24 = vrot.slane %v5161_v39, 5  ;;  %v5180_v25 = vshll.u32 %v5163_v42, 16  ;;  %v736_v9 = vrot.slane %v735_v51, 4  ;;  %v721_v12 = vor.u32 %v720_v52, %v717_v50 }
  0xb6   : >> { %v755_v56 = vsel %vm5144_vm2, %v750_v45, %v754_v49 }
  0xb7   : >> { %8124 = vst [vmem:[#allocation40_spill] sm:$0xff] %v5180_v25  ;;  %v726_v19 = vrot.slane %v5180_v25, 5  ;;  %v741_v10 = vsel %vm5144_vm2, %v736_v9, %v740_v24  ;;  %v722_v38 = vrot.slane %v721_v12, 4 }
  0xb8   : >> { %v5217_v52 = vcombine.high %v713_v15, %v741_v10  ;;  %v5219_v54 = vcombine.low %v713_v15, %v741_v10 }
  0xb9   : >> { %475 = vrot.lane.b32.xlu1 %v4967_v26, %s4756_s4  ;;  %473 = vrot.lane.b32.xlu0 %v4969_v27, %s4756_s4  ;;  %v5199_v26 = vcombine.high %v699_v6, %v699_v6  ;;  %v5201_v27 = vcombine.low %v699_v6, %v699_v6  ;;  %v727_v55 = vsel %vm5144_vm2, %v722_v38, %v726_v19  ;;  %vm1938_vm2 = vcmask 1041408  }
  0xba   : >> { %v5233_v9 = vcombine.high %v727_v55, %v755_v56  ;;  %v5235_v12 = vcombine.low %v727_v55, %v755_v56  ;;  %v5247_v38 = vcombine.low %v685_v44, %v713_v15  ;;  %v5257_v1 = vcombine.high %v699_v6, %v727_v55  ;;  %vm6350_vm11 = vmor %vm1938_vm2, %vm1939_vm10 }
  0xbb   : >> { %8126 = vst [vmem:[#allocation42_spill] sm:$0xff] %v5199_v26  ;;  %8127 = vst [vmem:[#allocation43_spill] sm:$0xff] %v5201_v27  ;;  %v5259_v14 = vcombine.low %v699_v6, %v727_v55  ;;  %v5269_v44 = vcombine.high %v741_v10, %v741_v10  ;;  %v5271_v15 = vcombine.low %v741_v10, %v741_v10  ;;  %vm2745_vm2 = vcmask 1044484  }
  0xbc   : >> { %8129 = vst [vmem:[#allocation45_spill] sm:$0xff] %v5247_v38  ;;  %8130 = vst [vmem:[#allocation46_spill] sm:$0xff] %v5257_v1  ;;  %v5281_v6 = vcombine.high %v755_v56, %v755_v56  ;;  %v5283_v55 = vcombine.low %v755_v56, %v755_v56 }
  0xbd   : >> { %790 = vrot.lane.b32.xlu1 %v5186_v3, %s4750_s24  ;;  %788 = vrot.lane.b32.xlu0 %v5188_v4, %s4750_s24  ;;  %8131 = vst [vmem:[#allocation47_spill] sm:$0xff] %v5259_v14  ;;  %8132 = vst [vmem:[#allocation48_spill] sm:$0xff] %v5271_v15 }
  0xbf   : >> { %v5209_v50 = vpop.permute.xlu1 %303  ;;  %v5211_v51 = vpop.permute.xlu0 %299 }
  0xc1   : >> { %794 = vrot.lane.b32.xlu1 %v5199_v26, %s4750_s24  ;;  %792 = vrot.lane.b32.xlu0 %v5201_v27, %s4750_s24 }
  0xc3   : >> { %v5225_v24 = vpop.permute.xlu1 %305  ;;  %v5227_v8 = vpop.permute.xlu0 %301 }
  0xc5   : >> { %798 = vrot.lane.b32.xlu1 %v5217_v52, %s4750_s24  ;;  %796 = vrot.lane.b32.xlu0 %v5219_v54, %s4750_s24 }
  0xc7   : >> { %v5237_v13 = vpop.permute.xlu1 %309  ;;  %v5239_v19 = vpop.permute.xlu0 %307 }
  0xc9   : >> { %802 = vrot.lane.b32.xlu1 %v5233_v9, %s4750_s24  ;;  %800 = vrot.lane.b32.xlu0 %v5235_v12, %s4750_s24 }
  0xcb   : >> { %v5249_v45 = vpop.permute.xlu1 %313  ;;  %v5251_v49 = vpop.permute.xlu0 %311 }
  0xcd   : >> { %816 = vrot.lane.b32.xlu1 %v5245_v18, %s4751_s25  ;;  %814 = vrot.lane.b32.xlu0 %v5247_v38, %s4751_s25 }
  0xcf   : >> { %v5261_v25 = vpop.permute.xlu1 %328  ;;  %v5263_v20 = vpop.permute.xlu0 %326 }
  0xd1   : >> { %820 = vrot.lane.b32.xlu1 %v5257_v1, %s4751_s25  ;;  %818 = vrot.lane.b32.xlu0 %v5259_v14, %s4751_s25 }
  0xd3   : >> { %v5273_v62 = vpop.permute.xlu1 %332  ;;  %v5275_v5 = vpop.permute.xlu0 %330 }
  0xd5   : >> { %824 = vrot.lane.b32.xlu1 %v5269_v44, %s4751_s25  ;;  %822 = vrot.lane.b32.xlu0 %v5271_v15, %s4751_s25 }
  0xd7   : >> { %v5285_v60 = vpop.permute.xlu1 %336  ;;  %v5287_v39 = vpop.permute.xlu0 %334 }
  0xd9   : >> { %828 = vrot.lane.b32.xlu1 %v5281_v6, %s4751_s25  ;;  %826 = vrot.lane.b32.xlu0 %v5283_v55, %s4751_s25 }
  0xdb   : >> { %v5293_v10 = vpop.permute.xlu1 %340  ;;  %v5295_v21 = vpop.permute.xlu0 %338 }
  0xdd   : >> { %842 = vrot.lane.b32.xlu1 %v5186_v3, %s4752_s26  ;;  %840 = vrot.lane.b32.xlu0 %v5188_v4, %s4752_s26 }
  0xdf   : >> { %v5301_v56 = vpop.permute.xlu1 %355  ;;  %v5303_v59 = vpop.permute.xlu0 %353 }
  0xe1   : >> { %846 = vrot.lane.b32.xlu1 %v5199_v26, %s4752_s26  ;;  %844 = vrot.lane.b32.xlu0 %v5201_v27, %s4752_s26 }
  0xe3   : >> { %v5309_v58 = vpop.permute.xlu1 %359  ;;  %v5311_v57 = vpop.permute.xlu0 %357 }
  0xe5   : >> { %850 = vrot.lane.b32.xlu1 %v5217_v52, %s4752_s26  ;;  %848 = vrot.lane.b32.xlu0 %v5219_v54, %s4752_s26 }
  0xe7   : >> { %v5317_v47 = vpop.permute.xlu1 %363  ;;  %v5319_v63 = vpop.permute.xlu0 %361 }
  0xe9   : >> { %854 = vrot.lane.b32.xlu1 %v5233_v9, %s4752_s26  ;;  %852 = vrot.lane.b32.xlu0 %v5235_v12, %s4752_s26 }
  0xeb   : >> { %v5325_v46 = vpop.permute.xlu1 %367  ;;  %v5327_v40 = vpop.permute.xlu0 %365 }
  0xed   : >> { %868 = vrot.lane.b32.xlu1 %v5245_v18, %s4753_s27  ;;  %866 = vrot.lane.b32.xlu0 %v5247_v38, %s4753_s27 }
  0xef   : >> { %v383_v53 = vpop.permute.xlu1 %382  ;;  %v381_v37 = vpop.permute.xlu0 %380 }
  0xf1   : >> { %872 = vrot.lane.b32.xlu1 %v5257_v1, %s4753_s27  ;;  %870 = vrot.lane.b32.xlu0 %v5259_v14, %s4753_s27 }
  0xf3   : >> { %v387_v36 = vpop.permute.xlu1 %386  ;;  %v385_v43 = vpop.permute.xlu0 %384 }
  0xf5   : >> { %876 = vrot.lane.b32.xlu1 %v5269_v44, %s4753_s27  ;;  %874 = vrot.lane.b32.xlu0 %v5271_v15, %s4753_s27 }
  0xf7   : >> { %v391_v42 = vpop.permute.xlu1 %390  ;;  %v389_v22 = vpop.permute.xlu0 %388 }
  0xf9   : >> { %880 = vrot.lane.b32.xlu1 %v5281_v6, %s4753_s27  ;;  %878 = vrot.lane.b32.xlu0 %v5283_v55, %s4753_s27 }
  0xfb   : >> { %v395_v0 = vpop.permute.xlu1 %394  ;;  %v393_v2 = vpop.permute.xlu0 %392 }
  0xfc   : >> { %v401_v7 = vsel %vm396_vm5, %v391_v42, %v393_v2  ;;  %v402_v41 = vsel %vm396_vm5, %v393_v2, %v395_v0  ;;  %v372_v2 = vsel %vm369_vm7, %v5311_v57, %v5309_v58 }
  0xfd   : >> { %894 = vrot.lane.b32.xlu1 %v5186_v3, %s4754_s29  ;;  %892 = vrot.lane.b32.xlu0 %v5188_v4, %s4754_s29 }
  0xff   : >> { %v410_v17 = vpop.permute.xlu1 %409  ;;  %v408_v61 = vpop.permute.xlu0 %407 }
 0x100   : >> { %v424_v23 = vsel %vm423_vm4, %v408_v61, %v410_v17 }
 0x101   : >> { %898 = vrot.lane.b32.xlu1 %v5199_v26, %s4754_s29  ;;  %896 = vrot.lane.b32.xlu0 %v5201_v27, %s4754_s29  ;;  %v400_v26 = vsel %vm396_vm5, %v389_v22, %v391_v42  ;;  %v398_v22 = vsel %vm396_vm5, %v383_v53, %v385_v43 }
 0x103   : >> { %v414_v16 = vpop.permute.xlu1 %413  ;;  %v412_v48 = vpop.permute.xlu0 %411 }
 0x104   : >> { %v535_v29 = vsel %vm488_vm6, %v395_v0, %v414_v16  ;;  %v425_v31 = vsel %vm423_vm4, %v410_v17, %v412_v48  ;;  %v426_v11 = vsel %vm423_vm4, %v412_v48, %v414_v16  ;;  %v523_v17 = vsel %vm488_vm6, %v400_v26, %v424_v23 }
 0x105   : >> { %604 = vmatprep.subr.bf16.mxu1 %v535_v29  ;;  %902 = vrot.lane.b32.xlu1 %v5217_v52, %s4754_s29  ;;  %v527_v61 = vsel %vm488_vm6, %v401_v7, %v425_v31  ;;  %v531_v27 = vsel %vm488_vm6, %v402_v41, %v426_v11  ;;  %v399_v7 = vsel %vm396_vm5, %v385_v43, %v387_v36 }
 0x106   : >> { %900 = vrot.lane.b32.xlu0 %v5219_v54, %s4754_s29  ;;  %563 = vmatprep.subr.bf16.mxu0 %v527_v61  ;;  %v397_v11 = vsel %vm396_vm5, %v381_v37, %v383_v53  ;;  %v374_v31 = vsel %vm369_vm7, %v5317_v47, %v5327_v40  ;;  %v371_v41 = vsel %vm369_vm7, %v5301_v56, %v5311_v57 }
 0x107   : >> { %605 = vmatpush1.bf16.msra.mxu1 %v531_v27  ;;  %v5375_v0 = vpop.permute.xlu1 %417  ;;  %564 = vmatpush1.bf16.msra.mxu0 %v523_v17  ;;  %v5377_v16 = vpop.permute.xlu0 %415  ;;  %v370_v37 = vsel %vm369_vm7, %v5303_v59, %v5301_v56  ;;  %v375_v48 = vsel %vm369_vm7, %v5327_v40, %v5325_v46  ;;  %v373_v53 = vsel %vm369_vm7, %v5319_v63, %v5317_v47 }
 0x108   : >> { %606 = vmatprep.subr.bf16.mxu1 %v387_v36  ;;  %565 = vmatprep.subr.bf16.mxu0 %v398_v22  ;;  %v347_v36 = vsel %vm342_vm8, %v5285_v60, %v5295_v21  ;;  %v519_v59 = vsel %vm488_vm6, %v5293_v10, %v5309_v58  ;;  %v348_v47 = vsel %vm342_vm8, %v5295_v21, %v5293_v10 }
 0x109   : >> { %906 = vrot.lane.b32.xlu1 %v5233_v9, %s4754_s29  ;;  %v511_v40 = vsel %vm488_vm6, %v347_v36, %v371_v41  ;;  %v515_v57 = vsel %vm488_vm6, %v348_v47, %v372_v2  ;;  %v345_v21 = vsel %vm342_vm8, %v5275_v5, %v5273_v62  ;;  %v320_v56 = vsel %vm315_vm9, %v5237_v13, %v5251_v49  ;;  %v8144_v41 = vld [vmem:[#allocation24_spill] sm:$0xff] }
 0x10a   : >> { %904 = vrot.lane.b32.xlu0 %v5235_v12, %s4754_s29  ;;  %v317_v61 = vsel %vm315_vm9, %v5227_v8, %v5209_v50  ;;  %v1129_v36 = vrot.slane %v8144_v41, 5  ;;  %v8145_v2 = vld [vmem:[#allocation12_spill] sm:$0xff] }
 0x10b   : >> { %607 = vmatpush1.bf16.msra.mxu1 %v399_v7  ;;  %v5386_v23 = vpop.permute.xlu1 %421  ;;  %566 = vmatpush1.bf16.msra.mxu0 %v397_v11  ;;  %v5388_v29 = vpop.permute.xlu0 %419  ;;  %v8139_v7 = vld [vmem:[#allocation17_spill] sm:$0xff]  ;;  %v8140_v11 = vld [vmem:[#allocation16_spill] sm:$0xff] }
 0x10c   : >> { %608 = vmatprep.subr.bf16.mxu1 %v5325_v46  ;;  %567 = vmatprep.subr.bf16.mxu0 %v374_v31  ;;  %v346_v46 = vsel %vm342_vm8, %v5287_v39, %v5285_v60  ;;  %v344_v60 = vsel %vm342_vm8, %v5261_v25, %v5275_v5  ;;  %v343_v39 = vsel %vm342_vm8, %v5263_v20, %v5261_v25 }
 0x10d   : >> { %920 = vrot.lane.b32.xlu1 %v5245_v18, %s4755_s30  ;;  %v507_v58 = vsel %vm488_vm6, %v346_v46, %v370_v37  ;;  %v321_v5 = vsel %vm315_vm9, %v5251_v49, %v5249_v45  ;;  %v319_v20 = vsel %vm315_vm9, %v5239_v19, %v5237_v13  ;;  %v316_v25 = vsel %vm315_vm9, %v5211_v51, %v5227_v8  ;;  %v8138_v13 = vld [vmem:[#allocation21_spill] sm:$0xff] }
 0x10e   : >> { %918 = vrot.lane.b32.xlu0 %v5247_v38, %s4755_s30  ;;  %v491_v8 = vsel %vm488_vm6, %v4993_v33, %v316_v25  ;;  %v1125_v33 = vrot.slane %v8138_v13, 5 }
 0x10f   : >> { %609 = vmatpush1.bf16.msra.mxu1 %v375_v48  ;;  %v5416_v42 = vpop.permute.xlu1 %436  ;;  %568 = vmatpush1.bf16.msra.mxu0 %v373_v53  ;;  %v5421_v43 = vpop.permute.xlu0 %434 }
 0x110   : >> { %610 = vmatprep.subr.bf16.mxu1 %v519_v59  ;;  %569 = vmatprep.subr.bf16.mxu0 %v511_v40  ;;  %v4408_v59 = vrot.slane %v8145_v2, 9  ;;  %v8146_v40 = vld [vmem:[#allocation30_spill] sm:$0xff] }
 0x111   : >> { %924 = vrot.lane.b32.xlu1 %v5257_v1, %s4755_s30  ;;  %v1133_v46 = vrot.slane %v8146_v40, 5 }
 0x112   : >> { %922 = vrot.lane.b32.xlu0 %v5259_v14, %s4755_s30 }
 0x113   : >> { %611 = vmatpush1.bf16.msra.mxu1 %v515_v57  ;;  %v5436_v63 = vpop.permute.xlu1 %440  ;;  %570 = vmatpush1.bf16.msra.mxu0 %v507_v58  ;;  %v5438_v26 = vpop.permute.xlu0 %438  ;;  %v8147_v57 = vld [vmem:[#allocation13_spill] sm:$0xff] }
 0x114   : >> { %612 = vmatprep.subr.bf16.mxu1 %v5273_v62  ;;  %571 = vmatprep.subr.bf16.mxu0 %v344_v60  ;;  %v318_v62 = vsel %vm315_vm9, %v5209_v50, %v5225_v24  ;;  %v503_v50 = vsel %vm488_vm6, %v4999_v34, %v5225_v24  ;;  %v4410_v58 = vrot.slane %v8147_v57, 9 }
 0x115   : >> { %928 = vrot.lane.b32.xlu1 %v5269_v44, %s4755_s30  ;;  %v499_v51 = vsel %vm488_vm6, %v5001_v35, %v318_v62  ;;  %v8137_v35 = vld [vmem:[#allocation11_spill] sm:$0xff]  ;;  %v5552_v62 = vsel %vm5508_vm12, %v4408_v59, %v1133_v46 }
 0x116   : >> { %926 = vrot.lane.b32.xlu0 %v5271_v15, %s4755_s30 }
 0x117   : >> { %613 = vmatpush1.bf16.msra.mxu1 %v345_v21  ;;  %v5454_v27 = vpop.permute.xlu1 %444  ;;  %572 = vmatpush1.bf16.msra.mxu0 %v343_v39  ;;  %v5456_v10 = vpop.permute.xlu0 %442 }
 0x118   : >> { %614 = vmatprep.subr.bf16.mxu1 %v5249_v45  ;;  %573 = vmatprep.subr.bf16.mxu0 %v320_v56  ;;  %v495_v45 = vsel %vm488_vm6, %v4991_v32, %v317_v61  ;;  %v8135_v32 = vld [vmem:[#allocation42_spill] sm:$0xff] }
 0x119   : >> { %932 = vrot.lane.b32.xlu1 %v5281_v6, %s4755_s30 }
 0x11a   : >> { %930 = vrot.lane.b32.xlu0 %v5283_v55, %s4755_s30 }
 0x11b   : >> { %615 = vmatpush1.bf16.msra.mxu1 %v321_v5  ;;  %v5481_v17 = vpop.permute.xlu1 %448  ;;  %574 = vmatpush1.bf16.msra.mxu0 %v319_v20  ;;  %v5486_v22 = vpop.permute.xlu0 %446 }
 0x11c   : >> { %616 = vmatprep.subr.bf16.mxu1 %v503_v50  ;;  %575 = vmatprep.subr.bf16.mxu0 %v495_v45  ;;  %v455_v50 = vsel %vm450_vm13, %v5454_v27, %v5486_v22  ;;  %v8150_v45 = vld [vmem:[#allocation14_spill] sm:$0xff] }
 0x11d   : >> { %946 = vrot.lane.b32.xlu1 %v5186_v3, %s4756_s4  ;;  %v8136_v3 = vld [vmem:[#allocation43_spill] sm:$0xff] }
 0x11e   : >> { %944 = vrot.lane.b32.xlu0 %v5188_v4, %s4756_s4  ;;  %v4406_v4 = vrot.slane %v8137_v35, 9 }
 0x11f   : >> { %617 = vmatpush1.bf16.msra.mxu1 %v499_v51  ;;  %v464_v34 = vpop.permute.xlu1 %463  ;;  %576 = vmatpush1.bf16.msra.mxu0 %v491_v8  ;;  %v462_v24 = vpop.permute.xlu0 %461  ;;  %v4409_v51 = vrot.slane %v8150_v45, 9  ;;  %v8151_v8 = vld [vmem:[#allocation38_spill] sm:$0xff] }
 0x120   : >> { %618 = vmatprep.subr.bf16.mxu1 %v4983_v30  ;;  %577 = vmatprep.subr.bf16.mxu0 %v4975_v28  ;;  %v8143_v30 = vld [vmem:[#allocation10_spill] sm:$0xff]  ;;  %v5520_v37 = vsel %vm5508_vm12, %v4406_v4, %v1125_v33  ;;  %v478_v59 = vsel %vm477_vm14, %v462_v24, %v464_v34  ;;  %v453_v28 = vsel %vm450_vm13, %v5438_v26, %v5436_v63 }
 0x121   : >> { %950 = vrot.lane.b32.xlu1 %v8135_v32, %s4756_s4  ;;  %v4407_v31 = vrot.slane %v8143_v30, 9  ;;  %v5540_v21 = vcombine.low %v5520_v37, %v5520_v37  ;;  %v1137_v32 = vrot.slane %v8151_v8, 5 }
 0x122   : >> { %948 = vrot.lane.b32.xlu0 %v8136_v3, %s4756_s4  ;;  %v8152_v3 = vld [vmem:[#allocation15_spill] sm:$0xff] }
 0x123   : >> { %v468_v19 = vpop.permute.xlu1 %467  ;;  %v466_v49 = vpop.permute.xlu0 %465  ;;  %619 = vmatpush1.bf16.msra.mxu1 %v8139_v7  ;;  %578 = vmatpush1.bf16.msra.mxu0 %v8140_v11  ;;  %v5526_v47 = vsel %vm5508_vm12, %v4407_v31, %v1129_v36  ;;  %v4411_v4 = vrot.slane %v8152_v3, 9  ;;  %v8153_v31 = vld [vmem:[#allocation39_spill] sm:$0xff] }
 0x124   : >> { %v5544_v61 = vcombine.high %v5526_v47, %v5526_v47  ;;  %v480_v33 = vsel %vm477_vm14, %v466_v49, %v468_v19  ;;  %v551_v11 = vsel %vm488_vm6, %v5481_v17, %v468_v19  ;;  %v1145_v36 = vrot.slane %v8153_v31, 5 }
 0x125   : >> { %954 = vrot.lane.b32.xlu1 %v5217_v52, %s4756_s4  ;;  %v8148_v52 = vld [vmem:[#allocation33_spill] sm:$0xff]  ;;  %v454_v19 = vsel %vm450_vm13, %v5456_v10, %v5454_v27  ;;  %v1138_v27 = vsel %vm5508_vm12, %v4409_v51, %v1137_v32  ;;  %v427_v32 = vsel %vm423_vm4, %v5377_v16, %v5375_v0 }
 0x126   : >> { %952 = vrot.lane.b32.xlu0 %v5219_v54, %s4756_s4  ;;  %v1141_v60 = vrot.slane %v8148_v52, 5  ;;  %v5534_v54 = vcombine.high %v5520_v37, %v5520_v37  ;;  %v1146_v10 = vsel %vm5508_vm12, %v4411_v4, %v1145_v36  ;;  %v5656_v4 = vcombine.low %v5520_v37, %v5552_v62 }
 0x127   : >> { %v472_v48 = vpop.permute.xlu1 %471  ;;  %v470_v53 = vpop.permute.xlu0 %469 }
 0x128   : >> { %v5559_v25 = vsel %vm5508_vm12, %v4410_v58, %v1141_v60  ;;  %v481_v7 = vsel %vm477_vm14, %v470_v53, %v472_v48  ;;  %v456_v60 = vsel %vm450_vm13, %v5486_v22, %v5481_v17  ;;  %v539_v17 = vsel %vm488_vm6, %v454_v19, %v478_v59  ;;  %8157 = vst [vmem:[#allocation16_spill] sm:$0xff] %v5656_v4 }
 0x129   : >> { %958 = vrot.lane.b32.xlu1 %v5233_v9, %s4756_s4  ;;  %v5548_v9 = vcombine.low %v5526_v47, %v5526_v47  ;;  %v5593_v24 = vcombine.high %v5552_v62, %v5559_v25  ;;  %v452_v53 = vsel %vm450_vm13, %v5416_v42, %v5438_v26  ;;  %v5700_v59 = vcombine.high %v1146_v10, %v1146_v10 }
 0x12a   : >> { %956 = vrot.lane.b32.xlu0 %v5235_v12, %s4756_s4  ;;  %v479_v12 = vsel %vm477_vm14, %v464_v34, %v466_v49  ;;  %v547_v34 = vsel %vm488_vm6, %v456_v60, %v480_v33  ;;  %v5665_v33 = vcombine.high %v5526_v47, %v1138_v27  ;;  %vm2329_vm12 = vsmask.f32 1280 }
 0x12b   : >> { %v476_v39 = vpop.permute.xlu1 %475  ;;  %v474_v56 = vpop.permute.xlu0 %473  ;;  %8149 = vst [vmem:[#allocation42_spill] sm:$0xff] %v5548_v9  ;;  %v543_v58 = vsel %vm488_vm6, %v455_v50, %v479_v12  ;;  %v451_v12 = vsel %vm450_vm13, %v5421_v43, %v5416_v42  ;;  %v429_v42 = vsel %vm423_vm4, %v5388_v29, %v5386_v23  ;;  %v5643_v43 = vcombine.high %v5520_v37, %v5552_v62  ;;  %v8155_v50 = vld [vmem:[#allocation8_spill] sm:$0xff]  ;;  %vm6760_vm0 = vmor %vm2329_vm12, %vm2330_vm15 }
 0x12c   : >> { %628 = vmatprep.subr.bf16.mxu1 %v476_v39  ;;  %v482_v5 = vsel %vm477_vm14, %v472_v48, %v474_v56  ;;  %v483_v20 = vsel %vm477_vm14, %v474_v56, %v476_v39  ;;  %v5597_v48 = vcombine.low %v5552_v62, %v5559_v25  ;;  %v5619_v56 = vcombine.high %v1138_v27, %v1146_v10  ;;  %v8159_v62 = vld [vmem:[#allocation49_spill] sm:$0xff] }
 0x12d   : >> { %1181 = vrot.lane.b32.xlu1 %v5534_v54, %s4750_s24  ;;  %587 = vmatprep.subr.bf16.mxu0 %v482_v5  ;;  %v5626_v5 = vcombine.low %v1138_v27, %v1146_v10  ;;  %8154 = vst [vmem:[#allocation43_spill] sm:$0xff] %v5643_v43  ;;  %v5647_v51 = vcombine.low %v8155_v50, %v8155_v50  ;;  %vm3136_vm12 = vsmask.f32 4368 }
 0x12e   : >> { %1179 = vrot.lane.b32.xlu0 %v5540_v21, %s4750_s24  ;;  %629 = vmatpush2.bf16.msra.mxu1 %v483_v20 }
 0x12f   : >> { %588 = vmatpush2.bf16.msra.mxu0 %v481_v7  ;;  %630 = vmatprep.subr.bf16.mxu1 %v551_v11  ;;  %v5577_v46 = vpop.permute.xlu1 %790  ;;  %v5580_v49 = vpop.permute.xlu0 %788  ;;  %8156 = vst [vmem:[#allocation17_spill] sm:$0xff] %v5647_v51  ;;  %v5686_v7 = vcombine.high %v5559_v25, %v5559_v25 }
 0x130   : >> { %589 = vmatprep.subr.bf16.mxu0 %v543_v58  ;;  %v5704_v58 = vcombine.low %v1146_v10, %v1146_v10 }
 0x131   : >> { %1185 = vrot.lane.b32.xlu1 %v5544_v61, %s4750_s24 }
 0x132   : >> { %1183 = vrot.lane.b32.xlu0 %v5548_v9, %s4750_s24  ;;  %631 = vmatpush2.bf16.msra.mxu1 %v547_v34 }
 0x133   : >> { %590 = vmatpush2.bf16.msra.mxu0 %v539_v17  ;;  %632 = vmatprep.subr.bf16.mxu1 %v5436_v63  ;;  %v5607_v22 = vpop.permute.xlu1 %794  ;;  %v5612_v39 = vpop.permute.xlu0 %792  ;;  %v428_v63 = vsel %vm423_vm4, %v5375_v0, %v5388_v29  ;;  %v5671_v0 = vcombine.low %v5526_v47, %v1138_v27  ;;  %v5692_v47 = vcombine.low %v5559_v25, %v5559_v25 }
 0x134   : >> { %591 = vmatprep.subr.bf16.mxu0 %v452_v53 }
 0x135   : >> { %1189 = vrot.lane.b32.xlu1 %v5593_v24, %s4750_s24  ;;  %8158 = vst [vmem:[#allocation50_spill] sm:$0xff] %v5671_v0 }
 0x136   : >> { %1187 = vrot.lane.b32.xlu0 %v5597_v48, %s4750_s24  ;;  %633 = vmatpush2.bf16.msra.mxu1 %v453_v28 }
 0x137   : >> { %592 = vmatpush2.bf16.msra.mxu0 %v451_v12  ;;  %634 = vmatprep.subr.bf16.mxu1 %v5386_v23  ;;  %v5629_v20 = vpop.permute.xlu1 %798  ;;  %v5634_v26 = vpop.permute.xlu0 %796 }
 0x138   : >> { %593 = vmatprep.subr.bf16.mxu0 %v428_v63 }
 0x139   : >> { %1193 = vrot.lane.b32.xlu1 %v5619_v56, %s4750_s24 }
 0x13a   : >> { %1191 = vrot.lane.b32.xlu0 %v5626_v5, %s4750_s24  ;;  %635 = vmatpush2.bf16.msra.mxu1 %v429_v42 }
 0x13b   : >> { %594 = vmatpush2.bf16.msra.mxu0 %v427_v32  ;;  %v5658_v23 = vpop.permute.xlu1 %802  ;;  %v5660_v29 = vpop.permute.xlu0 %800 }
 0x13d   : >> { %1207 = vrot.lane.b32.xlu1 %v5643_v43, %s4751_s25  ;;  %637 = vmatmul.mubr.bf16.vlgmr.msra.gmra.mxu1 %v5647_v51 }
 0x13e   : >> { %1205 = vrot.lane.b32.xlu0 %v5656_v4, %s4751_s25  ;;  %596 = vmatmul.mubr.bf16.vlgmr.msra.gmra.mxu0 %v5647_v51 }
 0x13f   : >> { %v5674_v16 = vpop.permute.xlu1 %816  ;;  %v5676_v37 = vpop.permute.xlu0 %814  ;;  %4405 = vmatprep.mubr.msk.bf16.mxu1 %vm559_vm3, %v8159_v62  ;;  %4404 = vmatprep.mubr.msk.bf16.mxu0 %vm559_vm3, %v8159_v62 }
 0x141   : >> { %1211 = vrot.lane.b32.xlu1 %v5665_v33, %s4751_s25 }
 0x142   : >> { %1209 = vrot.lane.b32.xlu0 %v5671_v0, %s4751_s25 }
 0x143   : >> { %v5694_v11 = vpop.permute.xlu1 %820  ;;  %v5696_v36 = vpop.permute.xlu0 %818 }
 0x145   : >> { %1215 = vrot.lane.b32.xlu1 %v5686_v7, %s4751_s25 }
 0x146   : >> { %1213 = vrot.lane.b32.xlu0 %v5692_v47, %s4751_s25 }
 0x147   : >> { %v5706_v60 = vpop.permute.xlu1 %824  ;;  %v5708_v19 = vpop.permute.xlu0 %822 }
 0x149   : >> { %1219 = vrot.lane.b32.xlu1 %v5700_v59, %s4751_s25 }
 0x14a   : >> { %1217 = vrot.lane.b32.xlu0 %v5704_v58, %s4751_s25 }
 0x14b   : >> { %v5714_v25 = vpop.permute.xlu1 %828  ;;  %v5716_v34 = vpop.permute.xlu0 %826 }
 0x14d   : >> { %1233 = vrot.lane.b32.xlu1 %v5534_v54, %s4752_s26 }
 0x14e   : >> { %1231 = vrot.lane.b32.xlu0 %v5540_v21, %s4752_s26 }
 0x14f   : >> { %v5722_v17 = vpop.permute.xlu1 %842  ;;  %v5724_v27 = vpop.permute.xlu0 %840 }
 0x151   : >> { %1237 = vrot.lane.b32.xlu1 %v5544_v61, %s4752_s26 }
 0x152   : >> { %1235 = vrot.lane.b32.xlu0 %v5548_v9, %s4752_s26 }
 0x153   : >> { %v5730_v10 = vpop.permute.xlu1 %846  ;;  %v5732_v53 = vpop.permute.xlu0 %844 }
 0x155   : >> { %1241 = vrot.lane.b32.xlu1 %v5593_v24, %s4752_s26 }
 0x156   : >> { %1239 = vrot.lane.b32.xlu0 %v5597_v48, %s4752_s26 }
 0x157   : >> { %v5738_v28 = vpop.permute.xlu1 %850  ;;  %v5740_v12 = vpop.permute.xlu0 %848 }
 0x159   : >> { %1245 = vrot.lane.b32.xlu1 %v5619_v56, %s4752_s26 }
 0x15a   : >> { %1243 = vrot.lane.b32.xlu0 %v5626_v5, %s4752_s26 }
 0x15b   : >> { %v5746_v63 = vpop.permute.xlu1 %854  ;;  %v5748_v42 = vpop.permute.xlu0 %852 }
 0x15d   : >> { %1259 = vrot.lane.b32.xlu1 %v5643_v43, %s4753_s27 }
 0x15e   : >> { %1257 = vrot.lane.b32.xlu0 %v5656_v4, %s4753_s27 }
 0x15f   : >> { %v869_v50 = vpop.permute.xlu1 %868  ;;  %v867_v32 = vpop.permute.xlu0 %866 }
 0x161   : >> { %1263 = vrot.lane.b32.xlu1 %v5665_v33, %s4753_s27 }
 0x162   : >> { %1261 = vrot.lane.b32.xlu0 %v5671_v0, %s4753_s27 }
 0x163   : >> { %v873_v3 = vpop.permute.xlu1 %872  ;;  %v871_v45 = vpop.permute.xlu0 %870 }
 0x165   : >> { %1267 = vrot.lane.b32.xlu1 %v5686_v7, %s4753_s27 }
 0x166   : >> { %1265 = vrot.lane.b32.xlu0 %v5692_v47, %s4753_s27 }
 0x167   : >> { %v877_v57 = vpop.permute.xlu1 %876  ;;  %v875_v2 = vpop.permute.xlu0 %874 }
 0x168   : >> { %v885_v15 = vsel %vm396_vm5, %v875_v2, %v877_v57  ;;  %v860_v2 = vsel %vm369_vm7, %v5738_v28, %v5748_v42 }
 0x169   : >> { %1271 = vrot.lane.b32.xlu1 %v5700_v59, %s4753_s27 }
 0x16a   : >> { %1269 = vrot.lane.b32.xlu0 %v5704_v58, %s4753_s27 }
 0x16b   : >> { %v881_v30 = vpop.permute.xlu1 %880  ;;  %v879_v35 = vpop.permute.xlu0 %878 }
 0x16c   : >> { %v886_v31 = vsel %vm396_vm5, %v877_v57, %v879_v35  ;;  %v887_v52 = vsel %vm396_vm5, %v879_v35, %v881_v30 }
 0x16d   : >> { %1285 = vrot.lane.b32.xlu1 %v5534_v54, %s4754_s29 }
 0x16e   : >> { %1283 = vrot.lane.b32.xlu0 %v5540_v21, %s4754_s29 }
 0x16f   : >> { %v895_v62 = vpop.permute.xlu1 %894  ;;  %v893_v51 = vpop.permute.xlu0 %892 }
 0x170   : >> { %v908_v8 = vsel %vm423_vm4, %v893_v51, %v895_v62 }
 0x171   : >> { %1289 = vrot.lane.b32.xlu1 %v5544_v61, %s4754_s29  ;;  %v1004_v35 = vsel %vm488_vm6, %v885_v15, %v908_v8  ;;  %v861_v8 = vsel %vm369_vm7, %v5748_v42, %v5746_v63  ;;  %v8161_v42 = vld [vmem:[#allocation19_spill] sm:$0xff] }
 0x172   : >> { %1287 = vrot.lane.b32.xlu0 %v5548_v9, %s4754_s29 }
 0x173   : >> { %v899_v38 = vpop.permute.xlu1 %898  ;;  %v897_v14 = vpop.permute.xlu0 %896 }
 0x174   : >> { %v909_v18 = vsel %vm423_vm4, %v895_v62, %v897_v14  ;;  %v910_v1 = vsel %vm423_vm4, %v897_v14, %v899_v38  ;;  %v1016_v40 = vsel %vm488_vm6, %v881_v30, %v899_v38  ;;  %v883_v38 = vsel %vm396_vm5, %v869_v50, %v871_v45 }
 0x175   : >> { %1293 = vrot.lane.b32.xlu1 %v5593_v24, %s4754_s29  ;;  %1075 = vmatprep.subr.bf16.mxu1 %v1016_v40  ;;  %v1008_v9 = vsel %vm488_vm6, %v886_v31, %v909_v18  ;;  %v1012_v51 = vsel %vm488_vm6, %v887_v52, %v910_v1  ;;  %v882_v1 = vsel %vm396_vm5, %v867_v32, %v869_v50  ;;  %v1515_v50 = vrot.slane %v8161_v42, 6 }
 0x176   : >> { %1291 = vrot.lane.b32.xlu0 %v5597_v48, %s4754_s29  ;;  %1034 = vmatprep.subr.bf16.mxu0 %v1008_v9  ;;  %v884_v18 = vsel %vm396_vm5, %v871_v45, %v873_v3  ;;  %v857_v40 = vsel %vm369_vm7, %v5722_v17, %v5732_v53  ;;  %v834_v52 = vsel %vm342_vm8, %v5706_v60, %v5716_v34  ;;  %v5860_v32 = vshrl.u32 %v8138_v13, 16 }
 0x177   : >> { %1076 = vmatpush1.bf16.msra.mxu1 %v1012_v51  ;;  %v5788_v14 = vpop.permute.xlu1 %902  ;;  %1035 = vmatpush1.bf16.msra.mxu0 %v1004_v35  ;;  %v856_v9 = vsel %vm369_vm7, %v5724_v27, %v5722_v17  ;;  %v859_v45 = vsel %vm369_vm7, %v5740_v12, %v5738_v28  ;;  %v1000_v62 = vsel %vm488_vm6, %v5714_v25, %v5730_v10 }
 0x178   : >> { %1077 = vmatprep.subr.bf16.mxu1 %v873_v3  ;;  %v5791_v30 = vpop.permute.xlu0 %900  ;;  %1036 = vmatprep.subr.bf16.mxu0 %v883_v38  ;;  %v858_v3 = vsel %vm369_vm7, %v5732_v53, %v5730_v10  ;;  %v992_v17 = vsel %vm488_vm6, %v834_v52, %v857_v40  ;;  %v833_v28 = vsel %vm342_vm8, %v5708_v19, %v5706_v60  ;;  %v8164_v40 = vld [vmem:[#allocation20_spill] sm:$0xff] }
 0x179   : >> { %1297 = vrot.lane.b32.xlu1 %v5619_v56, %s4754_s29  ;;  %v835_v53 = vsel %vm342_vm8, %v5716_v34, %v5714_v25  ;;  %v988_v12 = vsel %vm488_vm6, %v833_v28, %v856_v9  ;;  %v831_v60 = vsel %vm342_vm8, %v5674_v16, %v5696_v36  ;;  %v8160_v25 = vld [vmem:[#allocation18_spill] sm:$0xff]  ;;  %8162 = vst [vmem:[#allocation51_spill] sm:$0xff] %v5860_v32  ;;  %v1524_v52 = vrot.slane %v8164_v40, 5 }
 0x17a   : >> { %1295 = vrot.lane.b32.xlu0 %v5626_v5, %s4754_s29  ;;  %v996_v10 = vsel %vm488_vm6, %v835_v53, %v858_v3  ;;  %v1514_v34 = vrot.slane %v8160_v25, 5  ;;  %v830_v51 = vsel %vm342_vm8, %v5676_v37, %v5674_v16  ;;  %v832_v35 = vsel %vm342_vm8, %v5696_v36, %v5694_v11  ;;  %v8163_v36 = vld [vmem:[#allocation25_spill] sm:$0xff]  ;;  %v8165_v9 = vld [vmem:[#allocation22_spill] sm:$0xff] }
 0x17b   : >> { %1078 = vmatpush1.bf16.msra.mxu1 %v884_v18  ;;  %v5799_v15 = vpop.permute.xlu1 %906  ;;  %1037 = vmatpush1.bf16.msra.mxu0 %v882_v1  ;;  %v808_v1 = vsel %vm315_vm9, %v5629_v20, %v5660_v29  ;;  %v805_v18 = vsel %vm315_vm9, %v5577_v46, %v5612_v39  ;;  %v804_v3 = vsel %vm315_vm9, %v5580_v49, %v5577_v46 }
 0x17c   : >> { %1079 = vmatprep.subr.bf16.mxu1 %v5746_v63  ;;  %v5808_v57 = vpop.permute.xlu0 %904  ;;  %1038 = vmatprep.subr.bf16.mxu0 %v860_v2  ;;  %v1516_v37 = vor.u32 %v1515_v50, %v1514_v34  ;;  %v1521_v2 = vrot.slane %v8163_v36, 6  ;;  %v806_v28 = vsel %vm315_vm9, %v5612_v39, %v5607_v22  ;;  %v984_v46 = vsel %vm488_vm6, %v5281_v6, %v5607_v22  ;;  %v8167_v6 = vld [vmem:[#allocation48_spill] sm:$0xff] }
 0x17d   : >> { %1311 = vrot.lane.b32.xlu1 %v5643_v43, %s4755_s30  ;;  %v976_v49 = vsel %vm488_vm6, %v5269_v44, %v805_v18  ;;  %v980_v44 = vsel %vm488_vm6, %v5283_v55, %v806_v28  ;;  %v972_v22 = vsel %vm488_vm6, %v8167_v6, %v804_v3  ;;  %v8179_v3 = vld [vmem:[#allocation33_spill] sm:$0xff]  ;;  %v8182_v6 = vld [vmem:[#allocation47_spill] sm:$0xff] }
 0x17e   : >> { %1309 = vrot.lane.b32.xlu0 %v5656_v4, %s4755_s30  ;;  %v1517_v39 = vrot.slane %v1516_v37, 4  ;;  %v8176_v37 = vld [vmem:[#allocation28_spill] sm:$0xff] }
 0x17f   : >> { %1080 = vmatpush1.bf16.msra.mxu1 %v861_v8  ;;  %v5829_v31 = vpop.permute.xlu1 %920  ;;  %1039 = vmatpush1.bf16.msra.mxu0 %v859_v45  ;;  %v1525_v45 = vrot.slane %v8165_v9, 6  ;;  %v5890_v8 = vshrl.u32 %v8144_v41, 16  ;;  %v8194_v9 = vld [vmem:[#allocation40_spill] sm:$0xff] }
 0x180   : >> { %1081 = vmatprep.subr.bf16.mxu1 %v1000_v62  ;;  %v5835_v27 = vpop.permute.xlu0 %918  ;;  %1040 = vmatprep.subr.bf16.mxu0 %v992_v17  ;;  %v807_v62 = vsel %vm315_vm9, %v5634_v26, %v5629_v20  ;;  %v809_v17 = vsel %vm315_vm9, %v5660_v29, %v5658_v23  ;;  %v1551_v40 = vrot.slane %v8194_v9, 6 }
 0x181   : >> { %1315 = vrot.lane.b32.xlu1 %v5665_v33, %s4755_s30  ;;  %8166 = vst [vmem:[#allocation52_spill] sm:$0xff] %v5890_v8  ;;  %v1530_v29 = vrot.slane %v5890_v8, 5  ;;  %v934_v50 = vsel %vm450_vm13, %v5835_v27, %v5829_v31 }
 0x182   : >> { %1313 = vrot.lane.b32.xlu0 %v5671_v0, %s4755_s30 }
 0x183   : >> { %1082 = vmatpush1.bf16.msra.mxu1 %v996_v10  ;;  %v5849_v63 = vpop.permute.xlu1 %924  ;;  %1041 = vmatpush1.bf16.msra.mxu0 %v988_v12  ;;  %v8168_v10 = vld [vmem:[#allocation32_spill] sm:$0xff] }
 0x184   : >> { %1083 = vmatprep.subr.bf16.mxu1 %v5694_v11  ;;  %v5855_v19 = vpop.permute.xlu0 %922  ;;  %1042 = vmatprep.subr.bf16.mxu0 %v831_v60  ;;  %v1520_v11 = vrot.slane %v5860_v32, 5  ;;  %v1531_v12 = vrot.slane %v8168_v10, 6  ;;  %v8169_v60 = vld [vmem:[#allocation23_spill] sm:$0xff]  ;;  %v8185_v32 = vld [vmem:[#allocation37_spill] sm:$0xff] }
 0x185   : >> { %1319 = vrot.lane.b32.xlu1 %v5686_v7, %s4755_s30  ;;  %v1534_v34 = vrot.slane %v8169_v60, 5  ;;  %v1561_v10 = vrot.slane %v8185_v32, 6 }
 0x186   : >> { %1317 = vrot.lane.b32.xlu0 %v5692_v47, %s4755_s30  ;;  %v1522_v26 = vor.u32 %v1521_v2, %v1520_v11  ;;  %v1555_v11 = vrot.slane %v8176_v37, 6 }
 0x187   : >> { %1084 = vmatpush1.bf16.msra.mxu1 %v832_v35  ;;  %v5872_v38 = vpop.permute.xlu1 %928  ;;  %1043 = vmatpush1.bf16.msra.mxu0 %v830_v51  ;;  %v8173_v35 = vld [vmem:[#allocation30_spill] sm:$0xff] }
 0x188   : >> { %1085 = vmatprep.subr.bf16.mxu1 %v5658_v23  ;;  %v5881_v16 = vpop.permute.xlu0 %926  ;;  %1044 = vmatprep.subr.bf16.mxu0 %v808_v1  ;;  %v1526_v23 = vor.u32 %v1525_v45, %v1524_v52  ;;  %v5935_v55 = vshrl.u32 %v8173_v35, 16  ;;  %v8175_v1 = vld [vmem:[#allocation27_spill] sm:$0xff]  ;;  %v8177_v52 = vld [vmem:[#allocation46_spill] sm:$0xff]  ;;  %v8178_v45 = vld [vmem:[#allocation44_spill] sm:$0xff]  ;;  %v5950_v28 = vsel %vm5929_vm1, %v1517_v39, %v1522_v26 }
 0x189   : >> { %1323 = vrot.lane.b32.xlu1 %v5700_v59, %s4755_s30  ;;  %v1554_v18 = vrot.slane %v8175_v1, 5  ;;  %v8186_v39 = vld [vmem:[#allocation29_spill] sm:$0xff] }
 0x18a   : >> { %1321 = vrot.lane.b32.xlu0 %v5704_v58, %s4755_s30  ;;  %8174 = vst [vmem:[#allocation48_spill] sm:$0xff] %v5935_v55  ;;  %v1544_v26 = vrot.slane %v8186_v39, 5  ;;  %v8195_v1 = vld [vmem:[#allocation41_spill] sm:$0xff] }
 0x18b   : >> { %1086 = vmatpush1.bf16.msra.mxu1 %v809_v17  ;;  %v5906_v53 = vpop.permute.xlu1 %932  ;;  %1045 = vmatpush1.bf16.msra.mxu0 %v807_v62  ;;  %v5942_v62 = vshrl.u32 %v8179_v3, 16  ;;  %v8181_v17 = vld [vmem:[#allocation42_spill] sm:$0xff] }
 0x18c   : >> { %1087 = vmatprep.subr.bf16.mxu1 %v984_v46  ;;  %v5913_v20 = vpop.permute.xlu0 %930  ;;  %1046 = vmatprep.subr.bf16.mxu0 %v976_v49  ;;  %v1527_v46 = vrot.slane %v1526_v23, 4  ;;  %v1532_v49 = vor.u32 %v1531_v12, %v1530_v29  ;;  %v8187_v23 = vld [vmem:[#allocation34_spill] sm:$0xff] }
 0x18d   : >> { %1337 = vrot.lane.b32.xlu1 %v5534_v54, %s4756_s4  ;;  %8180 = vst [vmem:[#allocation46_spill] sm:$0xff] %v5942_v62  ;;  %v1545_v29 = vrot.slane %v8187_v23, 6  ;;  %v8188_v12 = vld [vmem:[#allocation38_spill] sm:$0xff]  ;;  %v5974_v23 = vcombine.high %v5950_v28, %v5950_v28  ;;  %v938_v9 = vsel %vm450_vm13, %v5872_v38, %v5913_v20 }
 0x18e   : >> { %1335 = vrot.lane.b32.xlu0 %v5540_v21, %s4756_s4  ;;  %v8172_v21 = vld [vmem:[#allocation26_spill] sm:$0xff] }
 0x18f   : >> { %1088 = vmatpush1.bf16.msra.mxu1 %v980_v44  ;;  %v5926_v54 = vpop.permute.xlu1 %946  ;;  %1047 = vmatpush1.bf16.msra.mxu0 %v972_v22  ;;  %v1535_v51 = vrot.slane %v8172_v21, 6  ;;  %v8183_v22 = vld [vmem:[#allocation45_spill] sm:$0xff]  ;;  %v8184_v21 = vld [vmem:[#allocation36_spill] sm:$0xff]  ;;  %v1546_v25 = vor.u32 %v1545_v29, %v1544_v26 }
 0x190   : >> { %v945_v2 = vpop.permute.xlu0 %944  ;;  %1089 = vmatprep.subr.bf16.mxu1 %v8177_v52  ;;  %1048 = vmatprep.subr.bf16.mxu0 %v8178_v45  ;;  %v1540_v45 = vrot.slane %v5935_v55, 5  ;;  %v1541_v60 = vrot.slane %v8184_v21, 6 }
 0x191   : >> { %1341 = vrot.lane.b32.xlu1 %v5544_v61, %s4756_s4  ;;  %v1536_v52 = vor.u32 %v1535_v51, %v1534_v34  ;;  %v1556_v61 = vor.u32 %v1555_v11, %v1554_v18  ;;  %v8190_v34 = vld [vmem:[#allocation39_spill] sm:$0xff] }
 0x192   : >> { %1339 = vrot.lane.b32.xlu0 %v8181_v17, %s4756_s4  ;;  %v1560_v17 = vrot.slane %v5942_v62, 5  ;;  %v5966_v51 = vshrl.u32 %v8190_v34, 16  ;;  %v8192_v18 = vld [vmem:[#allocation31_spill] sm:$0xff]  ;;  %v1542_v32 = vor.u32 %v1541_v60, %v1540_v45  ;;  %v5990_v60 = vcombine.low %v5950_v28, %v5950_v28 }
 0x193   : >> { %v951_v44 = vpop.permute.xlu1 %950  ;;  %1090 = vmatpush1.bf16.msra.mxu1 %v8182_v6  ;;  %1049 = vmatpush1.bf16.msra.mxu0 %v8183_v22  ;;  %v5963_v6 = vshrl.u32 %v8188_v12, 16  ;;  %v1564_v11 = vrot.slane %v8192_v18, 5  ;;  %v8193_v22 = vld [vmem:[#allocation35_spill] sm:$0xff]  ;;  %v1537_v39 = vrot.slane %v1536_v52, 4  ;;  %v1557_v62 = vrot.slane %v1556_v61, 4 }
 0x194   : >> { %v949_v36 = vpop.permute.xlu0 %948  ;;  %8191 = vst [vmem:[#allocation42_spill] sm:$0xff] %v5966_v51  ;;  %v1565_v21 = vrot.slane %v8193_v22, 6  ;;  %v1562_v42 = vor.u32 %v1561_v10, %v1560_v17  ;;  %v1570_v37 = vrot.slane %v5966_v51, 5  ;;  %v1571_v22 = vrot.slane %v8195_v1, 6 }
 0x195   : >> { %1345 = vrot.lane.b32.xlu1 %v5593_v24, %s4756_s4  ;;  %8189 = vst [vmem:[#allocation44_spill] sm:$0xff] %v5963_v6  ;;  %v5978_v24 = vsel %vm5929_vm1, %v1527_v46, %v1532_v49  ;;  %v961_v52 = vsel %vm477_vm14, %v5926_v54, %v949_v36  ;;  %v1547_v61 = vrot.slane %v1546_v25, 4 }
 0x196   : >> { %1343 = vrot.lane.b32.xlu0 %v5597_v48, %s4756_s4  ;;  %v1550_v48 = vrot.slane %v5963_v6, 5  ;;  %v1566_v10 = vor.u32 %v1565_v21, %v1564_v11  ;;  %v5998_v49 = vcombine.low %v5978_v24, %v5978_v24  ;;  %v6006_v21 = vsel %vm5929_vm1, %v1557_v62, %v1562_v42 }
 0x197   : >> { %v955_v55 = vpop.permute.xlu1 %954  ;;  %v1572_v11 = vor.u32 %v1571_v22, %v1570_v37  ;;  %v962_v62 = vsel %vm477_vm14, %v949_v36, %v951_v44  ;;  %v939_v36 = vsel %vm450_vm13, %v5913_v20, %v5906_v53 }
 0x198   : >> { %v953_v8 = vpop.permute.xlu0 %952  ;;  %8196 = vst [vmem:[#allocation47_spill] sm:$0xff] %v5998_v49  ;;  %v1552_v29 = vor.u32 %v1551_v40, %v1550_v48  ;;  %v1567_v25 = vrot.slane %v1566_v10, 4  ;;  %v1032_v40 = vsel %vm488_vm6, %v5906_v53, %v951_v44  ;;  %v935_v44 = vsel %vm450_vm13, %v5829_v31, %v5855_v19 }
 0x199   : >> { %1349 = vrot.lane.b32.xlu1 %v5619_v56, %s4756_s4  ;;  %v5994_v56 = vcombine.high %v5978_v24, %v5978_v24  ;;  %v963_v42 = vsel %vm477_vm14, %v953_v8, %v955_v55  ;;  %v937_v8 = vsel %vm450_vm13, %v5881_v16, %v5872_v38  ;;  %v936_v10 = vsel %vm450_vm13, %v5855_v19, %v5849_v63 }
 0x19a   : >> { %1347 = vrot.lane.b32.xlu0 %v5626_v5, %s4756_s4  ;;  %v1543_v5 = vsel %vm5929_vm1, %v1537_v39, %v1542_v32  ;;  %v960_v32 = vsel %vm477_vm14, %v945_v2, %v5926_v54  ;;  %v1024_v39 = vsel %vm488_vm6, %v938_v9, %v961_v52  ;;  %v1028_v2 = vsel %vm488_vm6, %v939_v36, %v962_v62 }
 0x19b   : >> { %v959_v46 = vpop.permute.xlu1 %958  ;;  %v6040_v9 = vcombine.low %v1543_v5, %v6006_v21  ;;  %v1020_v38 = vsel %vm488_vm6, %v937_v8, %v960_v32  ;;  %v1553_v16 = vsel %vm5929_vm1, %v1547_v61, %v1552_v29  ;;  %v1573_v53 = vsel %vm5929_vm1, %v1567_v25, %v1572_v11 }
 0x19c   : >> { %v957_v45 = vpop.permute.xlu0 %956  ;;  %1099 = vmatprep.subr.bf16.mxu1 %v959_v46  ;;  %v6060_v48 = vcombine.high %v1553_v16, %v1573_v53  ;;  %v6083_v27 = vcombine.high %v5950_v28, %v1543_v5  ;;  %v913_v19 = vsel %vm423_vm4, %v5808_v57, %v5799_v15  ;;  %v6094_v61 = vcombine.low %v5950_v28, %v1543_v5  ;;  %v8201_v28 = vld [vmem:[#allocation49_spill] sm:$0xff] }
 0x19d   : >> { %1608 = vrot.lane.b32.xlu1 %v5974_v23, %s4750_s24  ;;  %v964_v17 = vsel %vm477_vm14, %v955_v55, %v957_v45  ;;  %v965_v26 = vsel %vm477_vm14, %v957_v45, %v959_v46  ;;  %v6037_v55 = vcombine.high %v1543_v5, %v6006_v21  ;;  %v6070_v46 = vcombine.low %v1553_v16, %v1573_v53 }
 0x19e   : >> { %1606 = vrot.lane.b32.xlu0 %v5990_v60, %s4750_s24  ;;  %1058 = vmatprep.subr.bf16.mxu0 %v964_v17  ;;  %v912_v45 = vsel %vm423_vm4, %v5788_v14, %v5808_v57  ;;  %8197 = vst [vmem:[#allocation45_spill] sm:$0xff] %v6083_v27  ;;  %8198 = vst [vmem:[#allocation53_spill] sm:$0xff] %v6094_v61  ;;  %v6130_v29 = vcombine.low %v6006_v21, %v6006_v21  ;;  %vm2744_vm1 = vcmask 1040384  }
 0x19f   : >> { %1100 = vmatpush2.bf16.msra.mxu1 %v965_v26  ;;  %1059 = vmatpush2.bf16.msra.mxu0 %v963_v42  ;;  %v6023_v37 = vpop.permute.xlu1 %1181  ;;  %v6138_v42 = vcombine.high %v1573_v53, %v1573_v53  ;;  %v6142_v25 = vcombine.low %v1573_v53, %v1573_v53  ;;  %vm7127_vm10 = vmor %vm2744_vm1, %vm2745_vm2 }
 0x1a0   : >> { %1101 = vmatprep.subr.bf16.mxu1 %v1032_v40  ;;  %1060 = vmatprep.subr.bf16.mxu0 %v1024_v39  ;;  %v6026_v54 = vpop.permute.xlu0 %1179 }
 0x1a1   : >> { %1612 = vrot.lane.b32.xlu1 %v5994_v56, %s4750_s24 }
 0x1a2   : >> { %1610 = vrot.lane.b32.xlu0 %v5998_v49, %s4750_s24 }
 0x1a3   : >> { %1102 = vmatpush2.bf16.msra.mxu1 %v1028_v2  ;;  %1061 = vmatpush2.bf16.msra.mxu0 %v1020_v38  ;;  %v6050_v20 = vpop.permute.xlu1 %1185 }
 0x1a4   : >> { %1103 = vmatprep.subr.bf16.mxu1 %v5849_v63  ;;  %1062 = vmatprep.subr.bf16.mxu0 %v935_v44  ;;  %v6056_v22 = vpop.permute.xlu0 %1183  ;;  %v911_v63 = vsel %vm423_vm4, %v5791_v30, %v5788_v14  ;;  %v6103_v14 = vcombine.high %v5978_v24, %v1553_v16  ;;  %v6108_v30 = vcombine.low %v5978_v24, %v1553_v16 }
 0x1a5   : >> { %1616 = vrot.lane.b32.xlu1 %v6037_v55, %s4750_s24  ;;  %v6124_v24 = vcombine.high %v6006_v21, %v6006_v21 }
 0x1a6   : >> { %1614 = vrot.lane.b32.xlu0 %v6040_v9, %s4750_s24  ;;  %8199 = vst [vmem:[#allocation54_spill] sm:$0xff] %v6108_v30 }
 0x1a7   : >> { %1104 = vmatpush2.bf16.msra.mxu1 %v936_v10  ;;  %1063 = vmatpush2.bf16.msra.mxu0 %v934_v50  ;;  %v6072_v52 = vpop.permute.xlu1 %1189 }
 0x1a8   : >> { %1105 = vmatprep.subr.bf16.mxu1 %v5799_v15  ;;  %1064 = vmatprep.subr.bf16.mxu0 %v912_v45  ;;  %v6078_v31 = vpop.permute.xlu0 %1187  ;;  %v8200_v15 = vld [vmem:[#allocation17_spill] sm:$0xff] }
 0x1a9   : >> { %1620 = vrot.lane.b32.xlu1 %v6060_v48, %s4750_s24 }
 0x1aa   : >> { %1618 = vrot.lane.b32.xlu0 %v6070_v46, %s4750_s24 }
 0x1ab   : >> { %1106 = vmatpush2.bf16.msra.mxu1 %v913_v19  ;;  %1065 = vmatpush2.bf16.msra.mxu0 %v911_v63  ;;  %v6096_v17 = vpop.permute.xlu1 %1193 }
 0x1ac   : >> { %v6098_v26 = vpop.permute.xlu0 %1191 }
 0x1ad   : >> { %1634 = vrot.lane.b32.xlu1 %v6083_v27, %s4751_s25 }
 0x1ae   : >> { %1632 = vrot.lane.b32.xlu0 %v6094_v61, %s4751_s25  ;;  %1108 = vmatmul.mubr.bf16.vlgmr.msra.gmra.mxu1 %v8200_v15 }
 0x1af   : >> { %v6111_v57 = vpop.permute.xlu1 %1207  ;;  %1067 = vmatmul.mubr.bf16.vlgmr.msra.gmra.mxu0 %v8200_v15  ;;  %4429 = vmatprep.mubr.msk.bf16.mxu1 %vm559_vm3, %v8201_v28 }
 0x1b0   : >> { %v6116_v5 = vpop.permute.xlu0 %1205  ;;  %4428 = vmatprep.mubr.msk.bf16.mxu0 %vm559_vm3, %v8201_v28 }
 0x1b1   : >> { %1638 = vrot.lane.b32.xlu1 %v6103_v14, %s4751_s25 }
 0x1b2   : >> { %1636 = vrot.lane.b32.xlu0 %v6108_v30, %s4751_s25 }
 0x1b3   : >> { %v6132_v11 = vpop.permute.xlu1 %1211 }
 0x1b4   : >> { %v6134_v32 = vpop.permute.xlu0 %1209 }
 0x1b5   : >> { %1642 = vrot.lane.b32.xlu1 %v6124_v24, %s4751_s25 }
 0x1b6   : >> { %1640 = vrot.lane.b32.xlu0 %v6130_v29, %s4751_s25 }
 0x1b7   : >> { %v6144_v62 = vpop.permute.xlu1 %1215 }
 0x1b8   : >> { %v6146_v40 = vpop.permute.xlu0 %1213 }
 0x1b9   : >> { %1646 = vrot.lane.b32.xlu1 %v6138_v42, %s4751_s25 }
 0x1ba   : >> { %1644 = vrot.lane.b32.xlu0 %v6142_v25, %s4751_s25 }
 0x1bb   : >> { %v6152_v21 = vpop.permute.xlu1 %1219 }
 0x1bc   : >> { %v6154_v39 = vpop.permute.xlu0 %1217 }
 0x1bd   : >> { %1660 = vrot.lane.b32.xlu1 %v5974_v23, %s4752_s26 }
 0x1be   : >> { %1658 = vrot.lane.b32.xlu0 %v5990_v60, %s4752_s26 }
 0x1bf   : >> { %v6160_v8 = vpop.permute.xlu1 %1233 }
 0x1c0   : >> { %v6162_v36 = vpop.permute.xlu0 %1231 }
 0x1c1   : >> { %1664 = vrot.lane.b32.xlu1 %v5994_v56, %s4752_s26 }
 0x1c2   : >> { %1662 = vrot.lane.b32.xlu0 %v5998_v49, %s4752_s26 }
 0x1c3   : >> { %v6168_v2 = vpop.permute.xlu1 %1237 }
 0x1c4   : >> { %v6170_v38 = vpop.permute.xlu0 %1235 }
 0x1c5   : >> { %1668 = vrot.lane.b32.xlu1 %v6037_v55, %s4752_s26 }
 0x1c6   : >> { %1666 = vrot.lane.b32.xlu0 %v6040_v9, %s4752_s26 }
 0x1c7   : >> { %v6176_v16 = vpop.permute.xlu1 %1241 }
 0x1c8   : >> { %v6178_v53 = vpop.permute.xlu0 %1239 }
 0x1c9   : >> { %1672 = vrot.lane.b32.xlu1 %v6060_v48, %s4752_s26 }
 0x1ca   : >> { %1670 = vrot.lane.b32.xlu0 %v6070_v46, %s4752_s26 }
 0x1cb   : >> { %v1246_v44 = vpop.permute.xlu1 %1245 }
 0x1cc   : >> { %v1244_v50 = vpop.permute.xlu0 %1243 }
 0x1cd   : >> { %1686 = vrot.lane.b32.xlu1 %v6083_v27, %s4753_s27 }
 0x1ce   : >> { %1684 = vrot.lane.b32.xlu0 %v6094_v61, %s4753_s27 }
 0x1cf   : >> { %v1260_v10 = vpop.permute.xlu1 %1259 }
 0x1d0   : >> { %v1258_v45 = vpop.permute.xlu0 %1257 }
 0x1d1   : >> { %1690 = vrot.lane.b32.xlu1 %v6103_v14, %s4753_s27 }
 0x1d2   : >> { %1688 = vrot.lane.b32.xlu0 %v6108_v30, %s4753_s27 }
 0x1d3   : >> { %v1264_v63 = vpop.permute.xlu1 %1263 }
 0x1d4   : >> { %v1262_v19 = vpop.permute.xlu0 %1261 }
 0x1d5   : >> { %1694 = vrot.lane.b32.xlu1 %v6124_v24, %s4753_s27 }
 0x1d6   : >> { %1692 = vrot.lane.b32.xlu0 %v6130_v29, %s4753_s27 }
 0x1d7   : >> { %v1268_v6 = vpop.permute.xlu1 %1267 }
 0x1d8   : >> { %v1266_v1 = vpop.permute.xlu0 %1265 }
 0x1d9   : >> { %1698 = vrot.lane.b32.xlu1 %v6138_v42, %s4753_s27 }
 0x1da   : >> { %1696 = vrot.lane.b32.xlu0 %v6142_v25, %s4753_s27 }
 0x1db   : >> { %v1272_v51 = vpop.permute.xlu1 %1271 }
 0x1dc   : >> { %v1270_v18 = vpop.permute.xlu0 %1269 }
 0x1dd   : >> { %1712 = vrot.lane.b32.xlu1 %v5974_v23, %s4754_s29  ;;  %v1277_v12 = vsel %vm396_vm5, %v1268_v6, %v1270_v18  ;;  %v1278_v41 = vsel %vm396_vm5, %v1270_v18, %v1272_v51 }
 0x1de   : >> { %1710 = vrot.lane.b32.xlu0 %v5990_v60, %s4754_s29 }
 0x1df   : >> { %v1286_v28 = vpop.permute.xlu1 %1285 }
 0x1e0   : >> { %v1284_v15 = vpop.permute.xlu0 %1283 }
 0x1e1   : >> { %1716 = vrot.lane.b32.xlu1 %v5994_v56, %s4754_s29  ;;  %v1299_v3 = vsel %vm423_vm4, %v1284_v15, %v1286_v28 }
 0x1e2   : >> { %1714 = vrot.lane.b32.xlu0 %v5998_v49, %s4754_s29  ;;  %v1276_v49 = vsel %vm396_vm5, %v1266_v1, %v1268_v6  ;;  %v1251_v1 = vsel %vm369_vm7, %v6176_v16, %v1244_v50  ;;  %v1225_v6 = vsel %vm342_vm8, %v6144_v62, %v6154_v39 }
 0x1e3   : >> { %v1290_v34 = vpop.permute.xlu1 %1289  ;;  %v1395_v18 = vsel %vm488_vm6, %v1276_v49, %v1299_v3  ;;  %v1248_v3 = vsel %vm369_vm7, %v6160_v8, %v6170_v38  ;;  %v1250_v49 = vsel %vm369_vm7, %v6178_v53, %v6176_v16  ;;  %v1226_v16 = vsel %vm342_vm8, %v6154_v39, %v6152_v21 }
 0x1e4   : >> { %v1288_v35 = vpop.permute.xlu0 %1287  ;;  %v1407_v4 = vsel %vm488_vm6, %v1272_v51, %v1290_v34  ;;  %v1222_v39 = vsel %vm342_vm8, %v6111_v57, %v6134_v32 }
 0x1e5   : >> { %v1300_v0 = vsel %vm423_vm4, %v1286_v28, %v1288_v35  ;;  %v1301_v13 = vsel %vm423_vm4, %v1288_v35, %v1290_v34  ;;  %1720 = vrot.lane.b32.xlu1 %v6037_v55, %s4754_s29  ;;  %1466 = vmatprep.subr.bf16.mxu1 %v1407_v4  ;;  %v1274_v4 = vsel %vm396_vm5, %v1260_v10, %v1262_v19 }
 0x1e6   : >> { %1718 = vrot.lane.b32.xlu0 %v6040_v9, %s4754_s29  ;;  %v1399_v15 = vsel %vm488_vm6, %v1277_v12, %v1300_v0  ;;  %v1403_v43 = vsel %vm488_vm6, %v1278_v41, %v1301_v13  ;;  %v1275_v13 = vsel %vm396_vm5, %v1262_v19, %v1264_v63  ;;  %v1273_v41 = vsel %vm396_vm5, %v1258_v45, %v1260_v10 }
 0x1e7   : >> { %1425 = vmatprep.subr.bf16.mxu0 %v1399_v15  ;;  %1467 = vmatpush1.bf16.msra.mxu1 %v1403_v43  ;;  %v6221_v51 = vpop.permute.xlu1 %1293  ;;  %v1252_v12 = vsel %vm369_vm7, %v1244_v50, %v1246_v44  ;;  %v1249_v34 = vsel %vm369_vm7, %v6170_v38, %v6168_v2  ;;  %v1391_v10 = vsel %vm488_vm6, %v6152_v21, %v6168_v2 }
 0x1e8   : >> { %1426 = vmatpush1.bf16.msra.mxu0 %v1395_v18  ;;  %1468 = vmatprep.subr.bf16.mxu1 %v1264_v63  ;;  %v6224_v35 = vpop.permute.xlu0 %1291  ;;  %v1383_v38 = vsel %vm488_vm6, %v1225_v6, %v1248_v3  ;;  %v1224_v2 = vsel %vm342_vm8, %v6146_v40, %v6144_v62  ;;  %v1223_v62 = vsel %vm342_vm8, %v6134_v32, %v6132_v11 }
 0x1e9   : >> { %1427 = vmatprep.subr.bf16.mxu0 %v1274_v4  ;;  %1724 = vrot.lane.b32.xlu1 %v6060_v48, %s4754_s29  ;;  %v1221_v40 = vsel %vm342_vm8, %v6116_v5, %v6111_v57  ;;  %v1199_v19 = vsel %vm315_vm9, %v6072_v52, %v6098_v26  ;;  %v1200_v57 = vsel %vm315_vm9, %v6098_v26, %v6096_v17 }
 0x1ea   : >> { %1722 = vrot.lane.b32.xlu0 %v6070_v46, %s4754_s29  ;;  %v1197_v5 = vsel %vm315_vm9, %v6056_v22, %v6050_v20  ;;  %v1198_v32 = vsel %vm315_vm9, %v6078_v31, %v6072_v52  ;;  %v1375_v18 = vsel %vm488_vm6, %v5700_v59, %v6050_v20  ;;  %v1195_v4 = vsel %vm315_vm9, %v6026_v54, %v6023_v37  ;;  %v8205_v52 = vld [vmem:[#allocation21_spill] sm:$0xff] }
 0x1eb   : >> { %1469 = vmatpush1.bf16.msra.mxu1 %v1275_v13  ;;  %v6233_v43 = vpop.permute.xlu1 %1297  ;;  %v1371_v59 = vsel %vm488_vm6, %v5704_v58, %v1197_v5  ;;  %v8204_v58 = vld [vmem:[#allocation11_spill] sm:$0xff]  ;;  %v1943_v31 = vrot.slane %v8205_v52, 6 }
 0x1ec   : >> { %1428 = vmatpush1.bf16.msra.mxu0 %v1273_v41  ;;  %1470 = vmatprep.subr.bf16.mxu1 %v1246_v44  ;;  %v6235_v0 = vpop.permute.xlu0 %1295  ;;  %v1247_v44 = vsel %vm369_vm7, %v6162_v36, %v6160_v8  ;;  %v1387_v8 = vsel %vm488_vm6, %v1226_v16, %v1249_v34  ;;  %v8213_v16 = vld [vmem:[#allocation30_spill] sm:$0xff] }
 0x1ed   : >> { %1429 = vmatprep.subr.bf16.mxu0 %v1251_v1  ;;  %1738 = vrot.lane.b32.xlu1 %v6083_v27, %s4755_s30  ;;  %v1379_v53 = vsel %vm488_vm6, %v1224_v2, %v1247_v44  ;;  %v8210_v1 = vld [vmem:[#allocation24_spill] sm:$0xff]  ;;  %v1951_v2 = vrot.slane %v8213_v16, 6 }
 0x1ee   : >> { %1736 = vrot.lane.b32.xlu0 %v6094_v61, %s4755_s30  ;;  %v8212_v44 = vld [vmem:[#allocation12_spill] sm:$0xff] }
 0x1ef   : >> { %1471 = vmatpush1.bf16.msra.mxu1 %v1252_v12  ;;  %v6256_v28 = vpop.permute.xlu1 %1311  ;;  %v8211_v12 = vld [vmem:[#allocation16_spill] sm:$0xff] }
 0x1f0   : >> { %1430 = vmatpush1.bf16.msra.mxu0 %v1250_v49  ;;  %1472 = vmatprep.subr.bf16.mxu1 %v1391_v10  ;;  %v6264_v50 = vpop.permute.xlu0 %1309 }
 0x1f1   : >> { %1431 = vmatprep.subr.bf16.mxu0 %v1383_v38  ;;  %1742 = vrot.lane.b32.xlu1 %v6103_v14, %s4755_s30  ;;  %v4450_v38 = vrot.slane %v8212_v44, 10  ;;  %v1325_v13 = vsel %vm450_vm13, %v6264_v50, %v6256_v28 }
 0x1f2   : >> { %1740 = vrot.lane.b32.xlu0 %v6108_v30, %s4755_s30 }
 0x1f3   : >> { %1473 = vmatpush1.bf16.msra.mxu1 %v1387_v8  ;;  %v6278_v36 = vpop.permute.xlu1 %1315  ;;  %v8214_v8 = vld [vmem:[#allocation13_spill] sm:$0xff] }
 0x1f4   : >> { %1432 = vmatpush1.bf16.msra.mxu0 %v1379_v53  ;;  %1474 = vmatprep.subr.bf16.mxu1 %v6132_v11  ;;  %v6282_v21 = vpop.permute.xlu0 %1313  ;;  %v1196_v11 = vsel %vm315_vm9, %v6023_v37, %v6056_v22  ;;  %v1363_v37 = vsel %vm488_vm6, %v5692_v47, %v1195_v4  ;;  %v8206_v47 = vld [vmem:[#allocation50_spill] sm:$0xff]  ;;  %v4452_v53 = vrot.slane %v8214_v8, 10 }
 0x1f5   : >> { %1433 = vmatprep.subr.bf16.mxu0 %v1222_v39  ;;  %1746 = vrot.lane.b32.xlu1 %v6124_v24, %s4755_s30  ;;  %v1367_v22 = vsel %vm488_vm6, %v5686_v7, %v1196_v11  ;;  %v8202_v7 = vld [vmem:[#allocation43_spill] sm:$0xff] }
 0x1f6   : >> { %1744 = vrot.lane.b32.xlu0 %v6130_v29, %s4755_s30 }
 0x1f7   : >> { %1475 = vmatpush1.bf16.msra.mxu1 %v1223_v62  ;;  %v6297_v45 = vpop.permute.xlu1 %1319 }
 0x1f8   : >> { %1434 = vmatpush1.bf16.msra.mxu0 %v1221_v40  ;;  %1476 = vmatprep.subr.bf16.mxu1 %v6096_v17  ;;  %v6300_v63 = vpop.permute.xlu0 %1317 }
 0x1f9   : >> { %1435 = vmatprep.subr.bf16.mxu0 %v1199_v19  ;;  %1750 = vrot.lane.b32.xlu1 %v6138_v42, %s4755_s30 }
 0x1fa   : >> { %1748 = vrot.lane.b32.xlu0 %v6142_v25, %s4755_s30 }
 0x1fb   : >> { %1477 = vmatpush1.bf16.msra.mxu1 %v1200_v57  ;;  %v6321_v15 = vpop.permute.xlu1 %1323 }
 0x1fc   : >> { %1436 = vmatpush1.bf16.msra.mxu0 %v1198_v32  ;;  %1478 = vmatprep.subr.bf16.mxu1 %v1375_v18  ;;  %v6329_v17 = vpop.permute.xlu0 %1321  ;;  %v8216_v32 = vld [vmem:[#allocation14_spill] sm:$0xff] }
 0x1fd   : >> { %1437 = vmatprep.subr.bf16.mxu0 %v1367_v22  ;;  %1764 = vrot.lane.b32.xlu1 %v5974_v23, %s4756_s4  ;;  %v8203_v23 = vld [vmem:[#allocation47_spill] sm:$0xff]  ;;  %v4451_v18 = vrot.slane %v8216_v32, 10 }
 0x1fe   : >> { %1762 = vrot.lane.b32.xlu0 %v5990_v60, %s4756_s4  ;;  %v4448_v60 = vrot.slane %v8204_v58, 10 }
 0x1ff   : >> { %1479 = vmatpush1.bf16.msra.mxu1 %v1371_v59  ;;  %v1338_v20 = vpop.permute.xlu1 %1337  ;;  %v8217_v59 = vld [vmem:[#allocation38_spill] sm:$0xff] }
 0x200   : >> { %1438 = vmatpush1.bf16.msra.mxu0 %v1363_v37  ;;  %v1336_v54 = vpop.permute.xlu0 %1335  ;;  %1480 = vmatprep.subr.bf16.mxu1 %v5665_v33  ;;  %v8209_v33 = vld [vmem:[#allocation10_spill] sm:$0xff]  ;;  %v6363_v6 = vsel %vm6350_vm11, %v4448_v60, %v1943_v31  ;;  %v1955_v37 = vrot.slane %v8217_v59, 6  ;;  %v1329_v60 = vsel %vm450_vm13, %v6297_v45, %v6329_v17 }
 0x201   : >> { %1768 = vrot.lane.b32.xlu1 %v5994_v56, %s4756_s4  ;;  %1439 = vmatprep.subr.bf16.mxu0 %v8202_v7  ;;  %v4449_v41 = vrot.slane %v8209_v33, 10  ;;  %v1947_v56 = vrot.slane %v8210_v1, 6  ;;  %v6383_v62 = vcombine.low %v6363_v6, %v6363_v6  ;;  %v8218_v7 = vld [vmem:[#allocation15_spill] sm:$0xff]  ;;  %v1351_v31 = vsel %vm477_vm14, %v1336_v54, %v1338_v20 }
 0x202   : >> { %1766 = vrot.lane.b32.xlu0 %v8203_v23, %s4756_s4  ;;  %v4453_v23 = vrot.slane %v8218_v7, 10  ;;  %v1328_v54 = vsel %vm450_vm13, %v6300_v63, %v6297_v45  ;;  %v1956_v63 = vsel %vm6350_vm11, %v4451_v18, %v1955_v37 }
 0x203   : >> { %v1342_v26 = vpop.permute.xlu1 %1341  ;;  %1481 = vmatpush1.bf16.msra.mxu1 %v8206_v47  ;;  %v6367_v49 = vsel %vm6350_vm11, %v4449_v41, %v1947_v56  ;;  %v8219_v41 = vld [vmem:[#allocation39_spill] sm:$0xff]  ;;  %v1411_v45 = vsel %vm488_vm6, %v1328_v54, %v1351_v31 }
 0x204   : >> { %v1340_v3 = vpop.permute.xlu0 %1339  ;;  %1440 = vmatpush1.bf16.msra.mxu0 %v8211_v12  ;;  %v6387_v19 = vcombine.high %v6367_v49, %v6367_v49  ;;  %v6391_v11 = vcombine.low %v6367_v49, %v6367_v49  ;;  %v1963_v56 = vrot.slane %v8219_v41, 6 }
 0x205   : >> { %1772 = vrot.lane.b32.xlu1 %v6037_v55, %s4756_s4  ;;  %v8215_v55 = vld [vmem:[#allocation33_spill] sm:$0xff]  ;;  %v1353_v12 = vsel %vm477_vm14, %v1340_v3, %v1342_v26 }
 0x206   : >> { %1770 = vrot.lane.b32.xlu0 %v6040_v9, %s4756_s4  ;;  %v1959_v39 = vrot.slane %v8215_v55, 6  ;;  %v6377_v9 = vcombine.high %v6363_v6, %v6363_v6 }
 0x207   : >> { %v1346_v34 = vpop.permute.xlu1 %1345 }
 0x208   : >> { %v1344_v10 = vpop.permute.xlu0 %1343  ;;  %v6398_v5 = vsel %vm6350_vm11, %v4452_v53, %v1959_v39  ;;  %v1326_v39 = vsel %vm450_vm13, %v6256_v28, %v6282_v21 }
 0x209   : >> { %1776 = vrot.lane.b32.xlu1 %v6060_v48, %s4756_s4  ;;  %v1352_v48 = vsel %vm477_vm14, %v1338_v20, %v1340_v3  ;;  %v1354_v47 = vsel %vm477_vm14, %v1344_v10, %v1346_v34  ;;  %v1330_v3 = vsel %vm450_vm13, %v6329_v17, %v6321_v15  ;;  %v6525_v31 = vcombine.low %v6398_v5, %v6398_v5 }
 0x20a   : >> { %1774 = vrot.lane.b32.xlu0 %v6070_v46, %s4756_s4  ;;  %v1952_v46 = vsel %vm6350_vm11, %v4450_v38, %v1951_v2  ;;  %v1423_v38 = vsel %vm488_vm6, %v6321_v15, %v1342_v26  ;;  %v1415_v53 = vsel %vm488_vm6, %v1329_v60, %v1352_v48  ;;  %v1419_v10 = vsel %vm488_vm6, %v1330_v3, %v1353_v12 }
 0x20b   : >> { %v1350_v40 = vpop.permute.xlu1 %1349  ;;  %v6432_v26 = vcombine.high %v1952_v46, %v6398_v5  ;;  %v1964_v15 = vsel %vm6350_vm11, %v4453_v23, %v1963_v56  ;;  %v6478_v50 = vcombine.high %v6363_v6, %v1952_v46  ;;  %v6489_v37 = vcombine.low %v6363_v6, %v1952_v46  ;;  %v8222_v6 = vld [vmem:[#allocation49_spill] sm:$0xff] }
 0x20c   : >> { %v1348_v57 = vpop.permute.xlu0 %1347  ;;  %1490 = vmatprep.subr.bf16.mxu1 %v1350_v40  ;;  %v6455_v48 = vcombine.high %v1956_v63, %v1964_v15  ;;  %v6465_v18 = vcombine.low %v1956_v63, %v1964_v15  ;;  %v6535_v12 = vcombine.low %v1964_v15, %v1964_v15  ;;  %vm3135_vm11 = vsmask.f32 256 }
 0x20d   : >> { %1999 = vrot.lane.b32.xlu1 %v6377_v9, %s4750_s24  ;;  %v1355_v4 = vsel %vm477_vm14, %v1346_v34, %v1348_v57  ;;  %v1356_v22 = vsel %vm477_vm14, %v1348_v57, %v1350_v40  ;;  %v6435_v34 = vcombine.low %v1952_v46, %v6398_v5  ;;  %v1327_v57 = vsel %vm450_vm13, %v6282_v21, %v6278_v36  ;;  %vm7402_vm15 = vmor %vm3135_vm11, %vm3136_vm12 }
 0x20e   : >> { %1997 = vrot.lane.b32.xlu0 %v6383_v62, %s4750_s24  ;;  %1449 = vmatprep.subr.bf16.mxu0 %v1355_v4  ;;  %v1304_v21 = vsel %vm423_vm4, %v6235_v0, %v6233_v43  ;;  %8220 = vst [vmem:[#allocation43_spill] sm:$0xff] %v6489_v37 }
 0x20f   : >> { %1491 = vmatpush2.bf16.msra.mxu1 %v1356_v22  ;;  %1450 = vmatpush2.bf16.msra.mxu0 %v1354_v47  ;;  %v6418_v2 = vpop.permute.xlu1 %1608  ;;  %v1303_v22 = vsel %vm423_vm4, %v6221_v51, %v6235_v0 }
 0x210   : >> { %1492 = vmatprep.subr.bf16.mxu1 %v1423_v38  ;;  %1451 = vmatprep.subr.bf16.mxu0 %v1415_v53  ;;  %v6421_v20 = vpop.permute.xlu0 %1606 }
 0x211   : >> { %2003 = vrot.lane.b32.xlu1 %v6387_v19, %s4750_s24 }
 0x212   : >> { %2001 = vrot.lane.b32.xlu0 %v6391_v11, %s4750_s24 }
 0x213   : >> { %1493 = vmatpush2.bf16.msra.mxu1 %v1419_v10  ;;  %1452 = vmatpush2.bf16.msra.mxu0 %v1411_v45  ;;  %v6445_v17 = vpop.permute.xlu1 %1612  ;;  %v6559_v45 = vcombine.high %v1964_v15, %v1964_v15 }
 0x214   : >> { %1494 = vmatprep.subr.bf16.mxu1 %v6278_v36  ;;  %1453 = vmatprep.subr.bf16.mxu0 %v1326_v39  ;;  %v6451_v40 = vpop.permute.xlu0 %1610  ;;  %v1302_v36 = vsel %vm423_vm4, %v6224_v35, %v6221_v51  ;;  %v6498_v51 = vcombine.high %v6367_v49, %v1956_v63  ;;  %v6503_v35 = vcombine.low %v6367_v49, %v1956_v63 }
 0x215   : >> { %2007 = vrot.lane.b32.xlu1 %v6432_v26, %s4750_s24  ;;  %v6519_v49 = vcombine.high %v6398_v5, %v6398_v5 }
 0x216   : >> { %2005 = vrot.lane.b32.xlu0 %v6435_v34, %s4750_s24 }
 0x217   : >> { %1495 = vmatpush2.bf16.msra.mxu1 %v1327_v57  ;;  %1454 = vmatpush2.bf16.msra.mxu0 %v1325_v13  ;;  %v6467_v4 = vpop.permute.xlu1 %1616 }
 0x218   : >> { %1496 = vmatprep.subr.bf16.mxu1 %v6233_v43  ;;  %1455 = vmatprep.subr.bf16.mxu0 %v1303_v22  ;;  %v6473_v28 = vpop.permute.xlu0 %1614  ;;  %v8221_v43 = vld [vmem:[#allocation17_spill] sm:$0xff] }
 0x219   : >> { %2011 = vrot.lane.b32.xlu1 %v6455_v48, %s4750_s24 }
 0x21a   : >> { %2009 = vrot.lane.b32.xlu0 %v6465_v18, %s4750_s24 }
 0x21b   : >> { %1497 = vmatpush2.bf16.msra.mxu1 %v1304_v21  ;;  %1456 = vmatpush2.bf16.msra.mxu0 %v1302_v36  ;;  %v6491_v23 = vpop.permute.xlu1 %1620 }
 0x21c   : >> { %v6493_v60 = vpop.permute.xlu0 %1618 }
 0x21d   : >> { %2025 = vrot.lane.b32.xlu1 %v6478_v50, %s4751_s25 }
 0x21e   : >> { %2023 = vrot.lane.b32.xlu0 %v6489_v37, %s4751_s25  ;;  %1499 = vmatmul.mubr.bf16.vlgmr.msra.gmra.mxu1 %v8221_v43 }
 0x21f   : >> { %v6506_v0 = vpop.permute.xlu1 %1634  ;;  %1458 = vmatmul.mubr.bf16.vlgmr.msra.gmra.mxu0 %v8221_v43  ;;  %4447 = vmatprep.mubr.msk.bf16.mxu1 %vm559_vm3, %v8222_v6 }
 0x220   : >> { %v6511_v46 = vpop.permute.xlu0 %1632  ;;  %4446 = vmatprep.mubr.msk.bf16.mxu0 %vm559_vm3, %v8222_v6 }
 0x221   : >> { %2029 = vrot.lane.b32.xlu1 %v6498_v51, %s4751_s25 }
 0x222   : >> { %2027 = vrot.lane.b32.xlu0 %v6503_v35, %s4751_s25 }
 0x223   : >> { %v6527_v47 = vpop.permute.xlu1 %1638 }
 0x224   : >> { %v6529_v56 = vpop.permute.xlu0 %1636 }
 0x225   : >> { %2033 = vrot.lane.b32.xlu1 %v6519_v49, %s4751_s25 }
 0x226   : >> { %2031 = vrot.lane.b32.xlu0 %v6525_v31, %s4751_s25 }
 0x227   : >> { %v6537_v38 = vpop.permute.xlu1 %1642 }
 0x228   : >> { %v6539_v53 = vpop.permute.xlu0 %1640 }
 0x229   : >> { %2085 = vrot.lane.b32.xlu1 %v6519_v49, %s4753_s27 }
 0x22a   : >> { %2035 = vrot.lane.b32.xlu0 %v6535_v12, %s4751_s25 }
 0x22b   : >> { %v6545_v5 = vpop.permute.xlu1 %1646 }
 0x22c   : >> { %v6547_v54 = vpop.permute.xlu0 %1644 }
 0x22d   : >> { %2103 = vrot.lane.b32.xlu1 %v6377_v9, %s4754_s29 }
 0x22e   : >> { %2087 = vrot.lane.b32.xlu0 %v6535_v12, %s4753_s27 }
 0x22f   : >> { %v6553_v3 = vpop.permute.xlu1 %1660 }
 0x230   : >> { %v6555_v10 = vpop.permute.xlu0 %1658 }
 0x231   : >> { %2083 = vrot.lane.b32.xlu1 %v6525_v31, %s4753_s27 }
 0x232   : >> { %2105 = vrot.lane.b32.xlu0 %v6391_v11, %s4754_s29 }
 0x233   : >> { %v6563_v63 = vpop.permute.xlu1 %1664 }
 0x234   : >> { %v6565_v39 = vpop.permute.xlu0 %1662 }
 0x235   : >> { %2089 = vrot.lane.b32.xlu1 %v6559_v45, %s4753_s27 }
 0x236   : >> { %2101 = vrot.lane.b32.xlu0 %v6383_v62, %s4754_s29 }
 0x237   : >> { %v6571_v13 = vpop.permute.xlu1 %1668 }
 0x238   : >> { %v6573_v57 = vpop.permute.xlu0 %1666 }
 0x239   : >> { %2077 = vrot.lane.b32.xlu1 %v6478_v50, %s4753_s27 }
 0x23a   : >> { %2107 = vrot.lane.b32.xlu0 %v6387_v19, %s4754_s29 }
 0x23b   : >> { %v1673_v15 = vpop.permute.xlu1 %1672 }
 0x23c   : >> { %v1671_v22 = vpop.permute.xlu0 %1670 }
 0x23d   : >> { %2075 = vrot.lane.b32.xlu1 %v6489_v37, %s4753_s27 }
 0x23e   : >> { %2079 = vrot.lane.b32.xlu0 %v6503_v35, %s4753_s27 }
 0x23f   : >> { %v1687_v36 = vpop.permute.xlu1 %1686 }
 0x240   : >> { %v1685_v21 = vpop.permute.xlu0 %1684 }
 0x241   : >> { %2059 = vrot.lane.b32.xlu1 %v6432_v26, %s4752_s26 }
 0x242   : >> { %2081 = vrot.lane.b32.xlu0 %v6498_v51, %s4753_s27 }
 0x243   : >> { %v1691_v16 = vpop.permute.xlu1 %1690 }
 0x244   : >> { %v1689_v44 = vpop.permute.xlu0 %1688 }
 0x245   : >> { %2057 = vrot.lane.b32.xlu1 %v6435_v34, %s4752_s26 }
 0x246   : >> { %2061 = vrot.lane.b32.xlu0 %v6465_v18, %s4752_s26 }
 0x247   : >> { %v1695_v59 = vpop.permute.xlu1 %1694 }
 0x248   : >> { %v1693_v32 = vpop.permute.xlu0 %1692 }
 0x249   : >> { %2053 = vrot.lane.b32.xlu1 %v6391_v11, %s4752_s26  ;;  %v1703_v37 = vsel %vm396_vm5, %v1693_v32, %v1695_v59  ;;  %v1678_v32 = vsel %vm369_vm7, %v6571_v13, %v1671_v22 }
 0x24a   : >> { %2051 = vrot.lane.b32.xlu0 %v6377_v9, %s4752_s26 }
 0x24b   : >> { %v1699_v52 = vpop.permute.xlu1 %1698 }
 0x24c   : >> { %v1697_v58 = vpop.permute.xlu0 %1696 }
 0x24d   : >> { %2049 = vrot.lane.b32.xlu1 %v6383_v62, %s4752_s26  ;;  %v1704_v8 = vsel %vm396_vm5, %v1695_v59, %v1697_v58  ;;  %v1705_v43 = vsel %vm396_vm5, %v1697_v58, %v1699_v52  ;;  %v1675_v59 = vsel %vm369_vm7, %v6553_v3, %v6565_v39 }
 0x24e   : >> { %2063 = vrot.lane.b32.xlu0 %v6455_v48, %s4752_s26 }
 0x24f   : >> { %v1713_v1 = vpop.permute.xlu1 %1712 }
 0x250   : >> { %v1711_v33 = vpop.permute.xlu0 %1710 }
 0x251   : >> { %2055 = vrot.lane.b32.xlu1 %v6387_v19, %s4752_s26  ;;  %v1726_v41 = vsel %vm423_vm4, %v1711_v33, %v1713_v1 }
 0x252   : >> { %2037 = vrot.lane.b32.xlu0 %v6559_v45, %s4751_s25 }
 0x253   : >> { %v1717_v55 = vpop.permute.xlu1 %1716 }
 0x254   : >> { %v1715_v7 = vpop.permute.xlu0 %1714  ;;  %v1834_v6 = vsel %vm488_vm6, %v1699_v52, %v1717_v55  ;;  %v1822_v52 = vsel %vm488_vm6, %v1703_v37, %v1726_v41  ;;  %v1677_v41 = vsel %vm369_vm7, %v6573_v57, %v6571_v13  ;;  %v1653_v13 = vsel %vm342_vm8, %v6547_v54, %v6545_v5 }
 0x255   : >> { %v1727_v61 = vsel %vm423_vm4, %v1713_v1, %v1715_v7  ;;  %v1728_v30 = vsel %vm423_vm4, %v1715_v7, %v1717_v55  ;;  %2165 = vrot.lane.b32.xlu1 %v6465_v18, %s4756_s4  ;;  %1893 = vmatprep.subr.bf16.mxu1 %v1834_v6  ;;  %v1701_v55 = vsel %vm396_vm5, %v1687_v36, %v1689_v44 }
 0x256   : >> { %2163 = vrot.lane.b32.xlu0 %v6432_v26, %s4756_s4  ;;  %v1826_v33 = vsel %vm488_vm6, %v1704_v8, %v1727_v61  ;;  %v1830_v27 = vsel %vm488_vm6, %v1705_v43, %v1728_v30  ;;  %v1702_v61 = vsel %vm396_vm5, %v1689_v44, %v1691_v16  ;;  %v1679_v44 = vsel %vm369_vm7, %v1671_v22, %v1673_v15 }
 0x257   : >> { %1852 = vmatprep.subr.bf16.mxu0 %v1826_v33  ;;  %1894 = vmatpush1.bf16.msra.mxu1 %v1830_v27  ;;  %v6616_v58 = vpop.permute.xlu1 %1720  ;;  %v1700_v27 = vsel %vm396_vm5, %v1685_v21, %v1687_v36  ;;  %v1676_v7 = vsel %vm369_vm7, %v6565_v39, %v6563_v63  ;;  %v1674_v43 = vsel %vm369_vm7, %v6555_v10, %v6553_v3  ;;  %v8225_v21 = vld [vmem:[#allocation27_spill] sm:$0xff] }
 0x258   : >> { %1853 = vmatpush1.bf16.msra.mxu0 %v1822_v52  ;;  %1895 = vmatprep.subr.bf16.mxu1 %v1691_v16  ;;  %v6619_v1 = vpop.permute.xlu0 %1718  ;;  %v1652_v16 = vsel %vm342_vm8, %v6537_v38, %v6547_v54  ;;  %v1814_v3 = vsel %vm488_vm6, %v1653_v13, %v1676_v7  ;;  %v1649_v54 = vsel %vm342_vm8, %v6506_v0, %v6529_v56  ;;  %v2364_v33 = vrot.slane %v8225_v21, 6  ;;  %v8226_v52 = vld [vmem:[#allocation28_spill] sm:$0xff]  ;;  %v8230_v7 = vld [vmem:[#allocation19_spill] sm:$0xff] }
 0x259   : >> { %1854 = vmatprep.subr.bf16.mxu0 %v1701_v55  ;;  %2137 = vrot.lane.b32.xlu1 %v6519_v49, %s4755_s30  ;;  %v1810_v39 = vsel %vm488_vm6, %v1652_v16, %v1675_v59  ;;  %v1627_v36 = vsel %vm315_vm9, %v6493_v60, %v6491_v23  ;;  %v2365_v55 = vrot.slane %v8226_v52, 7  ;;  %v8227_v59 = vld [vmem:[#allocation20_spill] sm:$0xff]  ;;  %v8239_v52 = vld [vmem:[#allocation25_spill] sm:$0xff] }
 0x25a   : >> { %2161 = vrot.lane.b32.xlu0 %v6435_v34, %s4756_s4 }
 0x25b   : >> { %1896 = vmatpush1.bf16.msra.mxu1 %v1702_v61  ;;  %v6628_v30 = vpop.permute.xlu1 %1724  ;;  %v1624_v61 = vsel %vm315_vm9, %v6451_v40, %v6445_v17 }
 0x25c   : >> { %1855 = vmatpush1.bf16.msra.mxu0 %v1700_v27  ;;  %1897 = vmatprep.subr.bf16.mxu1 %v1673_v15  ;;  %v6630_v8 = vpop.permute.xlu0 %1722 }
 0x25d   : >> { %1856 = vmatprep.subr.bf16.mxu0 %v1678_v32  ;;  %2155 = vrot.lane.b32.xlu1 %v6377_v9, %s4756_s4  ;;  %v1818_v9 = vsel %vm488_vm6, %v6545_v5, %v6563_v63  ;;  %v1651_v63 = vsel %vm342_vm8, %v6539_v53, %v6537_v38  ;;  %v1648_v38 = vsel %vm342_vm8, %v6511_v46, %v6506_v0  ;;  %v8223_v0 = vld [vmem:[#allocation31_spill] sm:$0xff] }
 0x25e   : >> { %2139 = vrot.lane.b32.xlu0 %v6535_v12, %s4755_s30  ;;  %v1806_v57 = vsel %vm488_vm6, %v1651_v63, %v1674_v43  ;;  %v2372_v46 = vrot.slane %v8223_v0, 6  ;;  %v1802_v32 = vsel %vm488_vm6, %v6138_v42, %v6445_v17  ;;  %v8229_v17 = vld [vmem:[#allocation18_spill] sm:$0xff] }
 0x25f   : >> { %1898 = vmatpush1.bf16.msra.mxu1 %v1679_v44  ;;  %v6651_v37 = vpop.permute.xlu1 %1738  ;;  %v2332_v16 = vrot.slane %v8229_v17, 6 }
 0x260   : >> { %1857 = vmatpush1.bf16.msra.mxu0 %v1677_v41  ;;  %1899 = vmatprep.subr.bf16.mxu1 %v1818_v9  ;;  %v6659_v6 = vpop.permute.xlu0 %1736  ;;  %v8232_v9 = vld [vmem:[#allocation41_spill] sm:$0xff] }
 0x261   : >> { %1858 = vmatprep.subr.bf16.mxu0 %v1810_v39  ;;  %2167 = vrot.lane.b32.xlu1 %v6455_v48, %s4756_s4  ;;  %v2377_v43 = vrot.slane %v8232_v9, 7  ;;  %v2366_v39 = vor.u32 %v2365_v55, %v2364_v33  ;;  %v2337_v55 = vrot.slane %v8239_v52, 7 }
 0x262   : >> { %2157 = vrot.lane.b32.xlu0 %v6391_v11, %s4756_s4  ;;  %v1650_v11 = vsel %vm342_vm8, %v6529_v56, %v6527_v47  ;;  %v8224_v56 = vld [vmem:[#allocation35_spill] sm:$0xff] }
 0x263   : >> { %1900 = vmatpush1.bf16.msra.mxu1 %v1814_v3  ;;  %v6673_v10 = vpop.permute.xlu1 %1742  ;;  %v2373_v22 = vrot.slane %v8224_v56, 7  ;;  %v8233_v3 = vld [vmem:[#allocation46_spill] sm:$0xff] }
 0x264   : >> { %1859 = vmatpush1.bf16.msra.mxu0 %v1806_v57  ;;  %1901 = vmatprep.subr.bf16.mxu1 %v6527_v47  ;;  %v6677_v5 = vpop.permute.xlu0 %1740  ;;  %v1623_v47 = vsel %vm315_vm9, %v6418_v2, %v6451_v40  ;;  %v2368_v57 = vrot.slane %v8233_v3, 6 }
 0x265   : >> { %1860 = vmatprep.subr.bf16.mxu0 %v1649_v54  ;;  %2153 = vrot.lane.b32.xlu1 %v6383_v62, %s4756_s4  ;;  %v1626_v62 = vsel %vm315_vm9, %v6467_v4, %v6493_v60  ;;  %v1794_v40 = vsel %vm488_vm6, %v6124_v24, %v1623_v47  ;;  %v2374_v42 = vor.u32 %v2373_v22, %v2372_v46  ;;  %v8231_v24 = vld [vmem:[#allocation42_spill] sm:$0xff]  ;;  %v8234_v54 = vld [vmem:[#allocation37_spill] sm:$0xff]  ;;  %v8236_v46 = vld [vmem:[#allocation32_spill] sm:$0xff] }
 0x266   : >> { %2135 = vrot.lane.b32.xlu0 %v6525_v31, %s4755_s30  ;;  %v2376_v41 = vrot.slane %v8231_v24, 6  ;;  %v2345_v56 = vrot.slane %v8236_v46, 7  ;;  %v8237_v22 = vld [vmem:[#allocation45_spill] sm:$0xff] }
 0x267   : >> { %1902 = vmatpush1.bf16.msra.mxu1 %v1650_v11  ;;  %v6692_v53 = vpop.permute.xlu1 %1746  ;;  %v2369_v11 = vrot.slane %v8234_v54, 7 }
 0x268   : >> { %1861 = vmatpush1.bf16.msra.mxu0 %v1648_v38  ;;  %1903 = vmatprep.subr.bf16.mxu1 %v6491_v23  ;;  %v6695_v15 = vpop.permute.xlu0 %1744  ;;  %v1622_v23 = vsel %vm315_vm9, %v6421_v20, %v6418_v2  ;;  %v2333_v2 = vrot.slane %v8230_v7, 7  ;;  %v1798_v20 = vsel %vm488_vm6, %v6142_v25, %v1624_v61  ;;  %v8240_v61 = vld [vmem:[#allocation43_spill] sm:$0xff] }
 0x269   : >> { %1862 = vmatprep.subr.bf16.mxu0 %v1626_v62  ;;  %2159 = vrot.lane.b32.xlu1 %v6387_v19, %s4756_s4  ;;  %v1625_v19 = vsel %vm315_vm9, %v6473_v28, %v6467_v4  ;;  %v2340_v4 = vrot.slane %v8227_v59, 6  ;;  %v8228_v28 = vld [vmem:[#allocation22_spill] sm:$0xff]  ;;  %v1790_v63 = vsel %vm488_vm6, %v6130_v29, %v1622_v23  ;;  %v8235_v62 = vld [vmem:[#allocation52_spill] sm:$0xff] }
 0x26a   : >> { %2141 = vrot.lane.b32.xlu0 %v6559_v45, %s4755_s30  ;;  %v2341_v44 = vrot.slane %v8228_v28, 7  ;;  %v2344_v47 = vrot.slane %v8235_v62, 6  ;;  %v2334_v29 = vor.u32 %v2333_v2, %v2332_v16  ;;  %v8241_v23 = vld [vmem:[#allocation54_spill] sm:$0xff]  ;;  %v2370_v28 = vor.u32 %v2369_v11, %v2368_v57  ;;  %v8244_v16 = vld [vmem:[#allocation53_spill] sm:$0xff] }
 0x26b   : >> { %1904 = vmatpush1.bf16.msra.mxu1 %v1627_v36  ;;  %v6720_v27 = vpop.permute.xlu1 %1750  ;;  %v8238_v36 = vld [vmem:[#allocation51_spill] sm:$0xff] }
 0x26c   : >> { %1863 = vmatpush1.bf16.msra.mxu0 %v1625_v19  ;;  %1905 = vmatprep.subr.bf16.mxu1 %v1802_v32  ;;  %v6728_v60 = vpop.permute.xlu0 %1748  ;;  %v2342_v25 = vor.u32 %v2341_v44, %v2340_v4  ;;  %v2336_v33 = vrot.slane %v8238_v36, 6  ;;  %v2378_v19 = vor.u32 %v2377_v43, %v2376_v41  ;;  %v2367_v4 = vrot.slane %v2366_v39, 4 }
 0x26d   : >> { %1864 = vmatprep.subr.bf16.mxu0 %v1794_v40  ;;  %2131 = vrot.lane.b32.xlu1 %v6503_v35, %s4755_s30  ;;  %v2346_v2 = vor.u32 %v2345_v56, %v2344_v47  ;;  %v1731_v40 = vsel %vm423_vm4, %v6630_v8, %v6628_v30 }
 0x26e   : >> { %2129 = vrot.lane.b32.xlu0 %v6478_v50, %s4755_s30  ;;  %v2343_v7 = vrot.slane %v2342_v25, 4  ;;  %v6775_v39 = vsel %vm6760_vm0, %v2367_v4, %v2370_v28  ;;  %v8246_v25 = vld [vmem:[#allocation34_spill] sm:$0xff] }
 0x26f   : >> { %1906 = vmatpush1.bf16.msra.mxu1 %v1798_v20  ;;  %v1765_v13 = vpop.permute.xlu1 %1764  ;;  %v2338_v20 = vor.u32 %v2337_v55, %v2336_v33  ;;  %v2357_v47 = vrot.slane %v8246_v25, 7  ;;  %v8248_v33 = vld [vmem:[#allocation26_spill] sm:$0xff] }
 0x270   : >> { %1865 = vmatpush1.bf16.msra.mxu0 %v1790_v63  ;;  %v1763_v38 = vpop.permute.xlu0 %1762  ;;  %1907 = vmatprep.subr.bf16.mxu1 %v6103_v14  ;;  %v2375_v14 = vrot.slane %v2374_v42, 4  ;;  %v2335_v42 = vrot.slane %v2334_v29, 4  ;;  %v6779_v57 = vsel %vm6760_vm0, %v2343_v7, %v2346_v2  ;;  %v2349_v55 = vrot.slane %v8248_v33, 7  ;;  %v8249_v7 = vld [vmem:[#allocation44_spill] sm:$0xff] }
 0x271   : >> { %2133 = vrot.lane.b32.xlu1 %v6498_v51, %s4755_s30  ;;  %1866 = vmatprep.subr.bf16.mxu0 %v8237_v22  ;;  %v8247_v22 = vld [vmem:[#allocation23_spill] sm:$0xff] }
 0x272   : >> { %2127 = vrot.lane.b32.xlu0 %v8240_v61, %s4755_s30  ;;  %v6771_v41 = vsel %vm6760_vm0, %v2375_v14, %v2378_v19  ;;  %v6791_v56 = vsel %vm6760_vm0, %v2335_v42, %v2338_v20  ;;  %v2348_v29 = vrot.slane %v8247_v22, 6  ;;  %v6799_v14 = vcombine.high %v6775_v39, %v6775_v39  ;;  %v8250_v20 = vld [vmem:[#allocation40_spill] sm:$0xff] }
 0x273   : >> { %v1769_v32 = vpop.permute.xlu1 %1768  ;;  %1908 = vmatpush1.bf16.msra.mxu1 %v8241_v23  ;;  %v6803_v19 = vcombine.low %v6779_v57, %v6779_v57  ;;  %v6808_v28 = vcombine.high %v6791_v56, %v6791_v56  ;;  %v2361_v25 = vrot.slane %v8250_v20, 7  ;;  %v1756_v22 = vsel %vm450_vm13, %v6692_v53, %v6728_v60 }
 0x274   : >> { %v1767_v44 = vpop.permute.xlu0 %1766  ;;  %1867 = vmatpush1.bf16.msra.mxu0 %v8244_v16  ;;  %v2350_v33 = vor.u32 %v2349_v55, %v2348_v29  ;;  %v1850_v29 = vsel %vm488_vm6, %v6720_v27, %v1769_v32 }
 0x275   : >> { %2113 = vrot.lane.b32.xlu1 %v6465_v18, %s4754_s29  ;;  %v8245_v18 = vld [vmem:[#allocation29_spill] sm:$0xff]  ;;  %v1779_v23 = vsel %vm477_vm14, %v1765_v13, %v1767_v44  ;;  %v1780_v52 = vsel %vm477_vm14, %v1767_v44, %v1769_v32  ;;  %v1757_v44 = vsel %vm450_vm13, %v6728_v60, %v6720_v27  ;;  %v6843_v32 = vcombine.low %v6791_v56, %v6791_v56 }
 0x276   : >> { %2111 = vrot.lane.b32.xlu0 %v6432_v26, %s4754_s29  ;;  %v2356_v11 = vrot.slane %v8245_v18, 6  ;;  %v6787_v26 = vcombine.low %v6771_v41, %v6771_v41  ;;  %v1778_v18 = vsel %vm477_vm14, %v1763_v38, %v1765_v13  ;;  %v8252_v13 = vld [vmem:[#allocation36_spill] sm:$0xff] }
 0x277   : >> { %v1773_v43 = vpop.permute.xlu1 %1772  ;;  %v2353_v38 = vrot.slane %v8252_v13, 7 }
 0x278   : >> { %v1771_v63 = vpop.permute.xlu0 %1770  ;;  %v2358_v16 = vor.u32 %v2357_v47, %v2356_v11  ;;  %v8251_v47 = vld [vmem:[#allocation48_spill] sm:$0xff] }
 0x279   : >> { %2115 = vrot.lane.b32.xlu1 %v6455_v48, %s4754_s29  ;;  %v1781_v11 = vsel %vm477_vm14, %v1771_v63, %v1773_v43  ;;  %v1755_v63 = vsel %vm450_vm13, %v6695_v15, %v6692_v53  ;;  %v1846_v53 = vsel %vm488_vm6, %v1757_v44, %v1780_v52  ;;  %v6865_v52 = vcombine.high %v6779_v57, %v6779_v57 }
 0x27a   : >> { %2109 = vrot.lane.b32.xlu0 %v6435_v34, %s4754_s29  ;;  %v2360_v34 = vrot.slane %v8249_v7, 6  ;;  %v2352_v7 = vrot.slane %v8251_v47, 6  ;;  %v1838_v15 = vsel %vm488_vm6, %v1755_v63, %v1778_v18  ;;  %v1752_v18 = vsel %vm450_vm13, %v6659_v6, %v6651_v37  ;;  %v8254_v63 = vld [vmem:[#allocation49_spill] sm:$0xff] }
 0x27b   : >> { %v1777_v48 = vpop.permute.xlu1 %1776 }
 0x27c   : >> { %v1775_v4 = vpop.permute.xlu0 %1774  ;;  %1917 = vmatprep.subr.bf16.mxu1 %v1777_v48  ;;  %v2362_v27 = vor.u32 %v2361_v25, %v2360_v34 }
 0x27d   : >> { %2502 = vrot.lane.b32.xlu1 %v6787_v26, %s4753_s27  ;;  %v1782_v2 = vsel %vm477_vm14, %v1773_v43, %v1775_v4  ;;  %v1783_v42 = vsel %vm477_vm14, %v1775_v4, %v1777_v48  ;;  %v1842_v48 = vsel %vm488_vm6, %v1756_v22, %v1779_v23  ;;  %v6847_v22 = vcombine.low %v6775_v39, %v6775_v39 }
 0x27e   : >> { %2500 = vrot.lane.b32.xlu0 %v6799_v14, %s4753_s27  ;;  %1876 = vmatprep.subr.bf16.mxu0 %v1782_v2  ;;  %v2359_v23 = vrot.slane %v2358_v16, 4  ;;  %v1753_v4 = vsel %vm450_vm13, %v6651_v37, %v6677_v5  ;;  %v2351_v2 = vrot.slane %v2350_v33, 4  ;;  %v1754_v16 = vsel %vm450_vm13, %v6677_v5, %v6673_v10 }
 0x27f   : >> { %1918 = vmatpush2.bf16.msra.mxu1 %v1783_v42  ;;  %1877 = vmatpush2.bf16.msra.mxu0 %v1781_v11  ;;  %v6827_v55 = vpop.permute.xlu1 %1999  ;;  %v2354_v42 = vor.u32 %v2353_v38, %v2352_v7  ;;  %v6877_v7 = vcombine.high %v6771_v41, %v6771_v41  ;;  %v1730_v37 = vsel %vm423_vm4, %v6616_v58, %v6630_v8 }
 0x280   : >> { %1919 = vmatprep.subr.bf16.mxu1 %v1850_v29  ;;  %1878 = vmatprep.subr.bf16.mxu0 %v1842_v48  ;;  %v6831_v43 = vpop.permute.xlu0 %1997  ;;  %v2363_v34 = vsel %vm6760_vm0, %v2359_v23, %v2362_v27  ;;  %v1729_v33 = vsel %vm423_vm4, %v6619_v1, %v6616_v58 }
 0x281   : >> { %2520 = vrot.lane.b32.xlu1 %v6803_v19, %s4754_s29  ;;  %v2355_v6 = vsel %vm6760_vm0, %v2351_v2, %v2354_v42  ;;  %v6894_v5 = vcombine.low %v6779_v57, %v2363_v34  ;;  %v6914_v58 = vcombine.high %v6779_v57, %v2363_v34  ;;  %v6934_v57 = vcombine.low %v2363_v34, %v6771_v41 }
 0x282   : >> { %2518 = vrot.lane.b32.xlu0 %v6808_v28, %s4754_s29  ;;  %v6905_v29 = vcombine.high %v6791_v56, %v2355_v6  ;;  %v6919_v1 = vcombine.low %v6791_v56, %v2355_v6  ;;  %v6939_v56 = vcombine.high %v2355_v6, %v6775_v39  ;;  %v6950_v23 = vcombine.low %v2355_v6, %v6775_v39 }
 0x283   : >> { %1920 = vmatpush2.bf16.msra.mxu1 %v1846_v53  ;;  %1879 = vmatpush2.bf16.msra.mxu0 %v1838_v15  ;;  %v6853_v60 = vpop.permute.xlu1 %2003 }
 0x284   : >> { %1921 = vmatprep.subr.bf16.mxu1 %v6673_v10  ;;  %1880 = vmatprep.subr.bf16.mxu0 %v1753_v4  ;;  %v6859_v11 = vpop.permute.xlu0 %2001 }
 0x285   : >> { %2516 = vrot.lane.b32.xlu1 %v6843_v32, %s4754_s29 }
 0x286   : >> { %2498 = vrot.lane.b32.xlu0 %v6847_v22, %s4753_s27 }
 0x287   : >> { %1922 = vmatpush2.bf16.msra.mxu1 %v1754_v16  ;;  %1881 = vmatpush2.bf16.msra.mxu0 %v1752_v18  ;;  %v6881_v25 = vpop.permute.xlu1 %2007  ;;  %v6965_v18 = vcombine.high %v2363_v34, %v6771_v41 }
 0x288   : >> { %1923 = vmatprep.subr.bf16.mxu1 %v6628_v30  ;;  %1882 = vmatprep.subr.bf16.mxu0 %v1730_v37  ;;  %v6889_v10 = vpop.permute.xlu0 %2005  ;;  %v8253_v30 = vld [vmem:[#allocation17_spill] sm:$0xff] }
 0x289   : >> { %2522 = vrot.lane.b32.xlu1 %v6865_v52, %s4754_s29 }
 0x28a   : >> { %2504 = vrot.lane.b32.xlu0 %v6877_v7, %s4753_s27 }
 0x28b   : >> { %1924 = vmatpush2.bf16.msra.mxu1 %v1731_v40  ;;  %1883 = vmatpush2.bf16.msra.mxu0 %v1729_v33  ;;  %v6907_v48 = vpop.permute.xlu1 %2011 }
 0x28c   : >> { %v6909_v38 = vpop.permute.xlu0 %2009 }
 0x28d   : >> { %2494 = vrot.lane.b32.xlu1 %v6894_v5, %s4753_s27 }
 0x28e   : >> { %2492 = vrot.lane.b32.xlu0 %v6905_v29, %s4753_s27  ;;  %1885 = vmatmul.mubr.bf16.vlgmr.msra.gmra.mxu0 %v8253_v30 }
 0x28f   : >> { %v6922_v8 = vpop.permute.xlu1 %2025  ;;  %1926 = vmatmul.mubr.bf16.vlgmr.msra.gmra.mxu1 %v8253_v30  ;;  %4470 = vmatprep.mubr.msk.bf16.mxu0 %vm559_vm3, %v8254_v63 }
 0x290   : >> { %v6927_v44 = vpop.permute.xlu0 %2023  ;;  %4471 = vmatprep.mubr.msk.bf16.mxu1 %vm559_vm3, %v8254_v63 }
 0x291   : >> { %2496 = vrot.lane.b32.xlu1 %v6914_v58, %s4753_s27 }
 0x292   : >> { %2490 = vrot.lane.b32.xlu0 %v6919_v1, %s4753_s27 }
 0x293   : >> { %v6941_v53 = vpop.permute.xlu1 %2029 }
 0x294   : >> { %v6943_v15 = vpop.permute.xlu0 %2027 }
 0x295   : >> { %2476 = vrot.lane.b32.xlu1 %v6934_v57, %s4752_s26 }
 0x296   : >> { %2474 = vrot.lane.b32.xlu0 %v6939_v56, %s4752_s26 }
 0x297   : >> { %v6952_v27 = vpop.permute.xlu1 %2033 }
 0x298   : >> { %v6954_v4 = vpop.permute.xlu0 %2031 }
 0x299   : >> { %2448 = vrot.lane.b32.xlu1 %v6799_v14, %s4751_s25 }
 0x29a   : >> { %2472 = vrot.lane.b32.xlu0 %v6950_v23, %s4752_s26 }
 0x29b   : >> { %v2086_v2 = vpop.permute.xlu1 %2085 }
 0x29c   : >> { %v6960_v42 = vpop.permute.xlu0 %2035 }
 0x29d   : >> { %2466 = vrot.lane.b32.xlu1 %v6808_v28, %s4752_s26 }
 0x29e   : >> { %2450 = vrot.lane.b32.xlu0 %v6787_v26, %s4751_s25 }
 0x29f   : >> { %v2104_v39 = vpop.permute.xlu1 %2103 }
 0x2a0   : >> { %v2088_v16 = vpop.permute.xlu0 %2087 }
 0x2a1   : >> { %2478 = vrot.lane.b32.xlu1 %v6965_v18, %s4752_s26  ;;  %v2095_v33 = vsel %vm396_vm5, %v2086_v2, %v2088_v16 }
 0x2a2   : >> { %2468 = vrot.lane.b32.xlu0 %v6803_v19, %s4752_s26 }
 0x2a3   : >> { %v2084_v37 = vpop.permute.xlu1 %2083 }
 0x2a4   : >> { %v2106_v6 = vpop.permute.xlu0 %2105  ;;  %v2094_v20 = vsel %vm396_vm5, %v2084_v37, %v2086_v2 }
 0x2a5   : >> { %v2118_v40 = vsel %vm423_vm4, %v2104_v39, %v2106_v6  ;;  %2464 = vrot.lane.b32.xlu1 %v6843_v32, %s4752_s26 }
 0x2a6   : >> { %2446 = vrot.lane.b32.xlu0 %v6847_v22, %s4751_s25  ;;  %v2217_v41 = vsel %vm488_vm6, %v2095_v33, %v2118_v40 }
 0x2a7   : >> { %2243 = vmatprep.subr.bf16.mxu0 %v2217_v41  ;;  %v2090_v34 = vpop.permute.xlu1 %2089 }
 0x2a8   : >> { %v2102_v13 = vpop.permute.xlu0 %2101  ;;  %v2096_v33 = vsel %vm396_vm5, %v2088_v16, %v2090_v34 }
 0x2a9   : >> { %v2117_v47 = vsel %vm423_vm4, %v2102_v13, %v2104_v39  ;;  %2470 = vrot.lane.b32.xlu1 %v6865_v52, %s4752_s26 }
 0x2aa   : >> { %2452 = vrot.lane.b32.xlu0 %v6877_v7, %s4751_s25  ;;  %v2213_v17 = vsel %vm488_vm6, %v2094_v20, %v2117_v47 }
 0x2ab   : >> { %2244 = vmatpush1.bf16.msra.mxu0 %v2213_v17  ;;  %v2078_v46 = vpop.permute.xlu1 %2077 }
 0x2ac   : >> { %v2108_v59 = vpop.permute.xlu0 %2107 }
 0x2ad   : >> { %v2119_v40 = vsel %vm423_vm4, %v2106_v6, %v2108_v59  ;;  %2442 = vrot.lane.b32.xlu1 %v6894_v5, %s4751_s25  ;;  %v2225_v13 = vsel %vm488_vm6, %v2090_v34, %v2108_v59 }
 0x2ae   : >> { %2440 = vrot.lane.b32.xlu0 %v6905_v29, %s4751_s25  ;;  %2284 = vmatprep.subr.bf16.mxu1 %v2225_v13  ;;  %v2221_v2 = vsel %vm488_vm6, %v2096_v33, %v2119_v40  ;;  %v2043_v13 = vsel %vm342_vm8, %v6952_v27, %v6960_v42 }
 0x2af   : >> { %2285 = vmatpush1.bf16.msra.mxu1 %v2221_v2  ;;  %v2076_v20 = vpop.permute.xlu1 %2075 }
 0x2b0   : >> { %v2091_v17 = vsel %vm396_vm5, %v2076_v20, %v2078_v46  ;;  %v2080_v47 = vpop.permute.xlu0 %2079 }
 0x2b1   : >> { %2444 = vrot.lane.b32.xlu1 %v6914_v58, %s4751_s25  ;;  %v2092_v39 = vsel %vm396_vm5, %v2078_v46, %v2080_v47 }
 0x2b2   : >> { %2438 = vrot.lane.b32.xlu0 %v6919_v1, %s4751_s25  ;;  %2245 = vmatprep.subr.bf16.mxu0 %v2092_v39 }
 0x2b3   : >> { %2246 = vmatpush1.bf16.msra.mxu0 %v2091_v17  ;;  %v2060_v59 = vpop.permute.xlu1 %2059 }
 0x2b4   : >> { %v2082_v16 = vpop.permute.xlu0 %2081 }
 0x2b5   : >> { %2286 = vmatprep.subr.bf16.mxu1 %v2082_v16  ;;  %2424 = vrot.lane.b32.xlu1 %v6934_v57, %s4750_s24  ;;  %v2093_v37 = vsel %vm396_vm5, %v2080_v47, %v2082_v16  ;;  %v2042_v47 = vsel %vm342_vm8, %v6954_v4, %v6952_v27  ;;  %v2040_v27 = vsel %vm342_vm8, %v6922_v8, %v6943_v15 }
 0x2b6   : >> { %2422 = vrot.lane.b32.xlu0 %v6939_v56, %s4750_s24  ;;  %2287 = vmatpush1.bf16.msra.mxu1 %v2093_v37 }
 0x2b7   : >> { %v2058_v6 = vpop.permute.xlu1 %2057 }
 0x2b8   : >> { %v2068_v46 = vsel %vm369_vm7, %v2058_v6, %v2060_v59  ;;  %v2062_v41 = vpop.permute.xlu0 %2061 }
 0x2b9   : >> { %2414 = vrot.lane.b32.xlu1 %v6808_v28, %s4750_s24  ;;  %v2069_v34 = vsel %vm369_vm7, %v2060_v59, %v2062_v41 }
 0x2ba   : >> { %2420 = vrot.lane.b32.xlu0 %v6950_v23, %s4750_s24  ;;  %2247 = vmatprep.subr.bf16.mxu0 %v2069_v34 }
 0x2bb   : >> { %2248 = vmatpush1.bf16.msra.mxu0 %v2068_v46  ;;  %v2054_v33 = vpop.permute.xlu1 %2053 }
 0x2bc   : >> { %v2052_v40 = vpop.permute.xlu0 %2051 }
 0x2bd   : >> { %v2066_v2 = vsel %vm369_vm7, %v2052_v40, %v2054_v33  ;;  %2426 = vrot.lane.b32.xlu1 %v6965_v18, %s4750_s24 }
 0x2be   : >> { %2416 = vrot.lane.b32.xlu0 %v6803_v19, %s4750_s24  ;;  %v2201_v20 = vsel %vm488_vm6, %v2043_v13, %v2066_v2  ;;  %v2014_v2 = vsel %vm315_vm9, %v6827_v55, %v6859_v11 }
 0x2bf   : >> { %2249 = vmatprep.subr.bf16.mxu0 %v2201_v20  ;;  %v2050_v17 = vpop.permute.xlu1 %2049  ;;  %v2041_v20 = vsel %vm342_vm8, %v6943_v15, %v6941_v53 }
 0x2c0   : >> { %v2065_v39 = vsel %vm369_vm7, %v2050_v17, %v2052_v40  ;;  %v2064_v59 = vpop.permute.xlu0 %2063  ;;  %v2039_v40 = vsel %vm342_vm8, %v6927_v44, %v6922_v8  ;;  %v2016_v44 = vsel %vm315_vm9, %v6889_v10, %v6881_v25  ;;  %v2013_v17 = vsel %vm315_vm9, %v6831_v43, %v6827_v55 }
 0x2c1   : >> { %2288 = vmatprep.subr.bf16.mxu1 %v2064_v59  ;;  %2418 = vrot.lane.b32.xlu1 %v6865_v52, %s4750_s24  ;;  %v2070_v16 = vsel %vm369_vm7, %v2062_v41, %v2064_v59  ;;  %v2197_v37 = vsel %vm488_vm6, %v2042_v47, %v2065_v39  ;;  %v2185_v39 = vsel %vm488_vm6, %v6519_v49, %v2014_v2 }
 0x2c2   : >> { %2412 = vrot.lane.b32.xlu0 %v6843_v32, %s4750_s24  ;;  %2289 = vmatpush1.bf16.msra.mxu1 %v2070_v16  ;;  %v2181_v10 = vsel %vm488_vm6, %v6525_v31, %v2013_v17  ;;  %v2018_v55 = vsel %vm315_vm9, %v6909_v38, %v6907_v48  ;;  %v2015_v49 = vsel %vm315_vm9, %v6859_v11, %v6853_v60 }
 0x2c3   : >> { %2250 = vmatpush1.bf16.msra.mxu0 %v2197_v37  ;;  %v2056_v6 = vpop.permute.xlu1 %2055  ;;  %v2189_v31 = vsel %vm488_vm6, %v6535_v12, %v2015_v49 }
 0x2c4   : >> { %v2067_v4 = vsel %vm369_vm7, %v2054_v33, %v2056_v6  ;;  %2251 = vmatprep.subr.bf16.mxu0 %v2040_v27  ;;  %v2038_v46 = vpop.permute.xlu0 %2037 }
 0x2c5   : >> { %v2044_v34 = vsel %vm342_vm8, %v6960_v42, %v2038_v46  ;;  %2580 = vrot.lane.b32.xlu1 %v6934_v57, %s4756_s4  ;;  %v2209_v41 = vsel %vm488_vm6, %v2038_v46, %v2056_v6  ;;  %v2017_v42 = vsel %vm315_vm9, %v6881_v25, %v6909_v38 }
 0x2c6   : >> { %2578 = vrot.lane.b32.xlu0 %v6939_v56, %s4756_s4  ;;  %2290 = vmatprep.subr.bf16.mxu1 %v2209_v41  ;;  %v2205_v33 = vsel %vm488_vm6, %v2044_v34, %v2067_v4  ;;  %v8255_v41 = vld [vmem:[#allocation15_spill] sm:$0xff] }
 0x2c7   : >> { %2252 = vmatpush1.bf16.msra.mxu0 %v2039_v40  ;;  %2291 = vmatpush1.bf16.msra.mxu1 %v2205_v33  ;;  %v2166_v13 = vpop.permute.xlu1 %2165  ;;  %v4495_v40 = vrot.slane %v8255_v41, 11  ;;  %v8256_v33 = vld [vmem:[#allocation39_spill] sm:$0xff] }
 0x2c8   : >> { %2253 = vmatprep.subr.bf16.mxu0 %v2017_v42  ;;  %2292 = vmatprep.subr.bf16.mxu1 %v6941_v53  ;;  %v2164_v8 = vpop.permute.xlu0 %2163 }
 0x2c9   : >> { %2552 = vrot.lane.b32.xlu1 %v6799_v14, %s4755_s30 }
 0x2ca   : >> { %2576 = vrot.lane.b32.xlu0 %v6950_v23, %s4756_s4 }
 0x2cb   : >> { %2254 = vmatpush1.bf16.msra.mxu0 %v2016_v44  ;;  %2293 = vmatpush1.bf16.msra.mxu1 %v2041_v20  ;;  %v2138_v47 = vpop.permute.xlu1 %2137  ;;  %v8260_v20 = vld [vmem:[#allocation33_spill] sm:$0xff] }
 0x2cc   : >> { %2255 = vmatprep.subr.bf16.mxu0 %v2185_v39  ;;  %2294 = vmatprep.subr.bf16.mxu1 %v6907_v48  ;;  %v2162_v25 = vpop.permute.xlu0 %2161  ;;  %v2173_v48 = vsel %vm477_vm14, %v2164_v8, %v2166_v13  ;;  %v2765_v17 = vrot.slane %v8260_v20, 7 }
 0x2cd   : >> { %2570 = vrot.lane.b32.xlu1 %v6808_v28, %s4756_s4  ;;  %v2193_v28 = vsel %vm488_vm6, %v6559_v45, %v6853_v60 }
 0x2ce   : >> { %2554 = vrot.lane.b32.xlu0 %v6787_v26, %s4755_s30 }
 0x2cf   : >> { %2256 = vmatpush1.bf16.msra.mxu0 %v2181_v10  ;;  %2295 = vmatpush1.bf16.msra.mxu1 %v2018_v55  ;;  %v2156_v43 = vpop.permute.xlu1 %2155  ;;  %v8261_v55 = vld [vmem:[#allocation10_spill] sm:$0xff] }
 0x2d0   : >> { %2296 = vmatprep.subr.bf16.mxu1 %v2193_v28  ;;  %v2140_v53 = vpop.permute.xlu0 %2139  ;;  %2257 = vmatprep.subr.bf16.mxu0 %v6478_v50  ;;  %v4491_v49 = vrot.slane %v8261_v55, 11 }
 0x2d1   : >> { %2582 = vrot.lane.b32.xlu1 %v6965_v18, %s4756_s4  ;;  %v2147_v50 = vsel %vm450_vm13, %v2138_v47, %v2140_v53 }
 0x2d2   : >> { %2572 = vrot.lane.b32.xlu0 %v6803_v19, %s4756_s4  ;;  %v2172_v19 = vsel %vm477_vm14, %v2162_v25, %v2164_v8  ;;  %v8259_v8 = vld [vmem:[#allocation13_spill] sm:$0xff] }
 0x2d3   : >> { %2258 = vmatpush1.bf16.msra.mxu0 %v8240_v61  ;;  %2297 = vmatpush1.bf16.msra.mxu1 %v2189_v31  ;;  %v2168_v11 = vpop.permute.xlu1 %2167  ;;  %v4494_v44 = vrot.slane %v8259_v8, 11 }
 0x2d4   : >> { %2267 = vmatprep.subr.bf16.mxu0 %v2173_v48  ;;  %v2158_v45 = vpop.permute.xlu0 %2157  ;;  %2298 = vmatprep.subr.bf16.mxu1 %v6498_v51  ;;  %v2174_v59 = vsel %vm477_vm14, %v2166_v13, %v2168_v11  ;;  %v2769_v13 = vrot.slane %v8256_v33, 7  ;;  %v8264_v48 = vld [vmem:[#allocation21_spill] sm:$0xff] }
 0x2d5   : >> { %v2170_v60 = vsel %vm477_vm14, %v2156_v43, %v2158_v45  ;;  %2568 = vrot.lane.b32.xlu1 %v6843_v32, %s4756_s4  ;;  %v7147_v31 = vsel %vm7127_vm10, %v4494_v44, %v2765_v17 }
 0x2d6   : >> { %2550 = vrot.lane.b32.xlu0 %v6847_v22, %s4755_s30  ;;  %v2233_v12 = vsel %vm488_vm6, %v2147_v50, %v2170_v60  ;;  %v7141_v10 = vsel %vm7127_vm10, %v4495_v40, %v2769_v13  ;;  %v8268_v40 = vld [vmem:[#allocation30_spill] sm:$0xff] }
 0x2d7   : >> { %2268 = vmatpush2.bf16.msra.mxu0 %v2172_v19  ;;  %2299 = vmatpush1.bf16.msra.mxu1 %v6503_v35  ;;  %v2154_v61 = vpop.permute.xlu1 %2153  ;;  %v7156_v60 = vcombine.low %v7141_v10, %v7141_v10  ;;  %v7162_v19 = vcombine.high %v7147_v31, %v7147_v31  ;;  %v2757_v33 = vrot.slane %v8268_v40, 7  ;;  %v7209_v17 = vcombine.high %v7141_v10, %v7141_v10 }
 0x2d8   : >> { %v2169_v51 = vsel %vm477_vm14, %v2154_v61, %v2156_v43  ;;  %2269 = vmatprep.subr.bf16.mxu0 %v2233_v12  ;;  %2308 = vmatprep.subr.bf16.mxu1 %v2168_v11  ;;  %v2136_v38 = vpop.permute.xlu0 %2135  ;;  %v8262_v43 = vld [vmem:[#allocation24_spill] sm:$0xff]  ;;  %v8263_v11 = vld [vmem:[#allocation11_spill] sm:$0xff] }
 0x2d9   : >> { %v2146_v15 = vsel %vm450_vm13, %v2136_v38, %v2138_v47  ;;  %2574 = vrot.lane.b32.xlu1 %v6865_v52, %s4756_s4  ;;  %v2753_v28 = vrot.slane %v8262_v43, 7 }
 0x2da   : >> { %2556 = vrot.lane.b32.xlu0 %v6877_v7, %s4755_s30  ;;  %v2229_v32 = vsel %vm488_vm6, %v2146_v15, %v2169_v51 }
 0x2db   : >> { %2270 = vmatpush2.bf16.msra.mxu0 %v2229_v32  ;;  %2309 = vmatpush2.bf16.msra.mxu1 %v2174_v59  ;;  %v2160_v35 = vpop.permute.xlu1 %2159  ;;  %v2754_v12 = vsel %vm7127_vm10, %v4491_v49, %v2753_v28 }
 0x2dc   : >> { %v2171_v16 = vsel %vm477_vm14, %v2158_v45, %v2160_v35  ;;  %v2142_v37 = vpop.permute.xlu0 %2141  ;;  %v2749_v45 = vrot.slane %v8264_v48, 7  ;;  %v7202_v44 = vcombine.high %v2754_v12, %v2754_v12 }
 0x2dd   : >> { %v2148_v6 = vsel %vm450_vm13, %v2140_v53, %v2142_v37  ;;  %2546 = vrot.lane.b32.xlu1 %v6894_v5, %s4755_s30  ;;  %v2241_v52 = vsel %vm488_vm6, %v2142_v37, %v2160_v35  ;;  %v7188_v37 = vcombine.low %v7147_v31, %v7147_v31 }
 0x2de   : >> { %2544 = vrot.lane.b32.xlu0 %v6905_v29, %s4755_s30  ;;  %2310 = vmatprep.subr.bf16.mxu1 %v2241_v52  ;;  %v2237_v27 = vsel %vm488_vm6, %v2148_v6, %v2171_v16  ;;  %v8265_v6 = vld [vmem:[#allocation14_spill] sm:$0xff] }
 0x2df   : >> { %2311 = vmatpush2.bf16.msra.mxu1 %v2237_v27  ;;  %v2132_v4 = vpop.permute.xlu1 %2131  ;;  %v4493_v52 = vrot.slane %v8265_v6, 11  ;;  %v8266_v27 = vld [vmem:[#allocation38_spill] sm:$0xff] }
 0x2e0   : >> { %v2130_v46 = vpop.permute.xlu0 %2129 }
 0x2e1   : >> { %2548 = vrot.lane.b32.xlu1 %v6914_v58, %s4755_s30  ;;  %v2144_v34 = vsel %vm450_vm13, %v2130_v46, %v2132_v4 }
 0x2e2   : >> { %2542 = vrot.lane.b32.xlu0 %v6919_v1, %s4755_s30  ;;  %2271 = vmatprep.subr.bf16.mxu0 %v2144_v34  ;;  %v8267_v34 = vld [vmem:[#allocation12_spill] sm:$0xff] }
 0x2e3   : >> { %v2134_v42 = vpop.permute.xlu1 %2133  ;;  %v4492_v41 = vrot.slane %v8267_v34, 11 }
 0x2e4   : >> { %v2128_v47 = vpop.permute.xlu0 %2127  ;;  %2312 = vmatprep.subr.bf16.mxu1 %v2134_v42  ;;  %v2145_v39 = vsel %vm450_vm13, %v2132_v4, %v2134_v42  ;;  %v2761_v4 = vrot.slane %v8266_v27, 7 }
 0x2e5   : >> { %v2143_v25 = vsel %vm450_vm13, %v2128_v47, %v2130_v46  ;;  %2528 = vrot.lane.b32.xlu1 %v6934_v57, %s4754_s29  ;;  %2313 = vmatpush2.bf16.msra.mxu1 %v2145_v39  ;;  %v4490_v57 = vrot.slane %v8263_v11, 11 }
 0x2e6   : >> { %2526 = vrot.lane.b32.xlu0 %v6939_v56, %s4754_s29  ;;  %2272 = vmatpush2.bf16.msra.mxu0 %v2143_v25  ;;  %v2762_v47 = vsel %vm7127_vm10, %v4493_v52, %v2761_v4  ;;  %v2758_v25 = vsel %vm7127_vm10, %v4492_v41, %v2757_v33 }
 0x2e7   : >> { %v2114_v53 = vpop.permute.xlu1 %2113  ;;  %v7219_v28 = vcombine.low %v2754_v12, %v2762_v47  ;;  %v7256_v4 = vcombine.low %v2758_v25, %v7147_v31 }
 0x2e8   : >> { %v2112_v50 = vpop.permute.xlu0 %2111 }
 0x2e9   : >> { %2530 = vrot.lane.b32.xlu1 %v6965_v18, %s4754_s29  ;;  %v2121_v56 = vsel %vm423_vm4, %v2112_v50, %v2114_v53  ;;  %v2750_v18 = vsel %vm7127_vm10, %v4490_v57, %v2749_v45 }
 0x2ea   : >> { %2524 = vrot.lane.b32.xlu0 %v6950_v23, %s4754_s29  ;;  %2273 = vmatprep.subr.bf16.mxu0 %v2121_v56  ;;  %v7172_v23 = vcombine.low %v2754_v12, %v2754_v12  ;;  %v7176_v32 = vcombine.high %v2750_v18, %v2750_v18  ;;  %v7181_v16 = vcombine.low %v2750_v18, %v2750_v18 }
 0x2eb   : >> { %v2116_v61 = vpop.permute.xlu1 %2115  ;;  %v7224_v11 = vcombine.high %v2750_v18, %v2758_v25  ;;  %v7231_v56 = vcombine.high %v2754_v12, %v2762_v47  ;;  %v7247_v12 = vcombine.high %v2758_v25, %v7147_v31  ;;  %v7267_v31 = vcombine.high %v2762_v47, %v7141_v10 }
 0x2ec   : >> { %v2110_v51 = vpop.permute.xlu0 %2109  ;;  %2314 = vmatprep.subr.bf16.mxu1 %v2116_v61  ;;  %v2122_v38 = vsel %vm423_vm4, %v2114_v53, %v2116_v61 }
 0x2ed   : >> { %v2120_v15 = vsel %vm423_vm4, %v2110_v51, %v2112_v50  ;;  %2893 = vrot.lane.b32.xlu1 %v7156_v60, %s4753_s27  ;;  %2315 = vmatpush2.bf16.msra.mxu1 %v2122_v38  ;;  %v7236_v51 = vcombine.low %v2750_v18, %v2758_v25 }
 0x2ee   : >> { %2891 = vrot.lane.b32.xlu0 %v7162_v19, %s4753_s27  ;;  %2274 = vmatpush2.bf16.msra.mxu0 %v2120_v15 }
 0x2ef   : >> { %v2503_v59 = vpop.permute.xlu1 %2502 }
 0x2f0   : >> { %v2501_v35 = vpop.permute.xlu0 %2500  ;;  %2317 = vmatmul.mubr.bf16.vlgmr.msra.gmra.mxu1 %v8253_v30 }
 0x2f1   : >> { %2911 = vrot.lane.b32.xlu1 %v7172_v23, %s4754_s29  ;;  %2276 = vmatmul.mubr.bf16.vlgmr.msra.gmra.mxu0 %v8253_v30  ;;  %v2510_v42 = vsel %vm396_vm5, %v2501_v35, %v2503_v59 }
 0x2f2   : >> { %2909 = vrot.lane.b32.xlu0 %v7176_v32, %s4754_s29  ;;  %4488 = vmatprep.mubr.msk.bf16.mxu0 %vm559_vm3, %v8254_v63 }
 0x2f3   : >> { %v2521_v46 = vpop.permute.xlu1 %2520  ;;  %4489 = vmatprep.mubr.msk.bf16.mxu1 %vm559_vm3, %v8254_v63 }
 0x2f4   : >> { %v2519_v13 = vpop.permute.xlu0 %2518 }
 0x2f5   : >> { %v2533_v8 = vsel %vm423_vm4, %v2519_v13, %v2521_v46  ;;  %2907 = vrot.lane.b32.xlu1 %v7181_v16, %s4754_s29 }
 0x2f6   : >> { %2889 = vrot.lane.b32.xlu0 %v7188_v37, %s4753_s27  ;;  %v2632_v20 = vsel %vm488_vm6, %v2510_v42, %v2533_v8 }
 0x2f7   : >> { %2658 = vmatprep.subr.bf16.mxu0 %v2632_v20  ;;  %v2517_v39 = vpop.permute.xlu1 %2516 }
 0x2f8   : >> { %v2532_v55 = vsel %vm423_vm4, %v2517_v39, %v2519_v13  ;;  %v2499_v49 = vpop.permute.xlu0 %2498 }
 0x2f9   : >> { %v2509_v43 = vsel %vm396_vm5, %v2499_v49, %v2501_v35  ;;  %2913 = vrot.lane.b32.xlu1 %v7202_v44, %s4754_s29  ;;  %v7242_v35 = vcombine.low %v2762_v47, %v7141_v10 }
 0x2fa   : >> { %2895 = vrot.lane.b32.xlu0 %v7209_v17, %s4753_s27  ;;  %v2628_v53 = vsel %vm488_vm6, %v2509_v43, %v2532_v55  ;;  %v597_v55 = vpop.f32.mrf.mxu0 }
 0x2fb   : >> { %2659 = vmatpush1.bf16.msra.mxu0 %v2628_v53  ;;  %v2523_v2 = vpop.permute.xlu1 %2522 }
 0x2fc   : >> { %v2534_v57 = vsel %vm423_vm4, %v2521_v46, %v2523_v2  ;;  %v2505_v48 = vpop.permute.xlu0 %2504  ;;  %v599_v53 = vpop.f32.mrf.mxu0 }
 0x2fd   : >> { %v2511_v45 = vsel %vm396_vm5, %v2503_v59, %v2505_v48  ;;  %2885 = vrot.lane.b32.xlu1 %v7219_v28, %s4753_s27  ;;  %v2640_v50 = vsel %vm488_vm6, %v2505_v48, %v2523_v2 }
 0x2fe   : >> { %2883 = vrot.lane.b32.xlu0 %v7224_v11, %s4753_s27  ;;  %2699 = vmatprep.subr.bf16.mxu1 %v2640_v50  ;;  %v2636_v61 = vsel %vm488_vm6, %v2511_v45, %v2534_v57  ;;  %v601_v45 = vpop.f32.mrf.mxu0 }
 0x2ff   : >> { %2700 = vmatpush1.bf16.msra.mxu1 %v2636_v61  ;;  %v2495_v38 = vpop.permute.xlu1 %2494 }
 0x300   : >> { %v2493_v15 = vpop.permute.xlu0 %2492 }
 0x301   : >> { %2887 = vrot.lane.b32.xlu1 %v7231_v56, %s4753_s27  ;;  %v2507_v59 = vsel %vm396_vm5, %v2493_v15, %v2495_v38 }
 0x302   : >> { %2881 = vrot.lane.b32.xlu0 %v7236_v51, %s4753_s27  ;;  %2660 = vmatprep.subr.bf16.mxu0 %v2507_v59 }
 0x303   : >> { %v2497_v18 = vpop.permute.xlu1 %2496 }
 0x304   : >> { %v2491_v6 = vpop.permute.xlu0 %2490  ;;  %2701 = vmatprep.subr.bf16.mxu1 %v2497_v18  ;;  %v2508_v52 = vsel %vm396_vm5, %v2495_v38, %v2497_v18  ;;  %v602_v38 = vpop.f32.mrf.mxu0 }
 0x305   : >> { %v2506_v27 = vsel %vm396_vm5, %v2491_v6, %v2493_v15  ;;  %2867 = vrot.lane.b32.xlu1 %v7242_v35, %s4752_s26  ;;  %2702 = vmatpush1.bf16.msra.mxu1 %v2508_v52 }
 0x306   : >> { %2865 = vrot.lane.b32.xlu0 %v7247_v12, %s4752_s26  ;;  %2661 = vmatpush1.bf16.msra.mxu0 %v2506_v27  ;;  %v1068_v52 = vpop.f32.mrf.mxu0 }
 0x307   : >> { %v2477_v46 = vpop.permute.xlu1 %2476 }
 0x308   : >> { %v2475_v34 = vpop.permute.xlu0 %2474 }
 0x309   : >> { %2839 = vrot.lane.b32.xlu1 %v7162_v19, %s4751_s25  ;;  %v2484_v41 = vsel %vm369_vm7, %v2475_v34, %v2477_v46 }
 0x30a   : >> { %2863 = vrot.lane.b32.xlu0 %v7256_v4, %s4752_s26  ;;  %2662 = vmatprep.subr.bf16.mxu0 %v2484_v41 }
 0x30b   : >> { %v2449_v40 = vpop.permute.xlu1 %2448 }
 0x30c   : >> { %v2473_v33 = vpop.permute.xlu0 %2472 }
 0x30d   : >> { %v2483_v13 = vsel %vm369_vm7, %v2473_v33, %v2475_v34  ;;  %2857 = vrot.lane.b32.xlu1 %v7176_v32, %s4752_s26 }
 0x30e   : >> { %2841 = vrot.lane.b32.xlu0 %v7156_v60, %s4751_s25  ;;  %2663 = vmatpush1.bf16.msra.mxu0 %v2483_v13 }
 0x30f   : >> { %v2467_v42 = vpop.permute.xlu1 %2466 }
 0x310   : >> { %v2451_v8 = vpop.permute.xlu0 %2450 }
 0x311   : >> { %2869 = vrot.lane.b32.xlu1 %v7267_v31, %s4752_s26  ;;  %v2458_v10 = vsel %vm342_vm8, %v2449_v40, %v2451_v8 }
 0x312   : >> { %2859 = vrot.lane.b32.xlu0 %v7172_v23, %s4752_s26 }
 0x313   : >> { %v2479_v20 = vpop.permute.xlu1 %2478 }
 0x314   : >> { %v2469_v39 = vpop.permute.xlu0 %2468  ;;  %2703 = vmatprep.subr.bf16.mxu1 %v2479_v20  ;;  %v2485_v25 = vsel %vm369_vm7, %v2477_v46, %v2479_v20  ;;  %v1116_v46 = vmax.f32 %v597_v55, %v1068_v52 }
 0x315   : >> { %v2481_v47 = vsel %vm369_vm7, %v2467_v42, %v2469_v39  ;;  %2855 = vrot.lane.b32.xlu1 %v7181_v16, %s4752_s26  ;;  %2704 = vmatpush1.bf16.msra.mxu1 %v2485_v25 }
 0x316   : >> { %2837 = vrot.lane.b32.xlu0 %v7188_v37, %s4751_s25  ;;  %v2616_v49 = vsel %vm488_vm6, %v2458_v10, %v2481_v47 }
 0x317   : >> { %2664 = vmatprep.subr.bf16.mxu0 %v2616_v49  ;;  %v2465_v43 = vpop.permute.xlu1 %2464 }
 0x318   : >> { %v2480_v2 = vsel %vm369_vm7, %v2465_v43, %v2467_v42  ;;  %v2447_v57 = vpop.permute.xlu0 %2446 }
 0x319   : >> { %v2457_v48 = vsel %vm342_vm8, %v2447_v57, %v2449_v40  ;;  %2861 = vrot.lane.b32.xlu1 %v7202_v44, %s4752_s26  ;;  %v1070_v40 = vpop.f32.mrf.mxu0 }
 0x31a   : >> { %2843 = vrot.lane.b32.xlu0 %v7209_v17, %s4751_s25  ;;  %v2612_v50 = vsel %vm488_vm6, %v2457_v48, %v2480_v2  ;;  %v1117_v13 = vmax.f32 %v599_v53, %v1070_v40 }
 0x31b   : >> { %2665 = vmatpush1.bf16.msra.mxu0 %v2612_v50  ;;  %v2471_v61 = vpop.permute.xlu1 %2470  ;;  %v1072_v42 = vpop.f32.mrf.mxu0 }
 0x31c   : >> { %v2482_v15 = vsel %vm369_vm7, %v2469_v39, %v2471_v61  ;;  %v2453_v59 = vpop.permute.xlu0 %2452 }
 0x31d   : >> { %v2459_v18 = vsel %vm342_vm8, %v2451_v8, %v2453_v59  ;;  %2833 = vrot.lane.b32.xlu1 %v7219_v28, %s4751_s25  ;;  %v2624_v6 = vsel %vm488_vm6, %v2453_v59, %v2471_v61  ;;  %v1073_v25 = vpop.f32.mrf.mxu0 }
 0x31e   : >> { %2831 = vrot.lane.b32.xlu0 %v7224_v11, %s4751_s25  ;;  %2705 = vmatprep.subr.bf16.mxu1 %v2624_v6  ;;  %v2620_v27 = vsel %vm488_vm6, %v2459_v18, %v2482_v15 }
 0x31f   : >> { %2706 = vmatpush1.bf16.msra.mxu1 %v2620_v27  ;;  %v2443_v34 = vpop.permute.xlu1 %2442  ;;  %v1459_v47 = vpop.f32.mrf.mxu0 }
 0x320   : >> { %v2441_v41 = vpop.permute.xlu0 %2440  ;;  %v7309_v49 = vmax.f32 %v1116_v46, %v1459_v47 }
 0x321   : >> { %2835 = vrot.lane.b32.xlu1 %v7231_v56, %s4751_s25  ;;  %v2455_v33 = vsel %vm342_vm8, %v2441_v41, %v2443_v34  ;;  %v1461_v53 = vpop.f32.mrf.mxu0 }
 0x322   : >> { %2829 = vrot.lane.b32.xlu0 %v7236_v51, %s4751_s25  ;;  %2666 = vmatprep.subr.bf16.mxu0 %v2455_v33  ;;  %v7314_v57 = vmax.f32 %v1117_v13, %v1461_v53 }
 0x323   : >> { %v2445_v8 = vpop.permute.xlu1 %2444  ;;  %v1463_v48 = vpop.f32.mrf.mxu0 }
 0x324   : >> { %v2439_v20 = vpop.permute.xlu0 %2438  ;;  %2707 = vmatprep.subr.bf16.mxu1 %v2445_v8  ;;  %v2456_v39 = vsel %vm342_vm8, %v2443_v34, %v2445_v8 }
 0x325   : >> { %v2454_v10 = vsel %vm342_vm8, %v2439_v20, %v2441_v41  ;;  %2815 = vrot.lane.b32.xlu1 %v7242_v35, %s4750_s24  ;;  %2708 = vmatpush1.bf16.msra.mxu1 %v2456_v39  ;;  %v1464_v61 = vpop.f32.mrf.mxu0 }
 0x326   : >> { %2813 = vrot.lane.b32.xlu0 %v7247_v12, %s4750_s24  ;;  %2667 = vmatpush1.bf16.msra.mxu0 %v2454_v10 }
 0x327   : >> { %v2425_v55 = vpop.permute.xlu1 %2424 }
 0x328   : >> { %v2423_v43 = vpop.permute.xlu0 %2422 }
 0x329   : >> { %2805 = vrot.lane.b32.xlu1 %v7176_v32, %s4750_s24  ;;  %v2432_v2 = vsel %vm315_vm9, %v2423_v43, %v2425_v55 }
 0x32a   : >> { %2811 = vrot.lane.b32.xlu0 %v7256_v4, %s4750_s24  ;;  %2668 = vmatprep.subr.bf16.mxu0 %v2432_v2 }
 0x32b   : >> { %v2415_v45 = vpop.permute.xlu1 %2414 }
 0x32c   : >> { %v2421_v50 = vpop.permute.xlu0 %2420 }
 0x32d   : >> { %v2431_v38 = vsel %vm315_vm9, %v2421_v50, %v2423_v43  ;;  %2817 = vrot.lane.b32.xlu1 %v7267_v31, %s4750_s24  ;;  %v3165_v50 = vrot.slane %v8231_v24, 7 }
 0x32e   : >> { %2807 = vrot.lane.b32.xlu0 %v7172_v23, %s4750_s24  ;;  %2669 = vmatpush1.bf16.msra.mxu0 %v2431_v38 }
 0x32f   : >> { %v2427_v15 = vpop.permute.xlu1 %2426 }
 0x330   : >> { %v2417_v59 = vpop.permute.xlu0 %2416  ;;  %2709 = vmatprep.subr.bf16.mxu1 %v2427_v15  ;;  %v2433_v18 = vsel %vm315_vm9, %v2425_v55, %v2427_v15  ;;  %v3160_v15 = vrot.slane %v8233_v3, 7  ;;  %v4519_v3 = vrot.slane %v8223_v0, 11 }
 0x331   : >> { %v2429_v6 = vsel %vm315_vm9, %v2415_v45, %v2417_v59  ;;  %2809 = vrot.lane.b32.xlu1 %v7202_v44, %s4750_s24  ;;  %2710 = vmatpush1.bf16.msra.mxu1 %v2433_v18 }
 0x332   : >> { %2803 = vrot.lane.b32.xlu0 %v7181_v16, %s4750_s24  ;;  %v2600_v52 = vsel %vm488_vm6, %v6799_v14, %v2429_v6 }
 0x333   : >> { %2670 = vmatprep.subr.bf16.mxu0 %v2600_v52  ;;  %v2419_v27 = vpop.permute.xlu1 %2418 }
 0x334   : >> { %v2430_v46 = vsel %vm315_vm9, %v2417_v59, %v2419_v27  ;;  %v2413_v34 = vpop.permute.xlu0 %2412  ;;  %v2608_v41 = vsel %vm488_vm6, %v6877_v7, %v2419_v27  ;;  %v3166_v27 = vor.u32 %v3165_v50, %v8232_v9  ;;  %v8276_v50 = vld [vmem:[#allocation48_spill] sm:$0xff] }
 0x335   : >> { %v2428_v40 = vsel %vm315_vm9, %v2413_v34, %v2415_v45  ;;  %2971 = vrot.lane.b32.xlu1 %v7242_v35, %s4756_s4  ;;  %2711 = vmatprep.subr.bf16.mxu1 %v2608_v41  ;;  %v2604_v33 = vsel %vm488_vm6, %v6787_v26, %v2430_v46  ;;  %v3145_v46 = vrot.slane %v8235_v62, 7 }
 0x336   : >> { %2969 = vrot.lane.b32.xlu0 %v7247_v12, %s4756_s4  ;;  %v2596_v14 = vsel %vm488_vm6, %v6847_v22, %v2428_v40  ;;  %2712 = vmatpush1.bf16.msra.mxu1 %v2604_v33  ;;  %v4518_v33 = vrot.slane %v8225_v21, 11  ;;  %v7417_v21 = vsel %vm7402_vm15, %v4519_v3, %v3166_v27 }
 0x337   : >> { %2671 = vmatpush1.bf16.msra.mxu0 %v2596_v14  ;;  %v2581_v13 = vpop.permute.xlu1 %2580  ;;  %2713 = vmatprep.subr.bf16.mxu1 %v6914_v58  ;;  %v3161_v14 = vor.u32 %v3160_v15, %v8234_v54  ;;  %v8271_v54 = vld [vmem:[#allocation20_spill] sm:$0xff] }
 0x338   : >> { %v2579_v7 = vpop.permute.xlu0 %2578  ;;  %2672 = vmatprep.subr.bf16.mxu0 %v6905_v29  ;;  %v4515_v62 = vrot.slane %v8271_v54, 11 }
 0x339   : >> { %2943 = vrot.lane.b32.xlu1 %v7162_v19, %s4755_s30  ;;  %v2588_v22 = vsel %vm477_vm14, %v2579_v7, %v2581_v13 }
 0x33a   : >> { %2967 = vrot.lane.b32.xlu0 %v7256_v4, %s4756_s4  ;;  %2714 = vmatpush1.bf16.msra.mxu1 %v6894_v5 }
 0x33b   : >> { %2673 = vmatpush1.bf16.msra.mxu0 %v6919_v1  ;;  %v2553_v26 = vpop.permute.xlu1 %2552 }
 0x33c   : >> { %2682 = vmatprep.subr.bf16.mxu0 %v2588_v22  ;;  %v2577_v42 = vpop.permute.xlu0 %2576 }
 0x33d   : >> { %v2587_v58 = vsel %vm477_vm14, %v2577_v42, %v2579_v7  ;;  %2961 = vrot.lane.b32.xlu1 %v7176_v32, %s4756_s4 }
 0x33e   : >> { %2945 = vrot.lane.b32.xlu0 %v7156_v60, %s4755_s30 }
 0x33f   : >> { %2683 = vmatpush2.bf16.msra.mxu0 %v2587_v58  ;;  %v2571_v29 = vpop.permute.xlu1 %2570  ;;  %v7423_v58 = vsel %vm7402_vm15, %v4518_v33, %v3161_v14 }
 0x340   : >> { %v2555_v8 = vpop.permute.xlu0 %2554  ;;  %v7481_v27 = vcombine.low %v7423_v58, %v7423_v58 }
 0x341   : >> { %2973 = vrot.lane.b32.xlu1 %v7267_v31, %s4756_s4  ;;  %v2562_v39 = vsel %vm450_vm13, %v2553_v26, %v2555_v8 }
 0x342   : >> { %2963 = vrot.lane.b32.xlu0 %v7172_v23, %s4756_s4 }
 0x343   : >> { %v2583_v5 = vpop.permute.xlu1 %2582 }
 0x344   : >> { %v2573_v1 = vpop.permute.xlu0 %2572  ;;  %2723 = vmatprep.subr.bf16.mxu1 %v2583_v5  ;;  %v2589_v20 = vsel %vm477_vm14, %v2581_v13, %v2583_v5  ;;  %v3140_v13 = vrot.slane %v8238_v36, 7  ;;  %v8272_v36 = vld [vmem:[#allocation32_spill] sm:$0xff] }
 0x345   : >> { %v2585_v32 = vsel %vm477_vm14, %v2571_v29, %v2573_v1  ;;  %2959 = vrot.lane.b32.xlu1 %v7181_v16, %s4756_s4  ;;  %2724 = vmatpush2.bf16.msra.mxu1 %v2589_v20  ;;  %v3146_v22 = vor.u32 %v3145_v46, %v8272_v36  ;;  %v8277_v46 = vld [vmem:[#allocation29_spill] sm:$0xff] }
 0x346   : >> { %2941 = vrot.lane.b32.xlu0 %v7188_v37, %s4755_s30  ;;  %v2648_v25 = vsel %vm488_vm6, %v2562_v39, %v2585_v32  ;;  %v7434_v39 = vcombine.low %v7417_v21, %v7417_v21  ;;  %v7440_v32 = vcombine.high %v7423_v58, %v7423_v58 }
 0x347   : >> { %2684 = vmatprep.subr.bf16.mxu0 %v2648_v25  ;;  %v2569_v23 = vpop.permute.xlu1 %2568  ;;  %v7444_v25 = vsel %vm7402_vm15, %v4515_v62, %v3146_v22 }
 0x348   : >> { %v2584_v10 = vsel %vm477_vm14, %v2569_v23, %v2571_v29  ;;  %v2551_v47 = vpop.permute.xlu0 %2550  ;;  %v8273_v29 = vld [vmem:[#allocation18_spill] sm:$0xff] }
 0x349   : >> { %v2561_v55 = vsel %vm450_vm13, %v2551_v47, %v2553_v26  ;;  %2965 = vrot.lane.b32.xlu1 %v7202_v44, %s4756_s4 }
 0x34a   : >> { %2947 = vrot.lane.b32.xlu0 %v7209_v17, %s4755_s30  ;;  %v2644_v16 = vsel %vm488_vm6, %v2561_v55, %v2584_v10 }
 0x34b   : >> { %2685 = vmatpush2.bf16.msra.mxu0 %v2644_v16  ;;  %v2575_v43 = vpop.permute.xlu1 %2574 }
 0x34c   : >> { %v2586_v53 = vsel %vm477_vm14, %v2573_v1, %v2575_v43  ;;  %v2557_v2 = vpop.permute.xlu0 %2556 }
 0x34d   : >> { %v2563_v48 = vsel %vm450_vm13, %v2555_v8, %v2557_v2  ;;  %2937 = vrot.lane.b32.xlu1 %v7219_v28, %s4755_s30  ;;  %v2656_v45 = vsel %vm488_vm6, %v2557_v2, %v2575_v43  ;;  %v8274_v8 = vld [vmem:[#allocation25_spill] sm:$0xff]  ;;  %v7458_v43 = vcombine.low %v7444_v25, %v7444_v25  ;;  %v8275_v2 = vld [vmem:[#allocation44_spill] sm:$0xff] }
 0x34e   : >> { %2935 = vrot.lane.b32.xlu0 %v7224_v11, %s4755_s30  ;;  %2725 = vmatprep.subr.bf16.mxu1 %v2656_v45  ;;  %v2652_v44 = vsel %vm488_vm6, %v2563_v48, %v2586_v53  ;;  %v7385_v61 = vpop.f32.mrf.mxu0  ;;  %v3141_v5 = vor.u32 %v3140_v13, %v8274_v8  ;;  %v3155_v48 = vrot.slane %v8275_v2, 7  ;;  %v7505_v8 = vcombine.high %v7417_v21, %v7417_v21 }
 0x34f   : >> { %2726 = vmatpush2.bf16.msra.mxu1 %v2652_v44  ;;  %v2547_v38 = vpop.permute.xlu1 %2546  ;;  %v1934_v59 = vmax.f32 %v7309_v49, %v7385_v61 }
 0x350   : >> { %v2545_v18 = vpop.permute.xlu0 %2544  ;;  %v7390_v6 = vpop.f32.mrf.mxu0 }
 0x351   : >> { %2939 = vrot.lane.b32.xlu1 %v7231_v56, %s4755_s30  ;;  %v2559_v52 = vsel %vm450_vm13, %v2545_v18, %v2547_v38  ;;  %v1935_v24 = vmax.f32 %v7314_v57, %v7390_v6 }
 0x352   : >> { %2933 = vrot.lane.b32.xlu0 %v7236_v51, %s4755_s30  ;;  %2686 = vmatprep.subr.bf16.mxu0 %v2559_v52  ;;  %v1890_v34 = vpop.f32.mrf.mxu0 }
 0x353   : >> { %v2549_v41 = vpop.permute.xlu1 %2548  ;;  %v4517_v34 = vrot.slane %v8277_v46, 11 }
 0x354   : >> { %v2543_v7 = vpop.permute.xlu0 %2542  ;;  %2727 = vmatprep.subr.bf16.mxu1 %v2549_v41  ;;  %v2560_v0 = vsel %vm450_vm13, %v2547_v38, %v2549_v41  ;;  %v1891_v26 = vpop.f32.mrf.mxu0  ;;  %v3150_v38 = vrot.slane %v8276_v50, 7  ;;  %v8278_v41 = vld [vmem:[#allocation40_spill] sm:$0xff] }
 0x355   : >> { %v2558_v9 = vsel %vm450_vm13, %v2543_v7, %v2545_v18  ;;  %2919 = vrot.lane.b32.xlu1 %v7242_v35, %s4754_s29  ;;  %2728 = vmatpush2.bf16.msra.mxu1 %v2560_v0  ;;  %v4514_v35 = vrot.slane %v8273_v29, 11  ;;  %v3156_v33 = vor.u32 %v3155_v48, %v8278_v41  ;;  %v8279_v7 = vld [vmem:[#allocation23_spill] sm:$0xff]  ;;  %v8280_v26 = vld [vmem:[#allocation36_spill] sm:$0xff]  ;;  %v7498_v29 = vcombine.high %v7444_v25, %v7444_v25 }
 0x356   : >> { %2917 = vrot.lane.b32.xlu0 %v7247_v12, %s4754_s29  ;;  %2687 = vmatpush2.bf16.msra.mxu0 %v2558_v9  ;;  %v7427_v12 = vpop.f32.mrf.mxu1  ;;  %v4516_v0 = vrot.slane %v8279_v7, 11  ;;  %v3151_v9 = vor.u32 %v3150_v38, %v8280_v26 }
 0x357   : >> { %v2529_v42 = vpop.permute.xlu1 %2528  ;;  %v7450_v10 = vsel %vm7402_vm15, %v4514_v35, %v3141_v5  ;;  %v7509_v5 = vsel %vm7402_vm15, %v4517_v34, %v3156_v33 }
 0x358   : >> { %v2527_v1 = vpop.permute.xlu0 %2526  ;;  %v7446_v23 = vpop.f32.mrf.mxu1  ;;  %v7464_v53 = vcombine.high %v7450_v10, %v7450_v10  ;;  %v7474_v52 = vcombine.low %v7450_v10, %v7450_v10  ;;  %v7538_v34 = vcombine.high %v7444_v25, %v7509_v5 }
 0x359   : >> { %2921 = vrot.lane.b32.xlu1 %v7267_v31, %s4754_s29  ;;  %v2536_v20 = vsel %vm423_vm4, %v2527_v1, %v2529_v42 }
 0x35a   : >> { %2915 = vrot.lane.b32.xlu0 %v7256_v4, %s4754_s29  ;;  %2688 = vmatprep.subr.bf16.mxu0 %v2536_v20  ;;  %v642_v55 = vpop.f32.mrf.mxu1  ;;  %v3152_v20 = vsel %vm7402_vm15, %v4516_v0, %v3151_v9  ;;  %v7553_v0 = vcombine.low %v7509_v5, %v7417_v21 }
 0x35b   : >> { %v2531_v31 = vpop.permute.xlu1 %2530  ;;  %v7519_v55 = vcombine.low %v7444_v25, %v7509_v5  ;;  %v7527_v2 = vcombine.high %v7450_v10, %v3152_v20  ;;  %v7544_v33 = vcombine.low %v7450_v10, %v3152_v20  ;;  %v7560_v10 = vcombine.high %v3152_v20, %v7423_v58 }
 0x35c   : >> { %v2525_v47 = vpop.permute.xlu0 %2524  ;;  %2729 = vmatprep.subr.bf16.mxu1 %v2531_v31  ;;  %v2537_v4 = vsel %vm423_vm4, %v2529_v42, %v2531_v31  ;;  %v643_v45 = vpop.f32.mrf.mxu1 }
 0x35d   : >> { %v2535_v16 = vsel %vm423_vm4, %v2525_v47, %v2527_v1  ;;  %3290 = vrot.lane.b32.xlu1 %v7434_v39, %s4753_s27  ;;  %2730 = vmatpush2.bf16.msra.mxu1 %v2537_v4 }
 0x35e   : >> { %3288 = vrot.lane.b32.xlu0 %v7440_v32, %s4753_s27  ;;  %2689 = vmatpush2.bf16.msra.mxu0 %v2535_v16  ;;  %v1109_v18 = vpop.f32.mrf.mxu1 }
 0x35f   : >> { %v2894_v44 = vpop.permute.xlu1 %2893  ;;  %v1118_v3 = vmax.f32 %v7427_v12, %v1109_v18 }
 0x360   : >> { %v2892_v15 = vpop.permute.xlu0 %2891  ;;  %2732 = vmatmul.mubr.bf16.vlgmr.msra.gmra.mxu1 %v8253_v30  ;;  %v1111_v14 = vpop.f32.mrf.mxu1 }
 0x361   : >> { %2691 = vmatmul.mubr.bf16.vlgmr.msra.gmra.mxu0 %v8253_v30  ;;  %3308 = vrot.lane.b32.xlu1 %v7458_v43, %s4754_s29  ;;  %v1119_v54 = vmax.f32 %v7446_v23, %v1111_v14  ;;  %v2901_v22 = vsel %vm396_vm5, %v2892_v15, %v2894_v44 }
 0x362   : >> { %3306 = vrot.lane.b32.xlu0 %v7464_v53, %s4754_s29  ;;  %4512 = vmatprep.mubr.msk.bf16.mxu0 %vm559_vm3, %v8254_v63  ;;  %v1113_v36 = vpop.f32.mrf.mxu1 }
 0x363   : >> { %v2912_v13 = vpop.permute.xlu1 %2911  ;;  %4513 = vmatprep.mubr.msk.bf16.mxu1 %vm559_vm3, %v8254_v63 }
 0x364   : >> { %v2910_v62 = vpop.permute.xlu0 %2909  ;;  %v1114_v1 = vpop.f32.mrf.mxu1 }
 0x365   : >> { %v2924_v42 = vsel %vm423_vm4, %v2910_v62, %v2912_v13  ;;  %3304 = vrot.lane.b32.xlu1 %v7474_v52, %s4754_s29  ;;  %v7573_v1 = vcombine.low %v3152_v20, %v7423_v58  ;;  %v7585_v58 = vcombine.high %v7509_v5, %v7417_v21 }
 0x366   : >> { %3286 = vrot.lane.b32.xlu0 %v7481_v27, %s4753_s27  ;;  %v3023_v35 = vsel %vm488_vm6, %v2901_v22, %v2924_v42  ;;  %v1500_v47 = vpop.f32.mrf.mxu1 }
 0x367   : >> { %3049 = vmatprep.subr.bf16.mxu0 %v3023_v35  ;;  %v2908_v12 = vpop.permute.xlu1 %2907  ;;  %v7521_v16 = vmax.f32 %v1118_v3, %v1500_v47 }
 0x368   : >> { %v2923_v23 = vsel %vm423_vm4, %v2908_v12, %v2910_v62  ;;  %v2890_v31 = vpop.permute.xlu0 %2889  ;;  %v1502_v48 = vpop.f32.mrf.mxu1 }
 0x369   : >> { %v2900_v4 = vsel %vm396_vm5, %v2890_v31, %v2892_v15  ;;  %3310 = vrot.lane.b32.xlu1 %v7498_v29, %s4754_s29  ;;  %v7529_v50 = vmax.f32 %v1119_v54, %v1502_v48 }
 0x36a   : >> { %3292 = vrot.lane.b32.xlu0 %v7505_v8, %s4753_s27  ;;  %v3019_v40 = vsel %vm488_vm6, %v2900_v4, %v2923_v23  ;;  %v1504_v18 = vpop.f32.mrf.mxu1 }
 0x36b   : >> { %3050 = vmatpush1.bf16.msra.mxu0 %v3019_v40  ;;  %v2914_v45 = vpop.permute.xlu1 %2913 }
 0x36c   : >> { %v2925_v38 = vsel %vm423_vm4, %v2912_v13, %v2914_v45  ;;  %v2896_v15 = vpop.permute.xlu0 %2895  ;;  %v1505_v14 = vpop.f32.mrf.mxu1 }
 0x36d   : >> { %v2902_v3 = vsel %vm396_vm5, %v2894_v44, %v2896_v15  ;;  %3282 = vrot.lane.b32.xlu1 %v7519_v55, %s4753_s27  ;;  %v3031_v46 = vsel %vm488_vm6, %v2896_v15, %v2914_v45 }
 0x36e   : >> { %3280 = vrot.lane.b32.xlu0 %v7527_v2, %s4753_s27  ;;  %3090 = vmatprep.subr.bf16.mxu1 %v3031_v46  ;;  %v3027_v41 = vsel %vm488_vm6, %v2902_v3, %v2925_v38  ;;  %v7546_v7 = vpop.f32.mrf.mxu1 }
 0x36f   : >> { %3091 = vmatpush1.bf16.msra.mxu1 %v3027_v41  ;;  %v2886_v44 = vpop.permute.xlu1 %2885  ;;  %v1936_v26 = vmax.f32 %v7521_v16, %v7546_v7 }
 0x370   : >> { %v2884_v13 = vpop.permute.xlu0 %2883  ;;  %v7562_v9 = vpop.f32.mrf.mxu1 }
 0x371   : >> { %3284 = vrot.lane.b32.xlu1 %v7538_v34, %s4753_s27  ;;  %v2898_v25 = vsel %vm396_vm5, %v2884_v13, %v2886_v44  ;;  %v1937_v62 = vmax.f32 %v7529_v50, %v7562_v9 }
 0x372   : >> { %3278 = vrot.lane.b32.xlu0 %v7544_v33, %s4753_s27  ;;  %3051 = vmatprep.subr.bf16.mxu0 %v2898_v25  ;;  %v1931_v42 = vpop.f32.mrf.mxu1 }
 0x373   : >> { %v2888_v54 = vpop.permute.xlu1 %2887 }
 0x374   : >> { %v2882_v36 = vpop.permute.xlu0 %2881  ;;  %3092 = vmatprep.subr.bf16.mxu1 %v2888_v54  ;;  %v2899_v22 = vsel %vm396_vm5, %v2886_v44, %v2888_v54  ;;  %v1932_v12 = vpop.f32.mrf.mxu1 }
 0x375   : >> { %v2897_v35 = vsel %vm396_vm5, %v2882_v36, %v2884_v13  ;;  %3264 = vrot.lane.b32.xlu1 %v7553_v0, %s4752_s26  ;;  %3093 = vmatpush1.bf16.msra.mxu1 %v2899_v22 }
 0x376   : >> { %3262 = vrot.lane.b32.xlu0 %v7560_v10, %s4752_s26  ;;  %3052 = vmatpush1.bf16.msra.mxu0 %v2897_v35 }
 0x377   : >> { %v2868_v23 = vpop.permute.xlu1 %2867 }
 0x378   : >> { %v2866_v31 = vpop.permute.xlu0 %2865 }
 0x379   : >> { %3236 = vrot.lane.b32.xlu1 %v7440_v32, %s4751_s25  ;;  %v2875_v47 = vsel %vm369_vm7, %v2866_v31, %v2868_v23 }
 0x37a   : >> { %3260 = vrot.lane.b32.xlu0 %v7573_v1, %s4752_s26  ;;  %3053 = vmatprep.subr.bf16.mxu0 %v2875_v47 }
 0x37b   : >> { %v2840_v4 = vpop.permute.xlu1 %2839 }
 0x37c   : >> { %v2864_v40 = vpop.permute.xlu0 %2863 }
 0x37d   : >> { %v2874_v48 = vsel %vm369_vm7, %v2864_v40, %v2866_v31  ;;  %3254 = vrot.lane.b32.xlu1 %v7464_v53, %s4752_s26 }
 0x37e   : >> { %3238 = vrot.lane.b32.xlu0 %v7434_v39, %s4751_s25  ;;  %3054 = vmatpush1.bf16.msra.mxu0 %v2874_v48 }
 0x37f   : >> { %v2858_v20 = vpop.permute.xlu1 %2857 }
 0x380   : >> { %v2842_v45 = vpop.permute.xlu0 %2841 }
 0x381   : >> { %3266 = vrot.lane.b32.xlu1 %v7585_v58, %s4752_s26  ;;  %v2849_v21 = vsel %vm342_vm8, %v2840_v4, %v2842_v45 }
 0x382   : >> { %3256 = vrot.lane.b32.xlu0 %v7458_v43, %s4752_s26 }
 0x383   : >> { %v2870_v38 = vpop.permute.xlu1 %2869 }
 0x384   : >> { %v2876_v15 = vsel %vm369_vm7, %v2868_v23, %v2870_v38  ;;  %v2860_v18 = vpop.permute.xlu0 %2859  ;;  %3094 = vmatprep.subr.bf16.mxu1 %v2870_v38 }
 0x385   : >> { %v2872_v5 = vsel %vm369_vm7, %v2858_v20, %v2860_v18  ;;  %3252 = vrot.lane.b32.xlu1 %v7474_v52, %s4752_s26  ;;  %3095 = vmatpush1.bf16.msra.mxu1 %v2876_v15 }
 0x386   : >> { %3234 = vrot.lane.b32.xlu0 %v7481_v27, %s4751_s25  ;;  %v3007_v3 = vsel %vm488_vm6, %v2849_v21, %v2872_v5 }
 0x387   : >> { %3055 = vmatprep.subr.bf16.mxu0 %v3007_v3  ;;  %v2856_v46 = vpop.permute.xlu1 %2855 }
 0x388   : >> { %v2871_v41 = vsel %vm369_vm7, %v2856_v46, %v2858_v20  ;;  %v2838_v14 = vpop.permute.xlu0 %2837 }
 0x389   : >> { %v2848_v44 = vsel %vm342_vm8, %v2838_v14, %v2840_v4  ;;  %3258 = vrot.lane.b32.xlu1 %v7498_v29, %s4752_s26 }
 0x38a   : >> { %3240 = vrot.lane.b32.xlu0 %v7505_v8, %s4751_s25  ;;  %v3003_v13 = vsel %vm488_vm6, %v2848_v44, %v2871_v41 }
 0x38b   : >> { %3056 = vmatpush1.bf16.msra.mxu0 %v3003_v13  ;;  %v2862_v25 = vpop.permute.xlu1 %2861 }
 0x38c   : >> { %v2873_v54 = vsel %vm369_vm7, %v2860_v18, %v2862_v25  ;;  %v2844_v36 = vpop.permute.xlu0 %2843 }
 0x38d   : >> { %v2850_v22 = vsel %vm342_vm8, %v2842_v45, %v2844_v36  ;;  %3230 = vrot.lane.b32.xlu1 %v7519_v55, %s4751_s25  ;;  %v3015_v42 = vsel %vm488_vm6, %v2844_v36, %v2862_v25 }
 0x38e   : >> { %3228 = vrot.lane.b32.xlu0 %v7527_v2, %s4751_s25  ;;  %3096 = vmatprep.subr.bf16.mxu1 %v3015_v42  ;;  %v3011_v35 = vsel %vm488_vm6, %v2850_v22, %v2873_v54 }
 0x38f   : >> { %3097 = vmatpush1.bf16.msra.mxu1 %v3011_v35  ;;  %v2834_v12 = vpop.permute.xlu1 %2833 }
 0x390   : >> { %v2832_v23 = vpop.permute.xlu0 %2831 }
 0x391   : >> { %3232 = vrot.lane.b32.xlu1 %v7538_v34, %s4751_s25  ;;  %v2846_v31 = vsel %vm342_vm8, %v2832_v23, %v2834_v12 }
 0x392   : >> { %3226 = vrot.lane.b32.xlu0 %v7544_v33, %s4751_s25  ;;  %3057 = vmatprep.subr.bf16.mxu0 %v2846_v31 }
 0x393   : >> { %v2836_v47 = vpop.permute.xlu1 %2835 }
 0x394   : >> { %v2847_v4 = vsel %vm342_vm8, %v2834_v12, %v2836_v47  ;;  %v2830_v40 = vpop.permute.xlu0 %2829  ;;  %3098 = vmatprep.subr.bf16.mxu1 %v2836_v47 }
 0x395   : >> { %v2845_v48 = vsel %vm342_vm8, %v2830_v40, %v2832_v23  ;;  %3212 = vrot.lane.b32.xlu1 %v7553_v0, %s4750_s24  ;;  %3099 = vmatpush1.bf16.msra.mxu1 %v2847_v4 }
 0x396   : >> { %3210 = vrot.lane.b32.xlu0 %v7560_v10, %s4750_s24  ;;  %3058 = vmatpush1.bf16.msra.mxu0 %v2845_v48 }
 0x397   : >> { %v2816_v20 = vpop.permute.xlu1 %2815 }
 0x398   : >> { %v2814_v45 = vpop.permute.xlu0 %2813 }
 0x399   : >> { %3202 = vrot.lane.b32.xlu1 %v7464_v53, %s4750_s24  ;;  %v2823_v38 = vsel %vm315_vm9, %v2814_v45, %v2816_v20 }
 0x39a   : >> { %3208 = vrot.lane.b32.xlu0 %v7573_v1, %s4750_s24  ;;  %3059 = vmatprep.subr.bf16.mxu0 %v2823_v38 }
 0x39b   : >> { %v2806_v15 = vpop.permute.xlu1 %2805 }
 0x39c   : >> { %v2812_v18 = vpop.permute.xlu0 %2811 }
 0x39d   : >> { %v2822_v21 = vsel %vm315_vm9, %v2812_v18, %v2814_v45  ;;  %3214 = vrot.lane.b32.xlu1 %v7585_v58, %s4750_s24 }
 0x39e   : >> { %3204 = vrot.lane.b32.xlu0 %v7458_v43, %s4750_s24  ;;  %3060 = vmatpush1.bf16.msra.mxu0 %v2822_v21 }
 0x39f   : >> { %v2818_v5 = vpop.permute.xlu1 %2817 }
 0x3a0   : >> { %v2824_v3 = vsel %vm315_vm9, %v2816_v20, %v2818_v5  ;;  %v2808_v46 = vpop.permute.xlu0 %2807  ;;  %3100 = vmatprep.subr.bf16.mxu1 %v2818_v5 }
 0x3a1   : >> { %v2820_v41 = vsel %vm315_vm9, %v2806_v15, %v2808_v46  ;;  %3206 = vrot.lane.b32.xlu1 %v7498_v29, %s4750_s24  ;;  %3101 = vmatpush1.bf16.msra.mxu1 %v2824_v3 }
 0x3a2   : >> { %3200 = vrot.lane.b32.xlu0 %v7474_v52, %s4750_s24  ;;  %v2991_v14 = vsel %vm488_vm6, %v7162_v19, %v2820_v41  ;;  %v4757_v41 = vmov 0  }
 0x3a3   : >> { %3061 = vmatprep.subr.bf16.mxu0 %v2991_v14  ;;  %v2810_v44 = vpop.permute.xlu1 %2809  ;;  %4643 = vset.pattern.permute.xlu0 %v4757_v41 }
 0x3a4   : >> { %v2821_v13 = vsel %vm315_vm9, %v2808_v46, %v2810_v44  ;;  %v2804_v25 = vpop.permute.xlu0 %2803  ;;  %v2999_v54 = vsel %vm488_vm6, %v7209_v17, %v2810_v44 }
 0x3a5   : >> { %v2819_v36 = vsel %vm315_vm9, %v2804_v25, %v2806_v15  ;;  %3368 = vrot.lane.b32.xlu1 %v7553_v0, %s4756_s4  ;;  %3102 = vmatprep.subr.bf16.mxu1 %v2999_v54  ;;  %v2995_v22 = vsel %vm488_vm6, %v7156_v60, %v2821_v13 }
 0x3a6   : >> { %3366 = vrot.lane.b32.xlu0 %v7560_v10, %s4756_s4  ;;  %v2987_v19 = vsel %vm488_vm6, %v7188_v37, %v2819_v36  ;;  %3103 = vmatpush1.bf16.msra.mxu1 %v2995_v22 }
 0x3a7   : >> { %3062 = vmatpush1.bf16.msra.mxu0 %v2987_v19  ;;  %v2972_v42 = vpop.permute.xlu1 %2971  ;;  %3104 = vmatprep.subr.bf16.mxu1 %v7231_v56 }
 0x3a8   : >> { %v2970_v17 = vpop.permute.xlu0 %2969  ;;  %3063 = vmatprep.subr.bf16.mxu0 %v7224_v11 }
 0x3a9   : >> { %3340 = vrot.lane.b32.xlu1 %v7440_v32, %s4755_s30  ;;  %v2979_v37 = vsel %vm477_vm14, %v2970_v17, %v2972_v42 }
 0x3aa   : >> { %3364 = vrot.lane.b32.xlu0 %v7573_v1, %s4756_s4  ;;  %3105 = vmatpush1.bf16.msra.mxu1 %v7219_v28 }
 0x3ab   : >> { %3064 = vmatpush1.bf16.msra.mxu0 %v7236_v51  ;;  %v2944_v60 = vpop.permute.xlu1 %2943 }
 0x3ac   : >> { %3073 = vmatprep.subr.bf16.mxu0 %v2979_v37  ;;  %v2968_v35 = vpop.permute.xlu0 %2967 }
 0x3ad   : >> { %v2978_v56 = vsel %vm477_vm14, %v2968_v35, %v2970_v17  ;;  %3358 = vrot.lane.b32.xlu1 %v7464_v53, %s4756_s4 }
 0x3ae   : >> { %3342 = vrot.lane.b32.xlu0 %v7434_v39, %s4755_s30 }
 0x3af   : >> { %3074 = vmatpush2.bf16.msra.mxu0 %v2978_v56  ;;  %v2962_v11 = vpop.permute.xlu1 %2961 }
 0x3b0   : >> { %v2946_v12 = vpop.permute.xlu0 %2945  ;;  %v2318_v23 = vpop.f32.mrf.mxu1 }
 0x3b1   : >> { %3370 = vrot.lane.b32.xlu1 %v7585_v58, %s4756_s4  ;;  %v2277_v28 = vpop.f32.mrf.mxu0  ;;  %v7676_v51 = vmax.f32 %v1936_v26, %v2318_v23  ;;  %v2953_v61 = vsel %vm450_vm13, %v2944_v60, %v2946_v12 }
 0x3b2   : >> { %3360 = vrot.lane.b32.xlu0 %v7458_v43, %s4756_s4  ;;  %v7683_v53 = vmax.f32 %v1934_v59, %v2277_v28  ;;  %v2320_v31 = vpop.f32.mrf.mxu1 }
 0x3b3   : >> { %v2974_v47 = vpop.permute.xlu1 %2973  ;;  %v2279_v4 = vpop.f32.mrf.mxu0  ;;  %v7688_v40 = vmax.f32 %v1937_v62, %v2320_v31 }
 0x3b4   : >> { %v2980_v16 = vsel %vm477_vm14, %v2972_v42, %v2974_v47  ;;  %v2964_v7 = vpop.permute.xlu0 %2963  ;;  %3114 = vmatprep.subr.bf16.mxu1 %v2974_v47  ;;  %v7694_v43 = vmax.f32 %v1935_v24, %v2279_v4  ;;  %v2322_v49 = vpop.f32.mrf.mxu1 }
 0x3b5   : >> { %v2976_v59 = vsel %vm477_vm14, %v2962_v11, %v2964_v7  ;;  %3356 = vrot.lane.b32.xlu1 %v7474_v52, %s4756_s4  ;;  %3115 = vmatpush2.bf16.msra.mxu1 %v2980_v16  ;;  %v2281_v50 = vpop.f32.mrf.mxu0 }
 0x3b6   : >> { %3338 = vrot.lane.b32.xlu0 %v7481_v27, %s4755_s30  ;;  %v3039_v26 = vsel %vm488_vm6, %v2953_v61, %v2976_v59  ;;  %v2323_v9 = vpop.f32.mrf.mxu1 }
 0x3b7   : >> { %3075 = vmatprep.subr.bf16.mxu0 %v3039_v26  ;;  %v2960_v57 = vpop.permute.xlu1 %2959  ;;  %v2282_v6 = vpop.f32.mrf.mxu0 }
 0x3b8   : >> { %v2975_v24 = vsel %vm477_vm14, %v2960_v57, %v2962_v11  ;;  %v2942_v62 = vpop.permute.xlu0 %2941 }
 0x3b9   : >> { %v2952_v48 = vsel %vm450_vm13, %v2942_v62, %v2944_v60  ;;  %3362 = vrot.lane.b32.xlu1 %v7498_v29, %s4756_s4 }
 0x3ba   : >> { %3344 = vrot.lane.b32.xlu0 %v7505_v8, %s4755_s30  ;;  %v3035_v52 = vsel %vm488_vm6, %v2952_v48, %v2975_v24 }
 0x3bb   : >> { %3076 = vmatpush2.bf16.msra.mxu0 %v3035_v52  ;;  %v2966_v20 = vpop.permute.xlu1 %2965 }
 0x3bc   : >> { %v2977_v45 = vsel %vm477_vm14, %v2964_v7, %v2966_v20  ;;  %v2948_v38 = vpop.permute.xlu0 %2947 }
 0x3bd   : >> { %v2954_v15 = vsel %vm450_vm13, %v2946_v12, %v2948_v38  ;;  %3334 = vrot.lane.b32.xlu1 %v7519_v55, %s4755_s30  ;;  %v3047_v18 = vsel %vm488_vm6, %v2948_v38, %v2966_v20 }
 0x3be   : >> { %3332 = vrot.lane.b32.xlu0 %v7527_v2, %s4755_s30  ;;  %3116 = vmatprep.subr.bf16.mxu1 %v3047_v18  ;;  %v3043_v29 = vsel %vm488_vm6, %v2954_v15, %v2977_v45 }
 0x3bf   : >> { %3117 = vmatpush2.bf16.msra.mxu1 %v3043_v29  ;;  %v2938_v21 = vpop.permute.xlu1 %2937 }
 0x3c0   : >> { %v2936_v5 = vpop.permute.xlu0 %2935 }
 0x3c1   : >> { %3336 = vrot.lane.b32.xlu1 %v7538_v34, %s4755_s30  ;;  %v2950_v3 = vsel %vm450_vm13, %v2936_v5, %v2938_v21 }
 0x3c2   : >> { %3330 = vrot.lane.b32.xlu0 %v7544_v33, %s4755_s30  ;;  %3077 = vmatprep.subr.bf16.mxu0 %v2950_v3 }
 0x3c3   : >> { %v2940_v46 = vpop.permute.xlu1 %2939 }
 0x3c4   : >> { %v2951_v14 = vsel %vm450_vm13, %v2938_v21, %v2940_v46  ;;  %v2934_v44 = vpop.permute.xlu0 %2933  ;;  %3118 = vmatprep.subr.bf16.mxu1 %v2940_v46 }
 0x3c5   : >> { %v2949_v13 = vsel %vm450_vm13, %v2934_v44, %v2936_v5  ;;  %3316 = vrot.lane.b32.xlu1 %v7553_v0, %s4754_s29  ;;  %3119 = vmatpush2.bf16.msra.mxu1 %v2951_v14 }
 0x3c6   : >> { %3314 = vrot.lane.b32.xlu0 %v7560_v10, %s4754_s29  ;;  %3078 = vmatpush2.bf16.msra.mxu0 %v2949_v13  ;;  %v8281_v10 = vld [vmem:[#allocation9_spill] sm:$0xff] }
 0x3c7   : >> { %v2920_v25 = vpop.permute.xlu1 %2919 }
 0x3c8   : >> { %v2918_v54 = vpop.permute.xlu0 %2917 }
 0x3c9   : >> { %3318 = vrot.lane.b32.xlu1 %v7585_v58, %s4754_s29  ;;  %v2927_v36 = vsel %vm423_vm4, %v2918_v54, %v2920_v25 }
 0x3ca   : >> { %3312 = vrot.lane.b32.xlu0 %v7573_v1, %s4754_s29  ;;  %3079 = vmatprep.subr.bf16.mxu0 %v2927_v36 }
 0x3cb   : >> { %v2922_v22 = vpop.permute.xlu1 %2921 }
 0x3cc   : >> { %v2928_v19 = vsel %vm423_vm4, %v2920_v25, %v2922_v22  ;;  %v2916_v0 = vpop.permute.xlu0 %2915  ;;  %3120 = vmatprep.subr.bf16.mxu1 %v2922_v22 }
 0x3cd   : >> { %v2926_v42 = vsel %vm423_vm4, %v2916_v0, %v2918_v54  ;;  %3121 = vmatpush2.bf16.msra.mxu1 %v2928_v19 }
 0x3ce   : >> { %3080 = vmatpush2.bf16.msra.mxu0 %v2926_v42  ;;  %3534 = vperm.xlu0 %4643, %v8281_v10  }
 0x3cf   : >> { %v3291_v17 = vpop.permute.xlu1 %3290 }
 0x3d0   : >> { %v3289_v60 = vpop.permute.xlu0 %3288  ;;  %3123 = vmatmul.mubr.bf16.vlgmr.msra.gmra.mxu1 %v8253_v30 }
 0x3d1   : >> { %3082 = vmatmul.mubr.bf16.vlgmr.msra.gmra.mxu0 %v8253_v30  ;;  %4537 = vmatprep.mubr.msk.bf16.mxu1 %vm559_vm3, %v8254_v63  ;;  %v3298_v37 = vsel %vm396_vm5, %v3289_v60, %v3291_v17 }
 0x3d2   : >> { %4536 = vmatprep.mubr.msk.bf16.mxu0 %vm559_vm3, %v8254_v63  ;;  %vm3673_vm3 = vcmask 48128  }
 0x3d3   : >> { %v3309_v1 = vpop.permute.xlu1 %3308 }
 0x3d4   : >> { %v3307_v58 = vpop.permute.xlu0 %3306 }
 0x3d5   : >> { %v3321_v35 = vsel %vm423_vm4, %v3307_v58, %v3309_v1 }
 0x3d6   : >> { %v3420_v56 = vsel %vm488_vm6, %v3298_v37, %v3321_v35 }
 0x3d7   : >> { %3446 = vmatprep.subr.bf16.mxu0 %v3420_v56  ;;  %v3305_v11 = vpop.permute.xlu1 %3304 }
 0x3d8   : >> { %v3320_v12 = vsel %vm423_vm4, %v3305_v11, %v3307_v58  ;;  %v3287_v23 = vpop.permute.xlu0 %3286 }
 0x3d9   : >> { %v3297_v28 = vsel %vm396_vm5, %v3287_v23, %v3289_v60 }
 0x3da   : >> { %v3416_v31 = vsel %vm488_vm6, %v3297_v28, %v3320_v12 }
 0x3db   : >> { %3447 = vmatpush1.bf16.msra.mxu0 %v3416_v31  ;;  %v3311_v47 = vpop.permute.xlu1 %3310 }
 0x3dc   : >> { %v3322_v63 = vsel %vm423_vm4, %v3309_v1, %v3311_v47  ;;  %v3293_v4 = vpop.permute.xlu0 %3292 }
 0x3dd   : >> { %v3299_v16 = vsel %vm396_vm5, %v3291_v17, %v3293_v4  ;;  %v3428_v7 = vsel %vm488_vm6, %v3293_v4, %v3311_v47 }
 0x3de   : >> { %3487 = vmatprep.subr.bf16.mxu1 %v3428_v7  ;;  %v3424_v49 = vsel %vm488_vm6, %v3299_v16, %v3322_v63 }
 0x3df   : >> { %3488 = vmatpush1.bf16.msra.mxu1 %v3424_v49  ;;  %v3283_v61 = vpop.permute.xlu1 %3282 }
 0x3e0   : >> { %v3281_v59 = vpop.permute.xlu0 %3280 }
 0x3e1   : >> { %v3295_v50 = vsel %vm396_vm5, %v3281_v59, %v3283_v61 }
 0x3e2   : >> { %3448 = vmatprep.subr.bf16.mxu0 %v3295_v50 }
 0x3e3   : >> { %v3285_v26 = vpop.permute.xlu1 %3284 }
 0x3e4   : >> { %v3296_v9 = vsel %vm396_vm5, %v3283_v61, %v3285_v26  ;;  %v3279_v57 = vpop.permute.xlu0 %3278  ;;  %3489 = vmatprep.subr.bf16.mxu1 %v3285_v26 }
 0x3e5   : >> { %v3294_v6 = vsel %vm396_vm5, %v3279_v57, %v3281_v59  ;;  %3490 = vmatpush1.bf16.msra.mxu1 %v3296_v9  ;;  %vm4180_vm5 = vcmask 1042434  }
 0x3e6   : >> { %3449 = vmatpush1.bf16.msra.mxu0 %v3294_v6 }
 0x3e7   : >> { %v3265_v24 = vpop.permute.xlu1 %3264 }
 0x3e8   : >> { %v3263_v62 = vpop.permute.xlu0 %3262 }
 0x3e9   : >> { %v3272_v48 = vsel %vm369_vm7, %v3263_v62, %v3265_v24 }
 0x3ea   : >> { %3450 = vmatprep.subr.bf16.mxu0 %v3272_v48 }
 0x3eb   : >> { %v3237_v52 = vpop.permute.xlu1 %3236 }
 0x3ec   : >> { %v3261_v20 = vpop.permute.xlu0 %3260 }
 0x3ed   : >> { %v3271_v45 = vsel %vm369_vm7, %v3261_v20, %v3263_v62 }
 0x3ee   : >> { %3451 = vmatpush1.bf16.msra.mxu0 %v3271_v45 }
 0x3ef   : >> { %v3255_v38 = vpop.permute.xlu1 %3254 }
 0x3f0   : >> { %v3239_v15 = vpop.permute.xlu0 %3238 }
 0x3f1   : >> { %v3246_v5 = vsel %vm342_vm8, %v3237_v52, %v3239_v15 }
 0x3f3   : >> { %v3267_v18 = vpop.permute.xlu1 %3266 }
 0x3f4   : >> { %v3257_v29 = vpop.permute.xlu0 %3256  ;;  %3491 = vmatprep.subr.bf16.mxu1 %v3267_v18  ;;  %v3273_v21 = vsel %vm369_vm7, %v3265_v24, %v3267_v18 }
 0x3f5   : >> { %v3269_v3 = vsel %vm369_vm7, %v3255_v38, %v3257_v29  ;;  %3492 = vmatpush1.bf16.msra.mxu1 %v3273_v21 }
 0x3f6   : >> { %v3404_v46 = vsel %vm488_vm6, %v3246_v5, %v3269_v3 }
 0x3f7   : >> { %3452 = vmatprep.subr.bf16.mxu0 %v3404_v46  ;;  %v3253_v41 = vpop.permute.xlu1 %3252 }
 0x3f8   : >> { %v3268_v14 = vsel %vm369_vm7, %v3253_v41, %v3255_v38  ;;  %v3235_v44 = vpop.permute.xlu0 %3234 }
 0x3f9   : >> { %v3245_v13 = vsel %vm342_vm8, %v3235_v44, %v3237_v52 }
 0x3fa   : >> { %v3400_v25 = vsel %vm488_vm6, %v3245_v13, %v3268_v14 }
 0x3fb   : >> { %3453 = vmatpush1.bf16.msra.mxu0 %v3400_v25  ;;  %v3259_v54 = vpop.permute.xlu1 %3258 }
 0x3fc   : >> { %v3270_v36 = vsel %vm369_vm7, %v3257_v29, %v3259_v54  ;;  %v3241_v22 = vpop.permute.xlu0 %3240  ;;  %vm4186_vm7 = vcmask 1045509  }
 0x3fd   : >> { %v3247_v19 = vsel %vm342_vm8, %v3239_v15, %v3241_v22  ;;  %v3412_v0 = vsel %vm488_vm6, %v3241_v22, %v3259_v54 }
 0x3fe   : >> { %3493 = vmatprep.subr.bf16.mxu1 %v3412_v0  ;;  %v3408_v42 = vsel %vm488_vm6, %v3247_v19, %v3270_v36 }
 0x3ff   : >> { %3494 = vmatpush1.bf16.msra.mxu1 %v3408_v42  ;;  %v3231_v10 = vpop.permute.xlu1 %3230 }
 0x400   : >> { %v3229_v17 = vpop.permute.xlu0 %3228 }
 0x401   : >> { %v3243_v60 = vsel %vm342_vm8, %v3229_v17, %v3231_v10 }
 0x402   : >> { %3454 = vmatprep.subr.bf16.mxu0 %v3243_v60 }
 0x403   : >> { %v3233_v1 = vpop.permute.xlu1 %3232 }
 0x404   : >> { %v3244_v58 = vsel %vm342_vm8, %v3231_v10, %v3233_v1  ;;  %v3227_v37 = vpop.permute.xlu0 %3226  ;;  %3495 = vmatprep.subr.bf16.mxu1 %v3233_v1 }
 0x405   : >> { %v3242_v35 = vsel %vm342_vm8, %v3227_v37, %v3229_v17  ;;  %3496 = vmatpush1.bf16.msra.mxu1 %v3244_v58  ;;  %vm4188_vm8 = vcmask 1046534  }
 0x406   : >> { %3455 = vmatpush1.bf16.msra.mxu0 %v3242_v35 }
 0x407   : >> { %v3213_v56 = vpop.permute.xlu1 %3212 }
 0x408   : >> { %v3211_v11 = vpop.permute.xlu0 %3210 }
 0x409   : >> { %v3220_v12 = vsel %vm315_vm9, %v3211_v11, %v3213_v56 }
 0x40a   : >> { %3456 = vmatprep.subr.bf16.mxu0 %v3220_v12 }
 0x40b   : >> { %v3203_v23 = vpop.permute.xlu1 %3202 }
 0x40c   : >> { %v3209_v28 = vpop.permute.xlu0 %3208 }
 0x40d   : >> { %v3219_v31 = vsel %vm315_vm9, %v3209_v28, %v3211_v11 }
 0x40e   : >> { %3457 = vmatpush1.bf16.msra.mxu0 %v3219_v31 }
 0x40f   : >> { %v3215_v47 = vpop.permute.xlu1 %3214 }
 0x410   : >> { %v3221_v63 = vsel %vm315_vm9, %v3213_v56, %v3215_v47  ;;  %v3205_v4 = vpop.permute.xlu0 %3204  ;;  %3497 = vmatprep.subr.bf16.mxu1 %v3215_v47 }
 0x411   : >> { %v3217_v16 = vsel %vm315_vm9, %v3203_v23, %v3205_v4  ;;  %3498 = vmatpush1.bf16.msra.mxu1 %v3221_v63 }
 0x412   : >> { %v3388_v7 = vsel %vm488_vm6, %v7440_v32, %v3217_v16 }
 0x413   : >> { %3458 = vmatprep.subr.bf16.mxu0 %v3388_v7  ;;  %v3207_v49 = vpop.permute.xlu1 %3206 }
 0x414   : >> { %v3218_v61 = vsel %vm315_vm9, %v3205_v4, %v3207_v49  ;;  %v3201_v59 = vpop.permute.xlu0 %3200  ;;  %v3396_v50 = vsel %vm488_vm6, %v7505_v8, %v3207_v49 }
 0x415   : >> { %v3216_v26 = vsel %vm315_vm9, %v3201_v59, %v3203_v23  ;;  %3499 = vmatprep.subr.bf16.mxu1 %v3396_v50  ;;  %v3392_v9 = vsel %vm488_vm6, %v7434_v39, %v3218_v61  ;;  %vm4190_vm9 = vcmask 1047559  }
 0x416   : >> { %v3384_v57 = vsel %vm488_vm6, %v7481_v27, %v3216_v26  ;;  %3500 = vmatpush1.bf16.msra.mxu1 %v3392_v9 }
 0x417   : >> { %3459 = vmatpush1.bf16.msra.mxu0 %v3384_v57  ;;  %v3369_v32 = vpop.permute.xlu1 %3368  ;;  %3501 = vmatprep.subr.bf16.mxu1 %v7538_v34 }
 0x418   : >> { %v3367_v6 = vpop.permute.xlu0 %3366  ;;  %3460 = vmatprep.subr.bf16.mxu0 %v7527_v2 }
 0x419   : >> { %v3376_v24 = vsel %vm477_vm14, %v3367_v6, %v3369_v32 }
 0x41a   : >> { %3502 = vmatpush1.bf16.msra.mxu1 %v7519_v55 }
 0x41b   : >> { %3461 = vmatpush1.bf16.msra.mxu0 %v7544_v33  ;;  %v3341_v8 = vpop.permute.xlu1 %3340 }
 0x41c   : >> { %3470 = vmatprep.subr.bf16.mxu0 %v3376_v24  ;;  %v3365_v39 = vpop.permute.xlu0 %3364 }
 0x41d   : >> { %v3375_v62 = vsel %vm477_vm14, %v3365_v39, %v3367_v6 }
 0x41f   : >> { %3471 = vmatpush2.bf16.msra.mxu0 %v3375_v62  ;;  %v3359_v27 = vpop.permute.xlu1 %3358 }
 0x420   : >> { %v3343_v48 = vpop.permute.xlu0 %3342  ;;  %v2733_v52 = vpop.f32.mrf.mxu1 }
 0x421   : >> { %v2692_v20 = vpop.f32.mrf.mxu0  ;;  %v2742_v34 = vmax.f32 %v7676_v51, %v2733_v52  ;;  %v3350_v5 = vsel %vm450_vm13, %v3341_v8, %v3343_v48 }
 0x422   : >> { %v2740_v2 = vmax.f32 %v7683_v53, %v2692_v20  ;;  %v2735_v45 = vpop.f32.mrf.mxu1 }
 0x423   : >> { %v2694_v55 = vpop.f32.mrf.mxu0  ;;  %v2743_v33 = vmax.f32 %v7688_v40, %v2735_v45  ;;  %v3371_v38 = vpop.permute.xlu1 %3370 }
 0x424   : >> { %v2741_v15 = vmax.f32 %v7694_v43, %v2694_v55  ;;  %v3377_v18 = vsel %vm477_vm14, %v3369_v32, %v3371_v38  ;;  %v3361_v29 = vpop.permute.xlu0 %3360  ;;  %3511 = vmatprep.subr.bf16.mxu1 %v3371_v38  ;;  %v2737_v21 = vpop.f32.mrf.mxu1 }
 0x425   : >> { %v3373_v3 = vsel %vm477_vm14, %v3359_v27, %v3361_v29  ;;  %3512 = vmatpush2.bf16.msra.mxu1 %v3377_v18  ;;  %v2696_v51 = vpop.f32.mrf.mxu0 }
 0x426   : >> { %v3436_v53 = vsel %vm488_vm6, %v3350_v5, %v3373_v3  ;;  %v2738_v46 = vpop.f32.mrf.mxu1 }
 0x427   : >> { %3472 = vmatprep.subr.bf16.mxu0 %v3436_v53  ;;  %v3357_v41 = vpop.permute.xlu1 %3356  ;;  %v2697_v40 = vpop.f32.mrf.mxu0 }
 0x428   : >> { %v3372_v14 = vsel %vm477_vm14, %v3357_v41, %v3359_v27  ;;  %v3339_v43 = vpop.permute.xlu0 %3338 }
 0x429   : >> { %v3349_v44 = vsel %vm450_vm13, %v3339_v43, %v3341_v8 }
 0x42a   : >> { %v3432_v13 = vsel %vm488_vm6, %v3349_v44, %v3372_v14 }
 0x42b   : >> { %3473 = vmatpush2.bf16.msra.mxu0 %v3432_v13  ;;  %v3363_v25 = vpop.permute.xlu1 %3362 }
 0x42c   : >> { %v3374_v54 = vsel %vm477_vm14, %v3361_v29, %v3363_v25  ;;  %v3345_v36 = vpop.permute.xlu0 %3344 }
 0x42d   : >> { %v3351_v22 = vsel %vm450_vm13, %v3343_v48, %v3345_v36  ;;  %v3444_v19 = vsel %vm488_vm6, %v3345_v36, %v3363_v25 }
 0x42e   : >> { %3513 = vmatprep.subr.bf16.mxu1 %v3444_v19  ;;  %v3440_v0 = vsel %vm488_vm6, %v3351_v22, %v3374_v54  ;;  %vm4182_vm6 = vcmask 1043459  }
 0x42f   : >> { %3514 = vmatpush2.bf16.msra.mxu1 %v3440_v0  ;;  %v3335_v42 = vpop.permute.xlu1 %3334 }
 0x430   : >> { %v3333_v10 = vpop.permute.xlu0 %3332 }
 0x431   : >> { %v3347_v17 = vsel %vm450_vm13, %v3333_v10, %v3335_v42 }
 0x432   : >> { %3474 = vmatprep.subr.bf16.mxu0 %v3347_v17 }
 0x433   : >> { %v3337_v60 = vpop.permute.xlu1 %3336 }
 0x434   : >> { %v3348_v1 = vsel %vm450_vm13, %v3335_v42, %v3337_v60  ;;  %v3331_v58 = vpop.permute.xlu0 %3330  ;;  %3515 = vmatprep.subr.bf16.mxu1 %v3337_v60 }
 0x435   : >> { %v3346_v37 = vsel %vm450_vm13, %v3331_v58, %v3333_v10  ;;  %3516 = vmatpush2.bf16.msra.mxu1 %v3348_v1  ;;  %vm4257_vm13 = vcmask 47104  }
 0x436   : >> { %3475 = vmatpush2.bf16.msra.mxu0 %v3346_v37 }
 0x437   : >> { %v3317_v35 = vpop.permute.xlu1 %3316 }
 0x438   : >> { %v3315_v56 = vpop.permute.xlu0 %3314 }
 0x439   : >> { %v3324_v11 = vsel %vm423_vm4, %v3315_v56, %v3317_v35 }
 0x43a   : >> { %3476 = vmatprep.subr.bf16.mxu0 %v3324_v11 }
 0x43b   : >> { %v3319_v12 = vpop.permute.xlu1 %3318 }
 0x43c   : >> { %v3325_v23 = vsel %vm423_vm4, %v3317_v35, %v3319_v12  ;;  %v3313_v28 = vpop.permute.xlu0 %3312  ;;  %3517 = vmatprep.subr.bf16.mxu1 %v3319_v12 }
 0x43d   : >> { %v3323_v31 = vsel %vm423_vm4, %v3313_v28, %v3315_v56  ;;  %3518 = vmatpush2.bf16.msra.mxu1 %v3325_v23  ;;  %vm4178_vm4 = vcmask 1041409  }
 0x43e   : >> { %3477 = vmatpush2.bf16.msra.mxu0 %v3323_v31 }
 0x440   : >> { %3520 = vmatmul.mubr.bf16.vlgmr.msra.gmra.mxu1 %v8253_v30 }
 0x441   : >> { %3479 = vmatmul.mubr.bf16.vlgmr.msra.gmra.mxu0 %v8253_v30 }
 0x449   : >> { %v3535_v24 = vpop.permute.xlu0 %3534 }
 0x490   : >> { %v3124_v47 = vpop.f32.mrf.mxu1 }
 0x491   : >> { %v3083_v63 = vpop.f32.mrf.mxu0  ;;  %v3133_v4 = vmax.f32 %v2742_v34, %v3124_v47 }
 0x492   : >> { %v3131_v16 = vmax.f32 %v2740_v2, %v3083_v63  ;;  %v3126_v7 = vpop.f32.mrf.mxu1 }
 0x493   : >> { %v3085_v49 = vpop.f32.mrf.mxu0  ;;  %v3134_v61 = vmax.f32 %v2743_v33, %v3126_v7 }
 0x494   : >> { %v3132_v59 = vmax.f32 %v2741_v15, %v3085_v49  ;;  %v3128_v50 = vpop.f32.mrf.mxu1 }
 0x495   : >> { %v3087_v26 = vpop.f32.mrf.mxu0 }
 0x496   : >> { %v3129_v9 = vpop.f32.mrf.mxu1 }
 0x497   : >> { %v3088_v57 = vpop.f32.mrf.mxu0 }
 0x500   : >> { %v3521_v32 = vpop.f32.mrf.mxu1 }
 0x501   : >> { %v3480_v6 = vpop.f32.mrf.mxu0  ;;  %v3530_v8 = vmax.f32 %v3133_v4, %v3521_v32 }
 0x502   : >> { %v3528_v39 = vmax.f32 %v3131_v16, %v3480_v6  ;;  %v3523_v62 = vpop.f32.mrf.mxu1 }
 0x503   : >> { %v3482_v27 = vpop.f32.mrf.mxu0  ;;  %v3531_v38 = vmax.f32 %v3134_v61, %v3523_v62  ;;  %v3539_v18 = vadd.f32 %v3535_v24, %v3530_v8 }
 0x504   : >> { %v3529_v30 = vmax.f32 %v3132_v59, %v3482_v27  ;;  %v3537_v48 = vadd.f32 %v3535_v24, %v3528_v39  ;;  %v3525_v52 = vpop.f32.mrf.mxu1 }
 0x505   : >> { %v3484_v20 = vpop.f32.mrf.mxu0  ;;  %v3540_v15 = vadd.f32 %v3535_v24, %v3531_v38  ;;  %v3543_v21 = vmax.f32 %v3539_v18, 0.0 }
 0x506   : >> { %v3538_v34 = vadd.f32 %v3535_v24, %v3529_v30  ;;  %v3541_v2 = vmax.f32 %v3537_v48, 0.0  ;;  %v3526_v45 = vpop.f32.mrf.mxu1 }
 0x507   : >> { %v3485_v55 = vpop.f32.mrf.mxu0  ;;  %v3544_v29 = vmax.f32 %v3540_v15, 0.0 }
 0x508   : >> { %v3542_v33 = vmax.f32 %v3538_v34, 0.0  ;;  %3545 = vxpose.xlu1.b32.start.end [1/1] (short) %v3541_v2, 128 }
 0x50a   : >> { %3577 = vxpose.xlu0.b32.start.end [1/1] (short) %v3542_v33, 128 }
 0x545   : >> { %3641 = vxpose.xlu1.b32.start.end [1/1] (short) (narrow) %v3544_v29, 120 }
 0x547   : >> { %3609 = vxpose.xlu0.b32.start.end [1/1] (short) %v3543_v21, 128 }
 0x584   : >> { %v3561_v5 = vpop.trf.xlu1 }
 0x585   : >> { %v3674_v3 = vsel %vm3673_vm3, %v3561_v5, -inf }
 0x586   : >> { %v3675_v51 = vrot.slane %v3674_v3, 4  ;;  %v3593_v53 = vpop.trf.xlu0 }
 0x587   : >> { %v3786_v46 = vsel %vm3673_vm3, %v3593_v53, -inf }
 0x588   : >> { %v3676_v41 = vmax.f32 %v3674_v3, %v3675_v51  ;;  %v3787_v40 = vrot.slane %v3786_v46, 4  ;;  %v3562_v14 = vpop.trf.xlu1 }
 0x589   : >> { %v3681_v43 = vsel %vm3673_vm3, %v3562_v14, -inf }
 0x58a   : >> { %v3677_v44 = vrot.slane %v3676_v41, 2  ;;  %v3788_v13 = vmax.f32 %v3786_v46, %v3787_v40  ;;  %v3682_v25 = vrot.slane %v3681_v43, 4  ;;  %v3594_v54 = vpop.trf.xlu0 }
 0x58b   : >> { %v3793_v36 = vsel %vm3673_vm3, %v3594_v54, -inf }
 0x58c   : >> { %v3789_v22 = vrot.slane %v3788_v13, 2  ;;  %v3683_v19 = vmax.f32 %v3681_v43, %v3682_v25  ;;  %v3794_v0 = vrot.slane %v3793_v36, 4  ;;  %v3563_v42 = vpop.trf.xlu1  ;;  %v3678_v10 = vmax.f32 %v3676_v41, %v3677_v44 }
 0x58d   : >> { %v3688_v17 = vsel %vm3673_vm3, %v3563_v42, -inf }
 0x58e   : >> { %v3790_v60 = vmax.f32 %v3788_v13, %v3789_v22  ;;  %v3684_v1 = vrot.slane %v3683_v19, 2  ;;  %v3795_v58 = vmax.f32 %v3793_v36, %v3794_v0  ;;  %v3595_v37 = vpop.trf.xlu0  ;;  %v3689_v35 = vrot.slane %v3688_v17, 4 }
 0x58f   : >> { %v3800_v56 = vsel %vm3673_vm3, %v3595_v37, -inf  ;;  %v3679_v28 = vrot.slane %v3678_v10, 1 }
 0x590   : >> { %v3685_v11 = vmax.f32 %v3683_v19, %v3684_v1  ;;  %v3796_v12 = vrot.slane %v3795_v58, 2  ;;  %v3564_v23 = vpop.trf.xlu1  ;;  %v3690_v31 = vmax.f32 %v3688_v17, %v3689_v35  ;;  %v3801_v47 = vrot.slane %v3800_v56, 4 }
 0x591   : >> { %v3695_v63 = vsel %vm3673_vm3, %v3564_v23, -inf  ;;  %v3791_v4 = vrot.slane %v3790_v60, 1  ;;  %v3680_v8 = vmax.f32 %v3678_v10, %v3679_v28 }
 0x592   : >> { %v3686_v16 = vrot.slane %v3685_v11, 1  ;;  %v3797_v7 = vmax.f32 %v3795_v58, %v3796_v12  ;;  %v3696_v49 = vrot.slane %v3695_v63, 4  ;;  %v3596_v61 = vpop.trf.xlu0  ;;  %v3691_v59 = vrot.slane %v3690_v31, 2 }
 0x593   : >> { %v3802_v50 = vmax.f32 %v3800_v56, %v3801_v47  ;;  %v3807_v26 = vsel %vm3673_vm3, %v3596_v61, -inf  ;;  %v3792_v27 = vmax.f32 %v3790_v60, %v3791_v4 }
 0x594   : >> { %v3798_v9 = vrot.slane %v3797_v7, 1  ;;  %v3697_v57 = vmax.f32 %v3695_v63, %v3696_v49  ;;  %v3808_v32 = vrot.slane %v3807_v26, 4  ;;  %v3565_v6 = vpop.trf.xlu1  ;;  %v3692_v24 = vmax.f32 %v3690_v31, %v3691_v59 }
 0x595   : >> { %v3803_v39 = vrot.slane %v3802_v50, 2  ;;  %v3702_v62 = vsel %vm3673_vm3, %v3565_v6, -inf  ;;  %v3687_v30 = vmax.f32 %v3685_v11, %v3686_v16 }
 0x596   : >> { %v3698_v48 = vrot.slane %v3697_v57, 2  ;;  %v3809_v52 = vmax.f32 %v3807_v26, %v3808_v32  ;;  %v3597_v20 = vpop.trf.xlu0  ;;  %v3693_v34 = vrot.slane %v3692_v24, 1  ;;  %v3703_v45 = vrot.slane %v3702_v62, 4 }
 0x597   : >> { %v3804_v2 = vmax.f32 %v3802_v50, %v3803_v39  ;;  %v3814_v55 = vsel %vm3673_vm3, %v3597_v20, -inf  ;;  %v3799_v33 = vmax.f32 %v3797_v7, %v3798_v9  ;;  %v4179_v43 = vsel %vm4178_vm4, %v3687_v30, %v3680_v8 }
 0x598   : >> { %v3699_v38 = vmax.f32 %v3697_v57, %v3698_v48  ;;  %v3810_v15 = vrot.slane %v3809_v52, 2  ;;  %v3815_v18 = vrot.slane %v3814_v55, 4  ;;  %v3566_v29 = vpop.trf.xlu1  ;;  %v3694_v21 = vmax.f32 %v3692_v24, %v3693_v34 }
 0x599   : >> { %v3805_v5 = vrot.slane %v3804_v2, 1  ;;  %v3704_v3 = vmax.f32 %v3702_v62, %v3703_v45  ;;  %v3709_v51 = vsel %vm3673_vm3, %v3566_v29, -inf  ;;  %v4199_v25 = vsel %vm4178_vm4, %v3799_v33, %v3792_v27 }
 0x59a   : >> { %v3700_v53 = vrot.slane %v3699_v38, 1  ;;  %v3811_v46 = vmax.f32 %v3809_v52, %v3810_v15  ;;  %v3816_v41 = vmax.f32 %v3814_v55, %v3815_v18  ;;  %v3710_v40 = vrot.slane %v3709_v51, 4  ;;  %v3598_v14 = vpop.trf.xlu0 }
 0x59b   : >> { %v3705_v44 = vrot.slane %v3704_v3, 2  ;;  %v3821_v13 = vsel %vm3673_vm3, %v3598_v14, -inf  ;;  %v4181_v0 = vsel %vm4180_vm5, %v3694_v21, %v4179_v43  ;;  %v3806_v60 = vmax.f32 %v3804_v2, %v3805_v5 }
 0x59c   : >> { %v3812_v54 = vrot.slane %v3811_v46, 1  ;;  %v3817_v36 = vrot.slane %v3816_v41, 2  ;;  %v3711_v22 = vmax.f32 %v3709_v51, %v3710_v40  ;;  %v3567_v19 = vpop.trf.xlu1  ;;  %v3822_v10 = vrot.slane %v3821_v13, 4 }
 0x59d   : >> { %v3706_v42 = vmax.f32 %v3704_v3, %v3705_v44  ;;  %v3716_v17 = vsel %vm3673_vm3, %v3567_v19, -inf  ;;  %v3701_v1 = vmax.f32 %v3699_v38, %v3700_v53  ;;  %v4200_v59 = vsel %vm4180_vm5, %v3806_v60, %v4199_v25 }
 0x59e   : >> { %v3818_v58 = vmax.f32 %v3816_v41, %v3817_v36  ;;  %v3712_v37 = vrot.slane %v3711_v22, 2  ;;  %v3599_v35 = vpop.trf.xlu0  ;;  %v3823_v11 = vmax.f32 %v3821_v13, %v3822_v10  ;;  %v3717_v12 = vrot.slane %v3716_v17, 4 }
 0x59f   : >> { %v3707_v56 = vrot.slane %v3706_v42, 1  ;;  %v3828_v23 = vsel %vm3673_vm3, %v3599_v35, -inf  ;;  %v3813_v28 = vmax.f32 %v3811_v46, %v3812_v54  ;;  %v4183_v50 = vsel %vm4182_vm6, %v3701_v1, %v4181_v0 }
 0x5a0   : >> { %v3819_v31 = vrot.slane %v3818_v58, 1  ;;  %v3713_v47 = vmax.f32 %v3711_v22, %v3712_v37  ;;  %v3829_v63 = vrot.slane %v3828_v23, 4  ;;  %v3568_v4 = vpop.trf.xlu1  ;;  %v3824_v7 = vrot.slane %v3823_v11, 2 }
 0x5a1   : >> { %v3708_v16 = vmax.f32 %v3706_v42, %v3707_v56  ;;  %v3718_v49 = vmax.f32 %v3716_v17, %v3717_v12  ;;  %v3723_v61 = vsel %vm3673_vm3, %v3568_v4, -inf  ;;  %v4201_v39 = vsel %vm4182_vm6, %v3813_v28, %v4200_v59 }
 0x5a2   : >> { %v3830_v26 = vmax.f32 %v3828_v23, %v3829_v63  ;;  %v3724_v9 = vrot.slane %v3723_v61, 4  ;;  %v3600_v57 = vpop.trf.xlu0  ;;  %v3714_v32 = vrot.slane %v3713_v47, 1  ;;  %v3825_v6 = vmax.f32 %v3823_v11, %v3824_v7 }
 0x5a3   : >> { %v3719_v8 = vrot.slane %v3718_v49, 2  ;;  %v3835_v24 = vsel %vm3673_vm3, %v3600_v57, -inf  ;;  %v3820_v62 = vmax.f32 %v3818_v58, %v3819_v31  ;;  %v4185_v52 = vsel %vm2745_vm2, %v3708_v16, %v4183_v50 }
 0x5a4   : >> { %v3831_v27 = vrot.slane %v3830_v26, 2  ;;  %v3725_v30 = vmax.f32 %v3723_v61, %v3724_v9  ;;  %v3569_v48 = vpop.trf.xlu1  ;;  %v3836_v34 = vrot.slane %v3835_v24, 4  ;;  %v3826_v45 = vrot.slane %v3825_v6, 1 }
 0x5a5   : >> { %v3720_v20 = vmax.f32 %v3718_v49, %v3719_v8  ;;  %v3730_v2 = vsel %vm3673_vm3, %v3569_v48, -inf  ;;  %v3715_v18 = vmax.f32 %v3713_v47, %v3714_v32  ;;  %v4202_v40 = vsel %vm2745_vm2, %v3820_v62, %v4201_v39 }
 0x5a6   : >> { %v3832_v55 = vmax.f32 %v3830_v26, %v3831_v27  ;;  %v3726_v33 = vrot.slane %v3725_v30, 2  ;;  %v3731_v38 = vrot.slane %v3730_v2, 4  ;;  %v3601_v15 = vpop.trf.xlu0  ;;  %v3837_v21 = vmax.f32 %v3835_v24, %v3836_v34 }
 0x5a7   : >> { %v3721_v29 = vrot.slane %v3720_v20, 1  ;;  %v3842_v5 = vsel %vm3673_vm3, %v3601_v15, -inf  ;;  %v3827_v13 = vmax.f32 %v3825_v6, %v3826_v45  ;;  %v4187_v19 = vsel %vm4186_vm7, %v3715_v18, %v4185_v52 }
 0x5a8   : >> { %v3833_v3 = vrot.slane %v3832_v55, 1  ;;  %v3727_v51 = vmax.f32 %v3725_v30, %v3726_v33  ;;  %v3732_v53 = vmax.f32 %v3730_v2, %v3731_v38  ;;  %v3843_v46 = vrot.slane %v3842_v5, 4  ;;  %v3570_v41 = vpop.trf.xlu1 }
 0x5a9   : >> { %v3722_v14 = vmax.f32 %v3720_v20, %v3721_v29  ;;  %v3838_v43 = vrot.slane %v3837_v21, 2  ;;  %v3737_v44 = vsel %vm3673_vm3, %v3570_v41, -inf  ;;  %v4203_v23 = vsel %vm4186_vm7, %v3827_v13, %v4202_v40 }
 0x5aa   : >> { %v3728_v25 = vrot.slane %v3727_v51, 1  ;;  %v3733_v54 = vrot.slane %v3732_v53, 2  ;;  %v3844_v36 = vmax.f32 %v3842_v5, %v3843_v46  ;;  %v3602_v22 = vpop.trf.xlu0  ;;  %v3738_v42 = vrot.slane %v3737_v44, 4 }
 0x5ab   : >> { %v3839_v0 = vmax.f32 %v3837_v21, %v3838_v43  ;;  %v3849_v10 = vsel %vm3673_vm3, %v3602_v22, -inf  ;;  %v4189_v17 = vsel %vm4188_vm8, %v3722_v14, %v4187_v19  ;;  %v3834_v60 = vmax.f32 %v3832_v55, %v3833_v3 }
 0x5ac   : >> { %v3729_v1 = vmax.f32 %v3727_v51, %v3728_v25  ;;  %v3845_v58 = vrot.slane %v3844_v36, 2  ;;  %v3571_v37 = vpop.trf.xlu1  ;;  %v3739_v56 = vmax.f32 %v3737_v44, %v3738_v42  ;;  %v3850_v11 = vrot.slane %v3849_v10, 4 }
 0x5ad   : >> { %v3840_v35 = vrot.slane %v3839_v0, 1  ;;  %v3744_v12 = vsel %vm3673_vm3, %v3571_v37, -inf  ;;  %v3734_v31 = vmax.f32 %v3732_v53, %v3733_v54  ;;  %v4204_v61 = vsel %vm4188_vm8, %v3834_v60, %v4203_v23 }
 0x5ae   : >> { %v4191_v28 = vsel %vm4190_vm9, %v3729_v1, %v4189_v17  ;;  %v3745_v47 = vrot.slane %v3744_v12, 4  ;;  %v3603_v63 = vpop.trf.xlu0  ;;  %v3740_v16 = vrot.slane %v3739_v56, 2  ;;  %v3851_v7 = vmax.f32 %v3849_v10, %v3850_v11 }
 0x5af   : >> { %4250 = vst.msk [vmem:[%s7847_s6] sm:$0xff] %vm3673_vm3, %v4191_v28  ;;  %v3841_v4 = vmax.f32 %v3839_v0, %v3840_v35  ;;  %v3856_v49 = vsel %vm3673_vm3, %v3603_v63, -inf  ;;  %v3846_v59 = vmax.f32 %v3844_v36, %v3845_v58  ;;  %v3735_v30 = vrot.slane %v3734_v31, 1 }
 0x5b0   : >> { %v3746_v50 = vmax.f32 %v3744_v12, %v3745_v47  ;;  %v3857_v26 = vrot.slane %v3856_v49, 4  ;;  %v3572_v9 = vpop.trf.xlu1  ;;  %v3741_v32 = vmax.f32 %v3739_v56, %v3740_v16  ;;  %v3852_v6 = vrot.slane %v3851_v7, 2 }
 0x5b1   : >> { %v4205_v57 = vsel %vm4190_vm9, %v3841_v4, %v4204_v61  ;;  %v3751_v8 = vsel %vm3673_vm3, %v3572_v9, -inf  ;;  %v3847_v38 = vrot.slane %v3846_v59, 1  ;;  %v3736_v46 = vmax.f32 %v3734_v31, %v3735_v30 }
 0x5b2   : >> { %4252 = vst.msk [vmem:[%s7847_s6 + $0x10] sm:$0xff] %vm3673_vm3, %v4205_v57  ;;  %v3747_v24 = vrot.slane %v3746_v50, 2  ;;  %v3858_v39 = vmax.f32 %v3856_v49, %v3857_v26  ;;  %v3752_v62 = vrot.slane %v3751_v8, 4  ;;  %v3604_v27 = vpop.trf.xlu0  ;;  %v3742_v48 = vrot.slane %v3741_v32, 1 }
 0x5b3   : >> { %v3853_v52 = vmax.f32 %v3851_v7, %v3852_v6  ;;  %v3863_v20 = vsel %vm3673_vm3, %v3604_v27, -inf  ;;  %v3848_v54 = vmax.f32 %v3846_v59, %v3847_v38 }
 0x5b4   : >> { %v3748_v34 = vmax.f32 %v3746_v50, %v3747_v24  ;;  %v3859_v2 = vrot.slane %v3858_v39, 2  ;;  %v3753_v45 = vmax.f32 %v3751_v8, %v3752_v62  ;;  %v3864_v55 = vrot.slane %v3863_v20, 4  ;;  %v3573_v33 = vpop.trf.xlu1 }
 0x5b5   : >> { %v3743_v15 = vmax.f32 %v3741_v32, %v3742_v48  ;;  %v3854_v18 = vrot.slane %v3853_v52, 1  ;;  %v3758_v29 = vsel %vm3673_vm3, %v3573_v33, -inf }
 0x5b6   : >> { %v3749_v21 = vrot.slane %v3748_v34, 1  ;;  %v3860_v5 = vmax.f32 %v3858_v39, %v3859_v2  ;;  %v3754_v3 = vrot.slane %v3753_v45, 2  ;;  %v3865_v51 = vmax.f32 %v3863_v20, %v3864_v55  ;;  %v3605_v53 = vpop.trf.xlu0 }
 0x5b7   : >> { %v3759_v41 = vrot.slane %v3758_v29, 4  ;;  %v3870_v40 = vsel %vm3673_vm3, %v3605_v53, -inf  ;;  %v3855_v14 = vmax.f32 %v3853_v52, %v3854_v18  ;;  %v4192_v0 = vsel %vm4178_vm4, %v3743_v15, %v3736_v46 }
 0x5b8   : >> { %v3861_v43 = vrot.slane %v3860_v5, 1  ;;  %v3755_v44 = vmax.f32 %v3753_v45, %v3754_v3  ;;  %v3866_v13 = vrot.slane %v3865_v51, 2  ;;  %v3574_v25 = vpop.trf.xlu1  ;;  %v3871_v22 = vrot.slane %v3870_v40, 4 }
 0x5b9   : >> { %v3760_v36 = vmax.f32 %v3758_v29, %v3759_v41  ;;  %v3765_v19 = vsel %vm3673_vm3, %v3574_v25, -inf  ;;  %v3750_v42 = vmax.f32 %v3748_v34, %v3749_v21  ;;  %v4206_v56 = vsel %vm4178_vm4, %v3855_v14, %v3848_v54 }
 0x5ba   : >> { %v3756_v10 = vrot.slane %v3755_v44, 1  ;;  %v3867_v17 = vmax.f32 %v3865_v51, %v3866_v13  ;;  %v3606_v60 = vpop.trf.xlu0  ;;  %v3872_v58 = vmax.f32 %v3870_v40, %v3871_v22  ;;  %v3766_v37 = vrot.slane %v3765_v19, 4 }
 0x5bb   : >> { %v3761_v1 = vrot.slane %v3760_v36, 2  ;;  %v3877_v35 = vsel %vm3673_vm3, %v3606_v60, -inf  ;;  %v3862_v11 = vmax.f32 %v3860_v5, %v3861_v43  ;;  %v4193_v16 = vsel %vm4180_vm5, %v3750_v42, %v4192_v0 }
 0x5bc   : >> { %v3868_v12 = vrot.slane %v3867_v17, 1  ;;  %v3878_v23 = vrot.slane %v3877_v35, 4  ;;  %v3575_v28 = vpop.trf.xlu1  ;;  %v3873_v47 = vrot.slane %v3872_v58, 2  ;;  %v3767_v63 = vmax.f32 %v3765_v19, %v3766_v37 }
 0x5bd   : >> { %v3762_v31 = vmax.f32 %v3760_v36, %v3761_v1  ;;  %v3772_v4 = vsel %vm3673_vm3, %v3575_v28, -inf  ;;  %v3757_v7 = vmax.f32 %v3755_v44, %v3756_v10  ;;  %v4207_v32 = vsel %vm4180_vm5, %v3862_v11, %v4206_v56 }
 0x5be   : >> { %v3879_v49 = vmax.f32 %v3877_v35, %v3878_v23  ;;  %v3773_v61 = vrot.slane %v3772_v4, 4  ;;  %v3607_v59 = vpop.trf.xlu0  ;;  %v3874_v26 = vmax.f32 %v3872_v58, %v3873_v47  ;;  %v3768_v9 = vrot.slane %v3767_v63, 2 }
 0x5bf   : >> { %v3763_v50 = vrot.slane %v3762_v31, 1  ;;  %v3884_v57 = vsel %vm3673_vm3, %v3607_v59, -inf  ;;  %v3869_v62 = vmax.f32 %v3867_v17, %v3868_v12  ;;  %v4194_v55 = vsel %vm4182_vm6, %v3757_v7, %v4193_v16 }
 0x5c0   : >> { %v3880_v6 = vrot.slane %v3879_v49, 2  ;;  %v3774_v8 = vmax.f32 %v3772_v4, %v3773_v61  ;;  %v3885_v24 = vrot.slane %v3884_v57, 4  ;;  %v3576_v39 = vpop.trf.xlu1  ;;  %v3875_v27 = vrot.slane %v3874_v26, 1 }
 0x5c1   : >> { %v3769_v30 = vmax.f32 %v3767_v63, %v3768_v9  ;;  %v3779_v48 = vsel %vm3673_vm3, %v3576_v39, -inf  ;;  %v3764_v33 = vmax.f32 %v3762_v31, %v3763_v50  ;;  %v4208_v51 = vsel %vm4182_vm6, %v3869_v62, %v4207_v32 }
 0x5c2   : >> { %v3881_v52 = vmax.f32 %v3879_v49, %v3880_v6  ;;  %v3775_v20 = vrot.slane %v3774_v8, 2  ;;  %v3886_v34 = vmax.f32 %v3884_v57, %v3885_v24  ;;  %v3780_v2 = vrot.slane %v3779_v48, 4  ;;  %v3608_v45 = vpop.trf.xlu0 }
 0x5c3   : >> { %v3770_v38 = vrot.slane %v3769_v30, 1  ;;  %v3891_v15 = vsel %vm3673_vm3, %v3608_v45, -inf  ;;  %v3876_v53 = vmax.f32 %v3874_v26, %v3875_v27  ;;  %v4195_v19 = vsel %vm2745_vm2, %v3764_v33, %v4194_v55 }
 0x5c4   : >> { %v3882_v18 = vrot.slane %v3881_v52, 1  ;;  %v3776_v29 = vmax.f32 %v3774_v8, %v3775_v20  ;;  %v3887_v21 = vrot.slane %v3886_v34, 2  ;;  %v3781_v5 = vmax.f32 %v3779_v48, %v3780_v2  ;;  %v3657_v3 = vpop.trf.xlu1 }
 0x5c5   : >> { %v3892_v46 = vrot.slane %v3891_v15, 4  ;;  %v4010_v41 = vsel %vm3673_vm3, %v3657_v3, -inf  ;;  %v3771_v40 = vmax.f32 %v3769_v30, %v3770_v38  ;;  %v4209_v35 = vsel %vm2745_vm2, %v3876_v53, %v4208_v51 }
 0x5c6   : >> { %v3777_v14 = vrot.slane %v3776_v29, 1  ;;  %v3888_v43 = vmax.f32 %v3886_v34, %v3887_v21  ;;  %v3782_v44 = vrot.slane %v3781_v5, 2  ;;  %v3625_v13 = vpop.trf.xlu0  ;;  %v3883_v25 = vmax.f32 %v3881_v52, %v3882_v18 }
 0x5c7   : >> { %v3893_v54 = vmax.f32 %v3891_v15, %v3892_v46  ;;  %v4011_v36 = vrot.slane %v4010_v41, 4  ;;  %v3898_v22 = vsel %vm3673_vm3, %v3625_v13, -inf  ;;  %v4196_v56 = vsel %vm4186_vm7, %v3771_v40, %v4195_v19 }
 0x5c8   : >> { %v3778_v0 = vmax.f32 %v3776_v29, %v3777_v14  ;;  %v3889_v42 = vrot.slane %v3888_v43, 1  ;;  %v3783_v10 = vmax.f32 %v3781_v5, %v3782_v44  ;;  %v3658_v17 = vpop.trf.xlu1  ;;  %v3899_v58 = vrot.slane %v3898_v22, 4 }
 0x5c9   : >> { %v3894_v60 = vrot.slane %v3893_v54, 2  ;;  %v4012_v1 = vmax.f32 %v4010_v41, %v4011_v36  ;;  %v4017_v37 = vsel %vm3673_vm3, %v3658_v17, -inf  ;;  %v4210_v28 = vsel %vm4186_vm7, %v3883_v25, %v4209_v35 }
 0x5ca   : >> { %v3784_v11 = vrot.slane %v3783_v10, 1  ;;  %v4018_v12 = vrot.slane %v4017_v37, 4  ;;  %v3626_v23 = vpop.trf.xlu0  ;;  %v3890_v31 = vmax.f32 %v3888_v43, %v3889_v42  ;;  %v3900_v16 = vmax.f32 %v3898_v22, %v3899_v58 }
 0x5cb   : >> { %v3895_v47 = vmax.f32 %v3893_v54, %v3894_v60  ;;  %v3905_v63 = vsel %vm3673_vm3, %v3626_v23, -inf  ;;  %v4197_v59 = vsel %vm4188_vm8, %v3778_v0, %v4196_v56  ;;  %v4013_v26 = vrot.slane %v4012_v1, 2 }
 0x5cc   : >> { %v3785_v4 = vmax.f32 %v3783_v10, %v3784_v11  ;;  %v4019_v7 = vmax.f32 %v4017_v37, %v4018_v12  ;;  %v3906_v49 = vrot.slane %v3905_v63, 4  ;;  %v3659_v61 = vpop.trf.xlu1  ;;  %v4211_v39 = vsel %vm4188_vm8, %v3890_v31, %v4210_v28 }
 0x5cd   : >> { %v3896_v50 = vrot.slane %v3895_v47, 1  ;;  %v4024_v9 = vsel %vm3673_vm3, %v3659_v61, -inf  ;;  %v3901_v30 = vrot.slane %v3900_v16, 2  ;;  %v4014_v55 = vmax.f32 %v4012_v1, %v4013_v26 }
 0x5ce   : >> { %v4198_v57 = vsel %vm4190_vm9, %v3785_v4, %v4197_v59  ;;  %v4020_v32 = vrot.slane %v4019_v7, 2  ;;  %v3907_v6 = vmax.f32 %v3905_v63, %v3906_v49  ;;  %v4025_v8 = vrot.slane %v4024_v9, 4  ;;  %v3627_v24 = vpop.trf.xlu0 }
 0x5cf   : >> { %4251 = vst.msk [vmem:[%s7847_s6 + $0x8] sm:$0xff] %vm3673_vm3, %v4198_v57  ;;  %v3897_v62 = vmax.f32 %v3895_v47, %v3896_v50  ;;  %v3912_v27 = vsel %vm3673_vm3, %v3627_v24, -inf  ;;  %v3902_v5 = vmax.f32 %v3900_v16, %v3901_v30  ;;  %v4015_v43 = vrot.slane %v4014_v55, 1 }
 0x5d0   : >> { %v3908_v48 = vrot.slane %v3907_v6, 2  ;;  %v4026_v52 = vmax.f32 %v4024_v9, %v4025_v8  ;;  %v3913_v20 = vrot.slane %v3912_v27, 4  ;;  %v3660_v34 = vpop.trf.xlu1  ;;  %v4021_v33 = vmax.f32 %v4019_v7, %v4020_v32 }
 0x5d1   : >> { %v4212_v2 = vsel %vm4190_vm9, %v3897_v62, %v4211_v39  ;;  %v4031_v45 = vsel %vm3673_vm3, %v3660_v34, -inf  ;;  %v3903_v0 = vrot.slane %v3902_v5, 1  ;;  %v4016_v56 = vmax.f32 %v4014_v55, %v4015_v43 }
 0x5d2   : >> { %4253 = vst.msk [vmem:[%s7847_s6 + $0x18] sm:$0xff] %vm3673_vm3, %v4212_v2  ;;  %v4027_v38 = vrot.slane %v4026_v52, 2  ;;  %v3914_v15 = vmax.f32 %v3912_v27, %v3913_v20  ;;  %v3628_v18 = vpop.trf.xlu0  ;;  %v4032_v29 = vrot.slane %v4031_v45, 4  ;;  %v3909_v3 = vmax.f32 %v3907_v6, %v3908_v48 }
 0x5d3   : >> { %v3919_v21 = vsel %vm3673_vm3, %v3628_v18, -inf  ;;  %v4022_v44 = vrot.slane %v4021_v33, 1  ;;  %v3904_v16 = vmax.f32 %v3902_v5, %v3903_v0 }
 0x5d4   : >> { %v4028_v51 = vmax.f32 %v4026_v52, %v4027_v38  ;;  %v3915_v53 = vrot.slane %v3914_v15, 2  ;;  %v3661_v46 = vpop.trf.xlu1  ;;  %v4033_v41 = vmax.f32 %v4031_v45, %v4032_v29  ;;  %v3920_v40 = vrot.slane %v3919_v21, 4 }
 0x5d5   : >> { %v4038_v14 = vsel %vm3673_vm3, %v3661_v46, -inf  ;;  %v3910_v42 = vrot.slane %v3909_v3, 1  ;;  %v4023_v11 = vmax.f32 %v4021_v33, %v4022_v44 }
 0x5d6   : >> { %v3916_v13 = vmax.f32 %v3914_v15, %v3915_v53  ;;  %v3629_v25 = vpop.trf.xlu0  ;;  %v4034_v54 = vrot.slane %v4033_v41, 2  ;;  %v3921_v36 = vmax.f32 %v3919_v21, %v3920_v40  ;;  %v4039_v22 = vrot.slane %v4038_v14, 4 }
 0x5d7   : >> { %v3926_v19 = vsel %vm3673_vm3, %v3629_v25, -inf  ;;  %v4029_v10 = vrot.slane %v4028_v51, 1  ;;  %v3911_v50 = vmax.f32 %v3909_v3, %v3910_v42  ;;  %v4227_v62 = vsel %vm4178_vm4, %v4023_v11, %v4016_v56 }
 0x5d8   : >> { %v3927_v17 = vrot.slane %v3926_v19, 4  ;;  %v3662_v60 = vpop.trf.xlu1  ;;  %v4035_v1 = vmax.f32 %v4033_v41, %v4034_v54  ;;  %v3922_v58 = vrot.slane %v3921_v36, 2  ;;  %v4040_v37 = vmax.f32 %v4038_v14, %v4039_v22 }
 0x5d9   : >> { %v4045_v35 = vsel %vm3673_vm3, %v3662_v60, -inf  ;;  %v3917_v31 = vrot.slane %v3916_v13, 1  ;;  %v4030_v26 = vmax.f32 %v4028_v51, %v4029_v10  ;;  %v4213_v55 = vsel %vm4178_vm4, %v3911_v50, %v3904_v16 }
 0x5da   : >> { %v3928_v12 = vmax.f32 %v3926_v19, %v3927_v17  ;;  %v4046_v23 = vrot.slane %v4045_v35, 4  ;;  %v3630_v28 = vpop.trf.xlu0  ;;  %v3923_v47 = vmax.f32 %v3921_v36, %v3922_v58  ;;  %v4041_v63 = vrot.slane %v4040_v37, 2 }
 0x5db   : >> { %v3933_v4 = vsel %vm3673_vm3, %v3630_v28, -inf  ;;  %v4036_v9 = vrot.slane %v4035_v1, 1  ;;  %v3918_v27 = vmax.f32 %v3916_v13, %v3917_v31  ;;  %v4228_v33 = vsel %vm4180_vm5, %v4030_v26, %v4227_v62 }
 0x5dc   : >> { %v3929_v7 = vrot.slane %v3928_v12, 2  ;;  %v4047_v49 = vmax.f32 %v4045_v35, %v4046_v23  ;;  %v3934_v61 = vrot.slane %v3933_v4, 4  ;;  %v3663_v59 = vpop.trf.xlu1  ;;  %v4042_v32 = vmax.f32 %v4040_v37, %v4041_v63 }
 0x5dd   : >> { %v4052_v57 = vsel %vm3673_vm3, %v3663_v59, -inf  ;;  %v3924_v30 = vrot.slane %v3923_v47, 1  ;;  %v4037_v18 = vmax.f32 %v4035_v1, %v4036_v9  ;;  %v4214_v51 = vsel %vm4180_vm5, %v3918_v27, %v4213_v55 }
 0x5de   : >> { %v4048_v6 = vrot.slane %v4047_v49, 2  ;;  %v3935_v8 = vmax.f32 %v3933_v4, %v3934_v61  ;;  %v4053_v24 = vrot.slane %v4052_v57, 4  ;;  %v3631_v39 = vpop.trf.xlu0  ;;  %v3930_v52 = vmax.f32 %v3928_v12, %v3929_v7 }
 0x5df   : >> { %v3940_v48 = vsel %vm3673_vm3, %v3631_v39, -inf  ;;  %v4043_v29 = vrot.slane %v4042_v32, 1  ;;  %v3925_v40 = vmax.f32 %v3923_v47, %v3924_v30  ;;  %v4229_v19 = vsel %vm4182_vm6, %v4037_v18, %v4228_v33 }
 0x5e0   : >> { %v4049_v20 = vmax.f32 %v4047_v49, %v4048_v6  ;;  %v3936_v34 = vrot.slane %v3935_v8, 2  ;;  %v4054_v2 = vmax.f32 %v4052_v57, %v4053_v24  ;;  %v3664_v45 = vpop.trf.xlu1  ;;  %v3941_v38 = vrot.slane %v3940_v48, 4 }
 0x5e1   : >> { %v4059_v15 = vsel %vm3673_vm3, %v3664_v45, -inf  ;;  %v3931_v14 = vrot.slane %v3930_v52, 1  ;;  %v4044_v0 = vmax.f32 %v4042_v32, %v4043_v29  ;;  %v4215_v35 = vsel %vm4182_vm6, %v3925_v40, %v4214_v51 }
 0x5e2   : >> { %v3937_v21 = vmax.f32 %v3935_v8, %v3936_v34  ;;  %v4055_v5 = vrot.slane %v4054_v2, 2  ;;  %v3632_v3 = vpop.trf.xlu0  ;;  %v3942_v53 = vmax.f32 %v3940_v48, %v3941_v38  ;;  %v4060_v46 = vrot.slane %v4059_v15, 4 }
 0x5e3   : >> { %v3947_v41 = vsel %vm3673_vm3, %v3632_v3, -inf  ;;  %v4050_v43 = vrot.slane %v4049_v20, 1  ;;  %v3932_v56 = vmax.f32 %v3930_v52, %v3931_v14  ;;  %v4230_v4 = vsel %vm2745_vm2, %v4044_v0, %v4229_v19 }
 0x5e4   : >> { %v4056_v44 = vmax.f32 %v4054_v2, %v4055_v5  ;;  %v3665_v13 = vpop.trf.xlu1  ;;  %v3943_v25 = vrot.slane %v3942_v53, 2  ;;  %v4061_v54 = vmax.f32 %v4059_v15, %v4060_v46  ;;  %v3948_v36 = vrot.slane %v3947_v41, 4 }
 0x5e5   : >> { %v4066_v22 = vsel %vm3673_vm3, %v3665_v13, -inf  ;;  %v3938_v42 = vrot.slane %v3937_v21, 1  ;;  %v4051_v11 = vmax.f32 %v4049_v20, %v4050_v43  ;;  %v4216_v57 = vsel %vm2745_vm2, %v3932_v56, %v4215_v35 }
 0x5e6   : >> { %v4057_v10 = vrot.slane %v4056_v44, 1  ;;  %v3633_v17 = vpop.trf.xlu0  ;;  %v3944_v60 = vmax.f32 %v3942_v53, %v3943_v25  ;;  %v4062_v1 = vrot.slane %v4061_v54, 2  ;;  %v3949_v58 = vmax.f32 %v3947_v41, %v3948_v36 }
 0x5e7   : >> { %v4067_v37 = vrot.slane %v4066_v22, 4  ;;  %v3954_v12 = vsel %vm3673_vm3, %v3633_v17, -inf  ;;  %v3939_v16 = vmax.f32 %v3937_v21, %v3938_v42  ;;  %v4231_v32 = vsel %vm4186_vm7, %v4051_v11, %v4230_v4 }
 0x5e8   : >> { %v3666_v23 = vpop.trf.xlu1  ;;  %v3945_v28 = vrot.slane %v3944_v60, 1  ;;  %v4063_v31 = vmax.f32 %v4061_v54, %v4062_v1  ;;  %v3950_v47 = vrot.slane %v3949_v58, 2  ;;  %v4058_v7 = vmax.f32 %v4056_v44, %v4057_v10 }
 0x5e9   : >> { %v4073_v63 = vsel %vm3673_vm3, %v3666_v23, -inf  ;;  %v4068_v26 = vmax.f32 %v4066_v22, %v4067_v37  ;;  %v3955_v8 = vrot.slane %v3954_v12, 4  ;;  %v4217_v48 = vsel %vm4186_vm7, %v3939_v16, %v4216_v57 }
 0x5ea   : >> { %v4074_v49 = vrot.slane %v4073_v63, 4  ;;  %v3634_v61 = vpop.trf.xlu0  ;;  %v4064_v59 = vrot.slane %v4063_v31, 1  ;;  %v3951_v50 = vmax.f32 %v3949_v58, %v3950_v47  ;;  %v3946_v6 = vmax.f32 %v3944_v60, %v3945_v28 }
 0x5eb   : >> { %v3961_v9 = vsel %vm3673_vm3, %v3634_v61, -inf  ;;  %v4232_v52 = vsel %vm4188_vm8, %v4058_v7, %v4231_v32  ;;  %v4069_v55 = vrot.slane %v4068_v26, 2  ;;  %v3956_v15 = vmax.f32 %v3954_v12, %v3955_v8 }
 0x5ec   : >> { %v3667_v24 = vpop.trf.xlu1  ;;  %v4065_v39 = vmax.f32 %v4063_v31, %v4064_v59  ;;  %v3952_v62 = vrot.slane %v3951_v50, 1  ;;  %v4075_v27 = vmax.f32 %v4073_v63, %v4074_v49  ;;  %v3962_v20 = vrot.slane %v3961_v9, 4 }
 0x5ed   : >> { %v4080_v30 = vsel %vm3673_vm3, %v3667_v24, -inf  ;;  %v4218_v38 = vsel %vm4188_vm8, %v3946_v6, %v4217_v48  ;;  %v4070_v40 = vmax.f32 %v4068_v26, %v4069_v55  ;;  %v3957_v44 = vrot.slane %v3956_v15, 2 }
 0x5ee   : >> { %v3635_v34 = vpop.trf.xlu0  ;;  %v4233_v2 = vsel %vm4190_vm9, %v4065_v39, %v4232_v52  ;;  %v3953_v45 = vmax.f32 %v3951_v50, %v3952_v62  ;;  %v4081_v33 = vrot.slane %v4080_v30, 4  ;;  %v4076_v5 = vrot.slane %v4075_v27, 2 }
 0x5ef   : >> { %4256 = vst.msk [vmem:[%s7847_s6 + $0x30] sm:$0xff] %vm3673_vm3, %v4233_v2  ;;  %v3968_v18 = vsel %vm3673_vm3, %v3635_v34, -inf  ;;  %v3963_v51 = vmax.f32 %v3961_v9, %v3962_v20  ;;  %v4071_v10 = vrot.slane %v4070_v40, 1  ;;  %v7931_v58 = vmax.f32 %v3956_v15, %v3957_v44 }
 0x5f0   : >> { %v3668_v29 = vpop.trf.xlu1  ;;  %v4219_v21 = vsel %vm4190_vm9, %v3953_v45, %v4218_v38  ;;  %v4082_v53 = vmax.f32 %v4080_v30, %v4081_v33  ;;  %v3969_v14 = vrot.slane %v3968_v18, 4  ;;  %v4077_v36 = vmax.f32 %v4075_v27, %v4076_v5 }
 0x5f1   : >> { %v4087_v3 = vsel %vm3673_vm3, %v3668_v29, -inf  ;;  %4254 = vst.msk [vmem:[%s7847_s6 + $0x20] sm:$0xff] %vm3673_vm3, %v4219_v21  ;;  %v3964_v19 = vrot.slane %v3963_v51, 2  ;;  %v4072_v7 = vmax.f32 %v4070_v40, %v4071_v10  ;;  %v3959_v50 = vrot.slane %v7931_v58, 1 }
 0x5f2   : >> { %v4088_v46 = vrot.slane %v4087_v3, 4  ;;  %v3636_v41 = vpop.trf.xlu0  ;;  %v4083_v0 = vrot.slane %v4082_v53, 2  ;;  %v3970_v17 = vmax.f32 %v3968_v18, %v3969_v14  ;;  %v4078_v12 = vrot.slane %v4077_v36, 1 }
 0x5f3   : >> { %v3975_v43 = vsel %vm3673_vm3, %v3636_v41, -inf  ;;  %v3965_v31 = vmax.f32 %v3963_v51, %v3964_v19 }
 0x5f4   : >> { %v4089_v13 = vmax.f32 %v4087_v3, %v4088_v46  ;;  %v3976_v25 = vrot.slane %v3975_v43, 4  ;;  %v3669_v54 = vpop.trf.xlu1  ;;  %v4084_v47 = vmax.f32 %v4082_v53, %v4083_v0  ;;  %v3971_v49 = vrot.slane %v3970_v17, 2 }
 0x5f5   : >> { %v4094_v22 = vsel %vm3673_vm3, %v3669_v54, -inf  ;;  %v4079_v62 = vmax.f32 %v4077_v36, %v4078_v12  ;;  %v3966_v27 = vrot.slane %v3965_v31, 1 }
 0x5f6   : >> { %v3637_v42 = vpop.trf.xlu0  ;;  %v4095_v60 = vrot.slane %v4094_v22, 4  ;;  %v4090_v37 = vrot.slane %v4089_v13, 2  ;;  %v3977_v35 = vmax.f32 %v3975_v43, %v3976_v25  ;;  %v4085_v30 = vrot.slane %v4084_v47, 1 }
 0x5f7   : >> { %v3982_v1 = vsel %vm3673_vm3, %v3637_v42, -inf  ;;  %v3972_v20 = vmax.f32 %v3970_v17, %v3971_v49  ;;  %v4234_v3 = vsel %vm4178_vm4, %v4079_v62, %v4072_v7 }
 0x5f8   : >> { %v3983_v56 = vrot.slane %v3982_v1, 4  ;;  %v3670_v11 = vpop.trf.xlu1  ;;  %v4096_v23 = vmax.f32 %v4094_v22, %v4095_v60  ;;  %v4091_v26 = vmax.f32 %v4089_v13, %v4090_v37  ;;  %v3978_v9 = vrot.slane %v3977_v35, 2 }
 0x5f9   : >> { %v4101_v28 = vsel %vm3673_vm3, %v3670_v11, -inf  ;;  %v4086_v51 = vmax.f32 %v4084_v47, %v4085_v30  ;;  %v3973_v40 = vrot.slane %v3972_v20, 1  ;;  %v3967_v22 = vmax.f32 %v3965_v31, %v3966_v27 }
 0x5fa   : >> { %v3984_v63 = vmax.f32 %v3982_v1, %v3983_v56  ;;  %v4102_v4 = vrot.slane %v4101_v28, 4  ;;  %v3638_v16 = vpop.trf.xlu0  ;;  %v4097_v61 = vrot.slane %v4096_v23, 2  ;;  %v4092_v55 = vrot.slane %v4091_v26, 1 }
 0x5fb   : >> { %v3989_v59 = vsel %vm3673_vm3, %v3638_v16, -inf  ;;  %v3979_v33 = vmax.f32 %v3977_v35, %v3978_v9  ;;  %v3960_v37 = vmax.f32 %v7931_v58, %v3959_v50  ;;  %v4235_v35 = vsel %vm4180_vm5, %v4086_v51, %v4234_v3 }
 0x5fc   : >> { %v4103_v57 = vmax.f32 %v4101_v28, %v4102_v4  ;;  %v3671_v32 = vpop.trf.xlu1  ;;  %v4098_v6 = vmax.f32 %v4096_v23, %v4097_v61  ;;  %v3985_v8 = vrot.slane %v3984_v63, 2  ;;  %v3990_v24 = vrot.slane %v3989_v59, 4 }
 0x5fd   : >> { %v4108_v39 = vsel %vm3673_vm3, %v3671_v32, -inf  ;;  %v4093_v13 = vmax.f32 %v4091_v26, %v4092_v55  ;;  %v3980_v25 = vrot.slane %v3979_v33, 1  ;;  %v3974_v56 = vmax.f32 %v3972_v20, %v3973_v40 }
 0x5fe   : >> { %v4104_v48 = vrot.slane %v4103_v57, 2  ;;  %v3639_v52 = vpop.trf.xlu0  ;;  %v3991_v34 = vmax.f32 %v3989_v59, %v3990_v24  ;;  %v4109_v2 = vrot.slane %v4108_v39, 4  ;;  %v4099_v18 = vrot.slane %v4098_v6, 1 }
 0x5ff   : >> { %v3996_v45 = vsel %vm3673_vm3, %v3639_v52, -inf  ;;  %v3986_v29 = vmax.f32 %v3984_v63, %v3985_v8  ;;  %v4236_v12 = vsel %vm4182_vm6, %v4093_v13, %v4235_v35  ;;  %v3981_v23 = vmax.f32 %v3979_v33, %v3980_v25 }
 0x600   : >> { %v4105_v38 = vmax.f32 %v4103_v57, %v4104_v48  ;;  %v3997_v15 = vrot.slane %v3996_v45, 4  ;;  %v3992_v21 = vrot.slane %v3991_v34, 2  ;;  %v4110_v5 = vmax.f32 %v4108_v39, %v4109_v2 }
 0x601   : >> { %v4100_v19 = vmax.f32 %v4098_v6, %v4099_v18  ;;  %v3987_v0 = vrot.slane %v3986_v29, 1  ;;  %v4220_v16 = vsel %vm4178_vm4, %v3967_v22, %v3960_v37 }
 0x602   : >> { %v4106_v53 = vrot.slane %v4105_v38, 1  ;;  %v3998_v46 = vmax.f32 %v3996_v45, %v3997_v15  ;;  %v3640_v41 = vpop.trf.xlu0  ;;  %v3993_v14 = vmax.f32 %v3991_v34, %v3992_v21  ;;  %v4111_v43 = vrot.slane %v4110_v5, 2 }
 0x603   : >> { %v4003_v44 = vsel %vm3673_vm3, %v3640_v41, -inf  ;;  %v4237_v31 = vsel %vm2745_vm2, %v4100_v19, %v4236_v12  ;;  %v3988_v63 = vmax.f32 %v3986_v29, %v3987_v0  ;;  %v4221_v61 = vsel %vm4180_vm5, %v3974_v56, %v4220_v16 }
 0x604   : >> { %v3999_v54 = vrot.slane %v3998_v46, 2  ;;  %v4004_v36 = vrot.slane %v4003_v44, 4  ;;  %v4112_v42 = vmax.f32 %v4110_v5, %v4111_v43  ;;  %v4107_v10 = vmax.f32 %v4105_v38, %v4106_v53 }
 0x605   : >> { %v3994_v17 = vrot.slane %v3993_v14, 1  ;;  %v4222_v26 = vsel %vm4182_vm6, %v3981_v23, %v4221_v61 }
 0x606   : >> { %v4000_v60 = vmax.f32 %v3998_v46, %v3999_v54  ;;  %v4005_v1 = vmax.f32 %v4003_v44, %v4004_v36  ;;  %v4113_v11 = vrot.slane %v4112_v42, 1  ;;  %v4238_v58 = vsel %vm4186_vm7, %v4107_v10, %v4237_v31 }
 0x607   : >> { %v3995_v7 = vmax.f32 %v3993_v14, %v3994_v17  ;;  %v4223_v57 = vsel %vm2745_vm2, %v3988_v63, %v4222_v26 }
 0x608   : >> { %v4001_v28 = vrot.slane %v4000_v60, 1  ;;  %v4006_v47 = vrot.slane %v4005_v1, 2  ;;  %v4114_v4 = vmax.f32 %v4112_v42, %v4113_v11 }
 0x609   : >> { %v4224_v32 = vsel %vm4186_vm7, %v3995_v7, %v4223_v57 }
 0x60a   : >> { %v4007_v49 = vmax.f32 %v4005_v1, %v4006_v47  ;;  %v4239_v59 = vsel %vm4188_vm8, %v4114_v4, %v4238_v58  ;;  %v4002_v50 = vmax.f32 %v4000_v60, %v4001_v28 }
 0x60b   : >> { %4258 = vst.msk [vmem:[%s7847_s6 + $0x38] sm:$0x7f] %vm4257_vm13, %v4239_v59 }
 0x60c   : >> { %v4008_v9 = vrot.slane %v4007_v49, 1  ;;  %v4225_v8 = vsel %vm4188_vm8, %v4002_v50, %v4224_v32 }
 0x60d   : > { %211 = sbr.rel (!%p209_p0) target bundleno = 70 (0x46), region = 85 }
 0x60e   : >> { %v4009_v6 = vmax.f32 %v4007_v49, %v4008_v9 }
 0x610   : >> { %v4226_v24 = vsel %vm4190_vm9, %v4009_v6, %v4225_v8 }
 0x611   : >> { %4255 = vst.msk [vmem:[%s7847_s6 + $0x28] sm:$0xff] %vm3673_vm3, %v4226_v24 }
 0x612 PF: > { %p14_p1 = scmp.ge.s32.totalorder %s4800_s17, 4   ;;  %s8282_s12 = smov %s4732_s13 }
 0x613   : > { %s8283_s13 = smov %s4736_s14  ;;  %s8284_s14 = smov %s4810_s20 }
 0x614   : > { %s8285_s15 = smov %s4800_s17  ;;  %16 = sbr.rel (!%p14_p1) target bundleno = 4 (0x4), region = 96 }
 0x619   :  { %4280 = vsyncpa [#allocation3], 1 }
 0x61a   :  { %4282 = vsyncpa [#allocation3 + $0x1], 1 }
 0x61b   :  { %4283 = vsyncpa [#allocation5], 1 }

// kernel: net_forward.5
= control target key start
LH: loop header
LB: loop body
LE: loop exit
PB: predicated region body
PF: predicated region fallthrough
CT: control target
= control target key end

     0   :  { %vm1650_vm0 = vcmask 130048   ;;  %vm3734_vm1 = vmmov 0   ;;  %vm2558_vm2 = vcmask 1043456   ;;  %vm2554_vm3 = vcmask 64512   ;;  %s4852_s1 = inlined_call_operand.vmem [shape: bf16[784,520], index: 1, kind: input, shape index: {}]   ;;  %s4853_s0 = inlined_call_operand.vmem [shape: bf16[8,784], index: 0, kind: input, shape index: {}]   ;;  %s4854_s3 = inlined_call_operand.vmem [shape: bf16[520,190], index: 3, kind: input, shape index: {}]   ;;  %s4855_s2 = inlined_call_operand.vmem [shape: f32[1,520], index: 2, kind: input, shape index: {}]   ;;  %s4856_s5 = inlined_call_operand.vmem [shape: bf16[190,90], index: 5, kind: input, shape index: {}]   ;;  %s4857_s4 = inlined_call_operand.vmem [shape: f32[1,190], index: 4, kind: input, shape index: {}]   ;;  %s4858_s6 = inlined_call_operand.vmem [shape: f32[1,90], index: 6, kind: input, shape index: {}]   ;;  %s4859_s7 = inlined_call_operand.vmem [shape: f32[8,90], index: 7, kind: output, shape index: {}]  }
   0x1   :  { %v3268_v0 = vld [vmem:[%s4852_s1 + $0x11c] ss:$20 sps:$4 sm:$0xff]   ;;  %v3270_v1 = vld [vmem:[%s4852_s1 + $0x118] ss:$20 sps:$4 sm:$0xff]   ;;  %v3274_v4 = vld [vmem:[%s4852_s1 + $0xf4] ss:$20 sps:$4 sm:$0xff]  }
   0x2   :  { %1654 = vmatprep.subr.bf16.mxu0 %v3268_v0  ;;  %v3271_v2 = vld [vmem:[%s4852_s1 + $0x39c] ss:$20 sps:$4 sm:$0xff]   ;;  %v3273_v3 = vld [vmem:[%s4852_s1 + $0x398] ss:$20 sps:$4 sm:$0xff]   ;;  %v3277_v6 = vld [vmem:[%s4852_s1 + $0x374] ss:$20 sps:$4 sm:$0xff]  }
   0x3   :  { %1655 = vmatpush1.bf16.msra.mxu0 %v3270_v1  ;;  %v3276_v5 = vld [vmem:[%s4852_s1 + $0xf0] ss:$20 sps:$4 sm:$0xff]   ;;  %1695 = vmatprep.subr.bf16.mxu1 %v3271_v2  ;;  %v3280_v8 = vld [vmem:[%s4852_s1 + $0xcc] ss:$20 sps:$4 sm:$0xff]   ;;  %v3282_v9 = vld [vmem:[%s4852_s1 + $0xc8] ss:$20 sps:$4 sm:$0xff]  }
   0x4   :  { %1696 = vmatpush1.bf16.msra.mxu1 %v3273_v3  ;;  %1656 = vmatprep.subr.bf16.mxu0 %v3274_v4  ;;  %v3279_v7 = vld [vmem:[%s4852_s1 + $0x370] ss:$20 sps:$4 sm:$0xff]   ;;  %v3283_v10 = vld [vmem:[%s4852_s1 + $0x34c] ss:$20 sps:$4 sm:$0xff]   ;;  %v3285_v12 = vld [vmem:[%s4852_s1 + $0x348] ss:$20 sps:$4 sm:$0xff]  }
   0x5   :  { %1697 = vmatprep.subr.bf16.mxu1 %v3277_v6  ;;  %v3286_v11 = vld [vmem:[%s4852_s1 + $0xa4] ss:$20 sps:$4 sm:$0xff]   ;;  %v3288_v14 = vld [vmem:[%s4852_s1 + $0xa0] ss:$20 sps:$4 sm:$0xff]   ;;  %v3292_v15 = vld [vmem:[%s4852_s1 + $0x7c] ss:$20 sps:$4 sm:$0xff]  }
   0x6   :  { %v3289_v13 = vld [vmem:[%s4852_s1 + $0x324] ss:$20 sps:$4 sm:$0xff]   ;;  %v3291_v16 = vld [vmem:[%s4852_s1 + $0x320] ss:$20 sps:$4 sm:$0xff]   ;;  %v3295_v17 = vld [vmem:[%s4852_s1 + $0x2fc] ss:$20 sps:$4 sm:$0xff]  }
   0x7   :  { %1657 = vmatpush1.bf16.msra.mxu0 %v3276_v5  ;;  %v3294_v18 = vld [vmem:[%s4852_s1 + $0x78] ss:$20 sps:$4 sm:$0xff]   ;;  %v3298_v19 = vld [vmem:[%s4852_s1 + $0x54] ss:$20 sps:$4 sm:$0xff]   ;;  %v3300_v22 = vld [vmem:[%s4852_s1 + $0x50] ss:$20 sps:$4 sm:$0xff]  }
   0x8   :  { %1658 = vmatprep.subr.bf16.mxu0 %v3280_v8  ;;  %1698 = vmatpush1.bf16.msra.mxu1 %v3279_v7  ;;  %v3297_v20 = vld [vmem:[%s4852_s1 + $0x2f8] ss:$20 sps:$4 sm:$0xff]   ;;  %v3301_v21 = vld [vmem:[%s4852_s1 + $0x2d4] ss:$20 sps:$4 sm:$0xff]   ;;  %v3303_v24 = vld [vmem:[%s4852_s1 + $0x2d0] ss:$20 sps:$4 sm:$0xff]  }
   0x9   :  { %1699 = vmatprep.subr.bf16.mxu1 %v3283_v10  ;;  %v3304_v23 = vld [vmem:[%s4852_s1 + $0x2c] ss:$20 sps:$4 sm:$0xff]   ;;  %v3306_v26 = vld [vmem:[%s4852_s1 + $0x28] ss:$20 sps:$4 sm:$0xff]   ;;  %v3310_v27 = vld [vmem:[%s4852_s1 + $0x4] ss:$20 sps:$4 sm:$0xff]  }
   0xa   :  { %v3307_v25 = vld [vmem:[%s4852_s1 + $0x2ac] ss:$20 sps:$4 sm:$0xff]   ;;  %v3309_v28 = vld [vmem:[%s4852_s1 + $0x2a8] ss:$20 sps:$4 sm:$0xff]   ;;  %v3313_v29 = vld [vmem:[%s4852_s1 + $0x284] ss:$20 sps:$4 sm:$0xff]  }
   0xb   :  { %1659 = vmatpush1.bf16.msra.mxu0 %v3282_v9  ;;  %v3312_v30 = vld [vmem:[%s4852_s1] ss:$20 sps:$4 sm:$0xff]   ;;  %v3316_v31 = vld [vmem:[%s4852_s1 + $0x25c] ss:$20 sps:$4 sm:$0xff]   ;;  %v3318_v34 = vld [vmem:[%s4852_s1 + $0x258] ss:$20 sps:$4 sm:$0xff]  }
   0xc   :  { %1660 = vmatprep.subr.bf16.mxu0 %v3286_v11  ;;  %1700 = vmatpush1.bf16.msra.mxu1 %v3285_v12  ;;  %v3315_v32 = vld [vmem:[%s4852_s1 + $0x280] ss:$20 sps:$4 sm:$0xff]   ;;  %v3319_v33 = vld [vmem:[%s4852_s1 + $0x4dc] ss:$20 sps:$4 sm:$0xff]   ;;  %v3321_v36 = vld [vmem:[%s4852_s1 + $0x4d8] ss:$20 sps:$4 sm:$0xff]  }
   0xd   :  { %1701 = vmatprep.subr.bf16.mxu1 %v3289_v13  ;;  %v3322_v35 = vld [vmem:[%s4852_s1 + $0x234] ss:$20 sps:$4 sm:$0xff]   ;;  %v3324_v38 = vld [vmem:[%s4852_s1 + $0x230] ss:$20 sps:$4 sm:$0xff]   ;;  %v3328_v39 = vld [vmem:[%s4852_s1 + $0x20c] ss:$20 sps:$4 sm:$0xff]  }
   0xe   :  { %v3325_v37 = vld [vmem:[%s4852_s1 + $0x4b4] ss:$20 sps:$4 sm:$0xff]   ;;  %v3327_v40 = vld [vmem:[%s4852_s1 + $0x4b0] ss:$20 sps:$4 sm:$0xff]   ;;  %v3331_v41 = vld [vmem:[%s4852_s1 + $0x48c] ss:$20 sps:$4 sm:$0xff]  }
   0xf   :  { %1661 = vmatpush1.bf16.msra.mxu0 %v3288_v14  ;;  %v3330_v42 = vld [vmem:[%s4852_s1 + $0x208] ss:$20 sps:$4 sm:$0xff]   ;;  %v3334_v43 = vld [vmem:[%s4852_s1 + $0x1e4] ss:$20 sps:$4 sm:$0xff]   ;;  %v3336_v47 = vld [vmem:[%s4852_s1 + $0x1e0] ss:$20 sps:$4 sm:$0xff]  }
  0x10   :  { %1662 = vmatprep.subr.bf16.mxu0 %v3292_v15  ;;  %1702 = vmatpush1.bf16.msra.mxu1 %v3291_v16  ;;  %v3333_v44 = vld [vmem:[%s4852_s1 + $0x488] ss:$20 sps:$4 sm:$0xff]   ;;  %v3337_v45 = vld [vmem:[%s4852_s1 + $0x464] ss:$20 sps:$4 sm:$0xff]   ;;  %v3339_v51 = vld [vmem:[%s4852_s1 + $0x460] ss:$20 sps:$4 sm:$0xff]  }
  0x11   :  { %1703 = vmatprep.subr.bf16.mxu1 %v3295_v17  ;;  %v27_v46 = vld [vmem:[%s4853_s0] sm:$0xff]  ;;  %v3340_v49 = vld [vmem:[%s4852_s1 + $0x1bc] ss:$20 sps:$4 sm:$0xff]   ;;  %v28_v50 = vld [vmem:[%s4853_s0 + $0x8] sm:$0xff]  ;;  %vm2798_vm4 = vcmask 1046528   ;;  %vm2794_vm5 = vcmask 506880  }
  0x12   :  { %v3919_v48 = vcombine.high %v27_v46, %v27_v46  ;;  %v3931_v52 = vcombine.high %v28_v50, %v28_v50  ;;  %v3343_v53 = vld [vmem:[%s4852_s1 + $0x43c] ss:$20 sps:$4 sm:$0xff]   ;;  %v3342_v54 = vld [vmem:[%s4852_s1 + $0x1b8] ss:$20 sps:$4 sm:$0xff]   ;;  %v3346_v55 = vld [vmem:[%s4852_s1 + $0x194] ss:$20 sps:$4 sm:$0xff]   ;;  %v3982_v5 = vcombine.low %v27_v46, %v27_v46  ;;  %v3990_v8 = vcombine.low %v28_v50, %v28_v50 }
  0x13   :  { %1663 = vmatpush1.bf16.msra.mxu0 %v3294_v18  ;;  %v3345_v56 = vld [vmem:[%s4852_s1 + $0x438] ss:$20 sps:$4 sm:$0xff]   ;;  %v3349_v57 = vld [vmem:[%s4852_s1 + $0x414] ss:$20 sps:$4 sm:$0xff]   ;;  %v3348_v58 = vld [vmem:[%s4852_s1 + $0x190] ss:$20 sps:$4 sm:$0xff]  }
  0x14   :  { %1664 = vmatprep.subr.bf16.mxu0 %v3298_v19  ;;  %1704 = vmatpush1.bf16.msra.mxu1 %v3297_v20  ;;  %v3352_v59 = vld [vmem:[%s4852_s1 + $0x16c] ss:$20 sps:$4 sm:$0xff]   ;;  %v3351_v60 = vld [vmem:[%s4852_s1 + $0x410] ss:$20 sps:$4 sm:$0xff]   ;;  %v3354_v62 = vld [vmem:[%s4852_s1 + $0x168] ss:$20 sps:$4 sm:$0xff]  }
  0x15   :  { %1705 = vmatprep.subr.bf16.mxu1 %v3301_v21  ;;  %1686 = vmatprep.mubr.bf16.mxu0 %v3919_v48  ;;  %v3355_v61 = vld [vmem:[%s4852_s1 + $0x3ec] ss:$20 sps:$4 sm:$0xff]   ;;  %v3358_v63 = vld [vmem:[%s4852_s1 + $0x144] ss:$20 sps:$4 sm:$0xff]   ;;  %v3357_v0 = vld [vmem:[%s4852_s1 + $0x3e8] ss:$20 sps:$4 sm:$0xff]  }
  0x16   :  { %1727 = vmatprep.mubr.bf16.mxu1 %v3931_v52  ;;  %v3361_v1 = vld [vmem:[%s4852_s1 + $0x3c4] ss:$20 sps:$4 sm:$0xff]   ;;  %v3360_v2 = vld [vmem:[%s4852_s1 + $0x140] ss:$20 sps:$4 sm:$0xff]   ;;  %v3368_v3 = vld [vmem:[%s4852_s1 + $0x61c] ss:$20 sps:$4 sm:$0xff]  }
  0x17   :  { %1665 = vmatpush1.bf16.msra.mxu0 %v3300_v22  ;;  %v3364_v4 = vld [vmem:[%s4852_s1 + $0x3c0] ss:$20 sps:$4 sm:$0xff]   ;;  %v3379_v6 = vld [vmem:[%s4852_s1 + $0x124] ss:$20 sps:$4 sm:$0xff]   ;;  %v3385_v11 = vld [vmem:[%s4852_s1 + $0xfc] ss:$20 sps:$4 sm:$0xff]  }
  0x18   :  { %1666 = vmatprep.subr.bf16.mxu0 %v3304_v23  ;;  %1706 = vmatpush1.bf16.msra.mxu1 %v3303_v24  ;;  %v3366_v7 = vld [vmem:[%s4852_s1 + $0x618] ss:$20 sps:$4 sm:$0xff]   ;;  %v3373_v9 = vld [vmem:[%s4852_s1 + $0x5f4] ss:$20 sps:$4 sm:$0xff]   ;;  %v3371_v12 = vld [vmem:[%s4852_s1 + $0x5f0] ss:$20 sps:$4 sm:$0xff]  }
  0x19   :  { %1707 = vmatprep.subr.bf16.mxu1 %v3307_v25  ;;  %v3377_v10 = vld [vmem:[%s4852_s1 + $0x120] ss:$20 sps:$4 sm:$0xff]   ;;  %v3383_v14 = vld [vmem:[%s4852_s1 + $0xf8] ss:$20 sps:$4 sm:$0xff]   ;;  %v3374_v16 = vld [vmem:[%s4852_s1 + $0x5c8] ss:$20 sps:$4 sm:$0xff]  }
  0x1a   :  { %v3376_v13 = vld [vmem:[%s4852_s1 + $0x5cc] ss:$20 sps:$4 sm:$0xff]   ;;  %v3391_v15 = vld [vmem:[%s4852_s1 + $0xd4] ss:$20 sps:$4 sm:$0xff]   ;;  %v3382_v17 = vld [vmem:[%s4852_s1 + $0x5a4] ss:$20 sps:$4 sm:$0xff]  }
  0x1b   :  { %1667 = vmatpush1.bf16.msra.mxu0 %v3306_v26  ;;  %v3389_v18 = vld [vmem:[%s4852_s1 + $0xd0] ss:$20 sps:$4 sm:$0xff]   ;;  %v3397_v19 = vld [vmem:[%s4852_s1 + $0xac] ss:$20 sps:$4 sm:$0xff]   ;;  %v3395_v22 = vld [vmem:[%s4852_s1 + $0xa8] ss:$20 sps:$4 sm:$0xff]  }
  0x1c   :  { %1668 = vmatprep.subr.bf16.mxu0 %v3310_v27  ;;  %1708 = vmatpush1.bf16.msra.mxu1 %v3309_v28  ;;  %v3380_v20 = vld [vmem:[%s4852_s1 + $0x5a0] ss:$20 sps:$4 sm:$0xff]   ;;  %v3388_v21 = vld [vmem:[%s4852_s1 + $0x57c] ss:$20 sps:$4 sm:$0xff]   ;;  %v3403_v23 = vld [vmem:[%s4852_s1 + $0x84] ss:$20 sps:$4 sm:$0xff]  }
  0x1d   :  { %1709 = vmatprep.subr.bf16.mxu1 %v3313_v29  ;;  %v3386_v24 = vld [vmem:[%s4852_s1 + $0x578] ss:$20 sps:$4 sm:$0xff]   ;;  %v3394_v25 = vld [vmem:[%s4852_s1 + $0x554] ss:$20 sps:$4 sm:$0xff]   ;;  %v3409_v27 = vld [vmem:[%s4852_s1 + $0x5c] ss:$20 sps:$4 sm:$0xff]  }
  0x1e   :  { %v3401_v26 = vld [vmem:[%s4852_s1 + $0x80] ss:$20 sps:$4 sm:$0xff]   ;;  %v3392_v28 = vld [vmem:[%s4852_s1 + $0x550] ss:$20 sps:$4 sm:$0xff]   ;;  %vm2848_vm6 = vcmask 736256  }
  0x1f   :  { %1669 = vmatpush1.bf16.msra.mxu0 %v3312_v30  ;;  %v4058_v29 = vld [vmem:[%s4853_s0 + $0x10] sm:$0xff]  ;;  %v3400_v30 = vld [vmem:[%s4852_s1 + $0x52c] ss:$20 sps:$4 sm:$0xff]  }
  0x20   :  { %1670 = vmatprep.subr.bf16.mxu0 %v3316_v31  ;;  %1710 = vmatpush1.bf16.msra.mxu1 %v3315_v32  ;;  %v4065_v31 = vcombine.high %v4058_v29, %v4058_v29  ;;  %v3407_v32 = vld [vmem:[%s4852_s1 + $0x58] ss:$20 sps:$4 sm:$0xff]   ;;  %v3416_v46 = vld [vmem:[%s4852_s1 + $0x730] ss:$20 sps:$4 sm:$0xff]   ;;  %v3439_v50 = vld [vmem:[%s4852_s1 + $0x214] ss:$20 sps:$4 sm:$0xff]  }
  0x21   :  { %1711 = vmatprep.subr.bf16.mxu1 %v3319_v33  ;;  %v3415_v33 = vld [vmem:[%s4852_s1 + $0x34] ss:$20 sps:$4 sm:$0xff]  }
  0x23   :  { %1671 = vmatpush2.bf16.msra.mxu0 %v3318_v34  ;;  %v3398_v34 = vld [vmem:[%s4852_s1 + $0x528] ss:$20 sps:$4 sm:$0xff]  }
  0x24   :  { %1672 = vmatprep.subr.bf16.mxu0 %v3322_v35  ;;  %1712 = vmatpush2.bf16.msra.mxu1 %v3321_v36  ;;  %v3406_v35 = vld [vmem:[%s4852_s1 + $0x504] ss:$20 sps:$4 sm:$0xff]  }
  0x25   :  { %1713 = vmatprep.subr.bf16.mxu1 %v3325_v37  ;;  %v3413_v36 = vld [vmem:[%s4852_s1 + $0x30] ss:$20 sps:$4 sm:$0xff]   ;;  %v3421_v37 = vld [vmem:[%s4852_s1 + $0xc] ss:$20 sps:$4 sm:$0xff]  }
  0x27   :  { %1673 = vmatpush2.bf16.msra.mxu0 %v3324_v38  ;;  %v3404_v38 = vld [vmem:[%s4852_s1 + $0x500] ss:$20 sps:$4 sm:$0xff]  }
  0x28   :  { %1674 = vmatprep.subr.bf16.mxu0 %v3328_v39  ;;  %1714 = vmatpush2.bf16.msra.mxu1 %v3327_v40  ;;  %v3412_v39 = vld [vmem:[%s4852_s1 + $0x75c] ss:$20 sps:$4 sm:$0xff]  }
  0x29   :  { %1715 = vmatprep.subr.bf16.mxu1 %v3331_v41  ;;  %v3419_v40 = vld [vmem:[%s4852_s1 + $0x8] ss:$20 sps:$4 sm:$0xff]   ;;  %v3427_v41 = vld [vmem:[%s4852_s1 + $0x264] ss:$20 sps:$4 sm:$0xff]  }
  0x2b   :  { %1675 = vmatpush2.bf16.msra.mxu0 %v3330_v42  ;;  %v3410_v42 = vld [vmem:[%s4852_s1 + $0x758] ss:$20 sps:$4 sm:$0xff]  }
  0x2c   :  { %1676 = vmatprep.subr.bf16.mxu0 %v3334_v43  ;;  %1716 = vmatpush2.bf16.msra.mxu1 %v3333_v44  ;;  %v3418_v43 = vld [vmem:[%s4852_s1 + $0x734] ss:$20 sps:$4 sm:$0xff]  }
  0x2d   :  { %1717 = vmatprep.subr.bf16.mxu1 %v3337_v45  ;;  %v3425_v44 = vld [vmem:[%s4852_s1 + $0x260] ss:$20 sps:$4 sm:$0xff]   ;;  %v3433_v45 = vld [vmem:[%s4852_s1 + $0x23c] ss:$20 sps:$4 sm:$0xff]  }
  0x2f   :  { %1677 = vmatpush2.bf16.msra.mxu0 %v3336_v47  ;;  %v3424_v47 = vld [vmem:[%s4852_s1 + $0x70c] ss:$20 sps:$4 sm:$0xff]  }
  0x30   :  { %1678 = vmatprep.subr.bf16.mxu0 %v3340_v49  ;;  %1718 = vmatpush2.bf16.msra.mxu1 %v3339_v51  ;;  %v3431_v49 = vld [vmem:[%s4852_s1 + $0x238] ss:$20 sps:$4 sm:$0xff]   ;;  %v3422_v51 = vld [vmem:[%s4852_s1 + $0x708] ss:$20 sps:$4 sm:$0xff]  }
  0x31   :  { %1719 = vmatprep.subr.bf16.mxu1 %v3343_v53  ;;  %v3430_v53 = vld [vmem:[%s4852_s1 + $0x6e4] ss:$20 sps:$4 sm:$0xff]  }
  0x33   :  { %1679 = vmatpush2.bf16.msra.mxu0 %v3342_v54  ;;  %v3437_v54 = vld [vmem:[%s4852_s1 + $0x210] ss:$20 sps:$4 sm:$0xff]  }
  0x34   :  { %1680 = vmatprep.subr.bf16.mxu0 %v3346_v55  ;;  %1720 = vmatpush2.bf16.msra.mxu1 %v3345_v56  ;;  %v3445_v55 = vld [vmem:[%s4852_s1 + $0x1ec] ss:$20 sps:$4 sm:$0xff]  }
  0x35   :  { %1721 = vmatprep.subr.bf16.mxu1 %v3349_v57  ;;  %v3428_v56 = vld [vmem:[%s4852_s1 + $0x6e0] ss:$20 sps:$4 sm:$0xff]   ;;  %v3436_v57 = vld [vmem:[%s4852_s1 + $0x6bc] ss:$20 sps:$4 sm:$0xff]  }
  0x37   :  { %1681 = vmatpush2.bf16.msra.mxu0 %v3348_v58  ;;  %v3443_v58 = vld [vmem:[%s4852_s1 + $0x1e8] ss:$20 sps:$4 sm:$0xff]  }
  0x38   :  { %1682 = vmatprep.subr.bf16.mxu0 %v3352_v59  ;;  %1722 = vmatpush2.bf16.msra.mxu1 %v3351_v60  ;;  %v3451_v59 = vld [vmem:[%s4852_s1 + $0x1c4] ss:$20 sps:$4 sm:$0xff]  }
  0x39   :  { %1723 = vmatprep.subr.bf16.mxu1 %v3355_v61  ;;  %v3434_v60 = vld [vmem:[%s4852_s1 + $0x6b8] ss:$20 sps:$4 sm:$0xff]   ;;  %v3442_v61 = vld [vmem:[%s4852_s1 + $0x694] ss:$20 sps:$4 sm:$0xff]  }
  0x3b   :  { %1683 = vmatpush2.bf16.msra.mxu0 %v3354_v62  ;;  %v3449_v62 = vld [vmem:[%s4852_s1 + $0x1c0] ss:$20 sps:$4 sm:$0xff]  }
  0x3c   :  { %1684 = vmatprep.subr.bf16.mxu0 %v3358_v63  ;;  %1724 = vmatpush2.bf16.msra.mxu1 %v3357_v0  ;;  %v3457_v63 = vld [vmem:[%s4852_s1 + $0x19c] ss:$20 sps:$4 sm:$0xff]  }
  0x3d   :  { %1725 = vmatprep.subr.bf16.mxu1 %v3361_v1  ;;  %v3440_v0 = vld [vmem:[%s4852_s1 + $0x690] ss:$20 sps:$4 sm:$0xff]   ;;  %v3448_v1 = vld [vmem:[%s4852_s1 + $0x66c] ss:$20 sps:$4 sm:$0xff]  }
  0x3f   :  { %1685 = vmatpush2.bf16.msra.mxu0 %v3360_v2  ;;  %v3455_v2 = vld [vmem:[%s4852_s1 + $0x198] ss:$20 sps:$4 sm:$0xff]  }
  0x40   :  { %1736 = vmatprep.subr.bf16.mxu0 %v3368_v3  ;;  %1726 = vmatpush2.bf16.msra.mxu1 %v3364_v4  ;;  %v3465_v3 = vld [vmem:[%s4852_s1 + $0x174] ss:$20 sps:$4 sm:$0xff]  }
  0x41   :  { %1818 = vmatprep.subr.bf16.mxu1 %v3379_v6  ;;  %v3446_v4 = vld [vmem:[%s4852_s1 + $0x668] ss:$20 sps:$4 sm:$0xff]   ;;  %v3454_v6 = vld [vmem:[%s4852_s1 + $0x644] ss:$20 sps:$4 sm:$0xff]  }
  0x42   :  { %1687 = vmatmul.mubr.bf16.vlgmr.msra.gmra.mxu0 %v3982_v5 }
  0x43   :  { %1737 = vmatpush1.bf16.msra.mxu0 %v3366_v7  ;;  %1728 = vmatmul.mubr.bf16.vlgmr.msra.gmra.mxu1 %v3990_v8  ;;  %v3463_v7 = vld [vmem:[%s4852_s1 + $0x170] ss:$20 sps:$4 sm:$0xff]  }
  0x44   :  { %1738 = vmatprep.subr.bf16.mxu0 %v3373_v9  ;;  %1819 = vmatpush1.bf16.msra.mxu1 %v3377_v10  ;;  %v3468_v9 = vld [vmem:[%s4852_s1 + $0x14c] ss:$20 sps:$4 sm:$0xff]  }
  0x45   :  { %1850 = vmatprep.mubr.bf16.mxu1 %v3919_v48  ;;  %1820 = vmatprep.subr.bf16.mxu1 %v3385_v11  ;;  %v3452_v10 = vld [vmem:[%s4852_s1 + $0x640] ss:$20 sps:$4 sm:$0xff]   ;;  %v3462_v11 = vld [vmem:[%s4852_s1 + $0x784] ss:$20 sps:$4 sm:$0xff]  }
  0x46   :  { %1768 = vmatprep.mubr.bf16.mxu0 %v4065_v31 }
  0x47   :  { %1739 = vmatpush1.bf16.msra.mxu0 %v3371_v12  ;;  %v3466_v12 = vld [vmem:[%s4852_s1 + $0x148] ss:$20 sps:$4 sm:$0xff]  }
  0x48   :  { %1740 = vmatprep.subr.bf16.mxu0 %v3376_v13  ;;  %1821 = vmatpush1.bf16.msra.mxu1 %v3383_v14  ;;  %v4193_v13 = vcombine.low %v4058_v29, %v4058_v29  ;;  %v3475_v14 = vld [vmem:[%s4852_s1 + $0x624] ss:$20 sps:$4 sm:$0xff]   ;;  %v3491_v29 = vld [vmem:[%s4852_s1 + $0x5a8] ss:$20 sps:$4 sm:$0xff]  }
  0x49   :  { %1822 = vmatprep.subr.bf16.mxu1 %v3391_v15  ;;  %v3460_v15 = vld [vmem:[%s4852_s1 + $0x780] ss:$20 sps:$4 sm:$0xff]  }
  0x4b   :  { %1741 = vmatpush1.bf16.msra.mxu0 %v3374_v16  ;;  %v3471_v16 = vld [vmem:[%s4852_s1 + $0x3a4] ss:$20 sps:$4 sm:$0xff]  }
  0x4c   :  { %1742 = vmatprep.subr.bf16.mxu0 %v3382_v17  ;;  %1823 = vmatpush1.bf16.msra.mxu1 %v3389_v18  ;;  %v3473_v17 = vld [vmem:[%s4852_s1 + $0x620] ss:$20 sps:$4 sm:$0xff]   ;;  %v3481_v18 = vld [vmem:[%s4852_s1 + $0x5fc] ss:$20 sps:$4 sm:$0xff]  }
  0x4d   :  { %1824 = vmatprep.subr.bf16.mxu1 %v3397_v19  ;;  %v3732_v19 = vmov 0  }
  0x4f   :  { %1743 = vmatpush1.bf16.msra.mxu0 %v3380_v20  ;;  %v4215_v20 = vld [vmem:[%s4853_s0 + $0x18] ss:$0 sps:$4 sm:$0xff]  }
  0x50   :  { %1744 = vmatprep.subr.bf16.mxu0 %v3388_v21  ;;  %1825 = vmatpush1.bf16.msra.mxu1 %v3395_v22  ;;  %v3479_v21 = vld [vmem:[%s4852_s1 + $0x5f8] ss:$20 sps:$4 sm:$0xff]   ;;  %v3487_v22 = vld [vmem:[%s4852_s1 + $0x5d4] ss:$20 sps:$4 sm:$0xff]  }
  0x51   :  { %1826 = vmatprep.subr.bf16.mxu1 %v3403_v23  ;;  %v3469_v23 = vld [vmem:[%s4852_s1 + $0x3a0] ss:$20 sps:$4 sm:$0xff]  }
  0x53   :  { %1745 = vmatpush1.bf16.msra.mxu0 %v3386_v24  ;;  %v3478_v24 = vld [vmem:[%s4852_s1 + $0x37c] ss:$20 sps:$4 sm:$0xff]  }
  0x54   :  { %1746 = vmatprep.subr.bf16.mxu0 %v3394_v25  ;;  %1827 = vmatpush1.bf16.msra.mxu1 %v3401_v26  ;;  %v3485_v25 = vld [vmem:[%s4852_s1 + $0x5d0] ss:$20 sps:$4 sm:$0xff]   ;;  %v3493_v26 = vld [vmem:[%s4852_s1 + $0x5ac] ss:$20 sps:$4 sm:$0xff]  }
  0x55   :  { %1828 = vmatprep.subr.bf16.mxu1 %v3409_v27  ;;  %v3476_v27 = vld [vmem:[%s4852_s1 + $0x378] ss:$20 sps:$4 sm:$0xff]  }
  0x57   :  { %1747 = vmatpush1.bf16.msra.mxu0 %v3392_v28  ;;  %v3484_v28 = vld [vmem:[%s4852_s1 + $0x354] ss:$20 sps:$4 sm:$0xff]  }
  0x58   :  { %1748 = vmatprep.subr.bf16.mxu0 %v3400_v30  ;;  %1829 = vmatpush1.bf16.msra.mxu1 %v3407_v32  ;;  %v3499_v30 = vld [vmem:[%s4852_s1 + $0x584] ss:$20 sps:$4 sm:$0xff]  }
  0x59   :  { %1830 = vmatprep.subr.bf16.mxu1 %v3415_v33  ;;  %v3482_v32 = vld [vmem:[%s4852_s1 + $0x350] ss:$20 sps:$4 sm:$0xff]   ;;  %v3490_v33 = vld [vmem:[%s4852_s1 + $0x32c] ss:$20 sps:$4 sm:$0xff]  }
  0x5b   :  { %1749 = vmatpush1.bf16.msra.mxu0 %v3398_v34  ;;  %v3497_v34 = vld [vmem:[%s4852_s1 + $0x580] ss:$20 sps:$4 sm:$0xff]  }
  0x5c   :  { %1750 = vmatprep.subr.bf16.mxu0 %v3406_v35  ;;  %1831 = vmatpush1.bf16.msra.mxu1 %v3413_v36  ;;  %v3505_v35 = vld [vmem:[%s4852_s1 + $0x55c] ss:$20 sps:$4 sm:$0xff]  }
  0x5d   :  { %1832 = vmatprep.subr.bf16.mxu1 %v3421_v37  ;;  %v3488_v36 = vld [vmem:[%s4852_s1 + $0x328] ss:$20 sps:$4 sm:$0xff]   ;;  %v3496_v37 = vld [vmem:[%s4852_s1 + $0x304] ss:$20 sps:$4 sm:$0xff]  }
  0x5f   :  { %1751 = vmatpush1.bf16.msra.mxu0 %v3404_v38  ;;  %v3503_v38 = vld [vmem:[%s4852_s1 + $0x558] ss:$20 sps:$4 sm:$0xff]  }
  0x60   :  { %1752 = vmatprep.subr.bf16.mxu0 %v3412_v39  ;;  %1833 = vmatpush1.bf16.msra.mxu1 %v3419_v40  ;;  %v3511_v39 = vld [vmem:[%s4852_s1 + $0x534] ss:$20 sps:$4 sm:$0xff]  }
  0x61   :  { %1834 = vmatprep.subr.bf16.mxu1 %v3427_v41  ;;  %v3494_v40 = vld [vmem:[%s4852_s1 + $0x300] ss:$20 sps:$4 sm:$0xff]   ;;  %v3502_v41 = vld [vmem:[%s4852_s1 + $0x2dc] ss:$20 sps:$4 sm:$0xff]  }
  0x63   :  { %1753 = vmatpush2.bf16.msra.mxu0 %v3410_v42  ;;  %v3509_v42 = vld [vmem:[%s4852_s1 + $0x530] ss:$20 sps:$4 sm:$0xff]  }
  0x64   :  { %1754 = vmatprep.subr.bf16.mxu0 %v3418_v43  ;;  %1835 = vmatpush2.bf16.msra.mxu1 %v3425_v44  ;;  %v3517_v43 = vld [vmem:[%s4852_s1 + $0x50c] ss:$20 sps:$4 sm:$0xff]  }
  0x65   :  { %1836 = vmatprep.subr.bf16.mxu1 %v3433_v45  ;;  %v3500_v44 = vld [vmem:[%s4852_s1 + $0x2d8] ss:$20 sps:$4 sm:$0xff]   ;;  %v3508_v45 = vld [vmem:[%s4852_s1 + $0x2b4] ss:$20 sps:$4 sm:$0xff]  }
  0x67   :  { %1755 = vmatpush2.bf16.msra.mxu0 %v3416_v46  ;;  %v3515_v46 = vld [vmem:[%s4852_s1 + $0x508] ss:$20 sps:$4 sm:$0xff]  }
  0x68   :  { %1756 = vmatprep.subr.bf16.mxu0 %v3424_v47  ;;  %1837 = vmatpush2.bf16.msra.mxu1 %v3431_v49  ;;  %v3523_v47 = vld [vmem:[%s4852_s1 + $0x764] ss:$20 sps:$4 sm:$0xff]  }
  0x69   :  { %1838 = vmatprep.subr.bf16.mxu1 %v3439_v50  ;;  %v3506_v49 = vld [vmem:[%s4852_s1 + $0x2b0] ss:$20 sps:$4 sm:$0xff]   ;;  %v3514_v50 = vld [vmem:[%s4852_s1 + $0x28c] ss:$20 sps:$4 sm:$0xff]  }
  0x6b   :  { %1757 = vmatpush2.bf16.msra.mxu0 %v3422_v51  ;;  %v3521_v51 = vld [vmem:[%s4852_s1 + $0x760] ss:$20 sps:$4 sm:$0xff]  }
  0x6c   :  { %1758 = vmatprep.subr.bf16.mxu0 %v3430_v53  ;;  %1839 = vmatpush2.bf16.msra.mxu1 %v3437_v54  ;;  %v3529_v53 = vld [vmem:[%s4852_s1 + $0x73c] ss:$20 sps:$4 sm:$0xff]  }
  0x6d   :  { %1840 = vmatprep.subr.bf16.mxu1 %v3445_v55  ;;  %v3512_v54 = vld [vmem:[%s4852_s1 + $0x288] ss:$20 sps:$4 sm:$0xff]   ;;  %v3520_v55 = vld [vmem:[%s4852_s1 + $0x4e4] ss:$20 sps:$4 sm:$0xff]  }
  0x6f   :  { %1759 = vmatpush2.bf16.msra.mxu0 %v3428_v56  ;;  %v3527_v56 = vld [vmem:[%s4852_s1 + $0x738] ss:$20 sps:$4 sm:$0xff]  }
  0x70   :  { %1760 = vmatprep.subr.bf16.mxu0 %v3436_v57  ;;  %1841 = vmatpush2.bf16.msra.mxu1 %v3443_v58  ;;  %v3535_v57 = vld [vmem:[%s4852_s1 + $0x714] ss:$20 sps:$4 sm:$0xff]  }
  0x71   :  { %1842 = vmatprep.subr.bf16.mxu1 %v3451_v59  ;;  %v3518_v58 = vld [vmem:[%s4852_s1 + $0x4e0] ss:$20 sps:$4 sm:$0xff]   ;;  %v3526_v59 = vld [vmem:[%s4852_s1 + $0x4bc] ss:$20 sps:$4 sm:$0xff]  }
  0x73   :  { %1761 = vmatpush2.bf16.msra.mxu0 %v3434_v60  ;;  %v3533_v60 = vld [vmem:[%s4852_s1 + $0x710] ss:$20 sps:$4 sm:$0xff]  }
  0x74   :  { %1762 = vmatprep.subr.bf16.mxu0 %v3442_v61  ;;  %1843 = vmatpush2.bf16.msra.mxu1 %v3449_v62  ;;  %v3541_v61 = vld [vmem:[%s4852_s1 + $0x6ec] ss:$20 sps:$4 sm:$0xff]  }
  0x75   :  { %1844 = vmatprep.subr.bf16.mxu1 %v3457_v63  ;;  %v3524_v62 = vld [vmem:[%s4852_s1 + $0x4b8] ss:$20 sps:$4 sm:$0xff]   ;;  %v3532_v63 = vld [vmem:[%s4852_s1 + $0x494] ss:$20 sps:$4 sm:$0xff]  }
  0x77   :  { %1763 = vmatpush2.bf16.msra.mxu0 %v3440_v0  ;;  %v3539_v0 = vld [vmem:[%s4852_s1 + $0x6e8] ss:$20 sps:$4 sm:$0xff]  }
  0x78   :  { %1764 = vmatprep.subr.bf16.mxu0 %v3448_v1  ;;  %1845 = vmatpush2.bf16.msra.mxu1 %v3455_v2  ;;  %v3547_v1 = vld [vmem:[%s4852_s1 + $0x6c4] ss:$20 sps:$4 sm:$0xff]  }
  0x79   :  { %1846 = vmatprep.subr.bf16.mxu1 %v3465_v3  ;;  %v3530_v2 = vld [vmem:[%s4852_s1 + $0x490] ss:$20 sps:$4 sm:$0xff]   ;;  %v3538_v3 = vld [vmem:[%s4852_s1 + $0x46c] ss:$20 sps:$4 sm:$0xff]  }
  0x7b   :  { %1765 = vmatpush2.bf16.msra.mxu0 %v3446_v4  ;;  %v3545_v4 = vld [vmem:[%s4852_s1 + $0x6c0] ss:$20 sps:$4 sm:$0xff]  }
  0x7c   :  { %1766 = vmatprep.subr.bf16.mxu0 %v3454_v6  ;;  %1847 = vmatpush2.bf16.msra.mxu1 %v3463_v7  ;;  %v3553_v6 = vld [vmem:[%s4852_s1 + $0x69c] ss:$20 sps:$4 sm:$0xff]  }
  0x7d   :  { %1848 = vmatprep.subr.bf16.mxu1 %v3468_v9  ;;  %v3536_v7 = vld [vmem:[%s4852_s1 + $0x468] ss:$20 sps:$4 sm:$0xff]   ;;  %v3544_v9 = vld [vmem:[%s4852_s1 + $0x444] ss:$20 sps:$4 sm:$0xff]  }
  0x7f   :  { %1767 = vmatpush2.bf16.msra.mxu0 %v3452_v10  ;;  %v3551_v10 = vld [vmem:[%s4852_s1 + $0x698] ss:$20 sps:$4 sm:$0xff]  }
  0x80   :  { %1791 = vmatprep.subr.bf16.mxu0 %v3462_v11  ;;  %1849 = vmatpush2.bf16.msra.mxu1 %v3466_v12  ;;  %v3559_v11 = vld [vmem:[%s4852_s1 + $0x674] ss:$20 sps:$4 sm:$0xff]  }
  0x81   :  { %1900 = vmatprep.subr.bf16.mxu1 %v3475_v14  ;;  %v3542_v12 = vld [vmem:[%s4852_s1 + $0x440] ss:$20 sps:$4 sm:$0xff]   ;;  %v3550_v14 = vld [vmem:[%s4852_s1 + $0x41c] ss:$20 sps:$4 sm:$0xff]  }
  0x82   :  { %1769 = vmatmul.mubr.bf16.vlgmr.msra.gmra.mxu0 %v4193_v13 }
  0x83   :  { %1792 = vmatpush1.bf16.msra.mxu0 %v3460_v15  ;;  %1809 = vmatprep.mubr.bf16.mxu0 %v3732_v19  ;;  %v3557_v15 = vld [vmem:[%s4852_s1 + $0x670] ss:$20 sps:$4 sm:$0xff]  }
  0x84   :  { %1859 = vmatprep.subr.bf16.mxu0 %v3471_v16  ;;  %1851 = vmatmul.mubr.bf16.vlgmr.msra.gmra.mxu1 %v3982_v5  ;;  %v3565_v16 = vld [vmem:[%s4852_s1 + $0x64c] ss:$20 sps:$4 sm:$0xff]  }
  0x85   :  { %1901 = vmatpush1.bf16.msra.mxu1 %v3473_v17  ;;  %1932 = vmatprep.mubr.bf16.mxu1 %v4065_v31  ;;  %v3548_v17 = vld [vmem:[%s4852_s1 + $0x418] ss:$20 sps:$4 sm:$0xff]  }
  0x86   :  { %1902 = vmatprep.subr.bf16.mxu1 %v3481_v18  ;;  %v3556_v18 = vld [vmem:[%s4852_s1 + $0x3f4] ss:$20 sps:$4 sm:$0xff]  }
  0x89   :  { %1903 = vmatpush1.bf16.msra.mxu1 %v3479_v21  ;;  %v3563_v21 = vld [vmem:[%s4852_s1 + $0x648] ss:$20 sps:$4 sm:$0xff]  }
  0x8a   :  { %3106 = vmatmul.mubr.msk.bf16.vlgmr.msra.gmra.mxu0 %vm1650_vm0, %v4215_v20  ;;  %1904 = vmatprep.subr.bf16.mxu1 %v3487_v22  ;;  %v3571_v22 = vld [vmem:[%s4852_s1 + $0x4e8] ss:$20 sps:$4 sm:$0xff]  }
  0x8b   :  { %1860 = vmatpush1.bf16.msra.mxu0 %v3469_v23  ;;  %1891 = vmatprep.mubr.bf16.mxu0 %v3931_v52  ;;  %v3554_v23 = vld [vmem:[%s4852_s1 + $0x3f0] ss:$20 sps:$4 sm:$0xff]  }
  0x8c   :  { %1861 = vmatprep.subr.bf16.mxu0 %v3478_v24  ;;  %v3562_v24 = vld [vmem:[%s4852_s1 + $0x3cc] ss:$20 sps:$4 sm:$0xff]  }
  0x8d   :  { %1905 = vmatpush1.bf16.msra.mxu1 %v3485_v25  ;;  %v3572_v25 = vld [vmem:[%s4852_s1 + $0x3a8] ss:$20 sps:$4 sm:$0xff]  }
  0x8e   :  { %1906 = vmatprep.subr.bf16.mxu1 %v3493_v26  ;;  %v3575_v26 = vld [vmem:[%s4852_s1 + $0x4c0] ss:$20 sps:$4 sm:$0xff]  }
  0x8f   :  { %1862 = vmatpush1.bf16.msra.mxu0 %v3476_v27  ;;  %v3560_v27 = vld [vmem:[%s4852_s1 + $0x3c8] ss:$20 sps:$4 sm:$0xff]  }
  0x90   :  { %1863 = vmatprep.subr.bf16.mxu0 %v3484_v28  ;;  %v3568_v28 = vld [vmem:[%s4852_s1 + $0x78c] ss:$20 sps:$4 sm:$0xff]  }
  0x91   :  { %1907 = vmatpush1.bf16.msra.mxu1 %v3491_v29  ;;  %v3566_v29 = vld [vmem:[%s4852_s1 + $0x788] ss:$20 sps:$4 sm:$0xff]  }
  0x92   :  { %1908 = vmatprep.subr.bf16.mxu1 %v3499_v30  ;;  %v3576_v30 = vld [vmem:[%s4852_s1 + $0x380] ss:$20 sps:$4 sm:$0xff]  }
  0x93   :  { %1864 = vmatpush1.bf16.msra.mxu0 %v3482_v32  ;;  %v3569_v32 = vld [vmem:[%s4852_s1 + $0x268] ss:$20 sps:$4 sm:$0xff]  }
  0x94   :  { %1865 = vmatprep.subr.bf16.mxu0 %v3490_v33  ;;  %v3579_v33 = vld [vmem:[%s4852_s1 + $0x498] ss:$20 sps:$4 sm:$0xff]  }
  0x95   :  { %1909 = vmatpush1.bf16.msra.mxu1 %v3497_v34  ;;  %v3580_v34 = vld [vmem:[%s4852_s1 + $0x358] ss:$20 sps:$4 sm:$0xff]  }
  0x96   :  { %1910 = vmatprep.subr.bf16.mxu1 %v3505_v35  ;;  %v3583_v35 = vld [vmem:[%s4852_s1 + $0x470] ss:$20 sps:$4 sm:$0xff]  }
  0x97   :  { %1866 = vmatpush1.bf16.msra.mxu0 %v3488_v36  ;;  %v3570_v36 = vld [vmem:[%s4852_s1 + $0x128] ss:$20 sps:$4 sm:$0xff]  }
  0x98   :  { %1867 = vmatprep.subr.bf16.mxu0 %v3496_v37  ;;  %v3587_v37 = vld [vmem:[%s4852_s1 + $0x448] ss:$20 sps:$4 sm:$0xff]  }
  0x99   :  { %1911 = vmatpush1.bf16.msra.mxu1 %v3503_v38  ;;  %v3573_v38 = vld [vmem:[%s4852_s1 + $0x240] ss:$20 sps:$4 sm:$0xff]  }
  0x9a   :  { %1912 = vmatprep.subr.bf16.mxu1 %v3511_v39  ;;  %v3588_v39 = vld [vmem:[%s4852_s1 + $0x308] ss:$20 sps:$4 sm:$0xff]  }
  0x9b   :  { %1868 = vmatpush1.bf16.msra.mxu0 %v3494_v40  ;;  %v3574_v40 = vld [vmem:[%s4852_s1 + $0x100] ss:$20 sps:$4 sm:$0xff]  }
  0x9c   :  { %1869 = vmatprep.subr.bf16.mxu0 %v3502_v41  ;;  %v3591_v41 = vld [vmem:[%s4852_s1 + $0x420] ss:$20 sps:$4 sm:$0xff]  }
  0x9d   :  { %1913 = vmatpush1.bf16.msra.mxu1 %v3509_v42  ;;  %v3577_v42 = vld [vmem:[%s4852_s1 + $0x218] ss:$20 sps:$4 sm:$0xff]  }
  0x9e   :  { %1914 = vmatprep.subr.bf16.mxu1 %v3517_v43  ;;  %v3592_v43 = vld [vmem:[%s4852_s1 + $0x2e0] ss:$20 sps:$4 sm:$0xff]  }
  0x9f   :  { %1870 = vmatpush1.bf16.msra.mxu0 %v3500_v44  ;;  %v3595_v44 = vld [vmem:[%s4852_s1 + $0x3f8] ss:$20 sps:$4 sm:$0xff]  }
  0xa0   :  { %1871 = vmatprep.subr.bf16.mxu0 %v3508_v45  ;;  %v3581_v45 = vld [vmem:[%s4852_s1 + $0x1f0] ss:$20 sps:$4 sm:$0xff]  }
  0xa1   :  { %1915 = vmatpush1.bf16.msra.mxu1 %v3515_v46  ;;  %v3596_v46 = vld [vmem:[%s4852_s1 + $0x2b8] ss:$20 sps:$4 sm:$0xff]  }
  0xa2   :  { %1916 = vmatprep.subr.bf16.mxu1 %v3523_v47  ;;  %v3599_v47 = vld [vmem:[%s4852_s1 + $0x3d0] ss:$20 sps:$4 sm:$0xff]  }
  0xa3   :  { %1872 = vmatpush1.bf16.msra.mxu0 %v3506_v49  ;;  %v3582_v49 = vld [vmem:[%s4852_s1 + $0xb0] ss:$20 sps:$4 sm:$0xff]  }
  0xa4   :  { %1873 = vmatprep.subr.bf16.mxu0 %v3514_v50  ;;  %v3585_v50 = vld [vmem:[%s4852_s1 + $0x1c8] ss:$20 sps:$4 sm:$0xff]  }
  0xa5   :  { %1917 = vmatpush2.bf16.msra.mxu1 %v3521_v51  ;;  %v3600_v51 = vld [vmem:[%s4852_s1 + $0x290] ss:$20 sps:$4 sm:$0xff]  }
  0xa6   :  { %1918 = vmatprep.subr.bf16.mxu1 %v3529_v53  ;;  %v3620_v53 = vld [vmem:[%s4854_s3 + $0x74] ss:$8 sps:$4 sm:$0xff]  }
  0xa7   :  { %1874 = vmatpush1.bf16.msra.mxu0 %v3512_v54  ;;  %v3586_v54 = vld [vmem:[%s4852_s1 + $0x88] ss:$20 sps:$4 sm:$0xff]  }
  0xa8   :  { %1875 = vmatprep.subr.bf16.mxu0 %v3520_v55  ;;  %v3589_v55 = vld [vmem:[%s4852_s1 + $0x1a0] ss:$20 sps:$4 sm:$0xff]  }
  0xa9   :  { %1919 = vmatpush2.bf16.msra.mxu1 %v3527_v56  ;;  %v3618_v56 = vld [vmem:[%s4854_s3 + $0x70] ss:$8 sps:$4 sm:$0xff]  }
  0xaa   :  { %1920 = vmatprep.subr.bf16.mxu1 %v3535_v57  ;;  %v3623_v57 = vld [vmem:[%s4854_s3 + $0x64] ss:$8 sps:$4 sm:$0xff]  }
  0xab   :  { %1876 = vmatpush2.bf16.msra.mxu0 %v3518_v58  ;;  %v3590_v58 = vld [vmem:[%s4852_s1 + $0x60] ss:$20 sps:$4 sm:$0xff]  }
  0xac   :  { %1877 = vmatprep.subr.bf16.mxu0 %v3526_v59  ;;  %v3593_v59 = vld [vmem:[%s4852_s1 + $0x178] ss:$20 sps:$4 sm:$0xff]  }
  0xad   :  { %1921 = vmatpush2.bf16.msra.mxu1 %v3533_v60  ;;  %v3621_v60 = vld [vmem:[%s4854_s3 + $0x60] ss:$8 sps:$4 sm:$0xff]  }
  0xae   :  { %1922 = vmatprep.subr.bf16.mxu1 %v3541_v61  ;;  %v3626_v61 = vld [vmem:[%s4854_s3 + $0x54] ss:$8 sps:$4 sm:$0xff]  }
  0xaf   :  { %1878 = vmatpush2.bf16.msra.mxu0 %v3524_v62  ;;  %v3594_v62 = vld [vmem:[%s4852_s1 + $0x38] ss:$20 sps:$4 sm:$0xff]  }
  0xb0   :  { %1879 = vmatprep.subr.bf16.mxu0 %v3532_v63  ;;  %v3624_v63 = vld [vmem:[%s4854_s3 + $0x50] ss:$8 sps:$4 sm:$0xff]  }
  0xb1   :  { %1923 = vmatpush2.bf16.msra.mxu1 %v3539_v0  ;;  %v3629_v0 = vld [vmem:[%s4854_s3 + $0x44] ss:$8 sps:$4 sm:$0xff]  }
  0xb2   :  { %1924 = vmatprep.subr.bf16.mxu1 %v3547_v1  ;;  %v3598_v1 = vld [vmem:[%s4852_s1 + $0x10] ss:$20 sps:$4 sm:$0xff]  }
  0xb3   :  { %1880 = vmatpush2.bf16.msra.mxu0 %v3530_v2  ;;  %v3601_v2 = vld [vmem:[%s4852_s1 + $0x768] ss:$20 sps:$4 sm:$0xff]  }
  0xb4   :  { %1881 = vmatprep.subr.bf16.mxu0 %v3538_v3  ;;  %v3627_v3 = vld [vmem:[%s4854_s3 + $0x40] ss:$8 sps:$4 sm:$0xff]  }
  0xb5   :  { %1925 = vmatpush2.bf16.msra.mxu1 %v3545_v4  ;;  %v3632_v4 = vld [vmem:[%s4854_s3 + $0x34] ss:$8 sps:$4 sm:$0xff]  }
  0xb6   :  { %1926 = vmatprep.subr.bf16.mxu1 %v3553_v6  ;;  %v3602_v6 = vld [vmem:[%s4852_s1 + $0x628] ss:$20 sps:$4 sm:$0xff]  }
  0xb7   :  { %1882 = vmatpush2.bf16.msra.mxu0 %v3536_v7  ;;  %v3603_v7 = vld [vmem:[%s4852_s1 + $0x740] ss:$20 sps:$4 sm:$0xff]  }
  0xb8   :  { %1883 = vmatprep.subr.bf16.mxu0 %v3544_v9  ;;  %v3630_v9 = vld [vmem:[%s4854_s3 + $0x30] ss:$8 sps:$4 sm:$0xff]  }
  0xb9   :  { %1927 = vmatpush2.bf16.msra.mxu1 %v3551_v10  ;;  %v3635_v10 = vld [vmem:[%s4854_s3 + $0x24] ss:$8 sps:$4 sm:$0xff]  }
  0xba   :  { %1928 = vmatprep.subr.bf16.mxu1 %v3559_v11  ;;  %v3604_v11 = vld [vmem:[%s4852_s1 + $0x600] ss:$20 sps:$4 sm:$0xff]  }
  0xbb   :  { %1884 = vmatpush2.bf16.msra.mxu0 %v3542_v12  ;;  %v327_v12 = vlaneseq }
  0xbc   :  { %1885 = vmatprep.subr.bf16.mxu0 %v3550_v14  ;;  %v3605_v14 = vld [vmem:[%s4852_s1 + $0x718] ss:$20 sps:$4 sm:$0xff]  }
  0xbd   :  { %1929 = vmatpush2.bf16.msra.mxu1 %v3557_v15  ;;  %v3638_v15 = vld [vmem:[%s4854_s3 + $0x14] ss:$8 sps:$4 sm:$0xff]  }
  0xbe   :  { %1930 = vmatprep.subr.bf16.mxu1 %v3565_v16  ;;  %v4571_v16 = vshrl.u32 %v327_v12, 7  ;;  %v3678_v12 = vld [vmem:[%s4854_s3 + $0x130] ss:$8 sps:$4 sm:$0xff]  }
  0xbf   :  { %1886 = vmatpush2.bf16.msra.mxu0 %v3548_v17  ;;  %v3607_v17 = vld [vmem:[%s4852_s1 + $0x6f0] ss:$20 sps:$4 sm:$0xff]  }
  0xc0   :  { %1887 = vmatprep.subr.bf16.mxu0 %v3556_v18  ;;  %v3636_v18 = vld [vmem:[%s4854_s3 + $0x10] ss:$8 sps:$4 sm:$0xff]  }
  0xc1   :  { %1931 = vmatpush2.bf16.msra.mxu1 %v3563_v21  ;;  %v3641_v21 = vld [vmem:[%s4854_s3 + $0x4] ss:$8 sps:$4 sm:$0xff]  }
  0xc2   :  { %3213 = vmatprep.subr.bf16.mxu1 %v3571_v22  ;;  %v3608_v22 = vld [vmem:[%s4852_s1 + $0x5b0] ss:$20 sps:$4 sm:$0xff]  }
  0xc3   :  { %1888 = vmatpush2.bf16.msra.mxu0 %v3554_v23  ;;  %v329_v23 = vsub.s32 0, %v4571_v16 }
  0xc4   :  { %1889 = vmatprep.subr.bf16.mxu0 %v3562_v24  ;;  %1933 = vmatmul.mubr.bf16.vlgmr.msra.gmra.mxu1 %v4193_v13  ;;  %v3609_v24 = vld [vmem:[%s4852_s1 + $0x6c8] ss:$20 sps:$4 sm:$0xff]  }
  0xc5   :  { %3214 = vmatpush3.bf16.msra.mxu1 %v3572_v25  ;;  %2054 = vmatprep.mubr.bf16.mxu1 %v3931_v52  ;;  %v3584_v52 = vld [vmem:[%s4852_s1 + $0x330] ss:$20 sps:$4 sm:$0xff]  }
  0xc6   :  { %3215 = vmatprep.subr.bf16.mxu1 %v3575_v26  ;;  %v4592_v25 = vld [vmem:[%s4855_s2] sm:$0x1f]  ;;  %v333_v26 = vsub.s32 1, %v4571_v16 }
  0xc7   :  { %1890 = vmatpush2.bf16.msra.mxu0 %v3560_v27  ;;  %v3639_v27 = vld [vmem:[%s4854_s3] ss:$8 sps:$4 sm:$0xff]  }
  0xc8   :  { %1955 = vmatprep.subr.bf16.mxu0 %v3568_v28  ;;  %v3644_v28 = vld [vmem:[%s4854_s3 + $0xf4] ss:$8 sps:$4 sm:$0xff]  }
  0xc9   :  { %3216 = vmatpush3.bf16.msra.mxu1 %v3576_v30  ;;  %v330_v30 = vrot.slane %v4592_v25, %v329_v23 }
  0xca   :  { %1892 = vmatmul.mubr.bf16.vlgmr.msra.gmra.mxu0 %v3990_v8  ;;  %3217 = vmatprep.subr.bf16.mxu1 %v3579_v33  ;;  %v334_v33 = vrot.slane %v4592_v25, %v333_v26 }
  0xcb   :  { %1956 = vmatpush1.bf16.msra.mxu0 %v3566_v29  ;;  %1973 = vmatprep.mubr.bf16.mxu0 %v3732_v19  ;;  %v3610_v29 = vld [vmem:[%s4852_s1 + $0x588] ss:$20 sps:$4 sm:$0xff]  }
  0xcc   :  { %3191 = vmatprep.subr.bf16.mxu0 %v3569_v32  ;;  %v3611_v32 = vld [vmem:[%s4852_s1 + $0x6a0] ss:$20 sps:$4 sm:$0xff]  }
  0xcd   :  { %3218 = vmatpush3.bf16.msra.mxu1 %v3580_v34  ;;  %v3642_v34 = vld [vmem:[%s4854_s3 + $0xf0] ss:$8 sps:$4 sm:$0xff]  }
  0xce   :  { %3219 = vmatprep.subr.bf16.mxu1 %v3583_v35 }
  0xd1   :  { %3220 = vmatpush3.bf16.msra.mxu1 %v3584_v52  ;;  %v3647_v52 = vld [vmem:[%s4854_s3 + $0xe4] ss:$8 sps:$4 sm:$0xff]  }
  0xd2   :  { %3107 = vmatmul.mubr.msk.bf16.vlgmr.msra.gmra.mxu0 %vm1650_vm0, %v4215_v20  ;;  %3221 = vmatprep.subr.bf16.mxu1 %v3587_v37  ;;  %v3612_v37 = vld [vmem:[%s4852_s1 + $0x560] ss:$20 sps:$4 sm:$0xff]  }
  0xd3   :  { %3192 = vmatpush3.bf16.msra.mxu0 %v3570_v36  ;;  %2014 = vmatprep.mubr.bf16.mxu0 %v3919_v48  ;;  %v3578_v48 = vld [vmem:[%s4852_s1 + $0xd8] ss:$20 sps:$4 sm:$0xff]  }
  0xd4   :  { %3193 = vmatprep.subr.bf16.mxu0 %v3573_v38 }
  0xd5   :  { %3222 = vmatpush3.bf16.msra.mxu1 %v3588_v39 }
  0xd6   :  { %3223 = vmatprep.subr.bf16.mxu1 %v3591_v41 }
  0xd7   :  { %3194 = vmatpush3.bf16.msra.mxu0 %v3574_v40  ;;  %v3613_v40 = vld [vmem:[%s4852_s1 + $0x678] ss:$20 sps:$4 sm:$0xff]  }
  0xd8   :  { %3195 = vmatprep.subr.bf16.mxu0 %v3577_v42 }
  0xd9   :  { %3224 = vmatpush3.bf16.msra.mxu1 %v3592_v43  ;;  %v3645_v43 = vld [vmem:[%s4854_s3 + $0xe0] ss:$8 sps:$4 sm:$0xff]  }
  0xda   :  { %3225 = vmatprep.subr.bf16.mxu1 %v3595_v44 }
  0xdb   :  { %3196 = vmatpush3.bf16.msra.mxu0 %v3578_v48 }
  0xdc   :  { %3197 = vmatprep.subr.bf16.mxu0 %v3581_v45  ;;  %v3650_v45 = vld [vmem:[%s4854_s3 + $0xd4] ss:$8 sps:$4 sm:$0xff]  }
  0xdd   :  { %3226 = vmatpush3.bf16.msra.mxu1 %v3596_v46 }
  0xde   :  { %3227 = vmatprep.subr.bf16.mxu1 %v3599_v47  ;;  %v3614_v47 = vld [vmem:[%s4852_s1 + $0x538] ss:$20 sps:$4 sm:$0xff]  }
  0xdf   :  { %3198 = vmatpush3.bf16.msra.mxu0 %v3582_v49 }
  0xe0   :  { %3199 = vmatprep.subr.bf16.mxu0 %v3585_v50  ;;  %v3615_v50 = vld [vmem:[%s4852_s1 + $0x650] ss:$20 sps:$4 sm:$0xff]  }
  0xe1   :  { %3228 = vmatpush3.bf16.msra.mxu1 %v3600_v51 }
  0xe2   :  { %2565 = vmatprep.subr.bf16.mxu1 %v3620_v53  ;;  %v3648_v53 = vld [vmem:[%s4854_s3 + $0xd0] ss:$8 sps:$4 sm:$0xff]  }
  0xe3   :  { %3200 = vmatpush3.bf16.msra.mxu0 %v3586_v54 }
  0xe4   :  { %3201 = vmatprep.subr.bf16.mxu0 %v3589_v55  ;;  %2055 = vmatmul.mubr.bf16.vlgmr.msra.gmra.mxu1 %v3990_v8  ;;  %v3597_v8 = vld [vmem:[%s4852_s1 + $0x150] ss:$20 sps:$4 sm:$0xff]  }
  0xe5   :  { %2566 = vmatpush1.bf16.msra.mxu1 %v3618_v56  ;;  %v3653_v55 = vld [vmem:[%s4854_s3 + $0xc4] ss:$8 sps:$4 sm:$0xff]  }
  0xe6   :  { %2567 = vmatprep.subr.bf16.mxu1 %v3623_v57  ;;  %v3616_v56 = vld [vmem:[%s4852_s1 + $0x510] ss:$20 sps:$4 sm:$0xff]   ;;  %v3651_v57 = vld [vmem:[%s4854_s3 + $0xc0] ss:$8 sps:$4 sm:$0xff]  }
  0xe7   :  { %3202 = vmatpush3.bf16.msra.mxu0 %v3590_v58  ;;  %v3656_v58 = vld [vmem:[%s4854_s3 + $0xb4] ss:$8 sps:$4 sm:$0xff]  }
  0xe8   :  { %3203 = vmatprep.subr.bf16.mxu0 %v3593_v59  ;;  %v3617_v59 = vld [vmem:[%s4852_s1 + $0x790] ss:$20 sps:$4 sm:$0xff]  }
  0xe9   :  { %2568 = vmatpush1.bf16.msra.mxu1 %v3621_v60  ;;  %v3733_v60 = vmov 0.0  }
  0xea   :  { %2569 = vmatprep.subr.bf16.mxu1 %v3626_v61  ;;  %v3668_v61 = vld [vmem:[%s4854_s3 + $0x174] ss:$8 sps:$4 sm:$0xff]  }
  0xeb   :  { %3204 = vmatpush3.bf16.msra.mxu0 %v3594_v62  ;;  %v3654_v62 = vld [vmem:[%s4854_s3 + $0xb0] ss:$8 sps:$4 sm:$0xff]  }
  0xec   :  { %3205 = vmatprep.subr.bf16.mxu0 %v3597_v8  ;;  %v3659_v8 = vld [vmem:[%s4854_s3 + $0xa4] ss:$8 sps:$4 sm:$0xff]  }
  0xed   :  { %2570 = vmatpush1.bf16.msra.mxu1 %v3624_v63  ;;  %v3657_v63 = vld [vmem:[%s4854_s3 + $0xa0] ss:$8 sps:$4 sm:$0xff]  }
  0xee   :  { %2571 = vmatprep.subr.bf16.mxu1 %v3629_v0  ;;  %v3662_v0 = vld [vmem:[%s4854_s3 + $0x94] ss:$8 sps:$4 sm:$0xff]  }
  0xef   :  { %3206 = vmatpush3.bf16.msra.mxu0 %v3598_v1  ;;  %v3671_v1 = vld [vmem:[%s4854_s3 + $0x164] ss:$8 sps:$4 sm:$0xff]  }
  0xf0   :  { %3235 = vmatprep.subr.bf16.mxu0 %v3601_v2  ;;  %v3660_v2 = vld [vmem:[%s4854_s3 + $0x90] ss:$8 sps:$4 sm:$0xff]  }
  0xf1   :  { %2572 = vmatpush1.bf16.msra.mxu1 %v3627_v3  ;;  %v3665_v3 = vld [vmem:[%s4854_s3 + $0x84] ss:$8 sps:$4 sm:$0xff]  }
  0xf2   :  { %2015 = vmatmul.mubr.bf16.vlgmr.msra.gmra.mxu0 %v3982_v5  ;;  %2573 = vmatprep.subr.bf16.mxu1 %v3632_v4  ;;  %v3633_v5 = vld [vmem:[%s4854_s3 + $0x20] ss:$8 sps:$4 sm:$0xff]  }
  0xf3   :  { %3236 = vmatpush3.bf16.msra.mxu0 %v3602_v6  ;;  %2094 = vmatprep.mubr.bf16.mxu0 %v4065_v31  ;;  %v3606_v31 = vld [vmem:[%s4852_s1 + $0x5d8] ss:$20 sps:$4 sm:$0xff]   ;;  %v3669_v4 = vld [vmem:[%s4854_s3 + $0x160] ss:$8 sps:$4 sm:$0xff]   ;;  %v3674_v6 = vld [vmem:[%s4854_s3 + $0x154] ss:$8 sps:$4 sm:$0xff]  }
  0xf4   :  { %3237 = vmatprep.subr.bf16.mxu0 %v3603_v7  ;;  %v3672_v7 = vld [vmem:[%s4854_s3 + $0x150] ss:$8 sps:$4 sm:$0xff]  }
  0xf5   :  { %2574 = vmatpush1.bf16.msra.mxu1 %v3630_v9  ;;  %v3677_v9 = vld [vmem:[%s4854_s3 + $0x144] ss:$8 sps:$4 sm:$0xff]  }
  0xf6   :  { %2575 = vmatprep.subr.bf16.mxu1 %v3635_v10  ;;  %v3675_v10 = vld [vmem:[%s4854_s3 + $0x140] ss:$8 sps:$4 sm:$0xff]  }
  0xf7   :  { %3238 = vmatpush3.bf16.msra.mxu0 %v3604_v11  ;;  %v3680_v11 = vld [vmem:[%s4854_s3 + $0x134] ss:$8 sps:$4 sm:$0xff]  }
  0xf8   :  { %3239 = vmatprep.subr.bf16.mxu0 %v3605_v14  ;;  %v3683_v14 = vld [vmem:[%s4854_s3 + $0x124] ss:$8 sps:$4 sm:$0xff]  }
  0xf9   :  { %2576 = vmatpush1.bf16.msra.mxu1 %v3633_v5  ;;  %v3681_v5 = vld [vmem:[%s4854_s3 + $0x120] ss:$8 sps:$4 sm:$0xff]  }
  0xfa   :  { %2577 = vmatprep.subr.bf16.mxu1 %v3638_v15  ;;  %v3686_v15 = vld [vmem:[%s4854_s3 + $0x114] ss:$8 sps:$4 sm:$0xff]  }
  0xfb   :  { %3240 = vmatpush3.bf16.msra.mxu0 %v3606_v31  ;;  %v3684_v31 = vld [vmem:[%s4854_s3 + $0x110] ss:$8 sps:$4 sm:$0xff]  }
  0xfc   :  { %3241 = vmatprep.subr.bf16.mxu0 %v3607_v17  ;;  %v3689_v17 = vld [vmem:[%s4854_s3 + $0x104] ss:$8 sps:$4 sm:$0xff]  }
  0xfd   :  { %2578 = vmatpush1.bf16.msra.mxu1 %v3636_v18  ;;  %v3687_v18 = vld [vmem:[%s4854_s3 + $0x100] ss:$8 sps:$4 sm:$0xff]  }
  0xfe   :  { %2579 = vmatprep.subr.bf16.mxu1 %v3641_v21  ;;  %v3692_v21 = vld [vmem:[%s4854_s3 + $0x1f4] ss:$8 sps:$4 sm:$0xff]  }
  0xff   :  { %3242 = vmatpush3.bf16.msra.mxu0 %v3608_v22  ;;  %v3690_v22 = vld [vmem:[%s4854_s3 + $0x1f0] ss:$8 sps:$4 sm:$0xff]  }
 0x100   :  { %3243 = vmatprep.subr.bf16.mxu0 %v3609_v24  ;;  %v3695_v24 = vld [vmem:[%s4854_s3 + $0x1e4] ss:$8 sps:$4 sm:$0xff]  }
 0x101   :  { %2580 = vmatpush1.bf16.msra.mxu1 %v3639_v27  ;;  %v3693_v27 = vld [vmem:[%s4854_s3 + $0x1e0] ss:$8 sps:$4 sm:$0xff]  }
 0x102   :  { %v1688_v35 = vpop.f32.mrf.mxu0  ;;  %2581 = vmatprep.subr.bf16.mxu1 %v3644_v28  ;;  %v3698_v28 = vld [vmem:[%s4854_s3 + $0x1d4] ss:$8 sps:$4 sm:$0xff]  }
 0x103   :  { %3244 = vmatpush3.bf16.msra.mxu0 %v3610_v29  ;;  %v1689_v36 = vadd.f32 %v1688_v35, %v330_v30  ;;  %v1729_v39 = vpop.f32.mrf.mxu1  ;;  %v3696_v29 = vld [vmem:[%s4854_s3 + $0x1d0] ss:$8 sps:$4 sm:$0xff]   ;;  %v3701_v30 = vld [vmem:[%s4854_s3 + $0x1c4] ss:$8 sps:$4 sm:$0xff]  }
 0x104   :  { %v1690_v38 = vpop.f32.mrf.mxu0  ;;  %3245 = vmatprep.subr.bf16.mxu0 %v3611_v32 }
 0x105   :  { %v1691_v41 = vadd.f32 %v1690_v38, %v334_v33  ;;  %v4625_v42 = vadd.f32 %v1729_v39, %v1689_v36  ;;  %2582 = vmatpush2.bf16.msra.mxu1 %v3642_v34  ;;  %v1731_v48 = vpop.f32.mrf.mxu1  ;;  %v3699_v33 = vld [vmem:[%s4854_s3 + $0x1c0] ss:$8 sps:$4 sm:$0xff]   ;;  %v3702_v38 = vld [vmem:[%s4854_s3 + $0x1b0] ss:$8 sps:$4 sm:$0xff]  }
 0x106   :  { %v1692_v44 = vpop.f32.mrf.mxu0  ;;  %2583 = vmatprep.subr.bf16.mxu1 %v3647_v52  ;;  %v3704_v52 = vld [vmem:[%s4854_s3 + $0x1b4] ss:$8 sps:$4 sm:$0xff]  }
 0x107   :  { %3246 = vmatpush3.bf16.msra.mxu0 %v3612_v37  ;;  %v4633_v46 = vadd.f32 %v1731_v48, %v1691_v41  ;;  %v1733_v51 = vpop.f32.mrf.mxu1  ;;  %v3707_v41 = vld [vmem:[%s4854_s3 + $0x1a4] ss:$8 sps:$4 sm:$0xff]  }
 0x108   :  { %v1693_v49 = vpop.f32.mrf.mxu0  ;;  %3247 = vmatprep.subr.bf16.mxu0 %v3613_v40  ;;  %v3710_v51 = vld [vmem:[%s4854_s3 + $0x194] ss:$8 sps:$4 sm:$0xff]  }
 0x109   :  { %2584 = vmatpush2.bf16.msra.mxu1 %v3645_v43  ;;  %v1734_v54 = vpop.f32.mrf.mxu1  ;;  %v3705_v49 = vld [vmem:[%s4854_s3 + $0x1a0] ss:$8 sps:$4 sm:$0xff]  }
 0x10a   :  { %2585 = vmatprep.subr.bf16.mxu1 %v3650_v45 }
 0x10b   :  { %3248 = vmatpush3.bf16.msra.mxu0 %v3614_v47 }
 0x10c   :  { %3249 = vmatprep.subr.bf16.mxu0 %v3615_v50 }
 0x10d   :  { %2586 = vmatpush2.bf16.msra.mxu1 %v3648_v53 }
 0x10e   :  { %2587 = vmatprep.subr.bf16.mxu1 %v3653_v55 }
 0x10f   :  { %3250 = vmatpush3.bf16.msra.mxu0 %v3616_v56 }
 0x110   :  { %3259 = vmatprep.subr.bf16.mxu0 %v3733_v60 }
 0x111   :  { %2588 = vmatpush2.bf16.msra.mxu1 %v3651_v57  ;;  %v3713_v57 = vld [vmem:[%s4854_s3 + $0x184] ss:$8 sps:$4 sm:$0xff]  }
 0x112   :  { %2095 = vmatmul.mubr.bf16.vlgmr.msra.gmra.mxu0 %v4193_v13  ;;  %2589 = vmatprep.subr.bf16.mxu1 %v3656_v58  ;;  %v3666_v13 = vld [vmem:[%s4854_s3 + $0x170] ss:$8 sps:$4 sm:$0xff]  }
 0x113   :  { %3260 = vmatpush3.bf16.msra.mxu0 %v3617_v59  ;;  %3261 = vmatprep.mubr.msk.bf16.mxu0 %vm3734_vm1, %v3733_v60  ;;  %v3711_v60 = vld [vmem:[%s4854_s3 + $0x180] ss:$8 sps:$4 sm:$0xff]  }
 0x114   :  { %2606 = vmatprep.subr.bf16.mxu0 %v3668_v61  ;;  %v2216_v61 = vld [vmem:[%s4854_s3 + $0x200] sm:$0xff] }
 0x115   :  { %2590 = vmatpush2.bf16.msra.mxu1 %v3654_v62  ;;  %v3174_v62 = vcombine.high %v2216_v61, %v2216_v61 }
 0x116   :  { %2591 = vmatprep.subr.bf16.mxu1 %v3659_v8  ;;  %v3173_v8 = vcombine.low %v2216_v61, %v2216_v61  ;;  %v3717_v61 = vld [vmem:[%s4856_s5 + $0x30] sm:$0xff]  }
 0x119   :  { %2592 = vmatpush2.bf16.msra.mxu1 %v3657_v63  ;;  %v2560_v63 = vsel %vm2558_vm2, %v3173_v8, 0  ;;  %v3719_v8 = vld [vmem:[%s4856_s5 + $0x20] sm:$0xff]  }
 0x11a   :  { %3262 = vmatmul.mubr.msk.bf16.vlgmr.msra.gmra.mxu0 %vm1650_vm0, %v4215_v20  ;;  %2593 = vmatprep.subr.bf16.mxu1 %v3662_v0  ;;  %v3663_v20 = vld [vmem:[%s4854_s3 + $0x80] ss:$8 sps:$4 sm:$0xff]   ;;  %v337_v0 = vsub.s32 2, %v4571_v16 }
 0x11b   :  { %2607 = vmatpush1.bf16.msra.mxu0 %v3666_v13 }
 0x11c   :  { %2608 = vmatprep.subr.bf16.mxu0 %v3671_v1  ;;  %v341_v1 = vsub.s32 3, %v4571_v16 }
 0x11d   :  { %2594 = vmatpush2.bf16.msra.mxu1 %v3660_v2 }
 0x11e   :  { %2595 = vmatprep.subr.bf16.mxu1 %v3665_v3  ;;  %v338_v3 = vrot.slane %v4592_v25, %v337_v0  ;;  %v3721_v0 = vld [vmem:[%s4856_s5 + $0x10] sm:$0xff]  }
 0x11f   :  { %2609 = vmatpush1.bf16.msra.mxu0 %v3669_v4 }
 0x120   :  { %2610 = vmatprep.subr.bf16.mxu0 %v3674_v6  ;;  %v342_v6 = vrot.slane %v4592_v25, %v341_v1  ;;  %v3723_v1 = vld [vmem:[%s4856_s5] sm:$0xff]  }
 0x121   :  { %2596 = vmatpush2.bf16.msra.mxu1 %v3663_v20 }
 0x122   :  { %3175 = vmatprep.subr.msk.bf16.mxu1 %vm2558_vm2, %v3174_v62  ;;  %v3718_v62 = vld [vmem:[%s4856_s5 + $0x28] sm:$0xff]  }
 0x123   :  { %2611 = vmatpush1.bf16.msra.mxu0 %v3672_v7 }
 0x124   :  { %2612 = vmatprep.subr.bf16.mxu0 %v3677_v9 }
 0x127   :  { %2613 = vmatpush1.bf16.msra.mxu0 %v3675_v10 }
 0x128   :  { %2614 = vmatprep.subr.bf16.mxu0 %v3680_v11 }
 0x12b   :  { %2615 = vmatpush1.bf16.msra.mxu0 %v3678_v12 }
 0x12c   :  { %2616 = vmatprep.subr.bf16.mxu0 %v3683_v14 }
 0x12f   :  { %2617 = vmatpush1.bf16.msra.mxu0 %v3681_v5 }
 0x130   :  { %2618 = vmatprep.subr.bf16.mxu0 %v3686_v15 }
 0x133   :  { %2619 = vmatpush1.bf16.msra.mxu0 %v3684_v31 }
 0x134   :  { %2620 = vmatprep.subr.bf16.mxu0 %v3689_v17 }
 0x137   :  { %2621 = vmatpush1.bf16.msra.mxu0 %v3687_v18 }
 0x138   :  { %2622 = vmatprep.subr.bf16.mxu0 %v3692_v21 }
 0x13b   :  { %2623 = vmatpush2.bf16.msra.mxu0 %v3690_v22 }
 0x13c   :  { %2624 = vmatprep.subr.bf16.mxu0 %v3695_v24 }
 0x13f   :  { %2625 = vmatpush2.bf16.msra.mxu0 %v3693_v27 }
 0x140   :  { %2626 = vmatprep.subr.bf16.mxu0 %v3698_v28 }
 0x142   :  { %v1770_v32 = vpop.f32.mrf.mxu0 }
 0x143   :  { %2627 = vmatpush2.bf16.msra.mxu0 %v3696_v29  ;;  %v1771_v43 = vadd.f32 %v1770_v32, %v4625_v42 }
 0x144   :  { %v1772_v34 = vpop.f32.mrf.mxu0  ;;  %v1852_v35 = vpop.f32.mrf.mxu1  ;;  %2628 = vmatprep.subr.bf16.mxu0 %v3701_v30 }
 0x145   :  { %v1773_v45 = vadd.f32 %v1772_v34, %v4633_v46  ;;  %v3708_v46 = vld [vmem:[%s4854_s3 + $0x190] ss:$8 sps:$4 sm:$0xff]   ;;  %v1853_v9 = vadd.f32 %v1852_v35, %v338_v3 }
 0x146   :  { %v1774_v36 = vpop.f32.mrf.mxu0  ;;  %v1854_v37 = vpop.f32.mrf.mxu1 }
 0x147   :  { %2629 = vmatpush2.bf16.msra.mxu0 %v3699_v33  ;;  %v1855_v11 = vadd.f32 %v1854_v37, %v342_v6 }
 0x148   :  { %v1775_v39 = vpop.f32.mrf.mxu0  ;;  %v1856_v40 = vpop.f32.mrf.mxu1  ;;  %2630 = vmatprep.subr.bf16.mxu0 %v3704_v52 }
 0x14a   :  { %v1811_v44 = vpop.f32.mrf.mxu0  ;;  %v1857_v48 = vpop.f32.mrf.mxu1 }
 0x14b   :  { %v1812_v47 = vadd.f32 %v1811_v44, %v1771_v43  ;;  %2631 = vmatpush2.bf16.msra.mxu0 %v3702_v38 }
 0x14c   :  { %v1813_v50 = vpop.f32.mrf.mxu0  ;;  %2632 = vmatprep.subr.bf16.mxu0 %v3707_v41  ;;  %v345_v41 = vsub.s32 4, %v4571_v16 }
 0x14d   :  { %v1814_v53 = vadd.f32 %v1813_v50, %v1773_v45  ;;  %v2142_v54 = vmax.f32 %v1812_v47, 0.0 }
 0x14e   :  { %v1815_v55 = vpop.f32.mrf.mxu0  ;;  %v346_v43 = vrot.slane %v4592_v25, %v345_v41  ;;  %v3716_v25 = vld [vmem:[%s4856_s5 + $0x38] sm:$0xff]  }
 0x14f   :  { %v2143_v42 = vmax.f32 %v1814_v53, 0.0  ;;  %2633 = vmatpush2.bf16.msra.mxu0 %v3705_v49  ;;  %v2147_v59 = vpack.c.bf16 %v2142_v54, %v2142_v54 }
 0x150   :  { %v1816_v56 = vpop.f32.mrf.mxu0  ;;  %2634 = vmatprep.subr.bf16.mxu0 %v3710_v51 }
 0x151   :  { %v2148_v58 = vpack.c.bf16 %v2143_v42, %v2143_v42 }
 0x153   :  { %2597 = vmatprep.mubr.bf16.mxu1 %v2148_v58  ;;  %2635 = vmatpush2.bf16.msra.mxu0 %v3708_v46 }
 0x154   :  { %2598 = vmatmul.mubr.bf16.vlgmr.msra.gmra.mxu1 %v2147_v59  ;;  %2636 = vmatprep.subr.bf16.mxu0 %v3713_v57 }
 0x155   :  { %2679 = vmatprep.mubr.bf16.mxu1 %v3732_v19  ;;  %2662 = vmatpush1.bf16.msra.mxu1 %v2560_v63  ;;  %v3720_v63 = vld [vmem:[%s4856_s5 + $0x18] sm:$0xff]  }
 0x156   :  { %2802 = vmatprep.subr.bf16.mxu1 %v3732_v19 }
 0x157   :  { %2637 = vmatpush2.bf16.msra.mxu0 %v3711_v60 }
 0x184   :  { %v1934_v13 = vpop.f32.mrf.mxu1 }
 0x186   :  { %v1936_v2 = vpop.f32.mrf.mxu1 }
 0x188   :  { %v1938_v4 = vpop.f32.mrf.mxu1 }
 0x189   :  { %v3725_v4 = vld [vmem:[%s4856_s5 + $0x50] sm:$0xff]  }
 0x18a   :  { %v1893_v20 = vpop.f32.mrf.mxu0  ;;  %v1939_v7 = vpop.f32.mrf.mxu1 }
 0x18b   :  { %v1894_v12 = vadd.f32 %v1893_v20, %v1853_v9 }
 0x18c   :  { %v1895_v10 = vpop.f32.mrf.mxu0 }
 0x18d   :  { %v1896_v5 = vadd.f32 %v1895_v10, %v1855_v11  ;;  %v1935_v31 = vadd.f32 %v1934_v13, %v1894_v12  ;;  %v3722_v13 = vld [vmem:[%s4856_s5 + $0x8] sm:$0xff]   ;;  %v3727_v11 = vld [vmem:[%s4856_s5 + $0x40] sm:$0xff]  }
 0x18e   :  { %v1897_v14 = vpop.f32.mrf.mxu0  ;;  %v3726_v10 = vld [vmem:[%s4856_s5 + $0x48] sm:$0xff]   ;;  %v2217_v12 = vld [vmem:[%s4857_s4] sm:$0x3] }
 0x18f   :  { %v1937_v18 = vadd.f32 %v1936_v2, %v1896_v5  ;;  %v3724_v2 = vld [vmem:[%s4856_s5 + $0x58] sm:$0x7f]   ;;  %v2222_v14 = vrot.slane %v2217_v12, %v329_v23  ;;  %v2226_v5 = vrot.slane %v2217_v12, %v333_v26  ;;  %v3177_v26 = vld [vmem:[%s4858_s6] ss:$0 sm:$0xff] }
 0x190   :  { %v1898_v15 = vpop.f32.mrf.mxu0  ;;  %v2800_v3 = vsel %vm2798_vm4, %v3724_v2, 0 }
 0x192   :  { %v1975_v17 = vpop.f32.mrf.mxu0 }
 0x193   :  { %v1976_v21 = vadd.f32 %v1975_v17, %v1935_v31 }
 0x194   :  { %v1977_v22 = vpop.f32.mrf.mxu0 }
 0x195   :  { %v1978_v24 = vadd.f32 %v1977_v22, %v1937_v18  ;;  %v2144_v27 = vmax.f32 %v1976_v21, 0.0 }
 0x196   :  { %v1979_v28 = vpop.f32.mrf.mxu0 }
 0x197   :  { %v2145_v29 = vmax.f32 %v1978_v24, 0.0  ;;  %v2149_v33 = vpack.c.bf16 %v2144_v27, %v2144_v27 }
 0x198   :  { %v1980_v30 = vpop.f32.mrf.mxu0 }
 0x199   :  { %v2150_v32 = vpack.c.bf16 %v2145_v29, %v2145_v29 }
 0x19b   :  { %2638 = vmatprep.mubr.bf16.mxu0 %v2150_v32 }
 0x19c   :  { %2639 = vmatmul.mubr.bf16.vlgmr.msra.gmra.mxu0 %v2149_v33 }
 0x1a4   :  { %v3229_v34 = vpop.f32.mrf.mxu1 }
 0x1a6   :  { %v3230_v35 = vpop.f32.mrf.mxu1 }
 0x1a7   :  { %v3231_v47 = vadd.f32 %v3230_v35, %v3229_v34 }
 0x1a8   :  { %v3232_v52 = vpop.f32.mrf.mxu1 }
 0x1aa   :  { %v3233_v36 = vpop.f32.mrf.mxu1 }
 0x1b2   :  { %v3207_v37 = vpop.f32.mrf.mxu0 }
 0x1b4   :  { %v3208_v38 = vpop.f32.mrf.mxu0 }
 0x1b5   :  { %v3209_v44 = vadd.f32 %v3208_v38, %v3207_v37 }
 0x1b6   :  { %v3210_v39 = vpop.f32.mrf.mxu0 }
 0x1b7   :  { %v2017_v45 = vadd.f32 %v3209_v44, %v346_v43 }
 0x1b8   :  { %v3211_v40 = vpop.f32.mrf.mxu0 }
 0x1b9   :  { %v2057_v53 = vadd.f32 %v3231_v47, %v2017_v45 }
 0x1d2   :  { %v3251_v48 = vpop.f32.mrf.mxu0 }
 0x1d4   :  { %v3252_v49 = vpop.f32.mrf.mxu0 }
 0x1d5   :  { %v3253_v50 = vadd.f32 %v3252_v49, %v3251_v48 }
 0x1d6   :  { %v3254_v51 = vpop.f32.mrf.mxu0 }
 0x1d7   :  { %v2097_v55 = vadd.f32 %v3253_v50, %v2057_v53 }
 0x1d8   :  { %v3255_v54 = vpop.f32.mrf.mxu0 }
 0x1da   :  { %v2136_v42 = vpop.f32.mrf.mxu0 }
 0x1db   :  { %v2137_v46 = vadd.f32 %v2136_v42, %v2097_v55 }
 0x1dc   :  { %v3263_v56 = vpop.f32.mrf.mxu0 }
 0x1dd   :  { %v2146_v57 = vmax.f32 %v2137_v46, 0.0 }
 0x1de   :  { %v2139_v58 = vpop.f32.mrf.mxu0 }
 0x1df   :  { %v2151_v59 = vpack.c.bf16 %v2146_v57, %v2146_v57 }
 0x1e0   :  { %v3264_v60 = vpop.f32.mrf.mxu0 }
 0x1e1   :  { %3176 = vmatmul.mubr.msk.bf16.vlgmr.msra.gmra.mxu1 %vm2554_vm3, %v2151_v59 }
 0x1e2   :  { %2803 = vmatpush1.bf16.msra.mxu1 %v3716_v25 }
 0x1e3   :  { %2804 = vmatprep.subr.bf16.mxu1 %v3732_v19 }
 0x1e6   :  { %2805 = vmatpush1.bf16.msra.mxu1 %v3717_v61 }
 0x1e7   :  { %2806 = vmatprep.subr.bf16.mxu1 %v3732_v19 }
 0x1ea   :  { %2807 = vmatpush1.bf16.msra.mxu1 %v3718_v62 }
 0x1eb   :  { %2808 = vmatprep.subr.bf16.mxu1 %v3732_v19 }
 0x1ee   :  { %2809 = vmatpush1.bf16.msra.mxu1 %v3719_v8 }
 0x1ef   :  { %2810 = vmatprep.subr.bf16.mxu1 %v3732_v19 }
 0x1f2   :  { %2811 = vmatpush1.bf16.msra.mxu1 %v3720_v63 }
 0x1f3   :  { %2812 = vmatprep.subr.bf16.mxu1 %v3732_v19 }
 0x1f6   :  { %2813 = vmatpush1.bf16.msra.mxu1 %v3721_v0 }
 0x1f7   :  { %2814 = vmatprep.subr.bf16.mxu1 %v3732_v19 }
 0x1fa   :  { %2815 = vmatpush1.bf16.msra.mxu1 %v3722_v13 }
 0x1fb   :  { %2816 = vmatprep.subr.bf16.mxu1 %v3732_v19 }
 0x1fe   :  { %2817 = vmatpush1.bf16.msra.mxu1 %v3723_v1 }
 0x1ff   :  { %2826 = vmatprep.subr.bf16.mxu1 %v3732_v19 }
 0x202   :  { %2827 = vmatpush2.bf16.msra.mxu1 %v2800_v3 }
 0x203   :  { %2828 = vmatprep.subr.bf16.mxu1 %v3732_v19 }
 0x206   :  { %2829 = vmatpush2.bf16.msra.mxu1 %v3725_v4 }
 0x207   :  { %2830 = vmatprep.subr.bf16.mxu1 %v3732_v19 }
 0x20a   :  { %2831 = vmatpush2.bf16.msra.mxu1 %v3726_v10 }
 0x20b   :  { %2832 = vmatprep.subr.bf16.mxu1 %v3732_v19 }
 0x20e   :  { %2833 = vmatpush2.bf16.msra.mxu1 %v3727_v11 }
 0x214   :  { %v2599_v6 = vpop.f32.mrf.mxu1 }
 0x215   :  { %v2600_v15 = vadd.f32 %v2599_v6, %v2222_v14 }
 0x216   :  { %v2601_v20 = vpop.f32.mrf.mxu1 }
 0x217   :  { %v2602_v17 = vadd.f32 %v2601_v20, %v2226_v5 }
 0x218   :  { %v2603_v7 = vpop.f32.mrf.mxu1 }
 0x21a   :  { %v2604_v9 = vpop.f32.mrf.mxu1 }
 0x25c   :  { %v2640_v31 = vpop.f32.mrf.mxu0 }
 0x25d   :  { %v2641_v18 = vadd.f32 %v2640_v31, %v2600_v15 }
 0x25e   :  { %v2642_v19 = vpop.f32.mrf.mxu0 }
 0x25f   :  { %v2643_v21 = vadd.f32 %v2642_v19, %v2602_v17 }
 0x260   :  { %v2644_v22 = vpop.f32.mrf.mxu0 }
 0x262   :  { %v2645_v24 = vpop.f32.mrf.mxu0 }
 0x2a1   :  { %v2681_v27 = vpop.f32.mrf.mxu1 }
 0x2a2   :  { %v2682_v28 = vadd.f32 %v2681_v27, %v2641_v18 }
 0x2a3   :  { %v2683_v29 = vpop.f32.mrf.mxu1 }
 0x2a4   :  { %v2684_v30 = vadd.f32 %v2683_v29, %v2643_v21  ;;  %v2688_v32 = vmax.f32 %v2682_v28, 0.0 }
 0x2a5   :  { %v2685_v33 = vpop.f32.mrf.mxu1 }
 0x2a6   :  { %v2689_v34 = vmax.f32 %v2684_v30, 0.0  ;;  %v2690_v16 = vpack.c.bf16 %v2688_v32, %v2688_v32 }
 0x2a7   :  { %v2686_v35 = vpop.f32.mrf.mxu1 }
 0x2a8   :  { %v2691_v23 = vpack.c.bf16 %v2689_v34, %v2689_v34 }
 0x2aa   :  { %3190 = vmatprep.mubr.msk.bf16.mxu1 %vm2794_vm5, %v2691_v23 }
 0x2ab   :  { %2835 = vmatmul.mubr.bf16.vlgmr.msra.gmra.mxu1 %v2690_v16 }
 0x36b   :  { %v2836_v52 = vpop.f32.mrf.mxu1 }
 0x36c   :  { %v2837_v36 = vadd.f32 %v3177_v26, %v2836_v52 }
 0x36d   :  { %v2838_v37 = vpop.f32.mrf.mxu1 }
 0x36e   :  { %v2842_v38 = vsub.f32 0.0, %v2837_v36 }
 0x36f   :  { %v2839_v39 = vpop.f32.mrf.mxu1 }
 0x370   :  { %v2843_v40 = vmul.f32 1.442695, %v2842_v38 }
 0x371   :  { %v2840_v41 = vpop.f32.mrf.mxu1 }
 0x372   :  { %3728 = vpow2.f32 %v2843_v40 }
 0x37f   :  { %v3729_v43 = vpop.eup %3728 }
 0x380   :  { %v2845_v44 = vadd.f32 1.0, %v3729_v43 }
 0x382   :  { %3730 = vrcp.f32 %v2845_v44 }
 0x38f   :  { %v3731_v48 = vpop.eup %3730 }
 0x390   :  { %2849 = vst.msk [vmem:[%s4859_s7] sm:$0xff] %vm2848_vm6, %v3731_v48 }

</bundles_post_ra>
